<compile_context>
chip_gen: v5e
topology: v5e:2x2
jax: 0.10.0
libtpu: 0.0.40
codegen_flags: <defaults>
</compile_context>

<pallas_src>
import math

import jax
import jax.numpy as jnp
from jax.experimental import pallas as pl
from jax.experimental.pallas import tpu as pltpu

LANE = 128                      # vreg lane width  -> channel padding
SUB = 8                         # vreg sublane width -> output-W padding
VMEM_LIMIT = 32 * 1024 * 1024   # explicit scoped-VMEM budget (safe on v5e/v6e/v7x)


# ----------------------------------------------------------------------------
# Small layout helpers (wrapper side, plain XLA ops — no memory blow-up)
# ----------------------------------------------------------------------------
def _round_up(x, m):
    return (x + m - 1) // m * m


def _pad_axis(x, axis, target):
    cur = x.shape[axis]
    if cur >= target:
        return x
    pads = [(0, 0)] * x.ndim
    pads[axis] = (0, target - cur)
    return jnp.pad(x, pads)


def _pad_hw(x, ht, wt):
    """Zero-pad (N, H, W, C) on the high side of H/W to (ht, wt), crop if larger."""
    x = _pad_axis(x, 1, ht)
    x = _pad_axis(x, 2, wt)
    return x[:, :ht, :wt, :]


def _phase_stack(x, *, k, stride, pad, Ho, Wo_pad):
    """Spatially pad and split into stride*stride phases so every conv tap becomes a
    unit-stride static slice inside the kernel (no HBM im2col).  Returns
    (N*P, Hq, Wq, C) plus (P, Hq, Wq)."""
    N, _, _, C = x.shape
    if pad > 0:
        x = jnp.pad(x, ((0, 0), (pad, pad), (pad, pad), (0, 0)))
    off = (k - 1) // stride
    Hq, Wq = Ho + off, Wo_pad + off
    if stride == 1:
        return _pad_hw(x, Hq, Wq), 1, Hq, Wq
    phases = [
        _pad_hw(x[:, ph::stride, pw::stride, :], Hq, Wq)
        for ph in range(stride) for pw in range(stride)
    ]
    P = stride * stride
    xph = jnp.stack(phases, axis=1)                      # (N, P, Hq, Wq, C)
    return xph.reshape(N * P, Hq, Wq, C), P, Hq, Wq


# ----------------------------------------------------------------------------
# Fused conv kernel
# ----------------------------------------------------------------------------
def _make_conv_kernel(*, k, stride, Ho, Wo_pad, relu, has_ds, has_head):
    M = Ho * Wo_pad

    def kernel(*refs):
        it = iter(refs)
        x_ref = next(it)            # (P, Hq, Wq, Cin_p)       bf16
        w_ref = next(it)            # (k*k, Cin_p, Cout_p)     bf16
        sc_ref = next(it)           # (1, Cout_p)              f32  folded-BN scale
        bi_ref = next(it)           # (1, Cout_p)              f32  folded-BN bias
        if has_ds:
            xds_ref = next(it)      # (1, M, Cds_p)            bf16 strided residual source
            wds_ref = next(it)      # (Cds_p, Cout_p)          bf16 1x1 downsample weight
            dsc_ref = next(it)      # (1, Cout_p)              f32
            dbi_ref = next(it)      # (1, Cout_p)              f32
        if has_head:
            pw_ref = next(it)       # (M, 1)                   f32  pooling weights (mask/HW)
            wl_ref = next(it)       # (Cout_p, Dout_p)         f32
            bl_ref = next(it)       # (1, Dout_p)              f32
        out_ref = next(it)

        cout_p = w_ref.shape[-1]
        acc = jnp.zeros((M, cout_p), jnp.float32)

        # Unrolled tap loop: k*k shifted unit-stride windows of the VMEM-resident
        # input block; each is a (M, Cin_p) @ (Cin_p, Cout_p) bf16 MXU matmul
        # into the f32 accumulator.  (Equivalent to a tap grid axis, but the whole
        # per-image block is already resident, so an internal static loop avoids
        # 9x grid-step overhead and any per-tap re-DMA.)
        t = 0
        for kh in range(k):
            for kw in range(k):
                ph = (kh % stride) * stride + (kw % stride)   # phase index
                ho, wo = kh // stride, kw // stride           # in-phase offsets
                xt = x_ref[ph, ho:ho + Ho, wo:wo + Wo_pad, :]  # (Ho, Wo_pad, Cin_p)
                xt = xt.reshape(M, xt.shape[-1])               # free: Wo_pad % 8 == 0
                acc = acc + jnp.dot(xt, w_ref[t],
                                    preferred_element_type=jnp.float32)
                t += 1

        acc = acc * sc_ref[...] + bi_ref[...]                  # folded BatchNorm

        if has_ds:
            # Fused 1x1/stride-2 downsample + BN residual branch (one extra dot;
            # no separate pallas_call, no HBM round trip).  Residual is added
            # after BN with no trailing ReLU, as in ConvBlocks.forward.
            dsv = jnp.dot(xds_ref[0], wds_ref[...],
                          preferred_element_type=jnp.float32)
            acc = acc + (dsv * dsc_ref[...] + dbi_ref[...])

        if relu:
            acc = jnp.maximum(acc, 0.0)

        if has_head:
            # Fused AdaptiveAvgPool2d((1,1)) + Linear.  pw_ref carries
            # 1/(Ho*Wo) on valid output columns and 0 on the W-padding columns.
            pooled = jnp.sum(acc * pw_ref[...], axis=0, keepdims=True)   # (1, Cout_p)
            logits = jnp.dot(pooled, wl_ref[...],
                             preferred_element_type=jnp.float32) + bl_ref[...]
            out_ref[0] = jnp.broadcast_to(logits, out_ref.shape[1:])
        else:
            out_ref[0] = acc.astype(out_ref.dtype)

    return kernel


# ----------------------------------------------------------------------------
# Wrapper: one pallas_call per Conv+BN(+downsample residual)(+ReLU)(+pool+linear)
# ----------------------------------------------------------------------------
def conv_bn(x, w_oihw, bn, *, stride, pad, relu, ds=None, head=None):
    """x: (N, H, W, Cin_p) bf16 activation, channels already lane-padded.
       w_oihw: (Cout, Cin, k, k) f32.  bn: (scale, bias) folded BatchNorm.
       ds:   optional (x_src, w_ds_oihw, bn_ds) fused 1x1 stride-2 residual branch.
       head: optional (w_lin (Cin_lin, Dout), b_lin (Dout,)) fused avg-pool+linear."""
    N, H, W, Cin_p = x.shape
    Cout, Cin, k, _ = w_oihw.shape
    Ho = (H + 2 * pad - k) // stride + 1
    Wo = (W + 2 * pad - k) // stride + 1
    Wo_pad = _round_up(Wo, SUB)
    M = Ho * Wo_pad
    Cout_p = _round_up(Cout, LANE)
    T = k * k

    # -- main-branch operands -------------------------------------------------
    xph, P, Hq, Wq = _phase_stack(x, k=k, stride=stride, pad=pad, Ho=Ho, Wo_pad=Wo_pad)
    xph = xph.astype(jnp.bfloat16)

    wt = jnp.transpose(w_oihw, (2, 3, 1, 0))                  # (kh, kw, Cin, Cout)
    wt = jnp.pad(wt, ((0, 0), (0, 0), (0, Cin_p - Cin), (0, Cout_p - Cout)))
    wt = wt.reshape(T, Cin_p, Cout_p).astype(jnp.bfloat16)

    scale, bias = bn
    sc = jnp.pad(scale, (0, Cout_p - Cout)).reshape(1, Cout_p).astype(jnp.float32)
    bi = jnp.pad(bias, (0, Cout_p - Cout)).reshape(1, Cout_p).astype(jnp.float32)

    args = [xph, wt, sc, bi]
    in_specs = [
        pl.BlockSpec((P, Hq, Wq, Cin_p), lambda n: (n, 0, 0, 0)),
        pl.BlockSpec((T, Cin_p, Cout_p), lambda n: (0, 0, 0)),
        pl.BlockSpec((1, Cout_p), lambda n: (0, 0)),
        pl.BlockSpec((1, Cout_p), lambda n: (0, 0)),
    ]
    flops = 2 * N * M * Cin_p * Cout_p * T

    # -- fused 1x1 stride-2 downsample residual -------------------------------
    if ds is not None:
        x_src, w_ds, bn_ds = ds
        Cds_p = x_src.shape[-1]
        Cds = w_ds.shape[1]
        x_s = x_src[:, ::2, ::2, :]                           # 1x1, stride 2, pad 0
        x_s = _pad_hw(x_s, Ho, Wo_pad).reshape(N, M, Cds_p).astype(jnp.bfloat16)
        wds = jnp.transpose(w_ds[:, :, 0, 0], (1, 0))         # (Cin, Cout)
        wds = jnp.pad(wds, ((0, Cds_p - Cds), (0, Cout_p - Cout))).astype(jnp.bfloat16)
        ds_scale, ds_bias = bn_ds
        dsc = jnp.pad(ds_scale, (0, Cout_p - Cout)).reshape(1, Cout_p).astype(jnp.float32)
        dbi = jnp.pad(ds_bias, (0, Cout_p - Cout)).reshape(1, Cout_p).astype(jnp.float32)
        args += [x_s, wds, dsc, dbi]
        in_specs += [
            pl.BlockSpec((1, M, Cds_p), lambda n: (n, 0, 0)),
            pl.BlockSpec((Cds_p, Cout_p), lambda n: (0, 0)),
            pl.BlockSpec((1, Cout_p), lambda n: (0, 0)),
            pl.BlockSpec((1, Cout_p), lambda n: (0, 0)),
        ]
        flops += 2 * N * M * Cds_p * Cout_p

    # -- fused average-pool + linear head --------------------------------------
    if head is not None:
        w_lin, b_lin = head                                   # (Cin_lin, Dout), (Dout,)
        Dout = w_lin.shape[1]
        Dout_p = _round_up(Dout, LANE)
        valid = jnp.where(jnp.arange(Wo_pad) < Wo, 1.0 / (Ho * Wo), 0.0)
        pool_w = jnp.tile(valid, (Ho,)).reshape(M, 1).astype(jnp.float32)
        wl = jnp.pad(w_lin, ((0, Cout_p - w_lin.shape[0]),
                             (0, Dout_p - Dout))).astype(jnp.float32)
        bl = jnp.pad(b_lin, (0, Dout_p - Dout)).reshape(1, Dout_p).astype(jnp.float32)
        args += [pool_w, wl, bl]
        in_specs += [
            pl.BlockSpec((M, 1), lambda n: (0, 0)),
            pl.BlockSpec((Cout_p, Dout_p), lambda n: (0, 0)),
            pl.BlockSpec((1, Dout_p), lambda n: (0, 0)),
        ]
        out_shape = jax.ShapeDtypeStruct((N, SUB, Dout_p), jnp.float32)
        out_specs = pl.BlockSpec((1, SUB, Dout_p), lambda n: (n, 0, 0))
        flops += N * (M * Cout_p + 2 * Cout_p * Dout_p)
    else:
        out_shape = jax.ShapeDtypeStruct((N, M, Cout_p), jnp.bfloat16)
        out_specs = pl.BlockSpec((1, M, Cout_p), lambda n: (n, 0, 0))

    bytes_accessed = sum(int(a.size) * a.dtype.itemsize for a in args)
    bytes_accessed += math.prod(out_shape.shape) * jnp.dtype(out_shape.dtype).itemsize

    kernel = _make_conv_kernel(k=k, stride=stride, Ho=Ho, Wo_pad=Wo_pad,
                               relu=relu, has_ds=ds is not None,
                               has_head=head is not None)

    out = pl.pallas_call(
        kernel,
        out_shape=out_shape,
        grid=(N,),
        in_specs=in_specs,
        out_specs=out_specs,
        compiler_params=pltpu.CompilerParams(
            dimension_semantics=("parallel",),   # v7x: shard images across the 2 TCs
            vmem_limit_bytes=VMEM_LIMIT),
        cost_estimate=pl.CostEstimate(flops=int(flops), transcendentals=0,
                                      bytes_accessed=int(bytes_accessed)),
    )(*args)

    if head is not None:
        return out[:, 0, :]                                   # (N, Dout_p) f32
    out = out.reshape(N, Ho, Wo_pad, Cout_p)
    if Wo_pad != Wo:
        out = out[:, :, :Wo, :]                               # drop padded W columns
    return out


# ----------------------------------------------------------------------------
# Parameters (deterministic synthetic init; BN in eval mode, folded)
# ----------------------------------------------------------------------------
def _fold_bn(gamma, beta, mean, var, eps=1e-5):
    scale = gamma * jax.lax.rsqrt(var + eps)
    bias = beta - mean * scale
    return scale, bias


def _conv_w(key, cout, cin, k):
    fan_in = cin * k * k
    return jax.random.normal(key, (cout, cin, k, k), jnp.float32) / jnp.sqrt(fan_in)


def _bn_params(key, c):
    k1, k2, k3, k4 = jax.random.split(key, 4)
    gamma = jax.random.uniform(k1, (c,), jnp.float32, 0.5, 1.5)
    beta = jax.random.normal(k2, (c,), jnp.float32) * 0.1
    mean = jax.random.normal(k3, (c,), jnp.float32) * 0.1
    var = jax.random.uniform(k4, (c,), jnp.float32, 0.5, 1.5)
    return _fold_bn(gamma, beta, mean, var)


def init_params(key, input_dim, h1, h2, output_dim):
    keys = jax.random.split(key, 24)
    p = {}
    p["b1_c1_w"] = _conv_w(keys[0], h1, input_dim, 3); p["b1_bn1"] = _bn_params(keys[1], h1)
    p["b1_c2_w"] = _conv_w(keys[2], h1, h1, 3);        p["b1_bn2"] = _bn_params(keys[3], h1)
    p["ds1_w"] = _conv_w(keys[4], h1, input_dim, 1);   p["ds1_bn"] = _bn_params(keys[5], h1)
    p["b2_c1_w"] = _conv_w(keys[6], h1, h1, 3);        p["b2_bn1"] = _bn_params(keys[7], h1)
    p["b2_c2_w"] = _conv_w(keys[8], h1, h1, 3);        p["b2_bn2"] = _bn_params(keys[9], h1)
    p["b3_c1_w"] = _conv_w(keys[10], h2, h1, 3);       p["b3_bn1"] = _bn_params(keys[11], h2)
    p["b3_c2_w"] = _conv_w(keys[12], h2, h2, 3);       p["b3_bn2"] = _bn_params(keys[13], h2)
    p["ds2_w"] = _conv_w(keys[14], h2, h1, 1);         p["ds2_bn"] = _bn_params(keys[15], h2)
    p["b4_c1_w"] = _conv_w(keys[16], h2, h2, 3);       p["b4_bn1"] = _bn_params(keys[17], h2)
    p["b4_c2_w"] = _conv_w(keys[18], h2, h2, 3);       p["b4_bn2"] = _bn_params(keys[19], h2)
    p["lin_w"] = (jax.random.normal(keys[20], (output_dim, h2), jnp.float32)
                  / jnp.sqrt(h2)).T                    # stored as (h2, output_dim)
    p["lin_b"] = jax.random.normal(keys[21], (output_dim,), jnp.float32) * 0.1
    return p


# ----------------------------------------------------------------------------
# Forward pass (mirrors ConvBlocks.forward with is_downsample=True)
# ----------------------------------------------------------------------------
def conv_blocks_forward(x_nchw, p):
    x = jnp.transpose(x_nchw, (0, 2, 3, 1)).astype(jnp.float32)      # NCHW -> NHWC
    x = _pad_axis(x, 3, _round_up(x.shape[3], LANE)).astype(jnp.bfloat16)

    # basic_block1 (+ fused downsample1 residual, added after BN, no ReLU)
    y = conv_bn(x, p["b1_c1_w"], p["b1_bn1"], stride=2, pad=1, relu=True)
    out = conv_bn(y, p["b1_c2_w"], p["b1_bn2"], stride=1, pad=1, relu=False,
                  ds=(x, p["ds1_w"], p["ds1_bn"]))
    # basic_block2 (no residual in the reference forward)
    y = conv_bn(out, p["b2_c1_w"], p["b2_bn1"], stride=1, pad=1, relu=True)
    out = conv_bn(y, p["b2_c2_w"], p["b2_bn2"], stride=1, pad=1, relu=False)
    # basic_block3 (+ fused downsample2 residual, fed by basic_block2 output)
    y = conv_bn(out, p["b3_c1_w"], p["b3_bn1"], stride=2, pad=1, relu=True)
    out2 = conv_bn(y, p["b3_c2_w"], p["b3_bn2"], stride=1, pad=1, relu=False,
                   ds=(out, p["ds2_w"], p["ds2_bn"]))
    # basic_block4; last conv fused with AdaptiveAvgPool2d((1,1)) + Linear
    y = conv_bn(out2, p["b4_c1_w"], p["b4_bn1"], stride=1, pad=1, relu=True)
    logits = conv_bn(y, p["b4_c2_w"], p["b4_bn2"], stride=1, pad=1, relu=False,
                     head=(p["lin_w"], p["lin_b"]))
    return logits[:, :p["lin_w"].shape[1]]                            # (N, output_dim)


# ----------------------------------------------------------------------------
if __name__ == "__main__":
    BATCH, INPUT_DIM, H1, H2, OUT_DIM, SPATIAL = 2, 4, 8, 16, 10, 16

    key = jax.random.PRNGKey(0)
    kx, kp = jax.random.split(key)
    x = jax.random.normal(kx, (BATCH, INPUT_DIM, SPATIAL, SPATIAL), jnp.float32)  # NCHW
    params = init_params(kp, INPUT_DIM, H1, H2, OUT_DIM)

    fwd = jax.jit(conv_blocks_forward)
    out = fwd(x, params)
    jax.block_until_ready(out)
    assert out.shape == (BATCH, OUT_DIM), out.shape
    assert bool(jnp.all(jnp.isfinite(out)))
    print("KERNEL_OK")
</pallas_src>

<mosaic_0001>
module attributes {stable_mosaic.version = 11 : i64} {
  func.func @kernel(%arg0: i32, %arg1: memref<4x9x9x128xbf16, #tpu.memory_space<vmem>>, %arg2: memref<9x128x128xbf16, #tpu.memory_space<vmem>>, %arg3: memref<1x128xf32, #tpu.memory_space<vmem>>, %arg4: memref<1x128xf32, #tpu.memory_space<vmem>>, %arg5: memref<1x64x128xbf16, #tpu.memory_space<vmem>>) attributes {dimension_semantics = [#tpu.dimension_semantics<parallel>], iteration_bounds = array<i64: 2>, scalar_prefetch = 0 : i64, scratch_operands = 0 : i64, tpu.core_type = #tpu.core_type<tc>, window_params = [{transform_indices = @transform_0, window_bounds = array<i64: 4, 9, 9, 128>}, {pipeline_mode = #tpu.pipeline_mode<synchronous>, transform_indices = @transform_1, window_bounds = array<i64: 9, 128, 128>}, {pipeline_mode = #tpu.pipeline_mode<synchronous>, transform_indices = @transform_2, window_bounds = array<i64: 1, 128>}, {pipeline_mode = #tpu.pipeline_mode<synchronous>, transform_indices = @transform_3, window_bounds = array<i64: 1, 128>}, {transform_indices = @transform_4, window_bounds = array<i64: 1, 64, 128>}]} {
    %cst = arith.constant 0.000000e+00 : f32
    %0 = vector.broadcast %cst : f32 to vector<64x128xf32>
    %c0 = arith.constant 0 : index
    %c0_0 = arith.constant 0 : index
    %c0_1 = arith.constant 0 : index
    %c0_2 = arith.constant 0 : index
    %1 = vector.load %arg1[%c0, %c0_0, %c0_1, %c0_2] : memref<4x9x9x128xbf16, #tpu.memory_space<vmem>>, vector<1x8x8x128xbf16>
    %2 = vector.shape_cast %1 : vector<1x8x8x128xbf16> to vector<8x8x128xbf16>
    %3 = vector.shape_cast %2 : vector<8x8x128xbf16> to vector<64x128xbf16>
    %c0_3 = arith.constant 0 : index
    %c0_4 = arith.constant 0 : index
    %c0_5 = arith.constant 0 : index
    %4 = vector.load %arg2[%c0_3, %c0_4, %c0_5] : memref<9x128x128xbf16, #tpu.memory_space<vmem>>, vector<1x128x128xbf16>
    %5 = vector.shape_cast %4 : vector<1x128x128xbf16> to vector<128x128xbf16>
    %cst_6 = arith.constant dense<0.000000e+00> : vector<64x128xf32>
    %6 = tpu.matmul %3, %5, %cst_6 {dimension_numbers = #tpu.dot_dimension_numbers<[1], [0], [0], [1], [0, 0, 1, 1], [], []>} : vector<64x128xbf16>, vector<128x128xbf16>, vector<64x128xf32> -> vector<64x128xf32>
    %7 = arith.addf %0, %6 : vector<64x128xf32>
    %c1 = arith.constant 1 : index
    %c0_7 = arith.constant 0 : index
    %c0_8 = arith.constant 0 : index
    %c0_9 = arith.constant 0 : index
    %8 = vector.load %arg1[%c1, %c0_7, %c0_8, %c0_9] : memref<4x9x9x128xbf16, #tpu.memory_space<vmem>>, vector<1x8x8x128xbf16>
    %9 = vector.shape_cast %8 : vector<1x8x8x128xbf16> to vector<8x8x128xbf16>
    %10 = vector.shape_cast %9 : vector<8x8x128xbf16> to vector<64x128xbf16>
    %c1_10 = arith.constant 1 : index
    %c0_11 = arith.constant 0 : index
    %c0_12 = arith.constant 0 : index
    %11 = vector.load %arg2[%c1_10, %c0_11, %c0_12] : memref<9x128x128xbf16, #tpu.memory_space<vmem>>, vector<1x128x128xbf16>
    %12 = vector.shape_cast %11 : vector<1x128x128xbf16> to vector<128x128xbf16>
    %cst_13 = arith.constant dense<0.000000e+00> : vector<64x128xf32>
    %13 = tpu.matmul %10, %12, %cst_13 {dimension_numbers = #tpu.dot_dimension_numbers<[1], [0], [0], [1], [0, 0, 1, 1], [], []>} : vector<64x128xbf16>, vector<128x128xbf16>, vector<64x128xf32> -> vector<64x128xf32>
    %14 = arith.addf %7, %13 : vector<64x128xf32>
    %c0_14 = arith.constant 0 : index
    %c0_15 = arith.constant 0 : index
    %c1_16 = arith.constant 1 : index
    %c0_17 = arith.constant 0 : index
    %15 = vector.load %arg1[%c0_14, %c0_15, %c1_16, %c0_17] : memref<4x9x9x128xbf16, #tpu.memory_space<vmem>>, vector<1x8x8x128xbf16>
    %16 = vector.shape_cast %15 : vector<1x8x8x128xbf16> to vector<8x8x128xbf16>
    %17 = vector.shape_cast %16 : vector<8x8x128xbf16> to vector<64x128xbf16>
    %c2 = arith.constant 2 : index
    %c0_18 = arith.constant 0 : index
    %c0_19 = arith.constant 0 : index
    %18 = vector.load %arg2[%c2, %c0_18, %c0_19] : memref<9x128x128xbf16, #tpu.memory_space<vmem>>, vector<1x128x128xbf16>
    %19 = vector.shape_cast %18 : vector<1x128x128xbf16> to vector<128x128xbf16>
    %cst_20 = arith.constant dense<0.000000e+00> : vector<64x128xf32>
    %20 = tpu.matmul %17, %19, %cst_20 {dimension_numbers = #tpu.dot_dimension_numbers<[1], [0], [0], [1], [0, 0, 1, 1], [], []>} : vector<64x128xbf16>, vector<128x128xbf16>, vector<64x128xf32> -> vector<64x128xf32>
    %21 = arith.addf %14, %20 : vector<64x128xf32>
    %c2_21 = arith.constant 2 : index
    %c0_22 = arith.constant 0 : index
    %c0_23 = arith.constant 0 : index
    %c0_24 = arith.constant 0 : index
    %22 = vector.load %arg1[%c2_21, %c0_22, %c0_23, %c0_24] : memref<4x9x9x128xbf16, #tpu.memory_space<vmem>>, vector<1x8x8x128xbf16>
    %23 = vector.shape_cast %22 : vector<1x8x8x128xbf16> to vector<8x8x128xbf16>
    %24 = vector.shape_cast %23 : vector<8x8x128xbf16> to vector<64x128xbf16>
    %c3 = arith.constant 3 : index
    %c0_25 = arith.constant 0 : index
    %c0_26 = arith.constant 0 : index
    %25 = vector.load %arg2[%c3, %c0_25, %c0_26] : memref<9x128x128xbf16, #tpu.memory_space<vmem>>, vector<1x128x128xbf16>
    %26 = vector.shape_cast %25 : vector<1x128x128xbf16> to vector<128x128xbf16>
    %cst_27 = arith.constant dense<0.000000e+00> : vector<64x128xf32>
    %27 = tpu.matmul %24, %26, %cst_27 {dimension_numbers = #tpu.dot_dimension_numbers<[1], [0], [0], [1], [0, 0, 1, 1], [], []>} : vector<64x128xbf16>, vector<128x128xbf16>, vector<64x128xf32> -> vector<64x128xf32>
    %28 = arith.addf %21, %27 : vector<64x128xf32>
    %c3_28 = arith.constant 3 : index
    %c0_29 = arith.constant 0 : index
    %c0_30 = arith.constant 0 : index
    %c0_31 = arith.constant 0 : index
    %29 = vector.load %arg1[%c3_28, %c0_29, %c0_30, %c0_31] : memref<4x9x9x128xbf16, #tpu.memory_space<vmem>>, vector<1x8x8x128xbf16>
    %30 = vector.shape_cast %29 : vector<1x8x8x128xbf16> to vector<8x8x128xbf16>
    %31 = vector.shape_cast %30 : vector<8x8x128xbf16> to vector<64x128xbf16>
    %c4 = arith.constant 4 : index
    %c0_32 = arith.constant 0 : index
    %c0_33 = arith.constant 0 : index
    %32 = vector.load %arg2[%c4, %c0_32, %c0_33] : memref<9x128x128xbf16, #tpu.memory_space<vmem>>, vector<1x128x128xbf16>
    %33 = vector.shape_cast %32 : vector<1x128x128xbf16> to vector<128x128xbf16>
    %cst_34 = arith.constant dense<0.000000e+00> : vector<64x128xf32>
    %34 = tpu.matmul %31, %33, %cst_34 {dimension_numbers = #tpu.dot_dimension_numbers<[1], [0], [0], [1], [0, 0, 1, 1], [], []>} : vector<64x128xbf16>, vector<128x128xbf16>, vector<64x128xf32> -> vector<64x128xf32>
    %35 = arith.addf %28, %34 : vector<64x128xf32>
    %c2_35 = arith.constant 2 : index
    %c0_36 = arith.constant 0 : index
    %c1_37 = arith.constant 1 : index
    %c0_38 = arith.constant 0 : index
    %36 = vector.load %arg1[%c2_35, %c0_36, %c1_37, %c0_38] : memref<4x9x9x128xbf16, #tpu.memory_space<vmem>>, vector<1x8x8x128xbf16>
    %37 = vector.shape_cast %36 : vector<1x8x8x128xbf16> to vector<8x8x128xbf16>
    %38 = vector.shape_cast %37 : vector<8x8x128xbf16> to vector<64x128xbf16>
    %c5 = arith.constant 5 : index
    %c0_39 = arith.constant 0 : index
    %c0_40 = arith.constant 0 : index
    %39 = vector.load %arg2[%c5, %c0_39, %c0_40] : memref<9x128x128xbf16, #tpu.memory_space<vmem>>, vector<1x128x128xbf16>
    %40 = vector.shape_cast %39 : vector<1x128x128xbf16> to vector<128x128xbf16>
    %cst_41 = arith.constant dense<0.000000e+00> : vector<64x128xf32>
    %41 = tpu.matmul %38, %40, %cst_41 {dimension_numbers = #tpu.dot_dimension_numbers<[1], [0], [0], [1], [0, 0, 1, 1], [], []>} : vector<64x128xbf16>, vector<128x128xbf16>, vector<64x128xf32> -> vector<64x128xf32>
    %42 = arith.addf %35, %41 : vector<64x128xf32>
    %c0_42 = arith.constant 0 : index
    %c1_43 = arith.constant 1 : index
    %c0_44 = arith.constant 0 : index
    %c0_45 = arith.constant 0 : index
    %43 = vector.load %arg1[%c0_42, %c1_43, %c0_44, %c0_45] : memref<4x9x9x128xbf16, #tpu.memory_space<vmem>>, vector<1x8x8x128xbf16>
    %44 = vector.shape_cast %43 : vector<1x8x8x128xbf16> to vector<8x8x128xbf16>
    %45 = vector.shape_cast %44 : vector<8x8x128xbf16> to vector<64x128xbf16>
    %c6 = arith.constant 6 : index
    %c0_46 = arith.constant 0 : index
    %c0_47 = arith.constant 0 : index
    %46 = vector.load %arg2[%c6, %c0_46, %c0_47] : memref<9x128x128xbf16, #tpu.memory_space<vmem>>, vector<1x128x128xbf16>
    %47 = vector.shape_cast %46 : vector<1x128x128xbf16> to vector<128x128xbf16>
    %cst_48 = arith.constant dense<0.000000e+00> : vector<64x128xf32>
    %48 = tpu.matmul %45, %47, %cst_48 {dimension_numbers = #tpu.dot_dimension_numbers<[1], [0], [0], [1], [0, 0, 1, 1], [], []>} : vector<64x128xbf16>, vector<128x128xbf16>, vector<64x128xf32> -> vector<64x128xf32>
    %49 = arith.addf %42, %48 : vector<64x128xf32>
    %c1_49 = arith.constant 1 : index
    %c1_50 = arith.constant 1 : index
    %c0_51 = arith.constant 0 : index
    %c0_52 = arith.constant 0 : index
    %50 = vector.load %arg1[%c1_49, %c1_50, %c0_51, %c0_52] : memref<4x9x9x128xbf16, #tpu.memory_space<vmem>>, vector<1x8x8x128xbf16>
    %51 = vector.shape_cast %50 : vector<1x8x8x128xbf16> to vector<8x8x128xbf16>
    %52 = vector.shape_cast %51 : vector<8x8x128xbf16> to vector<64x128xbf16>
    %c7 = arith.constant 7 : index
    %c0_53 = arith.constant 0 : index
    %c0_54 = arith.constant 0 : index
    %53 = vector.load %arg2[%c7, %c0_53, %c0_54] : memref<9x128x128xbf16, #tpu.memory_space<vmem>>, vector<1x128x128xbf16>
    %54 = vector.shape_cast %53 : vector<1x128x128xbf16> to vector<128x128xbf16>
    %cst_55 = arith.constant dense<0.000000e+00> : vector<64x128xf32>
    %55 = tpu.matmul %52, %54, %cst_55 {dimension_numbers = #tpu.dot_dimension_numbers<[1], [0], [0], [1], [0, 0, 1, 1], [], []>} : vector<64x128xbf16>, vector<128x128xbf16>, vector<64x128xf32> -> vector<64x128xf32>
    %56 = arith.addf %49, %55 : vector<64x128xf32>
    %c0_56 = arith.constant 0 : index
    %c1_57 = arith.constant 1 : index
    %c1_58 = arith.constant 1 : index
    %c0_59 = arith.constant 0 : index
    %57 = vector.load %arg1[%c0_56, %c1_57, %c1_58, %c0_59] : memref<4x9x9x128xbf16, #tpu.memory_space<vmem>>, vector<1x8x8x128xbf16>
    %58 = vector.shape_cast %57 : vector<1x8x8x128xbf16> to vector<8x8x128xbf16>
    %59 = vector.shape_cast %58 : vector<8x8x128xbf16> to vector<64x128xbf16>
    %c8 = arith.constant 8 : index
    %c0_60 = arith.constant 0 : index
    %c0_61 = arith.constant 0 : index
    %60 = vector.load %arg2[%c8, %c0_60, %c0_61] : memref<9x128x128xbf16, #tpu.memory_space<vmem>>, vector<1x128x128xbf16>
    %61 = vector.shape_cast %60 : vector<1x128x128xbf16> to vector<128x128xbf16>
    %cst_62 = arith.constant dense<0.000000e+00> : vector<64x128xf32>
    %62 = tpu.matmul %59, %61, %cst_62 {dimension_numbers = #tpu.dot_dimension_numbers<[1], [0], [0], [1], [0, 0, 1, 1], [], []>} : vector<64x128xbf16>, vector<128x128xbf16>, vector<64x128xf32> -> vector<64x128xf32>
    %63 = arith.addf %56, %62 : vector<64x128xf32>
    %c0_63 = arith.constant 0 : index
    %c0_64 = arith.constant 0 : index
    %64 = vector.load %arg3[%c0_63, %c0_64] : memref<1x128xf32, #tpu.memory_space<vmem>>, vector<1x128xf32>
    %65 = vector.broadcast %64 : vector<1x128xf32> to vector<64x128xf32>
    %66 = arith.mulf %63, %65 : vector<64x128xf32>
    %c0_65 = arith.constant 0 : index
    %c0_66 = arith.constant 0 : index
    %67 = vector.load %arg4[%c0_65, %c0_66] : memref<1x128xf32, #tpu.memory_space<vmem>>, vector<1x128xf32>
    %68 = vector.broadcast %67 : vector<1x128xf32> to vector<64x128xf32>
    %69 = arith.addf %66, %68 : vector<64x128xf32>
    %cst_67 = arith.constant 0.000000e+00 : f32
    %70 = vector.broadcast %cst_67 : f32 to vector<64x128xf32>
    %71 = arith.maximumf %69, %70 : vector<64x128xf32>
    %72 = arith.truncf %71 : vector<64x128xf32> to vector<64x128xbf16>
    %c0_68 = arith.constant 0 : index
    %c0_69 = arith.constant 0 : index
    %c0_70 = arith.constant 0 : index
    %73 = vector.load %arg5[%c0_68, %c0_69, %c0_70] : memref<1x64x128xbf16, #tpu.memory_space<vmem>>, vector<1x64x128xbf16>
    %74 = vector.shape_cast %73 : vector<1x64x128xbf16> to vector<64x128xbf16>
    %75 = vector.shape_cast %72 : vector<64x128xbf16> to vector<1x64x128xbf16>
    tpu.vector_store %arg5[%c0_68, %c0_69, %c0_70], %75 {strides = array<i32>} : memref<1x64x128xbf16, #tpu.memory_space<vmem>>, vector<1x64x128xbf16>,
    return
  }
  func.func @transform_0(%arg0: i32) -> (i32, i32, i32, i32) {
    %c0_i32 = arith.constant 0 : i32
    %c0_i32_0 = arith.constant 0 : i32
    %c0_i32_1 = arith.constant 0 : i32
    %c0_i32_2 = arith.constant 0 : i32
    return %arg0, %c0_i32, %c0_i32_0, %c0_i32_1 : i32, i32, i32, i32
  }
  func.func @transform_1(%arg0: i32) -> (i32, i32, i32) {
    %c0_i32 = arith.constant 0 : i32
    %c0_i32_0 = arith.constant 0 : i32
    %c0_i32_1 = arith.constant 0 : i32
    %c0_i32_2 = arith.constant 0 : i32
    return %c0_i32, %c0_i32_0, %c0_i32_1 : i32, i32, i32
  }
  func.func @transform_2(%arg0: i32) -> (i32, i32) {
    %c0_i32 = arith.constant 0 : i32
    %c0_i32_0 = arith.constant 0 : i32
    %c0_i32_1 = arith.constant 0 : i32
    return %c0_i32, %c0_i32_0 : i32, i32
  }
  func.func @transform_3(%arg0: i32) -> (i32, i32) {
    %c0_i32 = arith.constant 0 : i32
    %c0_i32_0 = arith.constant 0 : i32
    %c0_i32_1 = arith.constant 0 : i32
    return %c0_i32, %c0_i32_0 : i32, i32
  }
  func.func @transform_4(%arg0: i32) -> (i32, i32, i32) {
    %c0_i32 = arith.constant 0 : i32
    %c0_i32_0 = arith.constant 0 : i32
    %c0_i32_1 = arith.constant 0 : i32
    return %arg0, %c0_i32, %c0_i32_0 : i32, i32, i32
  }
}

module attributes {stable_mosaic.version = 11 : i64} {
  func.func @kernel(%arg0: i32, %arg1: memref<1x10x10x128xbf16, #tpu.memory_space<vmem>>, %arg2: memref<9x128x128xbf16, #tpu.memory_space<vmem>>, %arg3: memref<1x128xf32, #tpu.memory_space<vmem>>, %arg4: memref<1x128xf32, #tpu.memory_space<vmem>>, %arg5: memref<1x64x128xbf16, #tpu.memory_space<vmem>>, %arg6: memref<128x128xbf16, #tpu.memory_space<vmem>>, %arg7: memref<1x128xf32, #tpu.memory_space<vmem>>, %arg8: memref<1x128xf32, #tpu.memory_space<vmem>>, %arg9: memref<1x64x128xbf16, #tpu.memory_space<vmem>>) attributes {dimension_semantics = [#tpu.dimension_semantics<parallel>], iteration_bounds = array<i64: 2>, scalar_prefetch = 0 : i64, scratch_operands = 0 : i64, tpu.core_type = #tpu.core_type<tc>, window_params = [{transform_indices = @transform_0, window_bounds = array<i64: 1, 10, 10, 128>}, {pipeline_mode = #tpu.pipeline_mode<synchronous>, transform_indices = @transform_1, window_bounds = array<i64: 9, 128, 128>}, {pipeline_mode = #tpu.pipeline_mode<synchronous>, transform_indices = @transform_2, window_bounds = array<i64: 1, 128>}, {pipeline_mode = #tpu.pipeline_mode<synchronous>, transform_indices = @transform_3, window_bounds = array<i64: 1, 128>}, {transform_indices = @transform_4, window_bounds = array<i64: 1, 64, 128>}, {pipeline_mode = #tpu.pipeline_mode<synchronous>, transform_indices = @transform_5, window_bounds = array<i64: 128, 128>}, {pipeline_mode = #tpu.pipeline_mode<synchronous>, transform_indices = @transform_6, window_bounds = array<i64: 1, 128>}, {pipeline_mode = #tpu.pipeline_mode<synchronous>, transform_indices = @transform_7, window_bounds = array<i64: 1, 128>}, {transform_indices = @transform_8, window_bounds = array<i64: 1, 64, 128>}]} {
    %cst = arith.constant 0.000000e+00 : f32
    %0 = vector.broadcast %cst : f32 to vector<64x128xf32>
    %c0 = arith.constant 0 : index
    %c0_0 = arith.constant 0 : index
    %c0_1 = arith.constant 0 : index
    %c0_2 = arith.constant 0 : index
    %1 = vector.load %arg1[%c0, %c0_0, %c0_1, %c0_2] : memref<1x10x10x128xbf16, #tpu.memory_space<vmem>>, vector<1x8x8x128xbf16>
    %2 = vector.shape_cast %1 : vector<1x8x8x128xbf16> to vector<8x8x128xbf16>
    %3 = vector.shape_cast %2 : vector<8x8x128xbf16> to vector<64x128xbf16>
    %c0_3 = arith.constant 0 : index
    %c0_4 = arith.constant 0 : index
    %c0_5 = arith.constant 0 : index
    %4 = vector.load %arg2[%c0_3, %c0_4, %c0_5] : memref<9x128x128xbf16, #tpu.memory_space<vmem>>, vector<1x128x128xbf16>
    %5 = vector.shape_cast %4 : vector<1x128x128xbf16> to vector<128x128xbf16>
    %cst_6 = arith.constant dense<0.000000e+00> : vector<64x128xf32>
    %6 = tpu.matmul %3, %5, %cst_6 {dimension_numbers = #tpu.dot_dimension_numbers<[1], [0], [0], [1], [0, 0, 1, 1], [], []>} : vector<64x128xbf16>, vector<128x128xbf16>, vector<64x128xf32> -> vector<64x128xf32>
    %7 = arith.addf %0, %6 : vector<64x128xf32>
    %c0_7 = arith.constant 0 : index
    %c0_8 = arith.constant 0 : index
    %c1 = arith.constant 1 : index
    %c0_9 = arith.constant 0 : index
    %8 = vector.load %arg1[%c0_7, %c0_8, %c1, %c0_9] : memref<1x10x10x128xbf16, #tpu.memory_space<vmem>>, vector<1x8x8x128xbf16>
    %9 = vector.shape_cast %8 : vector<1x8x8x128xbf16> to vector<8x8x128xbf16>
    %10 = vector.shape_cast %9 : vector<8x8x128xbf16> to vector<64x128xbf16>
    %c1_10 = arith.constant 1 : index
    %c0_11 = arith.constant 0 : index
    %c0_12 = arith.constant 0 : index
    %11 = vector.load %arg2[%c1_10, %c0_11, %c0_12] : memref<9x128x128xbf16, #tpu.memory_space<vmem>>, vector<1x128x128xbf16>
    %12 = vector.shape_cast %11 : vector<1x128x128xbf16> to vector<128x128xbf16>
    %cst_13 = arith.constant dense<0.000000e+00> : vector<64x128xf32>
    %13 = tpu.matmul %10, %12, %cst_13 {dimension_numbers = #tpu.dot_dimension_numbers<[1], [0], [0], [1], [0, 0, 1, 1], [], []>} : vector<64x128xbf16>, vector<128x128xbf16>, vector<64x128xf32> -> vector<64x128xf32>
    %14 = arith.addf %7, %13 : vector<64x128xf32>
    %c0_14 = arith.constant 0 : index
    %c0_15 = arith.constant 0 : index
    %c2 = arith.constant 2 : index
    %c0_16 = arith.constant 0 : index
    %15 = vector.load %arg1[%c0_14, %c0_15, %c2, %c0_16] : memref<1x10x10x128xbf16, #tpu.memory_space<vmem>>, vector<1x8x8x128xbf16>
    %16 = vector.shape_cast %15 : vector<1x8x8x128xbf16> to vector<8x8x128xbf16>
    %17 = vector.shape_cast %16 : vector<8x8x128xbf16> to vector<64x128xbf16>
    %c2_17 = arith.constant 2 : index
    %c0_18 = arith.constant 0 : index
    %c0_19 = arith.constant 0 : index
    %18 = vector.load %arg2[%c2_17, %c0_18, %c0_19] : memref<9x128x128xbf16, #tpu.memory_space<vmem>>, vector<1x128x128xbf16>
    %19 = vector.shape_cast %18 : vector<1x128x128xbf16> to vector<128x128xbf16>
    %cst_20 = arith.constant dense<0.000000e+00> : vector<64x128xf32>
    %20 = tpu.matmul %17, %19, %cst_20 {dimension_numbers = #tpu.dot_dimension_numbers<[1], [0], [0], [1], [0, 0, 1, 1], [], []>} : vector<64x128xbf16>, vector<128x128xbf16>, vector<64x128xf32> -> vector<64x128xf32>
    %21 = arith.addf %14, %20 : vector<64x128xf32>
    %c0_21 = arith.constant 0 : index
    %c1_22 = arith.constant 1 : index
    %c0_23 = arith.constant 0 : index
    %c0_24 = arith.constant 0 : index
    %22 = vector.load %arg1[%c0_21, %c1_22, %c0_23, %c0_24] : memref<1x10x10x128xbf16, #tpu.memory_space<vmem>>, vector<1x8x8x128xbf16>
    %23 = vector.shape_cast %22 : vector<1x8x8x128xbf16> to vector<8x8x128xbf16>
    %24 = vector.shape_cast %23 : vector<8x8x128xbf16> to vector<64x128xbf16>
    %c3 = arith.constant 3 : index
    %c0_25 = arith.constant 0 : index
    %c0_26 = arith.constant 0 : index
    %25 = vector.load %arg2[%c3, %c0_25, %c0_26] : memref<9x128x128xbf16, #tpu.memory_space<vmem>>, vector<1x128x128xbf16>
    %26 = vector.shape_cast %25 : vector<1x128x128xbf16> to vector<128x128xbf16>
    %cst_27 = arith.constant dense<0.000000e+00> : vector<64x128xf32>
    %27 = tpu.matmul %24, %26, %cst_27 {dimension_numbers = #tpu.dot_dimension_numbers<[1], [0], [0], [1], [0, 0, 1, 1], [], []>} : vector<64x128xbf16>, vector<128x128xbf16>, vector<64x128xf32> -> vector<64x128xf32>
    %28 = arith.addf %21, %27 : vector<64x128xf32>
    %c0_28 = arith.constant 0 : index
    %c1_29 = arith.constant 1 : index
    %c1_30 = arith.constant 1 : index
    %c0_31 = arith.constant 0 : index
    %29 = vector.load %arg1[%c0_28, %c1_29, %c1_30, %c0_31] : memref<1x10x10x128xbf16, #tpu.memory_space<vmem>>, vector<1x8x8x128xbf16>
    %30 = vector.shape_cast %29 : vector<1x8x8x128xbf16> to vector<8x8x128xbf16>
    %31 = vector.shape_cast %30 : vector<8x8x128xbf16> to vector<64x128xbf16>
    %c4 = arith.constant 4 : index
    %c0_32 = arith.constant 0 : index
    %c0_33 = arith.constant 0 : index
    %32 = vector.load %arg2[%c4, %c0_32, %c0_33] : memref<9x128x128xbf16, #tpu.memory_space<vmem>>, vector<1x128x128xbf16>
    %33 = vector.shape_cast %32 : vector<1x128x128xbf16> to vector<128x128xbf16>
    %cst_34 = arith.constant dense<0.000000e+00> : vector<64x128xf32>
    %34 = tpu.matmul %31, %33, %cst_34 {dimension_numbers = #tpu.dot_dimension_numbers<[1], [0], [0], [1], [0, 0, 1, 1], [], []>} : vector<64x128xbf16>, vector<128x128xbf16>, vector<64x128xf32> -> vector<64x128xf32>
    %35 = arith.addf %28, %34 : vector<64x128xf32>
    %c0_35 = arith.constant 0 : index
    %c1_36 = arith.constant 1 : index
    %c2_37 = arith.constant 2 : index
    %c0_38 = arith.constant 0 : index
    %36 = vector.load %arg1[%c0_35, %c1_36, %c2_37, %c0_38] : memref<1x10x10x128xbf16, #tpu.memory_space<vmem>>, vector<1x8x8x128xbf16>
    %37 = vector.shape_cast %36 : vector<1x8x8x128xbf16> to vector<8x8x128xbf16>
    %38 = vector.shape_cast %37 : vector<8x8x128xbf16> to vector<64x128xbf16>
    %c5 = arith.constant 5 : index
    %c0_39 = arith.constant 0 : index
    %c0_40 = arith.constant 0 : index
    %39 = vector.load %arg2[%c5, %c0_39, %c0_40] : memref<9x128x128xbf16, #tpu.memory_space<vmem>>, vector<1x128x128xbf16>
    %40 = vector.shape_cast %39 : vector<1x128x128xbf16> to vector<128x128xbf16>
    %cst_41 = arith.constant dense<0.000000e+00> : vector<64x128xf32>
    %41 = tpu.matmul %38, %40, %cst_41 {dimension_numbers = #tpu.dot_dimension_numbers<[1], [0], [0], [1], [0, 0, 1, 1], [], []>} : vector<64x128xbf16>, vector<128x128xbf16>, vector<64x128xf32> -> vector<64x128xf32>
    %42 = arith.addf %35, %41 : vector<64x128xf32>
    %c0_42 = arith.constant 0 : index
    %c2_43 = arith.constant 2 : index
    %c0_44 = arith.constant 0 : index
    %c0_45 = arith.constant 0 : index
    %43 = vector.load %arg1[%c0_42, %c2_43, %c0_44, %c0_45] : memref<1x10x10x128xbf16, #tpu.memory_space<vmem>>, vector<1x8x8x128xbf16>
    %44 = vector.shape_cast %43 : vector<1x8x8x128xbf16> to vector<8x8x128xbf16>
    %45 = vector.shape_cast %44 : vector<8x8x128xbf16> to vector<64x128xbf16>
    %c6 = arith.constant 6 : index
    %c0_46 = arith.constant 0 : index
    %c0_47 = arith.constant 0 : index
    %46 = vector.load %arg2[%c6, %c0_46, %c0_47] : memref<9x128x128xbf16, #tpu.memory_space<vmem>>, vector<1x128x128xbf16>
    %47 = vector.shape_cast %46 : vector<1x128x128xbf16> to vector<128x128xbf16>
    %cst_48 = arith.constant dense<0.000000e+00> : vector<64x128xf32>
    %48 = tpu.matmul %45, %47, %cst_48 {dimension_numbers = #tpu.dot_dimension_numbers<[1], [0], [0], [1], [0, 0, 1, 1], [], []>} : vector<64x128xbf16>, vector<128x128xbf16>, vector<64x128xf32> -> vector<64x128xf32>
    %49 = arith.addf %42, %48 : vector<64x128xf32>
    %c0_49 = arith.constant 0 : index
    %c2_50 = arith.constant 2 : index
    %c1_51 = arith.constant 1 : index
    %c0_52 = arith.constant 0 : index
    %50 = vector.load %arg1[%c0_49, %c2_50, %c1_51, %c0_52] : memref<1x10x10x128xbf16, #tpu.memory_space<vmem>>, vector<1x8x8x128xbf16>
    %51 = vector.shape_cast %50 : vector<1x8x8x128xbf16> to vector<8x8x128xbf16>
    %52 = vector.shape_cast %51 : vector<8x8x128xbf16> to vector<64x128xbf16>
    %c7 = arith.constant 7 : index
    %c0_53 = arith.constant 0 : index
    %c0_54 = arith.constant 0 : index
    %53 = vector.load %arg2[%c7, %c0_53, %c0_54] : memref<9x128x128xbf16, #tpu.memory_space<vmem>>, vector<1x128x128xbf16>
    %54 = vector.shape_cast %53 : vector<1x128x128xbf16> to vector<128x128xbf16>
    %cst_55 = arith.constant dense<0.000000e+00> : vector<64x128xf32>
    %55 = tpu.matmul %52, %54, %cst_55 {dimension_numbers = #tpu.dot_dimension_numbers<[1], [0], [0], [1], [0, 0, 1, 1], [], []>} : vector<64x128xbf16>, vector<128x128xbf16>, vector<64x128xf32> -> vector<64x128xf32>
    %56 = arith.addf %49, %55 : vector<64x128xf32>
    %c0_56 = arith.constant 0 : index
    %c2_57 = arith.constant 2 : index
    %c2_58 = arith.constant 2 : index
    %c0_59 = arith.constant 0 : index
    %57 = vector.load %arg1[%c0_56, %c2_57, %c2_58, %c0_59] : memref<1x10x10x128xbf16, #tpu.memory_space<vmem>>, vector<1x8x8x128xbf16>
    %58 = vector.shape_cast %57 : vector<1x8x8x128xbf16> to vector<8x8x128xbf16>
    %59 = vector.shape_cast %58 : vector<8x8x128xbf16> to vector<64x128xbf16>
    %c8 = arith.constant 8 : index
    %c0_60 = arith.constant 0 : index
    %c0_61 = arith.constant 0 : index
    %60 = vector.load %arg2[%c8, %c0_60, %c0_61] : memref<9x128x128xbf16, #tpu.memory_space<vmem>>, vector<1x128x128xbf16>
    %61 = vector.shape_cast %60 : vector<1x128x128xbf16> to vector<128x128xbf16>
    %cst_62 = arith.constant dense<0.000000e+00> : vector<64x128xf32>
    %62 = tpu.matmul %59, %61, %cst_62 {dimension_numbers = #tpu.dot_dimension_numbers<[1], [0], [0], [1], [0, 0, 1, 1], [], []>} : vector<64x128xbf16>, vector<128x128xbf16>, vector<64x128xf32> -> vector<64x128xf32>
    %63 = arith.addf %56, %62 : vector<64x128xf32>
    %c0_63 = arith.constant 0 : index
    %c0_64 = arith.constant 0 : index
    %64 = vector.load %arg3[%c0_63, %c0_64] : memref<1x128xf32, #tpu.memory_space<vmem>>, vector<1x128xf32>
    %65 = vector.broadcast %64 : vector<1x128xf32> to vector<64x128xf32>
    %66 = arith.mulf %63, %65 : vector<64x128xf32>
    %c0_65 = arith.constant 0 : index
    %c0_66 = arith.constant 0 : index
    %67 = vector.load %arg4[%c0_65, %c0_66] : memref<1x128xf32, #tpu.memory_space<vmem>>, vector<1x128xf32>
    %68 = vector.broadcast %67 : vector<1x128xf32> to vector<64x128xf32>
    %69 = arith.addf %66, %68 : vector<64x128xf32>
    %c0_67 = arith.constant 0 : index
    %c0_68 = arith.constant 0 : index
    %c0_69 = arith.constant 0 : index
    %70 = vector.load %arg5[%c0_67, %c0_68, %c0_69] : memref<1x64x128xbf16, #tpu.memory_space<vmem>>, vector<1x64x128xbf16>
    %71 = vector.shape_cast %70 : vector<1x64x128xbf16> to vector<64x128xbf16>
    %c0_70 = arith.constant 0 : index
    %c0_71 = arith.constant 0 : index
    %72 = vector.load %arg6[%c0_70, %c0_71] : memref<128x128xbf16, #tpu.memory_space<vmem>>, vector<128x128xbf16>
    %cst_72 = arith.constant dense<0.000000e+00> : vector<64x128xf32>
    %73 = tpu.matmul %71, %72, %cst_72 {dimension_numbers = #tpu.dot_dimension_numbers<[1], [0], [0], [1], [0, 0, 1, 1], [], []>} : vector<64x128xbf16>, vector<128x128xbf16>, vector<64x128xf32> -> vector<64x128xf32>
    %c0_73 = arith.constant 0 : index
    %c0_74 = arith.constant 0 : index
    %74 = vector.load %arg7[%c0_73, %c0_74] : memref<1x128xf32, #tpu.memory_space<vmem>>, vector<1x128xf32>
    %75 = vector.broadcast %74 : vector<1x128xf32> to vector<64x128xf32>
    %76 = arith.mulf %73, %75 : vector<64x128xf32>
    %c0_75 = arith.constant 0 : index
    %c0_76 = arith.constant 0 : index
    %77 = vector.load %arg8[%c0_75, %c0_76] : memref<1x128xf32, #tpu.memory_space<vmem>>, vector<1x128xf32>
    %78 = vector.broadcast %77 : vector<1x128xf32> to vector<64x128xf32>
    %79 = arith.addf %76, %78 : vector<64x128xf32>
    %80 = arith.addf %69, %79 : vector<64x128xf32>
    %81 = arith.truncf %80 : vector<64x128xf32> to vector<64x128xbf16>
    %c0_77 = arith.constant 0 : index
    %c0_78 = arith.constant 0 : index
    %c0_79 = arith.constant 0 : index
    %82 = vector.load %arg9[%c0_77, %c0_78, %c0_79] : memref<1x64x128xbf16, #tpu.memory_space<vmem>>, vector<1x64x128xbf16>
    %83 = vector.shape_cast %82 : vector<1x64x128xbf16> to vector<64x128xbf16>
    %84 = vector.shape_cast %81 : vector<64x128xbf16> to vector<1x64x128xbf16>
    tpu.vector_store %arg9[%c0_77, %c0_78, %c0_79], %84 {strides = array<i32>} : memref<1x64x128xbf16, #tpu.memory_space<vmem>>, vector<1x64x128xbf16>,
    return
  }
  func.func @transform_0(%arg0: i32) -> (i32, i32, i32, i32) {
    %c0_i32 = arith.constant 0 : i32
    %c0_i32_0 = arith.constant 0 : i32
    %c0_i32_1 = arith.constant 0 : i32
    %c0_i32_2 = arith.constant 0 : i32
    return %arg0, %c0_i32, %c0_i32_0, %c0_i32_1 : i32, i32, i32, i32
  }
  func.func @transform_1(%arg0: i32) -> (i32, i32, i32) {
    %c0_i32 = arith.constant 0 : i32
    %c0_i32_0 = arith.constant 0 : i32
    %c0_i32_1 = arith.constant 0 : i32
    %c0_i32_2 = arith.constant 0 : i32
    return %c0_i32, %c0_i32_0, %c0_i32_1 : i32, i32, i32
  }
  func.func @transform_2(%arg0: i32) -> (i32, i32) {
    %c0_i32 = arith.constant 0 : i32
    %c0_i32_0 = arith.constant 0 : i32
    %c0_i32_1 = arith.constant 0 : i32
    return %c0_i32, %c0_i32_0 : i32, i32
  }
  func.func @transform_3(%arg0: i32) -> (i32, i32) {
    %c0_i32 = arith.constant 0 : i32
    %c0_i32_0 = arith.constant 0 : i32
    %c0_i32_1 = arith.constant 0 : i32
    return %c0_i32, %c0_i32_0 : i32, i32
  }
  func.func @transform_4(%arg0: i32) -> (i32, i32, i32) {
    %c0_i32 = arith.constant 0 : i32
    %c0_i32_0 = arith.constant 0 : i32
    %c0_i32_1 = arith.constant 0 : i32
    return %arg0, %c0_i32, %c0_i32_0 : i32, i32, i32
  }
  func.func @transform_5(%arg0: i32) -> (i32, i32) {
    %c0_i32 = arith.constant 0 : i32
    %c0_i32_0 = arith.constant 0 : i32
    %c0_i32_1 = arith.constant 0 : i32
    return %c0_i32, %c0_i32_0 : i32, i32
  }
  func.func @transform_6(%arg0: i32) -> (i32, i32) {
    %c0_i32 = arith.constant 0 : i32
    %c0_i32_0 = arith.constant 0 : i32
    %c0_i32_1 = arith.constant 0 : i32
    return %c0_i32, %c0_i32_0 : i32, i32
  }
  func.func @transform_7(%arg0: i32) -> (i32, i32) {
    %c0_i32 = arith.constant 0 : i32
    %c0_i32_0 = arith.constant 0 : i32
    %c0_i32_1 = arith.constant 0 : i32
    return %c0_i32, %c0_i32_0 : i32, i32
  }
  func.func @transform_8(%arg0: i32) -> (i32, i32, i32) {
    %c0_i32 = arith.constant 0 : i32
    %c0_i32_0 = arith.constant 0 : i32
    %c0_i32_1 = arith.constant 0 : i32
    return %arg0, %c0_i32, %c0_i32_0 : i32, i32, i32
  }
}

module attributes {stable_mosaic.version = 11 : i64} {
  func.func @kernel(%arg0: i32, %arg1: memref<1x10x10x128xbf16, #tpu.memory_space<vmem>>, %arg2: memref<9x128x128xbf16, #tpu.memory_space<vmem>>, %arg3: memref<1x128xf32, #tpu.memory_space<vmem>>, %arg4: memref<1x128xf32, #tpu.memory_space<vmem>>, %arg5: memref<1x64x128xbf16, #tpu.memory_space<vmem>>) attributes {dimension_semantics = [#tpu.dimension_semantics<parallel>], iteration_bounds = array<i64: 2>, scalar_prefetch = 0 : i64, scratch_operands = 0 : i64, tpu.core_type = #tpu.core_type<tc>, window_params = [{transform_indices = @transform_0, window_bounds = array<i64: 1, 10, 10, 128>}, {pipeline_mode = #tpu.pipeline_mode<synchronous>, transform_indices = @transform_1, window_bounds = array<i64: 9, 128, 128>}, {pipeline_mode = #tpu.pipeline_mode<synchronous>, transform_indices = @transform_2, window_bounds = array<i64: 1, 128>}, {pipeline_mode = #tpu.pipeline_mode<synchronous>, transform_indices = @transform_3, window_bounds = array<i64: 1, 128>}, {transform_indices = @transform_4, window_bounds = array<i64: 1, 64, 128>}]} {
    %cst = arith.constant 0.000000e+00 : f32
    %0 = vector.broadcast %cst : f32 to vector<64x128xf32>
    %c0 = arith.constant 0 : index
    %c0_0 = arith.constant 0 : index
    %c0_1 = arith.constant 0 : index
    %c0_2 = arith.constant 0 : index
    %1 = vector.load %arg1[%c0, %c0_0, %c0_1, %c0_2] : memref<1x10x10x128xbf16, #tpu.memory_space<vmem>>, vector<1x8x8x128xbf16>
    %2 = vector.shape_cast %1 : vector<1x8x8x128xbf16> to vector<8x8x128xbf16>
    %3 = vector.shape_cast %2 : vector<8x8x128xbf16> to vector<64x128xbf16>
    %c0_3 = arith.constant 0 : index
    %c0_4 = arith.constant 0 : index
    %c0_5 = arith.constant 0 : index
    %4 = vector.load %arg2[%c0_3, %c0_4, %c0_5] : memref<9x128x128xbf16, #tpu.memory_space<vmem>>, vector<1x128x128xbf16>
    %5 = vector.shape_cast %4 : vector<1x128x128xbf16> to vector<128x128xbf16>
    %cst_6 = arith.constant dense<0.000000e+00> : vector<64x128xf32>
    %6 = tpu.matmul %3, %5, %cst_6 {dimension_numbers = #tpu.dot_dimension_numbers<[1], [0], [0], [1], [0, 0, 1, 1], [], []>} : vector<64x128xbf16>, vector<128x128xbf16>, vector<64x128xf32> -> vector<64x128xf32>
    %7 = arith.addf %0, %6 : vector<64x128xf32>
    %c0_7 = arith.constant 0 : index
    %c0_8 = arith.constant 0 : index
    %c1 = arith.constant 1 : index
    %c0_9 = arith.constant 0 : index
    %8 = vector.load %arg1[%c0_7, %c0_8, %c1, %c0_9] : memref<1x10x10x128xbf16, #tpu.memory_space<vmem>>, vector<1x8x8x128xbf16>
    %9 = vector.shape_cast %8 : vector<1x8x8x128xbf16> to vector<8x8x128xbf16>
    %10 = vector.shape_cast %9 : vector<8x8x128xbf16> to vector<64x128xbf16>
    %c1_10 = arith.constant 1 : index
    %c0_11 = arith.constant 0 : index
    %c0_12 = arith.constant 0 : index
    %11 = vector.load %arg2[%c1_10, %c0_11, %c0_12] : memref<9x128x128xbf16, #tpu.memory_space<vmem>>, vector<1x128x128xbf16>
    %12 = vector.shape_cast %11 : vector<1x128x128xbf16> to vector<128x128xbf16>
    %cst_13 = arith.constant dense<0.000000e+00> : vector<64x128xf32>
    %13 = tpu.matmul %10, %12, %cst_13 {dimension_numbers = #tpu.dot_dimension_numbers<[1], [0], [0], [1], [0, 0, 1, 1], [], []>} : vector<64x128xbf16>, vector<128x128xbf16>, vector<64x128xf32> -> vector<64x128xf32>
    %14 = arith.addf %7, %13 : vector<64x128xf32>
    %c0_14 = arith.constant 0 : index
    %c0_15 = arith.constant 0 : index
    %c2 = arith.constant 2 : index
    %c0_16 = arith.constant 0 : index
    %15 = vector.load %arg1[%c0_14, %c0_15, %c2, %c0_16] : memref<1x10x10x128xbf16, #tpu.memory_space<vmem>>, vector<1x8x8x128xbf16>
    %16 = vector.shape_cast %15 : vector<1x8x8x128xbf16> to vector<8x8x128xbf16>
    %17 = vector.shape_cast %16 : vector<8x8x128xbf16> to vector<64x128xbf16>
    %c2_17 = arith.constant 2 : index
    %c0_18 = arith.constant 0 : index
    %c0_19 = arith.constant 0 : index
    %18 = vector.load %arg2[%c2_17, %c0_18, %c0_19] : memref<9x128x128xbf16, #tpu.memory_space<vmem>>, vector<1x128x128xbf16>
    %19 = vector.shape_cast %18 : vector<1x128x128xbf16> to vector<128x128xbf16>
    %cst_20 = arith.constant dense<0.000000e+00> : vector<64x128xf32>
    %20 = tpu.matmul %17, %19, %cst_20 {dimension_numbers = #tpu.dot_dimension_numbers<[1], [0], [0], [1], [0, 0, 1, 1], [], []>} : vector<64x128xbf16>, vector<128x128xbf16>, vector<64x128xf32> -> vector<64x128xf32>
    %21 = arith.addf %14, %20 : vector<64x128xf32>
    %c0_21 = arith.constant 0 : index
    %c1_22 = arith.constant 1 : index
    %c0_23 = arith.constant 0 : index
    %c0_24 = arith.constant 0 : index
    %22 = vector.load %arg1[%c0_21, %c1_22, %c0_23, %c0_24] : memref<1x10x10x128xbf16, #tpu.memory_space<vmem>>, vector<1x8x8x128xbf16>
    %23 = vector.shape_cast %22 : vector<1x8x8x128xbf16> to vector<8x8x128xbf16>
    %24 = vector.shape_cast %23 : vector<8x8x128xbf16> to vector<64x128xbf16>
    %c3 = arith.constant 3 : index
    %c0_25 = arith.constant 0 : index
    %c0_26 = arith.constant 0 : index
    %25 = vector.load %arg2[%c3, %c0_25, %c0_26] : memref<9x128x128xbf16, #tpu.memory_space<vmem>>, vector<1x128x128xbf16>
    %26 = vector.shape_cast %25 : vector<1x128x128xbf16> to vector<128x128xbf16>
    %cst_27 = arith.constant dense<0.000000e+00> : vector<64x128xf32>
    %27 = tpu.matmul %24, %26, %cst_27 {dimension_numbers = #tpu.dot_dimension_numbers<[1], [0], [0], [1], [0, 0, 1, 1], [], []>} : vector<64x128xbf16>, vector<128x128xbf16>, vector<64x128xf32> -> vector<64x128xf32>
    %28 = arith.addf %21, %27 : vector<64x128xf32>
    %c0_28 = arith.constant 0 : index
    %c1_29 = arith.constant 1 : index
    %c1_30 = arith.constant 1 : index
    %c0_31 = arith.constant 0 : index
    %29 = vector.load %arg1[%c0_28, %c1_29, %c1_30, %c0_31] : memref<1x10x10x128xbf16, #tpu.memory_space<vmem>>, vector<1x8x8x128xbf16>
    %30 = vector.shape_cast %29 : vector<1x8x8x128xbf16> to vector<8x8x128xbf16>
    %31 = vector.shape_cast %30 : vector<8x8x128xbf16> to vector<64x128xbf16>
    %c4 = arith.constant 4 : index
    %c0_32 = arith.constant 0 : index
    %c0_33 = arith.constant 0 : index
    %32 = vector.load %arg2[%c4, %c0_32, %c0_33] : memref<9x128x128xbf16, #tpu.memory_space<vmem>>, vector<1x128x128xbf16>
    %33 = vector.shape_cast %32 : vector<1x128x128xbf16> to vector<128x128xbf16>
    %cst_34 = arith.constant dense<0.000000e+00> : vector<64x128xf32>
    %34 = tpu.matmul %31, %33, %cst_34 {dimension_numbers = #tpu.dot_dimension_numbers<[1], [0], [0], [1], [0, 0, 1, 1], [], []>} : vector<64x128xbf16>, vector<128x128xbf16>, vector<64x128xf32> -> vector<64x128xf32>
    %35 = arith.addf %28, %34 : vector<64x128xf32>
    %c0_35 = arith.constant 0 : index
    %c1_36 = arith.constant 1 : index
    %c2_37 = arith.constant 2 : index
    %c0_38 = arith.constant 0 : index
    %36 = vector.load %arg1[%c0_35, %c1_36, %c2_37, %c0_38] : memref<1x10x10x128xbf16, #tpu.memory_space<vmem>>, vector<1x8x8x128xbf16>
    %37 = vector.shape_cast %36 : vector<1x8x8x128xbf16> to vector<8x8x128xbf16>
    %38 = vector.shape_cast %37 : vector<8x8x128xbf16> to vector<64x128xbf16>
    %c5 = arith.constant 5 : index
    %c0_39 = arith.constant 0 : index
    %c0_40 = arith.constant 0 : index
    %39 = vector.load %arg2[%c5, %c0_39, %c0_40] : memref<9x128x128xbf16, #tpu.memory_space<vmem>>, vector<1x128x128xbf16>
    %40 = vector.shape_cast %39 : vector<1x128x128xbf16> to vector<128x128xbf16>
    %cst_41 = arith.constant dense<0.000000e+00> : vector<64x128xf32>
    %41 = tpu.matmul %38, %40, %cst_41 {dimension_numbers = #tpu.dot_dimension_numbers<[1], [0], [0], [1], [0, 0, 1, 1], [], []>} : vector<64x128xbf16>, vector<128x128xbf16>, vector<64x128xf32> -> vector<64x128xf32>
    %42 = arith.addf %35, %41 : vector<64x128xf32>
    %c0_42 = arith.constant 0 : index
    %c2_43 = arith.constant 2 : index
    %c0_44 = arith.constant 0 : index
    %c0_45 = arith.constant 0 : index
    %43 = vector.load %arg1[%c0_42, %c2_43, %c0_44, %c0_45] : memref<1x10x10x128xbf16, #tpu.memory_space<vmem>>, vector<1x8x8x128xbf16>
    %44 = vector.shape_cast %43 : vector<1x8x8x128xbf16> to vector<8x8x128xbf16>
    %45 = vector.shape_cast %44 : vector<8x8x128xbf16> to vector<64x128xbf16>
    %c6 = arith.constant 6 : index
    %c0_46 = arith.constant 0 : index
    %c0_47 = arith.constant 0 : index
    %46 = vector.load %arg2[%c6, %c0_46, %c0_47] : memref<9x128x128xbf16, #tpu.memory_space<vmem>>, vector<1x128x128xbf16>
    %47 = vector.shape_cast %46 : vector<1x128x128xbf16> to vector<128x128xbf16>
    %cst_48 = arith.constant dense<0.000000e+00> : vector<64x128xf32>
    %48 = tpu.matmul %45, %47, %cst_48 {dimension_numbers = #tpu.dot_dimension_numbers<[1], [0], [0], [1], [0, 0, 1, 1], [], []>} : vector<64x128xbf16>, vector<128x128xbf16>, vector<64x128xf32> -> vector<64x128xf32>
    %49 = arith.addf %42, %48 : vector<64x128xf32>
    %c0_49 = arith.constant 0 : index
    %c2_50 = arith.constant 2 : index
    %c1_51 = arith.constant 1 : index
    %c0_52 = arith.constant 0 : index
    %50 = vector.load %arg1[%c0_49, %c2_50, %c1_51, %c0_52] : memref<1x10x10x128xbf16, #tpu.memory_space<vmem>>, vector<1x8x8x128xbf16>
    %51 = vector.shape_cast %50 : vector<1x8x8x128xbf16> to vector<8x8x128xbf16>
    %52 = vector.shape_cast %51 : vector<8x8x128xbf16> to vector<64x128xbf16>
    %c7 = arith.constant 7 : index
    %c0_53 = arith.constant 0 : index
    %c0_54 = arith.constant 0 : index
    %53 = vector.load %arg2[%c7, %c0_53, %c0_54] : memref<9x128x128xbf16, #tpu.memory_space<vmem>>, vector<1x128x128xbf16>
    %54 = vector.shape_cast %53 : vector<1x128x128xbf16> to vector<128x128xbf16>
    %cst_55 = arith.constant dense<0.000000e+00> : vector<64x128xf32>
    %55 = tpu.matmul %52, %54, %cst_55 {dimension_numbers = #tpu.dot_dimension_numbers<[1], [0], [0], [1], [0, 0, 1, 1], [], []>} : vector<64x128xbf16>, vector<128x128xbf16>, vector<64x128xf32> -> vector<64x128xf32>
    %56 = arith.addf %49, %55 : vector<64x128xf32>
    %c0_56 = arith.constant 0 : index
    %c2_57 = arith.constant 2 : index
    %c2_58 = arith.constant 2 : index
    %c0_59 = arith.constant 0 : index
    %57 = vector.load %arg1[%c0_56, %c2_57, %c2_58, %c0_59] : memref<1x10x10x128xbf16, #tpu.memory_space<vmem>>, vector<1x8x8x128xbf16>
    %58 = vector.shape_cast %57 : vector<1x8x8x128xbf16> to vector<8x8x128xbf16>
    %59 = vector.shape_cast %58 : vector<8x8x128xbf16> to vector<64x128xbf16>
    %c8 = arith.constant 8 : index
    %c0_60 = arith.constant 0 : index
    %c0_61 = arith.constant 0 : index
    %60 = vector.load %arg2[%c8, %c0_60, %c0_61] : memref<9x128x128xbf16, #tpu.memory_space<vmem>>, vector<1x128x128xbf16>
    %61 = vector.shape_cast %60 : vector<1x128x128xbf16> to vector<128x128xbf16>
    %cst_62 = arith.constant dense<0.000000e+00> : vector<64x128xf32>
    %62 = tpu.matmul %59, %61, %cst_62 {dimension_numbers = #tpu.dot_dimension_numbers<[1], [0], [0], [1], [0, 0, 1, 1], [], []>} : vector<64x128xbf16>, vector<128x128xbf16>, vector<64x128xf32> -> vector<64x128xf32>
    %63 = arith.addf %56, %62 : vector<64x128xf32>
    %c0_63 = arith.constant 0 : index
    %c0_64 = arith.constant 0 : index
    %64 = vector.load %arg3[%c0_63, %c0_64] : memref<1x128xf32, #tpu.memory_space<vmem>>, vector<1x128xf32>
    %65 = vector.broadcast %64 : vector<1x128xf32> to vector<64x128xf32>
    %66 = arith.mulf %63, %65 : vector<64x128xf32>
    %c0_65 = arith.constant 0 : index
    %c0_66 = arith.constant 0 : index
    %67 = vector.load %arg4[%c0_65, %c0_66] : memref<1x128xf32, #tpu.memory_space<vmem>>, vector<1x128xf32>
    %68 = vector.broadcast %67 : vector<1x128xf32> to vector<64x128xf32>
    %69 = arith.addf %66, %68 : vector<64x128xf32>
    %cst_67 = arith.constant 0.000000e+00 : f32
    %70 = vector.broadcast %cst_67 : f32 to vector<64x128xf32>
    %71 = arith.maximumf %69, %70 : vector<64x128xf32>
    %72 = arith.truncf %71 : vector<64x128xf32> to vector<64x128xbf16>
    %c0_68 = arith.constant 0 : index
    %c0_69 = arith.constant 0 : index
    %c0_70 = arith.constant 0 : index
    %73 = vector.load %arg5[%c0_68, %c0_69, %c0_70] : memref<1x64x128xbf16, #tpu.memory_space<vmem>>, vector<1x64x128xbf16>
    %74 = vector.shape_cast %73 : vector<1x64x128xbf16> to vector<64x128xbf16>
    %75 = vector.shape_cast %72 : vector<64x128xbf16> to vector<1x64x128xbf16>
    tpu.vector_store %arg5[%c0_68, %c0_69, %c0_70], %75 {strides = array<i32>} : memref<1x64x128xbf16, #tpu.memory_space<vmem>>, vector<1x64x128xbf16>,
    return
  }
  func.func @transform_0(%arg0: i32) -> (i32, i32, i32, i32) {
    %c0_i32 = arith.constant 0 : i32
    %c0_i32_0 = arith.constant 0 : i32
    %c0_i32_1 = arith.constant 0 : i32
    %c0_i32_2 = arith.constant 0 : i32
    return %arg0, %c0_i32, %c0_i32_0, %c0_i32_1 : i32, i32, i32, i32
  }
  func.func @transform_1(%arg0: i32) -> (i32, i32, i32) {
    %c0_i32 = arith.constant 0 : i32
    %c0_i32_0 = arith.constant 0 : i32
    %c0_i32_1 = arith.constant 0 : i32
    %c0_i32_2 = arith.constant 0 : i32
    return %c0_i32, %c0_i32_0, %c0_i32_1 : i32, i32, i32
  }
  func.func @transform_2(%arg0: i32) -> (i32, i32) {
    %c0_i32 = arith.constant 0 : i32
    %c0_i32_0 = arith.constant 0 : i32
    %c0_i32_1 = arith.constant 0 : i32
    return %c0_i32, %c0_i32_0 : i32, i32
  }
  func.func @transform_3(%arg0: i32) -> (i32, i32) {
    %c0_i32 = arith.constant 0 : i32
    %c0_i32_0 = arith.constant 0 : i32
    %c0_i32_1 = arith.constant 0 : i32
    return %c0_i32, %c0_i32_0 : i32, i32
  }
  func.func @transform_4(%arg0: i32) -> (i32, i32, i32) {
    %c0_i32 = arith.constant 0 : i32
    %c0_i32_0 = arith.constant 0 : i32
    %c0_i32_1 = arith.constant 0 : i32
    return %arg0, %c0_i32, %c0_i32_0 : i32, i32, i32
  }
}

module attributes {stable_mosaic.version = 11 : i64} {
  func.func @kernel(%arg0: i32, %arg1: memref<1x10x10x128xbf16, #tpu.memory_space<vmem>>, %arg2: memref<9x128x128xbf16, #tpu.memory_space<vmem>>, %arg3: memref<1x128xf32, #tpu.memory_space<vmem>>, %arg4: memref<1x128xf32, #tpu.memory_space<vmem>>, %arg5: memref<1x64x128xbf16, #tpu.memory_space<vmem>>) attributes {dimension_semantics = [#tpu.dimension_semantics<parallel>], iteration_bounds = array<i64: 2>, scalar_prefetch = 0 : i64, scratch_operands = 0 : i64, tpu.core_type = #tpu.core_type<tc>, window_params = [{transform_indices = @transform_0, window_bounds = array<i64: 1, 10, 10, 128>}, {pipeline_mode = #tpu.pipeline_mode<synchronous>, transform_indices = @transform_1, window_bounds = array<i64: 9, 128, 128>}, {pipeline_mode = #tpu.pipeline_mode<synchronous>, transform_indices = @transform_2, window_bounds = array<i64: 1, 128>}, {pipeline_mode = #tpu.pipeline_mode<synchronous>, transform_indices = @transform_3, window_bounds = array<i64: 1, 128>}, {transform_indices = @transform_4, window_bounds = array<i64: 1, 64, 128>}]} {
    %cst = arith.constant 0.000000e+00 : f32
    %0 = vector.broadcast %cst : f32 to vector<64x128xf32>
    %c0 = arith.constant 0 : index
    %c0_0 = arith.constant 0 : index
    %c0_1 = arith.constant 0 : index
    %c0_2 = arith.constant 0 : index
    %1 = vector.load %arg1[%c0, %c0_0, %c0_1, %c0_2] : memref<1x10x10x128xbf16, #tpu.memory_space<vmem>>, vector<1x8x8x128xbf16>
    %2 = vector.shape_cast %1 : vector<1x8x8x128xbf16> to vector<8x8x128xbf16>
    %3 = vector.shape_cast %2 : vector<8x8x128xbf16> to vector<64x128xbf16>
    %c0_3 = arith.constant 0 : index
    %c0_4 = arith.constant 0 : index
    %c0_5 = arith.constant 0 : index
    %4 = vector.load %arg2[%c0_3, %c0_4, %c0_5] : memref<9x128x128xbf16, #tpu.memory_space<vmem>>, vector<1x128x128xbf16>
    %5 = vector.shape_cast %4 : vector<1x128x128xbf16> to vector<128x128xbf16>
    %cst_6 = arith.constant dense<0.000000e+00> : vector<64x128xf32>
    %6 = tpu.matmul %3, %5, %cst_6 {dimension_numbers = #tpu.dot_dimension_numbers<[1], [0], [0], [1], [0, 0, 1, 1], [], []>} : vector<64x128xbf16>, vector<128x128xbf16>, vector<64x128xf32> -> vector<64x128xf32>
    %7 = arith.addf %0, %6 : vector<64x128xf32>
    %c0_7 = arith.constant 0 : index
    %c0_8 = arith.constant 0 : index
    %c1 = arith.constant 1 : index
    %c0_9 = arith.constant 0 : index
    %8 = vector.load %arg1[%c0_7, %c0_8, %c1, %c0_9] : memref<1x10x10x128xbf16, #tpu.memory_space<vmem>>, vector<1x8x8x128xbf16>
    %9 = vector.shape_cast %8 : vector<1x8x8x128xbf16> to vector<8x8x128xbf16>
    %10 = vector.shape_cast %9 : vector<8x8x128xbf16> to vector<64x128xbf16>
    %c1_10 = arith.constant 1 : index
    %c0_11 = arith.constant 0 : index
    %c0_12 = arith.constant 0 : index
    %11 = vector.load %arg2[%c1_10, %c0_11, %c0_12] : memref<9x128x128xbf16, #tpu.memory_space<vmem>>, vector<1x128x128xbf16>
    %12 = vector.shape_cast %11 : vector<1x128x128xbf16> to vector<128x128xbf16>
    %cst_13 = arith.constant dense<0.000000e+00> : vector<64x128xf32>
    %13 = tpu.matmul %10, %12, %cst_13 {dimension_numbers = #tpu.dot_dimension_numbers<[1], [0], [0], [1], [0, 0, 1, 1], [], []>} : vector<64x128xbf16>, vector<128x128xbf16>, vector<64x128xf32> -> vector<64x128xf32>
    %14 = arith.addf %7, %13 : vector<64x128xf32>
    %c0_14 = arith.constant 0 : index
    %c0_15 = arith.constant 0 : index
    %c2 = arith.constant 2 : index
    %c0_16 = arith.constant 0 : index
    %15 = vector.load %arg1[%c0_14, %c0_15, %c2, %c0_16] : memref<1x10x10x128xbf16, #tpu.memory_space<vmem>>, vector<1x8x8x128xbf16>
    %16 = vector.shape_cast %15 : vector<1x8x8x128xbf16> to vector<8x8x128xbf16>
    %17 = vector.shape_cast %16 : vector<8x8x128xbf16> to vector<64x128xbf16>
    %c2_17 = arith.constant 2 : index
    %c0_18 = arith.constant 0 : index
    %c0_19 = arith.constant 0 : index
    %18 = vector.load %arg2[%c2_17, %c0_18, %c0_19] : memref<9x128x128xbf16, #tpu.memory_space<vmem>>, vector<1x128x128xbf16>
    %19 = vector.shape_cast %18 : vector<1x128x128xbf16> to vector<128x128xbf16>
    %cst_20 = arith.constant dense<0.000000e+00> : vector<64x128xf32>
    %20 = tpu.matmul %17, %19, %cst_20 {dimension_numbers = #tpu.dot_dimension_numbers<[1], [0], [0], [1], [0, 0, 1, 1], [], []>} : vector<64x128xbf16>, vector<128x128xbf16>, vector<64x128xf32> -> vector<64x128xf32>
    %21 = arith.addf %14, %20 : vector<64x128xf32>
    %c0_21 = arith.constant 0 : index
    %c1_22 = arith.constant 1 : index
    %c0_23 = arith.constant 0 : index
    %c0_24 = arith.constant 0 : index
    %22 = vector.load %arg1[%c0_21, %c1_22, %c0_23, %c0_24] : memref<1x10x10x128xbf16, #tpu.memory_space<vmem>>, vector<1x8x8x128xbf16>
    %23 = vector.shape_cast %22 : vector<1x8x8x128xbf16> to vector<8x8x128xbf16>
    %24 = vector.shape_cast %23 : vector<8x8x128xbf16> to vector<64x128xbf16>
    %c3 = arith.constant 3 : index
    %c0_25 = arith.constant 0 : index
    %c0_26 = arith.constant 0 : index
    %25 = vector.load %arg2[%c3, %c0_25, %c0_26] : memref<9x128x128xbf16, #tpu.memory_space<vmem>>, vector<1x128x128xbf16>
    %26 = vector.shape_cast %25 : vector<1x128x128xbf16> to vector<128x128xbf16>
    %cst_27 = arith.constant dense<0.000000e+00> : vector<64x128xf32>
    %27 = tpu.matmul %24, %26, %cst_27 {dimension_numbers = #tpu.dot_dimension_numbers<[1], [0], [0], [1], [0, 0, 1, 1], [], []>} : vector<64x128xbf16>, vector<128x128xbf16>, vector<64x128xf32> -> vector<64x128xf32>
    %28 = arith.addf %21, %27 : vector<64x128xf32>
    %c0_28 = arith.constant 0 : index
    %c1_29 = arith.constant 1 : index
    %c1_30 = arith.constant 1 : index
    %c0_31 = arith.constant 0 : index
    %29 = vector.load %arg1[%c0_28, %c1_29, %c1_30, %c0_31] : memref<1x10x10x128xbf16, #tpu.memory_space<vmem>>, vector<1x8x8x128xbf16>
    %30 = vector.shape_cast %29 : vector<1x8x8x128xbf16> to vector<8x8x128xbf16>
    %31 = vector.shape_cast %30 : vector<8x8x128xbf16> to vector<64x128xbf16>
    %c4 = arith.constant 4 : index
    %c0_32 = arith.constant 0 : index
    %c0_33 = arith.constant 0 : index
    %32 = vector.load %arg2[%c4, %c0_32, %c0_33] : memref<9x128x128xbf16, #tpu.memory_space<vmem>>, vector<1x128x128xbf16>
    %33 = vector.shape_cast %32 : vector<1x128x128xbf16> to vector<128x128xbf16>
    %cst_34 = arith.constant dense<0.000000e+00> : vector<64x128xf32>
    %34 = tpu.matmul %31, %33, %cst_34 {dimension_numbers = #tpu.dot_dimension_numbers<[1], [0], [0], [1], [0, 0, 1, 1], [], []>} : vector<64x128xbf16>, vector<128x128xbf16>, vector<64x128xf32> -> vector<64x128xf32>
    %35 = arith.addf %28, %34 : vector<64x128xf32>
    %c0_35 = arith.constant 0 : index
    %c1_36 = arith.constant 1 : index
    %c2_37 = arith.constant 2 : index
    %c0_38 = arith.constant 0 : index
    %36 = vector.load %arg1[%c0_35, %c1_36, %c2_37, %c0_38] : memref<1x10x10x128xbf16, #tpu.memory_space<vmem>>, vector<1x8x8x128xbf16>
    %37 = vector.shape_cast %36 : vector<1x8x8x128xbf16> to vector<8x8x128xbf16>
    %38 = vector.shape_cast %37 : vector<8x8x128xbf16> to vector<64x128xbf16>
    %c5 = arith.constant 5 : index
    %c0_39 = arith.constant 0 : index
    %c0_40 = arith.constant 0 : index
    %39 = vector.load %arg2[%c5, %c0_39, %c0_40] : memref<9x128x128xbf16, #tpu.memory_space<vmem>>, vector<1x128x128xbf16>
    %40 = vector.shape_cast %39 : vector<1x128x128xbf16> to vector<128x128xbf16>
    %cst_41 = arith.constant dense<0.000000e+00> : vector<64x128xf32>
    %41 = tpu.matmul %38, %40, %cst_41 {dimension_numbers = #tpu.dot_dimension_numbers<[1], [0], [0], [1], [0, 0, 1, 1], [], []>} : vector<64x128xbf16>, vector<128x128xbf16>, vector<64x128xf32> -> vector<64x128xf32>
    %42 = arith.addf %35, %41 : vector<64x128xf32>
    %c0_42 = arith.constant 0 : index
    %c2_43 = arith.constant 2 : index
    %c0_44 = arith.constant 0 : index
    %c0_45 = arith.constant 0 : index
    %43 = vector.load %arg1[%c0_42, %c2_43, %c0_44, %c0_45] : memref<1x10x10x128xbf16, #tpu.memory_space<vmem>>, vector<1x8x8x128xbf16>
    %44 = vector.shape_cast %43 : vector<1x8x8x128xbf16> to vector<8x8x128xbf16>
    %45 = vector.shape_cast %44 : vector<8x8x128xbf16> to vector<64x128xbf16>
    %c6 = arith.constant 6 : index
    %c0_46 = arith.constant 0 : index
    %c0_47 = arith.constant 0 : index
    %46 = vector.load %arg2[%c6, %c0_46, %c0_47] : memref<9x128x128xbf16, #tpu.memory_space<vmem>>, vector<1x128x128xbf16>
    %47 = vector.shape_cast %46 : vector<1x128x128xbf16> to vector<128x128xbf16>
    %cst_48 = arith.constant dense<0.000000e+00> : vector<64x128xf32>
    %48 = tpu.matmul %45, %47, %cst_48 {dimension_numbers = #tpu.dot_dimension_numbers<[1], [0], [0], [1], [0, 0, 1, 1], [], []>} : vector<64x128xbf16>, vector<128x128xbf16>, vector<64x128xf32> -> vector<64x128xf32>
    %49 = arith.addf %42, %48 : vector<64x128xf32>
    %c0_49 = arith.constant 0 : index
    %c2_50 = arith.constant 2 : index
    %c1_51 = arith.constant 1 : index
    %c0_52 = arith.constant 0 : index
    %50 = vector.load %arg1[%c0_49, %c2_50, %c1_51, %c0_52] : memref<1x10x10x128xbf16, #tpu.memory_space<vmem>>, vector<1x8x8x128xbf16>
    %51 = vector.shape_cast %50 : vector<1x8x8x128xbf16> to vector<8x8x128xbf16>
    %52 = vector.shape_cast %51 : vector<8x8x128xbf16> to vector<64x128xbf16>
    %c7 = arith.constant 7 : index
    %c0_53 = arith.constant 0 : index
    %c0_54 = arith.constant 0 : index
    %53 = vector.load %arg2[%c7, %c0_53, %c0_54] : memref<9x128x128xbf16, #tpu.memory_space<vmem>>, vector<1x128x128xbf16>
    %54 = vector.shape_cast %53 : vector<1x128x128xbf16> to vector<128x128xbf16>
    %cst_55 = arith.constant dense<0.000000e+00> : vector<64x128xf32>
    %55 = tpu.matmul %52, %54, %cst_55 {dimension_numbers = #tpu.dot_dimension_numbers<[1], [0], [0], [1], [0, 0, 1, 1], [], []>} : vector<64x128xbf16>, vector<128x128xbf16>, vector<64x128xf32> -> vector<64x128xf32>
    %56 = arith.addf %49, %55 : vector<64x128xf32>
    %c0_56 = arith.constant 0 : index
    %c2_57 = arith.constant 2 : index
    %c2_58 = arith.constant 2 : index
    %c0_59 = arith.constant 0 : index
    %57 = vector.load %arg1[%c0_56, %c2_57, %c2_58, %c0_59] : memref<1x10x10x128xbf16, #tpu.memory_space<vmem>>, vector<1x8x8x128xbf16>
    %58 = vector.shape_cast %57 : vector<1x8x8x128xbf16> to vector<8x8x128xbf16>
    %59 = vector.shape_cast %58 : vector<8x8x128xbf16> to vector<64x128xbf16>
    %c8 = arith.constant 8 : index
    %c0_60 = arith.constant 0 : index
    %c0_61 = arith.constant 0 : index
    %60 = vector.load %arg2[%c8, %c0_60, %c0_61] : memref<9x128x128xbf16, #tpu.memory_space<vmem>>, vector<1x128x128xbf16>
    %61 = vector.shape_cast %60 : vector<1x128x128xbf16> to vector<128x128xbf16>
    %cst_62 = arith.constant dense<0.000000e+00> : vector<64x128xf32>
    %62 = tpu.matmul %59, %61, %cst_62 {dimension_numbers = #tpu.dot_dimension_numbers<[1], [0], [0], [1], [0, 0, 1, 1], [], []>} : vector<64x128xbf16>, vector<128x128xbf16>, vector<64x128xf32> -> vector<64x128xf32>
    %63 = arith.addf %56, %62 : vector<64x128xf32>
    %c0_63 = arith.constant 0 : index
    %c0_64 = arith.constant 0 : index
    %64 = vector.load %arg3[%c0_63, %c0_64] : memref<1x128xf32, #tpu.memory_space<vmem>>, vector<1x128xf32>
    %65 = vector.broadcast %64 : vector<1x128xf32> to vector<64x128xf32>
    %66 = arith.mulf %63, %65 : vector<64x128xf32>
    %c0_65 = arith.constant 0 : index
    %c0_66 = arith.constant 0 : index
    %67 = vector.load %arg4[%c0_65, %c0_66] : memref<1x128xf32, #tpu.memory_space<vmem>>, vector<1x128xf32>
    %68 = vector.broadcast %67 : vector<1x128xf32> to vector<64x128xf32>
    %69 = arith.addf %66, %68 : vector<64x128xf32>
    %70 = arith.truncf %69 : vector<64x128xf32> to vector<64x128xbf16>
    %c0_67 = arith.constant 0 : index
    %c0_68 = arith.constant 0 : index
    %c0_69 = arith.constant 0 : index
    %71 = vector.load %arg5[%c0_67, %c0_68, %c0_69] : memref<1x64x128xbf16, #tpu.memory_space<vmem>>, vector<1x64x128xbf16>
    %72 = vector.shape_cast %71 : vector<1x64x128xbf16> to vector<64x128xbf16>
    %73 = vector.shape_cast %70 : vector<64x128xbf16> to vector<1x64x128xbf16>
    tpu.vector_store %arg5[%c0_67, %c0_68, %c0_69], %73 {strides = array<i32>} : memref<1x64x128xbf16, #tpu.memory_space<vmem>>, vector<1x64x128xbf16>,
    return
  }
  func.func @transform_0(%arg0: i32) -> (i32, i32, i32, i32) {
    %c0_i32 = arith.constant 0 : i32
    %c0_i32_0 = arith.constant 0 : i32
    %c0_i32_1 = arith.constant 0 : i32
    %c0_i32_2 = arith.constant 0 : i32
    return %arg0, %c0_i32, %c0_i32_0, %c0_i32_1 : i32, i32, i32, i32
  }
  func.func @transform_1(%arg0: i32) -> (i32, i32, i32) {
    %c0_i32 = arith.constant 0 : i32
    %c0_i32_0 = arith.constant 0 : i32
    %c0_i32_1 = arith.constant 0 : i32
    %c0_i32_2 = arith.constant 0 : i32
    return %c0_i32, %c0_i32_0, %c0_i32_1 : i32, i32, i32
  }
  func.func @transform_2(%arg0: i32) -> (i32, i32) {
    %c0_i32 = arith.constant 0 : i32
    %c0_i32_0 = arith.constant 0 : i32
    %c0_i32_1 = arith.constant 0 : i32
    return %c0_i32, %c0_i32_0 : i32, i32
  }
  func.func @transform_3(%arg0: i32) -> (i32, i32) {
    %c0_i32 = arith.constant 0 : i32
    %c0_i32_0 = arith.constant 0 : i32
    %c0_i32_1 = arith.constant 0 : i32
    return %c0_i32, %c0_i32_0 : i32, i32
  }
  func.func @transform_4(%arg0: i32) -> (i32, i32, i32) {
    %c0_i32 = arith.constant 0 : i32
    %c0_i32_0 = arith.constant 0 : i32
    %c0_i32_1 = arith.constant 0 : i32
    return %arg0, %c0_i32, %c0_i32_0 : i32, i32, i32
  }
}

module attributes {stable_mosaic.version = 11 : i64} {
  func.func @kernel(%arg0: i32, %arg1: memref<4x5x9x128xbf16, #tpu.memory_space<vmem>>, %arg2: memref<9x128x128xbf16, #tpu.memory_space<vmem>>, %arg3: memref<1x128xf32, #tpu.memory_space<vmem>>, %arg4: memref<1x128xf32, #tpu.memory_space<vmem>>, %arg5: memref<1x32x128xbf16, #tpu.memory_space<vmem>>) attributes {dimension_semantics = [#tpu.dimension_semantics<parallel>], iteration_bounds = array<i64: 2>, scalar_prefetch = 0 : i64, scratch_operands = 0 : i64, tpu.core_type = #tpu.core_type<tc>, window_params = [{transform_indices = @transform_0, window_bounds = array<i64: 4, 5, 9, 128>}, {pipeline_mode = #tpu.pipeline_mode<synchronous>, transform_indices = @transform_1, window_bounds = array<i64: 9, 128, 128>}, {pipeline_mode = #tpu.pipeline_mode<synchronous>, transform_indices = @transform_2, window_bounds = array<i64: 1, 128>}, {pipeline_mode = #tpu.pipeline_mode<synchronous>, transform_indices = @transform_3, window_bounds = array<i64: 1, 128>}, {transform_indices = @transform_4, window_bounds = array<i64: 1, 32, 128>}]} {
    %cst = arith.constant 0.000000e+00 : f32
    %0 = vector.broadcast %cst : f32 to vector<32x128xf32>
    %c0 = arith.constant 0 : index
    %c0_0 = arith.constant 0 : index
    %c0_1 = arith.constant 0 : index
    %c0_2 = arith.constant 0 : index
    %1 = vector.load %arg1[%c0, %c0_0, %c0_1, %c0_2] : memref<4x5x9x128xbf16, #tpu.memory_space<vmem>>, vector<1x4x8x128xbf16>
    %2 = vector.shape_cast %1 : vector<1x4x8x128xbf16> to vector<4x8x128xbf16>
    %3 = vector.shape_cast %2 : vector<4x8x128xbf16> to vector<32x128xbf16>
    %c0_3 = arith.constant 0 : index
    %c0_4 = arith.constant 0 : index
    %c0_5 = arith.constant 0 : index
    %4 = vector.load %arg2[%c0_3, %c0_4, %c0_5] : memref<9x128x128xbf16, #tpu.memory_space<vmem>>, vector<1x128x128xbf16>
    %5 = vector.shape_cast %4 : vector<1x128x128xbf16> to vector<128x128xbf16>
    %cst_6 = arith.constant dense<0.000000e+00> : vector<32x128xf32>
    %6 = tpu.matmul %3, %5, %cst_6 {dimension_numbers = #tpu.dot_dimension_numbers<[1], [0], [0], [1], [0, 0, 1, 1], [], []>} : vector<32x128xbf16>, vector<128x128xbf16>, vector<32x128xf32> -> vector<32x128xf32>
    %7 = arith.addf %0, %6 : vector<32x128xf32>
    %c1 = arith.constant 1 : index
    %c0_7 = arith.constant 0 : index
    %c0_8 = arith.constant 0 : index
    %c0_9 = arith.constant 0 : index
    %8 = vector.load %arg1[%c1, %c0_7, %c0_8, %c0_9] : memref<4x5x9x128xbf16, #tpu.memory_space<vmem>>, vector<1x4x8x128xbf16>
    %9 = vector.shape_cast %8 : vector<1x4x8x128xbf16> to vector<4x8x128xbf16>
    %10 = vector.shape_cast %9 : vector<4x8x128xbf16> to vector<32x128xbf16>
    %c1_10 = arith.constant 1 : index
    %c0_11 = arith.constant 0 : index
    %c0_12 = arith.constant 0 : index
    %11 = vector.load %arg2[%c1_10, %c0_11, %c0_12] : memref<9x128x128xbf16, #tpu.memory_space<vmem>>, vector<1x128x128xbf16>
    %12 = vector.shape_cast %11 : vector<1x128x128xbf16> to vector<128x128xbf16>
    %cst_13 = arith.constant dense<0.000000e+00> : vector<32x128xf32>
    %13 = tpu.matmul %10, %12, %cst_13 {dimension_numbers = #tpu.dot_dimension_numbers<[1], [0], [0], [1], [0, 0, 1, 1], [], []>} : vector<32x128xbf16>, vector<128x128xbf16>, vector<32x128xf32> -> vector<32x128xf32>
    %14 = arith.addf %7, %13 : vector<32x128xf32>
    %c0_14 = arith.constant 0 : index
    %c0_15 = arith.constant 0 : index
    %c1_16 = arith.constant 1 : index
    %c0_17 = arith.constant 0 : index
    %15 = vector.load %arg1[%c0_14, %c0_15, %c1_16, %c0_17] : memref<4x5x9x128xbf16, #tpu.memory_space<vmem>>, vector<1x4x8x128xbf16>
    %16 = vector.shape_cast %15 : vector<1x4x8x128xbf16> to vector<4x8x128xbf16>
    %17 = vector.shape_cast %16 : vector<4x8x128xbf16> to vector<32x128xbf16>
    %c2 = arith.constant 2 : index
    %c0_18 = arith.constant 0 : index
    %c0_19 = arith.constant 0 : index
    %18 = vector.load %arg2[%c2, %c0_18, %c0_19] : memref<9x128x128xbf16, #tpu.memory_space<vmem>>, vector<1x128x128xbf16>
    %19 = vector.shape_cast %18 : vector<1x128x128xbf16> to vector<128x128xbf16>
    %cst_20 = arith.constant dense<0.000000e+00> : vector<32x128xf32>
    %20 = tpu.matmul %17, %19, %cst_20 {dimension_numbers = #tpu.dot_dimension_numbers<[1], [0], [0], [1], [0, 0, 1, 1], [], []>} : vector<32x128xbf16>, vector<128x128xbf16>, vector<32x128xf32> -> vector<32x128xf32>
    %21 = arith.addf %14, %20 : vector<32x128xf32>
    %c2_21 = arith.constant 2 : index
    %c0_22 = arith.constant 0 : index
    %c0_23 = arith.constant 0 : index
    %c0_24 = arith.constant 0 : index
    %22 = vector.load %arg1[%c2_21, %c0_22, %c0_23, %c0_24] : memref<4x5x9x128xbf16, #tpu.memory_space<vmem>>, vector<1x4x8x128xbf16>
    %23 = vector.shape_cast %22 : vector<1x4x8x128xbf16> to vector<4x8x128xbf16>
    %24 = vector.shape_cast %23 : vector<4x8x128xbf16> to vector<32x128xbf16>
    %c3 = arith.constant 3 : index
    %c0_25 = arith.constant 0 : index
    %c0_26 = arith.constant 0 : index
    %25 = vector.load %arg2[%c3, %c0_25, %c0_26] : memref<9x128x128xbf16, #tpu.memory_space<vmem>>, vector<1x128x128xbf16>
    %26 = vector.shape_cast %25 : vector<1x128x128xbf16> to vector<128x128xbf16>
    %cst_27 = arith.constant dense<0.000000e+00> : vector<32x128xf32>
    %27 = tpu.matmul %24, %26, %cst_27 {dimension_numbers = #tpu.dot_dimension_numbers<[1], [0], [0], [1], [0, 0, 1, 1], [], []>} : vector<32x128xbf16>, vector<128x128xbf16>, vector<32x128xf32> -> vector<32x128xf32>
    %28 = arith.addf %21, %27 : vector<32x128xf32>
    %c3_28 = arith.constant 3 : index
    %c0_29 = arith.constant 0 : index
    %c0_30 = arith.constant 0 : index
    %c0_31 = arith.constant 0 : index
    %29 = vector.load %arg1[%c3_28, %c0_29, %c0_30, %c0_31] : memref<4x5x9x128xbf16, #tpu.memory_space<vmem>>, vector<1x4x8x128xbf16>
    %30 = vector.shape_cast %29 : vector<1x4x8x128xbf16> to vector<4x8x128xbf16>
    %31 = vector.shape_cast %30 : vector<4x8x128xbf16> to vector<32x128xbf16>
    %c4 = arith.constant 4 : index
    %c0_32 = arith.constant 0 : index
    %c0_33 = arith.constant 0 : index
    %32 = vector.load %arg2[%c4, %c0_32, %c0_33] : memref<9x128x128xbf16, #tpu.memory_space<vmem>>, vector<1x128x128xbf16>
    %33 = vector.shape_cast %32 : vector<1x128x128xbf16> to vector<128x128xbf16>
    %cst_34 = arith.constant dense<0.000000e+00> : vector<32x128xf32>
    %34 = tpu.matmul %31, %33, %cst_34 {dimension_numbers = #tpu.dot_dimension_numbers<[1], [0], [0], [1], [0, 0, 1, 1], [], []>} : vector<32x128xbf16>, vector<128x128xbf16>, vector<32x128xf32> -> vector<32x128xf32>
    %35 = arith.addf %28, %34 : vector<32x128xf32>
    %c2_35 = arith.constant 2 : index
    %c0_36 = arith.constant 0 : index
    %c1_37 = arith.constant 1 : index
    %c0_38 = arith.constant 0 : index
    %36 = vector.load %arg1[%c2_35, %c0_36, %c1_37, %c0_38] : memref<4x5x9x128xbf16, #tpu.memory_space<vmem>>, vector<1x4x8x128xbf16>
    %37 = vector.shape_cast %36 : vector<1x4x8x128xbf16> to vector<4x8x128xbf16>
    %38 = vector.shape_cast %37 : vector<4x8x128xbf16> to vector<32x128xbf16>
    %c5 = arith.constant 5 : index
    %c0_39 = arith.constant 0 : index
    %c0_40 = arith.constant 0 : index
    %39 = vector.load %arg2[%c5, %c0_39, %c0_40] : memref<9x128x128xbf16, #tpu.memory_space<vmem>>, vector<1x128x128xbf16>
    %40 = vector.shape_cast %39 : vector<1x128x128xbf16> to vector<128x128xbf16>
    %cst_41 = arith.constant dense<0.000000e+00> : vector<32x128xf32>
    %41 = tpu.matmul %38, %40, %cst_41 {dimension_numbers = #tpu.dot_dimension_numbers<[1], [0], [0], [1], [0, 0, 1, 1], [], []>} : vector<32x128xbf16>, vector<128x128xbf16>, vector<32x128xf32> -> vector<32x128xf32>
    %42 = arith.addf %35, %41 : vector<32x128xf32>
    %c0_42 = arith.constant 0 : index
    %c1_43 = arith.constant 1 : index
    %c0_44 = arith.constant 0 : index
    %c0_45 = arith.constant 0 : index
    %43 = vector.load %arg1[%c0_42, %c1_43, %c0_44, %c0_45] : memref<4x5x9x128xbf16, #tpu.memory_space<vmem>>, vector<1x4x8x128xbf16>
    %44 = vector.shape_cast %43 : vector<1x4x8x128xbf16> to vector<4x8x128xbf16>
    %45 = vector.shape_cast %44 : vector<4x8x128xbf16> to vector<32x128xbf16>
    %c6 = arith.constant 6 : index
    %c0_46 = arith.constant 0 : index
    %c0_47 = arith.constant 0 : index
    %46 = vector.load %arg2[%c6, %c0_46, %c0_47] : memref<9x128x128xbf16, #tpu.memory_space<vmem>>, vector<1x128x128xbf16>
    %47 = vector.shape_cast %46 : vector<1x128x128xbf16> to vector<128x128xbf16>
    %cst_48 = arith.constant dense<0.000000e+00> : vector<32x128xf32>
    %48 = tpu.matmul %45, %47, %cst_48 {dimension_numbers = #tpu.dot_dimension_numbers<[1], [0], [0], [1], [0, 0, 1, 1], [], []>} : vector<32x128xbf16>, vector<128x128xbf16>, vector<32x128xf32> -> vector<32x128xf32>
    %49 = arith.addf %42, %48 : vector<32x128xf32>
    %c1_49 = arith.constant 1 : index
    %c1_50 = arith.constant 1 : index
    %c0_51 = arith.constant 0 : index
    %c0_52 = arith.constant 0 : index
    %50 = vector.load %arg1[%c1_49, %c1_50, %c0_51, %c0_52] : memref<4x5x9x128xbf16, #tpu.memory_space<vmem>>, vector<1x4x8x128xbf16>
    %51 = vector.shape_cast %50 : vector<1x4x8x128xbf16> to vector<4x8x128xbf16>
    %52 = vector.shape_cast %51 : vector<4x8x128xbf16> to vector<32x128xbf16>
    %c7 = arith.constant 7 : index
    %c0_53 = arith.constant 0 : index
    %c0_54 = arith.constant 0 : index
    %53 = vector.load %arg2[%c7, %c0_53, %c0_54] : memref<9x128x128xbf16, #tpu.memory_space<vmem>>, vector<1x128x128xbf16>
    %54 = vector.shape_cast %53 : vector<1x128x128xbf16> to vector<128x128xbf16>
    %cst_55 = arith.constant dense<0.000000e+00> : vector<32x128xf32>
    %55 = tpu.matmul %52, %54, %cst_55 {dimension_numbers = #tpu.dot_dimension_numbers<[1], [0], [0], [1], [0, 0, 1, 1], [], []>} : vector<32x128xbf16>, vector<128x128xbf16>, vector<32x128xf32> -> vector<32x128xf32>
    %56 = arith.addf %49, %55 : vector<32x128xf32>
    %c0_56 = arith.constant 0 : index
    %c1_57 = arith.constant 1 : index
    %c1_58 = arith.constant 1 : index
    %c0_59 = arith.constant 0 : index
    %57 = vector.load %arg1[%c0_56, %c1_57, %c1_58, %c0_59] : memref<4x5x9x128xbf16, #tpu.memory_space<vmem>>, vector<1x4x8x128xbf16>
    %58 = vector.shape_cast %57 : vector<1x4x8x128xbf16> to vector<4x8x128xbf16>
    %59 = vector.shape_cast %58 : vector<4x8x128xbf16> to vector<32x128xbf16>
    %c8 = arith.constant 8 : index
    %c0_60 = arith.constant 0 : index
    %c0_61 = arith.constant 0 : index
    %60 = vector.load %arg2[%c8, %c0_60, %c0_61] : memref<9x128x128xbf16, #tpu.memory_space<vmem>>, vector<1x128x128xbf16>
    %61 = vector.shape_cast %60 : vector<1x128x128xbf16> to vector<128x128xbf16>
    %cst_62 = arith.constant dense<0.000000e+00> : vector<32x128xf32>
    %62 = tpu.matmul %59, %61, %cst_62 {dimension_numbers = #tpu.dot_dimension_numbers<[1], [0], [0], [1], [0, 0, 1, 1], [], []>} : vector<32x128xbf16>, vector<128x128xbf16>, vector<32x128xf32> -> vector<32x128xf32>
    %63 = arith.addf %56, %62 : vector<32x128xf32>
    %c0_63 = arith.constant 0 : index
    %c0_64 = arith.constant 0 : index
    %64 = vector.load %arg3[%c0_63, %c0_64] : memref<1x128xf32, #tpu.memory_space<vmem>>, vector<1x128xf32>
    %65 = vector.broadcast %64 : vector<1x128xf32> to vector<32x128xf32>
    %66 = arith.mulf %63, %65 : vector<32x128xf32>
    %c0_65 = arith.constant 0 : index
    %c0_66 = arith.constant 0 : index
    %67 = vector.load %arg4[%c0_65, %c0_66] : memref<1x128xf32, #tpu.memory_space<vmem>>, vector<1x128xf32>
    %68 = vector.broadcast %67 : vector<1x128xf32> to vector<32x128xf32>
    %69 = arith.addf %66, %68 : vector<32x128xf32>
    %cst_67 = arith.constant 0.000000e+00 : f32
    %70 = vector.broadcast %cst_67 : f32 to vector<32x128xf32>
    %71 = arith.maximumf %69, %70 : vector<32x128xf32>
    %72 = arith.truncf %71 : vector<32x128xf32> to vector<32x128xbf16>
    %c0_68 = arith.constant 0 : index
    %c0_69 = arith.constant 0 : index
    %c0_70 = arith.constant 0 : index
    %73 = vector.load %arg5[%c0_68, %c0_69, %c0_70] : memref<1x32x128xbf16, #tpu.memory_space<vmem>>, vector<1x32x128xbf16>
    %74 = vector.shape_cast %73 : vector<1x32x128xbf16> to vector<32x128xbf16>
    %75 = vector.shape_cast %72 : vector<32x128xbf16> to vector<1x32x128xbf16>
    tpu.vector_store %arg5[%c0_68, %c0_69, %c0_70], %75 {strides = array<i32>} : memref<1x32x128xbf16, #tpu.memory_space<vmem>>, vector<1x32x128xbf16>,
    return
  }
  func.func @transform_0(%arg0: i32) -> (i32, i32, i32, i32) {
    %c0_i32 = arith.constant 0 : i32
    %c0_i32_0 = arith.constant 0 : i32
    %c0_i32_1 = arith.constant 0 : i32
    %c0_i32_2 = arith.constant 0 : i32
    return %arg0, %c0_i32, %c0_i32_0, %c0_i32_1 : i32, i32, i32, i32
  }
  func.func @transform_1(%arg0: i32) -> (i32, i32, i32) {
    %c0_i32 = arith.constant 0 : i32
    %c0_i32_0 = arith.constant 0 : i32
    %c0_i32_1 = arith.constant 0 : i32
    %c0_i32_2 = arith.constant 0 : i32
    return %c0_i32, %c0_i32_0, %c0_i32_1 : i32, i32, i32
  }
  func.func @transform_2(%arg0: i32) -> (i32, i32) {
    %c0_i32 = arith.constant 0 : i32
    %c0_i32_0 = arith.constant 0 : i32
    %c0_i32_1 = arith.constant 0 : i32
    return %c0_i32, %c0_i32_0 : i32, i32
  }
  func.func @transform_3(%arg0: i32) -> (i32, i32) {
    %c0_i32 = arith.constant 0 : i32
    %c0_i32_0 = arith.constant 0 : i32
    %c0_i32_1 = arith.constant 0 : i32
    return %c0_i32, %c0_i32_0 : i32, i32
  }
  func.func @transform_4(%arg0: i32) -> (i32, i32, i32) {
    %c0_i32 = arith.constant 0 : i32
    %c0_i32_0 = arith.constant 0 : i32
    %c0_i32_1 = arith.constant 0 : i32
    return %arg0, %c0_i32, %c0_i32_0 : i32, i32, i32
  }
}

module attributes {stable_mosaic.version = 11 : i64} {
  func.func @kernel(%arg0: i32, %arg1: memref<1x6x10x128xbf16, #tpu.memory_space<vmem>>, %arg2: memref<9x128x128xbf16, #tpu.memory_space<vmem>>, %arg3: memref<1x128xf32, #tpu.memory_space<vmem>>, %arg4: memref<1x128xf32, #tpu.memory_space<vmem>>, %arg5: memref<1x32x128xbf16, #tpu.memory_space<vmem>>, %arg6: memref<128x128xbf16, #tpu.memory_space<vmem>>, %arg7: memref<1x128xf32, #tpu.memory_space<vmem>>, %arg8: memref<1x128xf32, #tpu.memory_space<vmem>>, %arg9: memref<1x32x128xbf16, #tpu.memory_space<vmem>>) attributes {dimension_semantics = [#tpu.dimension_semantics<parallel>], iteration_bounds = array<i64: 2>, scalar_prefetch = 0 : i64, scratch_operands = 0 : i64, tpu.core_type = #tpu.core_type<tc>, window_params = [{transform_indices = @transform_0, window_bounds = array<i64: 1, 6, 10, 128>}, {pipeline_mode = #tpu.pipeline_mode<synchronous>, transform_indices = @transform_1, window_bounds = array<i64: 9, 128, 128>}, {pipeline_mode = #tpu.pipeline_mode<synchronous>, transform_indices = @transform_2, window_bounds = array<i64: 1, 128>}, {pipeline_mode = #tpu.pipeline_mode<synchronous>, transform_indices = @transform_3, window_bounds = array<i64: 1, 128>}, {transform_indices = @transform_4, window_bounds = array<i64: 1, 32, 128>}, {pipeline_mode = #tpu.pipeline_mode<synchronous>, transform_indices = @transform_5, window_bounds = array<i64: 128, 128>}, {pipeline_mode = #tpu.pipeline_mode<synchronous>, transform_indices = @transform_6, window_bounds = array<i64: 1, 128>}, {pipeline_mode = #tpu.pipeline_mode<synchronous>, transform_indices = @transform_7, window_bounds = array<i64: 1, 128>}, {transform_indices = @transform_8, window_bounds = array<i64: 1, 32, 128>}]} {
    %cst = arith.constant 0.000000e+00 : f32
    %0 = vector.broadcast %cst : f32 to vector<32x128xf32>
    %c0 = arith.constant 0 : index
    %c0_0 = arith.constant 0 : index
    %c0_1 = arith.constant 0 : index
    %c0_2 = arith.constant 0 : index
    %1 = vector.load %arg1[%c0, %c0_0, %c0_1, %c0_2] : memref<1x6x10x128xbf16, #tpu.memory_space<vmem>>, vector<1x4x8x128xbf16>
    %2 = vector.shape_cast %1 : vector<1x4x8x128xbf16> to vector<4x8x128xbf16>
    %3 = vector.shape_cast %2 : vector<4x8x128xbf16> to vector<32x128xbf16>
    %c0_3 = arith.constant 0 : index
    %c0_4 = arith.constant 0 : index
    %c0_5 = arith.constant 0 : index
    %4 = vector.load %arg2[%c0_3, %c0_4, %c0_5] : memref<9x128x128xbf16, #tpu.memory_space<vmem>>, vector<1x128x128xbf16>
    %5 = vector.shape_cast %4 : vector<1x128x128xbf16> to vector<128x128xbf16>
    %cst_6 = arith.constant dense<0.000000e+00> : vector<32x128xf32>
    %6 = tpu.matmul %3, %5, %cst_6 {dimension_numbers = #tpu.dot_dimension_numbers<[1], [0], [0], [1], [0, 0, 1, 1], [], []>} : vector<32x128xbf16>, vector<128x128xbf16>, vector<32x128xf32> -> vector<32x128xf32>
    %7 = arith.addf %0, %6 : vector<32x128xf32>
    %c0_7 = arith.constant 0 : index
    %c0_8 = arith.constant 0 : index
    %c1 = arith.constant 1 : index
    %c0_9 = arith.constant 0 : index
    %8 = vector.load %arg1[%c0_7, %c0_8, %c1, %c0_9] : memref<1x6x10x128xbf16, #tpu.memory_space<vmem>>, vector<1x4x8x128xbf16>
    %9 = vector.shape_cast %8 : vector<1x4x8x128xbf16> to vector<4x8x128xbf16>
    %10 = vector.shape_cast %9 : vector<4x8x128xbf16> to vector<32x128xbf16>
    %c1_10 = arith.constant 1 : index
    %c0_11 = arith.constant 0 : index
    %c0_12 = arith.constant 0 : index
    %11 = vector.load %arg2[%c1_10, %c0_11, %c0_12] : memref<9x128x128xbf16, #tpu.memory_space<vmem>>, vector<1x128x128xbf16>
    %12 = vector.shape_cast %11 : vector<1x128x128xbf16> to vector<128x128xbf16>
    %cst_13 = arith.constant dense<0.000000e+00> : vector<32x128xf32>
    %13 = tpu.matmul %10, %12, %cst_13 {dimension_numbers = #tpu.dot_dimension_numbers<[1], [0], [0], [1], [0, 0, 1, 1], [], []>} : vector<32x128xbf16>, vector<128x128xbf16>, vector<32x128xf32> -> vector<32x128xf32>
    %14 = arith.addf %7, %13 : vector<32x128xf32>
    %c0_14 = arith.constant 0 : index
    %c0_15 = arith.constant 0 : index
    %c2 = arith.constant 2 : index
    %c0_16 = arith.constant 0 : index
    %15 = vector.load %arg1[%c0_14, %c0_15, %c2, %c0_16] : memref<1x6x10x128xbf16, #tpu.memory_space<vmem>>, vector<1x4x8x128xbf16>
    %16 = vector.shape_cast %15 : vector<1x4x8x128xbf16> to vector<4x8x128xbf16>
    %17 = vector.shape_cast %16 : vector<4x8x128xbf16> to vector<32x128xbf16>
    %c2_17 = arith.constant 2 : index
    %c0_18 = arith.constant 0 : index
    %c0_19 = arith.constant 0 : index
    %18 = vector.load %arg2[%c2_17, %c0_18, %c0_19] : memref<9x128x128xbf16, #tpu.memory_space<vmem>>, vector<1x128x128xbf16>
    %19 = vector.shape_cast %18 : vector<1x128x128xbf16> to vector<128x128xbf16>
    %cst_20 = arith.constant dense<0.000000e+00> : vector<32x128xf32>
    %20 = tpu.matmul %17, %19, %cst_20 {dimension_numbers = #tpu.dot_dimension_numbers<[1], [0], [0], [1], [0, 0, 1, 1], [], []>} : vector<32x128xbf16>, vector<128x128xbf16>, vector<32x128xf32> -> vector<32x128xf32>
    %21 = arith.addf %14, %20 : vector<32x128xf32>
    %c0_21 = arith.constant 0 : index
    %c1_22 = arith.constant 1 : index
    %c0_23 = arith.constant 0 : index
    %c0_24 = arith.constant 0 : index
    %22 = vector.load %arg1[%c0_21, %c1_22, %c0_23, %c0_24] : memref<1x6x10x128xbf16, #tpu.memory_space<vmem>>, vector<1x4x8x128xbf16>
    %23 = vector.shape_cast %22 : vector<1x4x8x128xbf16> to vector<4x8x128xbf16>
    %24 = vector.shape_cast %23 : vector<4x8x128xbf16> to vector<32x128xbf16>
    %c3 = arith.constant 3 : index
    %c0_25 = arith.constant 0 : index
    %c0_26 = arith.constant 0 : index
    %25 = vector.load %arg2[%c3, %c0_25, %c0_26] : memref<9x128x128xbf16, #tpu.memory_space<vmem>>, vector<1x128x128xbf16>
    %26 = vector.shape_cast %25 : vector<1x128x128xbf16> to vector<128x128xbf16>
    %cst_27 = arith.constant dense<0.000000e+00> : vector<32x128xf32>
    %27 = tpu.matmul %24, %26, %cst_27 {dimension_numbers = #tpu.dot_dimension_numbers<[1], [0], [0], [1], [0, 0, 1, 1], [], []>} : vector<32x128xbf16>, vector<128x128xbf16>, vector<32x128xf32> -> vector<32x128xf32>
    %28 = arith.addf %21, %27 : vector<32x128xf32>
    %c0_28 = arith.constant 0 : index
    %c1_29 = arith.constant 1 : index
    %c1_30 = arith.constant 1 : index
    %c0_31 = arith.constant 0 : index
    %29 = vector.load %arg1[%c0_28, %c1_29, %c1_30, %c0_31] : memref<1x6x10x128xbf16, #tpu.memory_space<vmem>>, vector<1x4x8x128xbf16>
    %30 = vector.shape_cast %29 : vector<1x4x8x128xbf16> to vector<4x8x128xbf16>
    %31 = vector.shape_cast %30 : vector<4x8x128xbf16> to vector<32x128xbf16>
    %c4 = arith.constant 4 : index
    %c0_32 = arith.constant 0 : index
    %c0_33 = arith.constant 0 : index
    %32 = vector.load %arg2[%c4, %c0_32, %c0_33] : memref<9x128x128xbf16, #tpu.memory_space<vmem>>, vector<1x128x128xbf16>
    %33 = vector.shape_cast %32 : vector<1x128x128xbf16> to vector<128x128xbf16>
    %cst_34 = arith.constant dense<0.000000e+00> : vector<32x128xf32>
    %34 = tpu.matmul %31, %33, %cst_34 {dimension_numbers = #tpu.dot_dimension_numbers<[1], [0], [0], [1], [0, 0, 1, 1], [], []>} : vector<32x128xbf16>, vector<128x128xbf16>, vector<32x128xf32> -> vector<32x128xf32>
    %35 = arith.addf %28, %34 : vector<32x128xf32>
    %c0_35 = arith.constant 0 : index
    %c1_36 = arith.constant 1 : index
    %c2_37 = arith.constant 2 : index
    %c0_38 = arith.constant 0 : index
    %36 = vector.load %arg1[%c0_35, %c1_36, %c2_37, %c0_38] : memref<1x6x10x128xbf16, #tpu.memory_space<vmem>>, vector<1x4x8x128xbf16>
    %37 = vector.shape_cast %36 : vector<1x4x8x128xbf16> to vector<4x8x128xbf16>
    %38 = vector.shape_cast %37 : vector<4x8x128xbf16> to vector<32x128xbf16>
    %c5 = arith.constant 5 : index
    %c0_39 = arith.constant 0 : index
    %c0_40 = arith.constant 0 : index
    %39 = vector.load %arg2[%c5, %c0_39, %c0_40] : memref<9x128x128xbf16, #tpu.memory_space<vmem>>, vector<1x128x128xbf16>
    %40 = vector.shape_cast %39 : vector<1x128x128xbf16> to vector<128x128xbf16>
    %cst_41 = arith.constant dense<0.000000e+00> : vector<32x128xf32>
    %41 = tpu.matmul %38, %40, %cst_41 {dimension_numbers = #tpu.dot_dimension_numbers<[1], [0], [0], [1], [0, 0, 1, 1], [], []>} : vector<32x128xbf16>, vector<128x128xbf16>, vector<32x128xf32> -> vector<32x128xf32>
    %42 = arith.addf %35, %41 : vector<32x128xf32>
    %c0_42 = arith.constant 0 : index
    %c2_43 = arith.constant 2 : index
    %c0_44 = arith.constant 0 : index
    %c0_45 = arith.constant 0 : index
    %43 = vector.load %arg1[%c0_42, %c2_43, %c0_44, %c0_45] : memref<1x6x10x128xbf16, #tpu.memory_space<vmem>>, vector<1x4x8x128xbf16>
    %44 = vector.shape_cast %43 : vector<1x4x8x128xbf16> to vector<4x8x128xbf16>
    %45 = vector.shape_cast %44 : vector<4x8x128xbf16> to vector<32x128xbf16>
    %c6 = arith.constant 6 : index
    %c0_46 = arith.constant 0 : index
    %c0_47 = arith.constant 0 : index
    %46 = vector.load %arg2[%c6, %c0_46, %c0_47] : memref<9x128x128xbf16, #tpu.memory_space<vmem>>, vector<1x128x128xbf16>
    %47 = vector.shape_cast %46 : vector<1x128x128xbf16> to vector<128x128xbf16>
    %cst_48 = arith.constant dense<0.000000e+00> : vector<32x128xf32>
    %48 = tpu.matmul %45, %47, %cst_48 {dimension_numbers = #tpu.dot_dimension_numbers<[1], [0], [0], [1], [0, 0, 1, 1], [], []>} : vector<32x128xbf16>, vector<128x128xbf16>, vector<32x128xf32> -> vector<32x128xf32>
    %49 = arith.addf %42, %48 : vector<32x128xf32>
    %c0_49 = arith.constant 0 : index
    %c2_50 = arith.constant 2 : index
    %c1_51 = arith.constant 1 : index
    %c0_52 = arith.constant 0 : index
    %50 = vector.load %arg1[%c0_49, %c2_50, %c1_51, %c0_52] : memref<1x6x10x128xbf16, #tpu.memory_space<vmem>>, vector<1x4x8x128xbf16>
    %51 = vector.shape_cast %50 : vector<1x4x8x128xbf16> to vector<4x8x128xbf16>
    %52 = vector.shape_cast %51 : vector<4x8x128xbf16> to vector<32x128xbf16>
    %c7 = arith.constant 7 : index
    %c0_53 = arith.constant 0 : index
    %c0_54 = arith.constant 0 : index
    %53 = vector.load %arg2[%c7, %c0_53, %c0_54] : memref<9x128x128xbf16, #tpu.memory_space<vmem>>, vector<1x128x128xbf16>
    %54 = vector.shape_cast %53 : vector<1x128x128xbf16> to vector<128x128xbf16>
    %cst_55 = arith.constant dense<0.000000e+00> : vector<32x128xf32>
    %55 = tpu.matmul %52, %54, %cst_55 {dimension_numbers = #tpu.dot_dimension_numbers<[1], [0], [0], [1], [0, 0, 1, 1], [], []>} : vector<32x128xbf16>, vector<128x128xbf16>, vector<32x128xf32> -> vector<32x128xf32>
    %56 = arith.addf %49, %55 : vector<32x128xf32>
    %c0_56 = arith.constant 0 : index
    %c2_57 = arith.constant 2 : index
    %c2_58 = arith.constant 2 : index
    %c0_59 = arith.constant 0 : index
    %57 = vector.load %arg1[%c0_56, %c2_57, %c2_58, %c0_59] : memref<1x6x10x128xbf16, #tpu.memory_space<vmem>>, vector<1x4x8x128xbf16>
    %58 = vector.shape_cast %57 : vector<1x4x8x128xbf16> to vector<4x8x128xbf16>
    %59 = vector.shape_cast %58 : vector<4x8x128xbf16> to vector<32x128xbf16>
    %c8 = arith.constant 8 : index
    %c0_60 = arith.constant 0 : index
    %c0_61 = arith.constant 0 : index
    %60 = vector.load %arg2[%c8, %c0_60, %c0_61] : memref<9x128x128xbf16, #tpu.memory_space<vmem>>, vector<1x128x128xbf16>
    %61 = vector.shape_cast %60 : vector<1x128x128xbf16> to vector<128x128xbf16>
    %cst_62 = arith.constant dense<0.000000e+00> : vector<32x128xf32>
    %62 = tpu.matmul %59, %61, %cst_62 {dimension_numbers = #tpu.dot_dimension_numbers<[1], [0], [0], [1], [0, 0, 1, 1], [], []>} : vector<32x128xbf16>, vector<128x128xbf16>, vector<32x128xf32> -> vector<32x128xf32>
    %63 = arith.addf %56, %62 : vector<32x128xf32>
    %c0_63 = arith.constant 0 : index
    %c0_64 = arith.constant 0 : index
    %64 = vector.load %arg3[%c0_63, %c0_64] : memref<1x128xf32, #tpu.memory_space<vmem>>, vector<1x128xf32>
    %65 = vector.broadcast %64 : vector<1x128xf32> to vector<32x128xf32>
    %66 = arith.mulf %63, %65 : vector<32x128xf32>
    %c0_65 = arith.constant 0 : index
    %c0_66 = arith.constant 0 : index
    %67 = vector.load %arg4[%c0_65, %c0_66] : memref<1x128xf32, #tpu.memory_space<vmem>>, vector<1x128xf32>
    %68 = vector.broadcast %67 : vector<1x128xf32> to vector<32x128xf32>
    %69 = arith.addf %66, %68 : vector<32x128xf32>
    %c0_67 = arith.constant 0 : index
    %c0_68 = arith.constant 0 : index
    %c0_69 = arith.constant 0 : index
    %70 = vector.load %arg5[%c0_67, %c0_68, %c0_69] : memref<1x32x128xbf16, #tpu.memory_space<vmem>>, vector<1x32x128xbf16>
    %71 = vector.shape_cast %70 : vector<1x32x128xbf16> to vector<32x128xbf16>
    %c0_70 = arith.constant 0 : index
    %c0_71 = arith.constant 0 : index
    %72 = vector.load %arg6[%c0_70, %c0_71] : memref<128x128xbf16, #tpu.memory_space<vmem>>, vector<128x128xbf16>
    %cst_72 = arith.constant dense<0.000000e+00> : vector<32x128xf32>
    %73 = tpu.matmul %71, %72, %cst_72 {dimension_numbers = #tpu.dot_dimension_numbers<[1], [0], [0], [1], [0, 0, 1, 1], [], []>} : vector<32x128xbf16>, vector<128x128xbf16>, vector<32x128xf32> -> vector<32x128xf32>
    %c0_73 = arith.constant 0 : index
    %c0_74 = arith.constant 0 : index
    %74 = vector.load %arg7[%c0_73, %c0_74] : memref<1x128xf32, #tpu.memory_space<vmem>>, vector<1x128xf32>
    %75 = vector.broadcast %74 : vector<1x128xf32> to vector<32x128xf32>
    %76 = arith.mulf %73, %75 : vector<32x128xf32>
    %c0_75 = arith.constant 0 : index
    %c0_76 = arith.constant 0 : index
    %77 = vector.load %arg8[%c0_75, %c0_76] : memref<1x128xf32, #tpu.memory_space<vmem>>, vector<1x128xf32>
    %78 = vector.broadcast %77 : vector<1x128xf32> to vector<32x128xf32>
    %79 = arith.addf %76, %78 : vector<32x128xf32>
    %80 = arith.addf %69, %79 : vector<32x128xf32>
    %81 = arith.truncf %80 : vector<32x128xf32> to vector<32x128xbf16>
    %c0_77 = arith.constant 0 : index
    %c0_78 = arith.constant 0 : index
    %c0_79 = arith.constant 0 : index
    %82 = vector.load %arg9[%c0_77, %c0_78, %c0_79] : memref<1x32x128xbf16, #tpu.memory_space<vmem>>, vector<1x32x128xbf16>
    %83 = vector.shape_cast %82 : vector<1x32x128xbf16> to vector<32x128xbf16>
    %84 = vector.shape_cast %81 : vector<32x128xbf16> to vector<1x32x128xbf16>
    tpu.vector_store %arg9[%c0_77, %c0_78, %c0_79], %84 {strides = array<i32>} : memref<1x32x128xbf16, #tpu.memory_space<vmem>>, vector<1x32x128xbf16>,
    return
  }
  func.func @transform_0(%arg0: i32) -> (i32, i32, i32, i32) {
    %c0_i32 = arith.constant 0 : i32
    %c0_i32_0 = arith.constant 0 : i32
    %c0_i32_1 = arith.constant 0 : i32
    %c0_i32_2 = arith.constant 0 : i32
    return %arg0, %c0_i32, %c0_i32_0, %c0_i32_1 : i32, i32, i32, i32
  }
  func.func @transform_1(%arg0: i32) -> (i32, i32, i32) {
    %c0_i32 = arith.constant 0 : i32
    %c0_i32_0 = arith.constant 0 : i32
    %c0_i32_1 = arith.constant 0 : i32
    %c0_i32_2 = arith.constant 0 : i32
    return %c0_i32, %c0_i32_0, %c0_i32_1 : i32, i32, i32
  }
  func.func @transform_2(%arg0: i32) -> (i32, i32) {
    %c0_i32 = arith.constant 0 : i32
    %c0_i32_0 = arith.constant 0 : i32
    %c0_i32_1 = arith.constant 0 : i32
    return %c0_i32, %c0_i32_0 : i32, i32
  }
  func.func @transform_3(%arg0: i32) -> (i32, i32) {
    %c0_i32 = arith.constant 0 : i32
    %c0_i32_0 = arith.constant 0 : i32
    %c0_i32_1 = arith.constant 0 : i32
    return %c0_i32, %c0_i32_0 : i32, i32
  }
  func.func @transform_4(%arg0: i32) -> (i32, i32, i32) {
    %c0_i32 = arith.constant 0 : i32
    %c0_i32_0 = arith.constant 0 : i32
    %c0_i32_1 = arith.constant 0 : i32
    return %arg0, %c0_i32, %c0_i32_0 : i32, i32, i32
  }
  func.func @transform_5(%arg0: i32) -> (i32, i32) {
    %c0_i32 = arith.constant 0 : i32
    %c0_i32_0 = arith.constant 0 : i32
    %c0_i32_1 = arith.constant 0 : i32
    return %c0_i32, %c0_i32_0 : i32, i32
  }
  func.func @transform_6(%arg0: i32) -> (i32, i32) {
    %c0_i32 = arith.constant 0 : i32
    %c0_i32_0 = arith.constant 0 : i32
    %c0_i32_1 = arith.constant 0 : i32
    return %c0_i32, %c0_i32_0 : i32, i32
  }
  func.func @transform_7(%arg0: i32) -> (i32, i32) {
    %c0_i32 = arith.constant 0 : i32
    %c0_i32_0 = arith.constant 0 : i32
    %c0_i32_1 = arith.constant 0 : i32
    return %c0_i32, %c0_i32_0 : i32, i32
  }
  func.func @transform_8(%arg0: i32) -> (i32, i32, i32) {
    %c0_i32 = arith.constant 0 : i32
    %c0_i32_0 = arith.constant 0 : i32
    %c0_i32_1 = arith.constant 0 : i32
    return %arg0, %c0_i32, %c0_i32_0 : i32, i32, i32
  }
}

module attributes {stable_mosaic.version = 11 : i64} {
  func.func @kernel(%arg0: i32, %arg1: memref<1x6x10x128xbf16, #tpu.memory_space<vmem>>, %arg2: memref<9x128x128xbf16, #tpu.memory_space<vmem>>, %arg3: memref<1x128xf32, #tpu.memory_space<vmem>>, %arg4: memref<1x128xf32, #tpu.memory_space<vmem>>, %arg5: memref<1x32x128xbf16, #tpu.memory_space<vmem>>) attributes {dimension_semantics = [#tpu.dimension_semantics<parallel>], iteration_bounds = array<i64: 2>, scalar_prefetch = 0 : i64, scratch_operands = 0 : i64, tpu.core_type = #tpu.core_type<tc>, window_params = [{transform_indices = @transform_0, window_bounds = array<i64: 1, 6, 10, 128>}, {pipeline_mode = #tpu.pipeline_mode<synchronous>, transform_indices = @transform_1, window_bounds = array<i64: 9, 128, 128>}, {pipeline_mode = #tpu.pipeline_mode<synchronous>, transform_indices = @transform_2, window_bounds = array<i64: 1, 128>}, {pipeline_mode = #tpu.pipeline_mode<synchronous>, transform_indices = @transform_3, window_bounds = array<i64: 1, 128>}, {transform_indices = @transform_4, window_bounds = array<i64: 1, 32, 128>}]} {
    %cst = arith.constant 0.000000e+00 : f32
    %0 = vector.broadcast %cst : f32 to vector<32x128xf32>
    %c0 = arith.constant 0 : index
    %c0_0 = arith.constant 0 : index
    %c0_1 = arith.constant 0 : index
    %c0_2 = arith.constant 0 : index
    %1 = vector.load %arg1[%c0, %c0_0, %c0_1, %c0_2] : memref<1x6x10x128xbf16, #tpu.memory_space<vmem>>, vector<1x4x8x128xbf16>
    %2 = vector.shape_cast %1 : vector<1x4x8x128xbf16> to vector<4x8x128xbf16>
    %3 = vector.shape_cast %2 : vector<4x8x128xbf16> to vector<32x128xbf16>
    %c0_3 = arith.constant 0 : index
    %c0_4 = arith.constant 0 : index
    %c0_5 = arith.constant 0 : index
    %4 = vector.load %arg2[%c0_3, %c0_4, %c0_5] : memref<9x128x128xbf16, #tpu.memory_space<vmem>>, vector<1x128x128xbf16>
    %5 = vector.shape_cast %4 : vector<1x128x128xbf16> to vector<128x128xbf16>
    %cst_6 = arith.constant dense<0.000000e+00> : vector<32x128xf32>
    %6 = tpu.matmul %3, %5, %cst_6 {dimension_numbers = #tpu.dot_dimension_numbers<[1], [0], [0], [1], [0, 0, 1, 1], [], []>} : vector<32x128xbf16>, vector<128x128xbf16>, vector<32x128xf32> -> vector<32x128xf32>
    %7 = arith.addf %0, %6 : vector<32x128xf32>
    %c0_7 = arith.constant 0 : index
    %c0_8 = arith.constant 0 : index
    %c1 = arith.constant 1 : index
    %c0_9 = arith.constant 0 : index
    %8 = vector.load %arg1[%c0_7, %c0_8, %c1, %c0_9] : memref<1x6x10x128xbf16, #tpu.memory_space<vmem>>, vector<1x4x8x128xbf16>
    %9 = vector.shape_cast %8 : vector<1x4x8x128xbf16> to vector<4x8x128xbf16>
    %10 = vector.shape_cast %9 : vector<4x8x128xbf16> to vector<32x128xbf16>
    %c1_10 = arith.constant 1 : index
    %c0_11 = arith.constant 0 : index
    %c0_12 = arith.constant 0 : index
    %11 = vector.load %arg2[%c1_10, %c0_11, %c0_12] : memref<9x128x128xbf16, #tpu.memory_space<vmem>>, vector<1x128x128xbf16>
    %12 = vector.shape_cast %11 : vector<1x128x128xbf16> to vector<128x128xbf16>
    %cst_13 = arith.constant dense<0.000000e+00> : vector<32x128xf32>
    %13 = tpu.matmul %10, %12, %cst_13 {dimension_numbers = #tpu.dot_dimension_numbers<[1], [0], [0], [1], [0, 0, 1, 1], [], []>} : vector<32x128xbf16>, vector<128x128xbf16>, vector<32x128xf32> -> vector<32x128xf32>
    %14 = arith.addf %7, %13 : vector<32x128xf32>
    %c0_14 = arith.constant 0 : index
    %c0_15 = arith.constant 0 : index
    %c2 = arith.constant 2 : index
    %c0_16 = arith.constant 0 : index
    %15 = vector.load %arg1[%c0_14, %c0_15, %c2, %c0_16] : memref<1x6x10x128xbf16, #tpu.memory_space<vmem>>, vector<1x4x8x128xbf16>
    %16 = vector.shape_cast %15 : vector<1x4x8x128xbf16> to vector<4x8x128xbf16>
    %17 = vector.shape_cast %16 : vector<4x8x128xbf16> to vector<32x128xbf16>
    %c2_17 = arith.constant 2 : index
    %c0_18 = arith.constant 0 : index
    %c0_19 = arith.constant 0 : index
    %18 = vector.load %arg2[%c2_17, %c0_18, %c0_19] : memref<9x128x128xbf16, #tpu.memory_space<vmem>>, vector<1x128x128xbf16>
    %19 = vector.shape_cast %18 : vector<1x128x128xbf16> to vector<128x128xbf16>
    %cst_20 = arith.constant dense<0.000000e+00> : vector<32x128xf32>
    %20 = tpu.matmul %17, %19, %cst_20 {dimension_numbers = #tpu.dot_dimension_numbers<[1], [0], [0], [1], [0, 0, 1, 1], [], []>} : vector<32x128xbf16>, vector<128x128xbf16>, vector<32x128xf32> -> vector<32x128xf32>
    %21 = arith.addf %14, %20 : vector<32x128xf32>
    %c0_21 = arith.constant 0 : index
    %c1_22 = arith.constant 1 : index
    %c0_23 = arith.constant 0 : index
    %c0_24 = arith.constant 0 : index
    %22 = vector.load %arg1[%c0_21, %c1_22, %c0_23, %c0_24] : memref<1x6x10x128xbf16, #tpu.memory_space<vmem>>, vector<1x4x8x128xbf16>
    %23 = vector.shape_cast %22 : vector<1x4x8x128xbf16> to vector<4x8x128xbf16>
    %24 = vector.shape_cast %23 : vector<4x8x128xbf16> to vector<32x128xbf16>
    %c3 = arith.constant 3 : index
    %c0_25 = arith.constant 0 : index
    %c0_26 = arith.constant 0 : index
    %25 = vector.load %arg2[%c3, %c0_25, %c0_26] : memref<9x128x128xbf16, #tpu.memory_space<vmem>>, vector<1x128x128xbf16>
    %26 = vector.shape_cast %25 : vector<1x128x128xbf16> to vector<128x128xbf16>
    %cst_27 = arith.constant dense<0.000000e+00> : vector<32x128xf32>
    %27 = tpu.matmul %24, %26, %cst_27 {dimension_numbers = #tpu.dot_dimension_numbers<[1], [0], [0], [1], [0, 0, 1, 1], [], []>} : vector<32x128xbf16>, vector<128x128xbf16>, vector<32x128xf32> -> vector<32x128xf32>
    %28 = arith.addf %21, %27 : vector<32x128xf32>
    %c0_28 = arith.constant 0 : index
    %c1_29 = arith.constant 1 : index
    %c1_30 = arith.constant 1 : index
    %c0_31 = arith.constant 0 : index
    %29 = vector.load %arg1[%c0_28, %c1_29, %c1_30, %c0_31] : memref<1x6x10x128xbf16, #tpu.memory_space<vmem>>, vector<1x4x8x128xbf16>
    %30 = vector.shape_cast %29 : vector<1x4x8x128xbf16> to vector<4x8x128xbf16>
    %31 = vector.shape_cast %30 : vector<4x8x128xbf16> to vector<32x128xbf16>
    %c4 = arith.constant 4 : index
    %c0_32 = arith.constant 0 : index
    %c0_33 = arith.constant 0 : index
    %32 = vector.load %arg2[%c4, %c0_32, %c0_33] : memref<9x128x128xbf16, #tpu.memory_space<vmem>>, vector<1x128x128xbf16>
    %33 = vector.shape_cast %32 : vector<1x128x128xbf16> to vector<128x128xbf16>
    %cst_34 = arith.constant dense<0.000000e+00> : vector<32x128xf32>
    %34 = tpu.matmul %31, %33, %cst_34 {dimension_numbers = #tpu.dot_dimension_numbers<[1], [0], [0], [1], [0, 0, 1, 1], [], []>} : vector<32x128xbf16>, vector<128x128xbf16>, vector<32x128xf32> -> vector<32x128xf32>
    %35 = arith.addf %28, %34 : vector<32x128xf32>
    %c0_35 = arith.constant 0 : index
    %c1_36 = arith.constant 1 : index
    %c2_37 = arith.constant 2 : index
    %c0_38 = arith.constant 0 : index
    %36 = vector.load %arg1[%c0_35, %c1_36, %c2_37, %c0_38] : memref<1x6x10x128xbf16, #tpu.memory_space<vmem>>, vector<1x4x8x128xbf16>
    %37 = vector.shape_cast %36 : vector<1x4x8x128xbf16> to vector<4x8x128xbf16>
    %38 = vector.shape_cast %37 : vector<4x8x128xbf16> to vector<32x128xbf16>
    %c5 = arith.constant 5 : index
    %c0_39 = arith.constant 0 : index
    %c0_40 = arith.constant 0 : index
    %39 = vector.load %arg2[%c5, %c0_39, %c0_40] : memref<9x128x128xbf16, #tpu.memory_space<vmem>>, vector<1x128x128xbf16>
    %40 = vector.shape_cast %39 : vector<1x128x128xbf16> to vector<128x128xbf16>
    %cst_41 = arith.constant dense<0.000000e+00> : vector<32x128xf32>
    %41 = tpu.matmul %38, %40, %cst_41 {dimension_numbers = #tpu.dot_dimension_numbers<[1], [0], [0], [1], [0, 0, 1, 1], [], []>} : vector<32x128xbf16>, vector<128x128xbf16>, vector<32x128xf32> -> vector<32x128xf32>
    %42 = arith.addf %35, %41 : vector<32x128xf32>
    %c0_42 = arith.constant 0 : index
    %c2_43 = arith.constant 2 : index
    %c0_44 = arith.constant 0 : index
    %c0_45 = arith.constant 0 : index
    %43 = vector.load %arg1[%c0_42, %c2_43, %c0_44, %c0_45] : memref<1x6x10x128xbf16, #tpu.memory_space<vmem>>, vector<1x4x8x128xbf16>
    %44 = vector.shape_cast %43 : vector<1x4x8x128xbf16> to vector<4x8x128xbf16>
    %45 = vector.shape_cast %44 : vector<4x8x128xbf16> to vector<32x128xbf16>
    %c6 = arith.constant 6 : index
    %c0_46 = arith.constant 0 : index
    %c0_47 = arith.constant 0 : index
    %46 = vector.load %arg2[%c6, %c0_46, %c0_47] : memref<9x128x128xbf16, #tpu.memory_space<vmem>>, vector<1x128x128xbf16>
    %47 = vector.shape_cast %46 : vector<1x128x128xbf16> to vector<128x128xbf16>
    %cst_48 = arith.constant dense<0.000000e+00> : vector<32x128xf32>
    %48 = tpu.matmul %45, %47, %cst_48 {dimension_numbers = #tpu.dot_dimension_numbers<[1], [0], [0], [1], [0, 0, 1, 1], [], []>} : vector<32x128xbf16>, vector<128x128xbf16>, vector<32x128xf32> -> vector<32x128xf32>
    %49 = arith.addf %42, %48 : vector<32x128xf32>
    %c0_49 = arith.constant 0 : index
    %c2_50 = arith.constant 2 : index
    %c1_51 = arith.constant 1 : index
    %c0_52 = arith.constant 0 : index
    %50 = vector.load %arg1[%c0_49, %c2_50, %c1_51, %c0_52] : memref<1x6x10x128xbf16, #tpu.memory_space<vmem>>, vector<1x4x8x128xbf16>
    %51 = vector.shape_cast %50 : vector<1x4x8x128xbf16> to vector<4x8x128xbf16>
    %52 = vector.shape_cast %51 : vector<4x8x128xbf16> to vector<32x128xbf16>
    %c7 = arith.constant 7 : index
    %c0_53 = arith.constant 0 : index
    %c0_54 = arith.constant 0 : index
    %53 = vector.load %arg2[%c7, %c0_53, %c0_54] : memref<9x128x128xbf16, #tpu.memory_space<vmem>>, vector<1x128x128xbf16>
    %54 = vector.shape_cast %53 : vector<1x128x128xbf16> to vector<128x128xbf16>
    %cst_55 = arith.constant dense<0.000000e+00> : vector<32x128xf32>
    %55 = tpu.matmul %52, %54, %cst_55 {dimension_numbers = #tpu.dot_dimension_numbers<[1], [0], [0], [1], [0, 0, 1, 1], [], []>} : vector<32x128xbf16>, vector<128x128xbf16>, vector<32x128xf32> -> vector<32x128xf32>
    %56 = arith.addf %49, %55 : vector<32x128xf32>
    %c0_56 = arith.constant 0 : index
    %c2_57 = arith.constant 2 : index
    %c2_58 = arith.constant 2 : index
    %c0_59 = arith.constant 0 : index
    %57 = vector.load %arg1[%c0_56, %c2_57, %c2_58, %c0_59] : memref<1x6x10x128xbf16, #tpu.memory_space<vmem>>, vector<1x4x8x128xbf16>
    %58 = vector.shape_cast %57 : vector<1x4x8x128xbf16> to vector<4x8x128xbf16>
    %59 = vector.shape_cast %58 : vector<4x8x128xbf16> to vector<32x128xbf16>
    %c8 = arith.constant 8 : index
    %c0_60 = arith.constant 0 : index
    %c0_61 = arith.constant 0 : index
    %60 = vector.load %arg2[%c8, %c0_60, %c0_61] : memref<9x128x128xbf16, #tpu.memory_space<vmem>>, vector<1x128x128xbf16>
    %61 = vector.shape_cast %60 : vector<1x128x128xbf16> to vector<128x128xbf16>
    %cst_62 = arith.constant dense<0.000000e+00> : vector<32x128xf32>
    %62 = tpu.matmul %59, %61, %cst_62 {dimension_numbers = #tpu.dot_dimension_numbers<[1], [0], [0], [1], [0, 0, 1, 1], [], []>} : vector<32x128xbf16>, vector<128x128xbf16>, vector<32x128xf32> -> vector<32x128xf32>
    %63 = arith.addf %56, %62 : vector<32x128xf32>
    %c0_63 = arith.constant 0 : index
    %c0_64 = arith.constant 0 : index
    %64 = vector.load %arg3[%c0_63, %c0_64] : memref<1x128xf32, #tpu.memory_space<vmem>>, vector<1x128xf32>
    %65 = vector.broadcast %64 : vector<1x128xf32> to vector<32x128xf32>
    %66 = arith.mulf %63, %65 : vector<32x128xf32>
    %c0_65 = arith.constant 0 : index
    %c0_66 = arith.constant 0 : index
    %67 = vector.load %arg4[%c0_65, %c0_66] : memref<1x128xf32, #tpu.memory_space<vmem>>, vector<1x128xf32>
    %68 = vector.broadcast %67 : vector<1x128xf32> to vector<32x128xf32>
    %69 = arith.addf %66, %68 : vector<32x128xf32>
    %cst_67 = arith.constant 0.000000e+00 : f32
    %70 = vector.broadcast %cst_67 : f32 to vector<32x128xf32>
    %71 = arith.maximumf %69, %70 : vector<32x128xf32>
    %72 = arith.truncf %71 : vector<32x128xf32> to vector<32x128xbf16>
    %c0_68 = arith.constant 0 : index
    %c0_69 = arith.constant 0 : index
    %c0_70 = arith.constant 0 : index
    %73 = vector.load %arg5[%c0_68, %c0_69, %c0_70] : memref<1x32x128xbf16, #tpu.memory_space<vmem>>, vector<1x32x128xbf16>
    %74 = vector.shape_cast %73 : vector<1x32x128xbf16> to vector<32x128xbf16>
    %75 = vector.shape_cast %72 : vector<32x128xbf16> to vector<1x32x128xbf16>
    tpu.vector_store %arg5[%c0_68, %c0_69, %c0_70], %75 {strides = array<i32>} : memref<1x32x128xbf16, #tpu.memory_space<vmem>>, vector<1x32x128xbf16>,
    return
  }
  func.func @transform_0(%arg0: i32) -> (i32, i32, i32, i32) {
    %c0_i32 = arith.constant 0 : i32
    %c0_i32_0 = arith.constant 0 : i32
    %c0_i32_1 = arith.constant 0 : i32
    %c0_i32_2 = arith.constant 0 : i32
    return %arg0, %c0_i32, %c0_i32_0, %c0_i32_1 : i32, i32, i32, i32
  }
  func.func @transform_1(%arg0: i32) -> (i32, i32, i32) {
    %c0_i32 = arith.constant 0 : i32
    %c0_i32_0 = arith.constant 0 : i32
    %c0_i32_1 = arith.constant 0 : i32
    %c0_i32_2 = arith.constant 0 : i32
    return %c0_i32, %c0_i32_0, %c0_i32_1 : i32, i32, i32
  }
  func.func @transform_2(%arg0: i32) -> (i32, i32) {
    %c0_i32 = arith.constant 0 : i32
    %c0_i32_0 = arith.constant 0 : i32
    %c0_i32_1 = arith.constant 0 : i32
    return %c0_i32, %c0_i32_0 : i32, i32
  }
  func.func @transform_3(%arg0: i32) -> (i32, i32) {
    %c0_i32 = arith.constant 0 : i32
    %c0_i32_0 = arith.constant 0 : i32
    %c0_i32_1 = arith.constant 0 : i32
    return %c0_i32, %c0_i32_0 : i32, i32
  }
  func.func @transform_4(%arg0: i32) -> (i32, i32, i32) {
    %c0_i32 = arith.constant 0 : i32
    %c0_i32_0 = arith.constant 0 : i32
    %c0_i32_1 = arith.constant 0 : i32
    return %arg0, %c0_i32, %c0_i32_0 : i32, i32, i32
  }
}

module attributes {stable_mosaic.version = 11 : i64} {
  func.func @kernel(%arg0: i32, %arg1: memref<1x6x10x128xbf16, #tpu.memory_space<vmem>>, %arg2: memref<9x128x128xbf16, #tpu.memory_space<vmem>>, %arg3: memref<1x128xf32, #tpu.memory_space<vmem>>, %arg4: memref<1x128xf32, #tpu.memory_space<vmem>>, %arg5: memref<32x1xf32, #tpu.memory_space<vmem>>, %arg6: memref<128x128xf32, #tpu.memory_space<vmem>>, %arg7: memref<1x128xf32, #tpu.memory_space<vmem>>, %arg8: memref<1x8x128xf32, #tpu.memory_space<vmem>>) attributes {dimension_semantics = [#tpu.dimension_semantics<parallel>], iteration_bounds = array<i64: 2>, scalar_prefetch = 0 : i64, scratch_operands = 0 : i64, tpu.core_type = #tpu.core_type<tc>, window_params = [{transform_indices = @transform_0, window_bounds = array<i64: 1, 6, 10, 128>}, {pipeline_mode = #tpu.pipeline_mode<synchronous>, transform_indices = @transform_1, window_bounds = array<i64: 9, 128, 128>}, {pipeline_mode = #tpu.pipeline_mode<synchronous>, transform_indices = @transform_2, window_bounds = array<i64: 1, 128>}, {pipeline_mode = #tpu.pipeline_mode<synchronous>, transform_indices = @transform_3, window_bounds = array<i64: 1, 128>}, {pipeline_mode = #tpu.pipeline_mode<synchronous>, transform_indices = @transform_4, window_bounds = array<i64: 32, 1>}, {pipeline_mode = #tpu.pipeline_mode<synchronous>, transform_indices = @transform_5, window_bounds = array<i64: 128, 128>}, {pipeline_mode = #tpu.pipeline_mode<synchronous>, transform_indices = @transform_6, window_bounds = array<i64: 1, 128>}, {transform_indices = @transform_7, window_bounds = array<i64: 1, 8, 128>}]} {
    %cst = arith.constant 0.000000e+00 : f32
    %0 = vector.broadcast %cst : f32 to vector<32x128xf32>
    %c0 = arith.constant 0 : index
    %c0_0 = arith.constant 0 : index
    %c0_1 = arith.constant 0 : index
    %c0_2 = arith.constant 0 : index
    %1 = vector.load %arg1[%c0, %c0_0, %c0_1, %c0_2] : memref<1x6x10x128xbf16, #tpu.memory_space<vmem>>, vector<1x4x8x128xbf16>
    %2 = vector.shape_cast %1 : vector<1x4x8x128xbf16> to vector<4x8x128xbf16>
    %3 = vector.shape_cast %2 : vector<4x8x128xbf16> to vector<32x128xbf16>
    %c0_3 = arith.constant 0 : index
    %c0_4 = arith.constant 0 : index
    %c0_5 = arith.constant 0 : index
    %4 = vector.load %arg2[%c0_3, %c0_4, %c0_5] : memref<9x128x128xbf16, #tpu.memory_space<vmem>>, vector<1x128x128xbf16>
    %5 = vector.shape_cast %4 : vector<1x128x128xbf16> to vector<128x128xbf16>
    %cst_6 = arith.constant dense<0.000000e+00> : vector<32x128xf32>
    %6 = tpu.matmul %3, %5, %cst_6 {dimension_numbers = #tpu.dot_dimension_numbers<[1], [0], [0], [1], [0, 0, 1, 1], [], []>} : vector<32x128xbf16>, vector<128x128xbf16>, vector<32x128xf32> -> vector<32x128xf32>
    %7 = arith.addf %0, %6 : vector<32x128xf32>
    %c0_7 = arith.constant 0 : index
    %c0_8 = arith.constant 0 : index
    %c1 = arith.constant 1 : index
    %c0_9 = arith.constant 0 : index
    %8 = vector.load %arg1[%c0_7, %c0_8, %c1, %c0_9] : memref<1x6x10x128xbf16, #tpu.memory_space<vmem>>, vector<1x4x8x128xbf16>
    %9 = vector.shape_cast %8 : vector<1x4x8x128xbf16> to vector<4x8x128xbf16>
    %10 = vector.shape_cast %9 : vector<4x8x128xbf16> to vector<32x128xbf16>
    %c1_10 = arith.constant 1 : index
    %c0_11 = arith.constant 0 : index
    %c0_12 = arith.constant 0 : index
    %11 = vector.load %arg2[%c1_10, %c0_11, %c0_12] : memref<9x128x128xbf16, #tpu.memory_space<vmem>>, vector<1x128x128xbf16>
    %12 = vector.shape_cast %11 : vector<1x128x128xbf16> to vector<128x128xbf16>
    %cst_13 = arith.constant dense<0.000000e+00> : vector<32x128xf32>
    %13 = tpu.matmul %10, %12, %cst_13 {dimension_numbers = #tpu.dot_dimension_numbers<[1], [0], [0], [1], [0, 0, 1, 1], [], []>} : vector<32x128xbf16>, vector<128x128xbf16>, vector<32x128xf32> -> vector<32x128xf32>
    %14 = arith.addf %7, %13 : vector<32x128xf32>
    %c0_14 = arith.constant 0 : index
    %c0_15 = arith.constant 0 : index
    %c2 = arith.constant 2 : index
    %c0_16 = arith.constant 0 : index
    %15 = vector.load %arg1[%c0_14, %c0_15, %c2, %c0_16] : memref<1x6x10x128xbf16, #tpu.memory_space<vmem>>, vector<1x4x8x128xbf16>
    %16 = vector.shape_cast %15 : vector<1x4x8x128xbf16> to vector<4x8x128xbf16>
    %17 = vector.shape_cast %16 : vector<4x8x128xbf16> to vector<32x128xbf16>
    %c2_17 = arith.constant 2 : index
    %c0_18 = arith.constant 0 : index
    %c0_19 = arith.constant 0 : index
    %18 = vector.load %arg2[%c2_17, %c0_18, %c0_19] : memref<9x128x128xbf16, #tpu.memory_space<vmem>>, vector<1x128x128xbf16>
    %19 = vector.shape_cast %18 : vector<1x128x128xbf16> to vector<128x128xbf16>
    %cst_20 = arith.constant dense<0.000000e+00> : vector<32x128xf32>
    %20 = tpu.matmul %17, %19, %cst_20 {dimension_numbers = #tpu.dot_dimension_numbers<[1], [0], [0], [1], [0, 0, 1, 1], [], []>} : vector<32x128xbf16>, vector<128x128xbf16>, vector<32x128xf32> -> vector<32x128xf32>
    %21 = arith.addf %14, %20 : vector<32x128xf32>
    %c0_21 = arith.constant 0 : index
    %c1_22 = arith.constant 1 : index
    %c0_23 = arith.constant 0 : index
    %c0_24 = arith.constant 0 : index
    %22 = vector.load %arg1[%c0_21, %c1_22, %c0_23, %c0_24] : memref<1x6x10x128xbf16, #tpu.memory_space<vmem>>, vector<1x4x8x128xbf16>
    %23 = vector.shape_cast %22 : vector<1x4x8x128xbf16> to vector<4x8x128xbf16>
    %24 = vector.shape_cast %23 : vector<4x8x128xbf16> to vector<32x128xbf16>
    %c3 = arith.constant 3 : index
    %c0_25 = arith.constant 0 : index
    %c0_26 = arith.constant 0 : index
    %25 = vector.load %arg2[%c3, %c0_25, %c0_26] : memref<9x128x128xbf16, #tpu.memory_space<vmem>>, vector<1x128x128xbf16>
    %26 = vector.shape_cast %25 : vector<1x128x128xbf16> to vector<128x128xbf16>
    %cst_27 = arith.constant dense<0.000000e+00> : vector<32x128xf32>
    %27 = tpu.matmul %24, %26, %cst_27 {dimension_numbers = #tpu.dot_dimension_numbers<[1], [0], [0], [1], [0, 0, 1, 1], [], []>} : vector<32x128xbf16>, vector<128x128xbf16>, vector<32x128xf32> -> vector<32x128xf32>
    %28 = arith.addf %21, %27 : vector<32x128xf32>
    %c0_28 = arith.constant 0 : index
    %c1_29 = arith.constant 1 : index
    %c1_30 = arith.constant 1 : index
    %c0_31 = arith.constant 0 : index
    %29 = vector.load %arg1[%c0_28, %c1_29, %c1_30, %c0_31] : memref<1x6x10x128xbf16, #tpu.memory_space<vmem>>, vector<1x4x8x128xbf16>
    %30 = vector.shape_cast %29 : vector<1x4x8x128xbf16> to vector<4x8x128xbf16>
    %31 = vector.shape_cast %30 : vector<4x8x128xbf16> to vector<32x128xbf16>
    %c4 = arith.constant 4 : index
    %c0_32 = arith.constant 0 : index
    %c0_33 = arith.constant 0 : index
    %32 = vector.load %arg2[%c4, %c0_32, %c0_33] : memref<9x128x128xbf16, #tpu.memory_space<vmem>>, vector<1x128x128xbf16>
    %33 = vector.shape_cast %32 : vector<1x128x128xbf16> to vector<128x128xbf16>
    %cst_34 = arith.constant dense<0.000000e+00> : vector<32x128xf32>
    %34 = tpu.matmul %31, %33, %cst_34 {dimension_numbers = #tpu.dot_dimension_numbers<[1], [0], [0], [1], [0, 0, 1, 1], [], []>} : vector<32x128xbf16>, vector<128x128xbf16>, vector<32x128xf32> -> vector<32x128xf32>
    %35 = arith.addf %28, %34 : vector<32x128xf32>
    %c0_35 = arith.constant 0 : index
    %c1_36 = arith.constant 1 : index
    %c2_37 = arith.constant 2 : index
    %c0_38 = arith.constant 0 : index
    %36 = vector.load %arg1[%c0_35, %c1_36, %c2_37, %c0_38] : memref<1x6x10x128xbf16, #tpu.memory_space<vmem>>, vector<1x4x8x128xbf16>
    %37 = vector.shape_cast %36 : vector<1x4x8x128xbf16> to vector<4x8x128xbf16>
    %38 = vector.shape_cast %37 : vector<4x8x128xbf16> to vector<32x128xbf16>
    %c5 = arith.constant 5 : index
    %c0_39 = arith.constant 0 : index
    %c0_40 = arith.constant 0 : index
    %39 = vector.load %arg2[%c5, %c0_39, %c0_40] : memref<9x128x128xbf16, #tpu.memory_space<vmem>>, vector<1x128x128xbf16>
    %40 = vector.shape_cast %39 : vector<1x128x128xbf16> to vector<128x128xbf16>
    %cst_41 = arith.constant dense<0.000000e+00> : vector<32x128xf32>
    %41 = tpu.matmul %38, %40, %cst_41 {dimension_numbers = #tpu.dot_dimension_numbers<[1], [0], [0], [1], [0, 0, 1, 1], [], []>} : vector<32x128xbf16>, vector<128x128xbf16>, vector<32x128xf32> -> vector<32x128xf32>
    %42 = arith.addf %35, %41 : vector<32x128xf32>
    %c0_42 = arith.constant 0 : index
    %c2_43 = arith.constant 2 : index
    %c0_44 = arith.constant 0 : index
    %c0_45 = arith.constant 0 : index
    %43 = vector.load %arg1[%c0_42, %c2_43, %c0_44, %c0_45] : memref<1x6x10x128xbf16, #tpu.memory_space<vmem>>, vector<1x4x8x128xbf16>
    %44 = vector.shape_cast %43 : vector<1x4x8x128xbf16> to vector<4x8x128xbf16>
    %45 = vector.shape_cast %44 : vector<4x8x128xbf16> to vector<32x128xbf16>
    %c6 = arith.constant 6 : index
    %c0_46 = arith.constant 0 : index
    %c0_47 = arith.constant 0 : index
    %46 = vector.load %arg2[%c6, %c0_46, %c0_47] : memref<9x128x128xbf16, #tpu.memory_space<vmem>>, vector<1x128x128xbf16>
    %47 = vector.shape_cast %46 : vector<1x128x128xbf16> to vector<128x128xbf16>
    %cst_48 = arith.constant dense<0.000000e+00> : vector<32x128xf32>
    %48 = tpu.matmul %45, %47, %cst_48 {dimension_numbers = #tpu.dot_dimension_numbers<[1], [0], [0], [1], [0, 0, 1, 1], [], []>} : vector<32x128xbf16>, vector<128x128xbf16>, vector<32x128xf32> -> vector<32x128xf32>
    %49 = arith.addf %42, %48 : vector<32x128xf32>
    %c0_49 = arith.constant 0 : index
    %c2_50 = arith.constant 2 : index
    %c1_51 = arith.constant 1 : index
    %c0_52 = arith.constant 0 : index
    %50 = vector.load %arg1[%c0_49, %c2_50, %c1_51, %c0_52] : memref<1x6x10x128xbf16, #tpu.memory_space<vmem>>, vector<1x4x8x128xbf16>
    %51 = vector.shape_cast %50 : vector<1x4x8x128xbf16> to vector<4x8x128xbf16>
    %52 = vector.shape_cast %51 : vector<4x8x128xbf16> to vector<32x128xbf16>
    %c7 = arith.constant 7 : index
    %c0_53 = arith.constant 0 : index
    %c0_54 = arith.constant 0 : index
    %53 = vector.load %arg2[%c7, %c0_53, %c0_54] : memref<9x128x128xbf16, #tpu.memory_space<vmem>>, vector<1x128x128xbf16>
    %54 = vector.shape_cast %53 : vector<1x128x128xbf16> to vector<128x128xbf16>
    %cst_55 = arith.constant dense<0.000000e+00> : vector<32x128xf32>
    %55 = tpu.matmul %52, %54, %cst_55 {dimension_numbers = #tpu.dot_dimension_numbers<[1], [0], [0], [1], [0, 0, 1, 1], [], []>} : vector<32x128xbf16>, vector<128x128xbf16>, vector<32x128xf32> -> vector<32x128xf32>
    %56 = arith.addf %49, %55 : vector<32x128xf32>
    %c0_56 = arith.constant 0 : index
    %c2_57 = arith.constant 2 : index
    %c2_58 = arith.constant 2 : index
    %c0_59 = arith.constant 0 : index
    %57 = vector.load %arg1[%c0_56, %c2_57, %c2_58, %c0_59] : memref<1x6x10x128xbf16, #tpu.memory_space<vmem>>, vector<1x4x8x128xbf16>
    %58 = vector.shape_cast %57 : vector<1x4x8x128xbf16> to vector<4x8x128xbf16>
    %59 = vector.shape_cast %58 : vector<4x8x128xbf16> to vector<32x128xbf16>
    %c8 = arith.constant 8 : index
    %c0_60 = arith.constant 0 : index
    %c0_61 = arith.constant 0 : index
    %60 = vector.load %arg2[%c8, %c0_60, %c0_61] : memref<9x128x128xbf16, #tpu.memory_space<vmem>>, vector<1x128x128xbf16>
    %61 = vector.shape_cast %60 : vector<1x128x128xbf16> to vector<128x128xbf16>
    %cst_62 = arith.constant dense<0.000000e+00> : vector<32x128xf32>
    %62 = tpu.matmul %59, %61, %cst_62 {dimension_numbers = #tpu.dot_dimension_numbers<[1], [0], [0], [1], [0, 0, 1, 1], [], []>} : vector<32x128xbf16>, vector<128x128xbf16>, vector<32x128xf32> -> vector<32x128xf32>
    %63 = arith.addf %56, %62 : vector<32x128xf32>
    %c0_63 = arith.constant 0 : index
    %c0_64 = arith.constant 0 : index
    %64 = vector.load %arg3[%c0_63, %c0_64] : memref<1x128xf32, #tpu.memory_space<vmem>>, vector<1x128xf32>
    %65 = vector.broadcast %64 : vector<1x128xf32> to vector<32x128xf32>
    %66 = arith.mulf %63, %65 : vector<32x128xf32>
    %c0_65 = arith.constant 0 : index
    %c0_66 = arith.constant 0 : index
    %67 = vector.load %arg4[%c0_65, %c0_66] : memref<1x128xf32, #tpu.memory_space<vmem>>, vector<1x128xf32>
    %68 = vector.broadcast %67 : vector<1x128xf32> to vector<32x128xf32>
    %69 = arith.addf %66, %68 : vector<32x128xf32>
    %c0_67 = arith.constant 0 : index
    %c0_68 = arith.constant 0 : index
    %70 = vector.load %arg5[%c0_67, %c0_68] : memref<32x1xf32, #tpu.memory_space<vmem>>, vector<32x1xf32>
    %71 = vector.broadcast %70 : vector<32x1xf32> to vector<32x128xf32>
    %72 = arith.mulf %69, %71 : vector<32x128xf32>
    %cst_69 = arith.constant dense<0.000000e+00> : vector<128xf32>
    %73 = vector.multi_reduction <add>, %72, %cst_69 [0] : vector<32x128xf32> to vector<128xf32>
    %74 = vector.shape_cast %73 : vector<128xf32> to vector<1x128xf32>
    %c0_70 = arith.constant 0 : index
    %c0_71 = arith.constant 0 : index
    %75 = vector.load %arg6[%c0_70, %c0_71] : memref<128x128xf32, #tpu.memory_space<vmem>>, vector<128x128xf32>
    %cst_72 = arith.constant dense<0.000000e+00> : vector<1x128xf32>
    %76 = tpu.matmul %74, %75, %cst_72 {dimension_numbers = #tpu.dot_dimension_numbers<[1], [0], [0], [1], [0, 0, 1, 1], [], []>} : vector<1x128xf32>, vector<128x128xf32>, vector<1x128xf32> -> vector<1x128xf32>
    %c0_73 = arith.constant 0 : index
    %c0_74 = arith.constant 0 : index
    %77 = vector.load %arg7[%c0_73, %c0_74] : memref<1x128xf32, #tpu.memory_space<vmem>>, vector<1x128xf32>
    %78 = arith.addf %76, %77 : vector<1x128xf32>
    %79 = vector.shape_cast %78 : vector<1x128xf32> to vector<1x128xf32>
    %80 = vector.broadcast %79 : vector<1x128xf32> to vector<8x128xf32>
    %c0_75 = arith.constant 0 : index
    %c0_76 = arith.constant 0 : index
    %c0_77 = arith.constant 0 : index
    %81 = vector.load %arg8[%c0_75, %c0_76, %c0_77] : memref<1x8x128xf32, #tpu.memory_space<vmem>>, vector<1x8x128xf32>
    %82 = vector.shape_cast %81 : vector<1x8x128xf32> to vector<8x128xf32>
    %83 = vector.shape_cast %80 : vector<8x128xf32> to vector<1x8x128xf32>
    tpu.vector_store %arg8[%c0_75, %c0_76, %c0_77], %83 {strides = array<i32>} : memref<1x8x128xf32, #tpu.memory_space<vmem>>, vector<1x8x128xf32>,
    return
  }
  func.func @transform_0(%arg0: i32) -> (i32, i32, i32, i32) {
    %c0_i32 = arith.constant 0 : i32
    %c0_i32_0 = arith.constant 0 : i32
    %c0_i32_1 = arith.constant 0 : i32
    %c0_i32_2 = arith.constant 0 : i32
    return %arg0, %c0_i32, %c0_i32_0, %c0_i32_1 : i32, i32, i32, i32
  }
  func.func @transform_1(%arg0: i32) -> (i32, i32, i32) {
    %c0_i32 = arith.constant 0 : i32
    %c0_i32_0 = arith.constant 0 : i32
    %c0_i32_1 = arith.constant 0 : i32
    %c0_i32_2 = arith.constant 0 : i32
    return %c0_i32, %c0_i32_0, %c0_i32_1 : i32, i32, i32
  }
  func.func @transform_2(%arg0: i32) -> (i32, i32) {
    %c0_i32 = arith.constant 0 : i32
    %c0_i32_0 = arith.constant 0 : i32
    %c0_i32_1 = arith.constant 0 : i32
    return %c0_i32, %c0_i32_0 : i32, i32
  }
  func.func @transform_3(%arg0: i32) -> (i32, i32) {
    %c0_i32 = arith.constant 0 : i32
    %c0_i32_0 = arith.constant 0 : i32
    %c0_i32_1 = arith.constant 0 : i32
    return %c0_i32, %c0_i32_0 : i32, i32
  }
  func.func @transform_4(%arg0: i32) -> (i32, i32) {
    %c0_i32 = arith.constant 0 : i32
    %c0_i32_0 = arith.constant 0 : i32
    %c0_i32_1 = arith.constant 0 : i32
    return %c0_i32, %c0_i32_0 : i32, i32
  }
  func.func @transform_5(%arg0: i32) -> (i32, i32) {
    %c0_i32 = arith.constant 0 : i32
    %c0_i32_0 = arith.constant 0 : i32
    %c0_i32_1 = arith.constant 0 : i32
    return %c0_i32, %c0_i32_0 : i32, i32
  }
  func.func @transform_6(%arg0: i32) -> (i32, i32) {
    %c0_i32 = arith.constant 0 : i32
    %c0_i32_0 = arith.constant 0 : i32
    %c0_i32_1 = arith.constant 0 : i32
    return %c0_i32, %c0_i32_0 : i32, i32
  }
  func.func @transform_7(%arg0: i32) -> (i32, i32, i32) {
    %c0_i32 = arith.constant 0 : i32
    %c0_i32_0 = arith.constant 0 : i32
    %c0_i32_1 = arith.constant 0 : i32
    return %arg0, %c0_i32, %c0_i32_0 : i32, i32, i32
  }
}

</mosaic_0001>

<bundles_post_ra>
// kernel: conv_blocks_forward.8
= control target key start
LH: loop header
LB: loop body
LE: loop exit
PB: predicated region body
PF: predicated region fallthrough
CT: control target
= control target key end

     0   :  { %s2614_s15 = smov 0   ;;  %s3067_s0 = inlined_call_operand.vmem [shape: bf16[8,9,9,128], index: 0, kind: input, shape index: {}]   ;;  %s3068_s1 = inlined_call_operand.vmem [shape: bf16[9,128,128], index: 1, kind: input, shape index: {}]   ;;  %s3069_s2 = inlined_call_operand.vmem [shape: f32[1,128], index: 2, kind: input, shape index: {}]   ;;  %s3070_s3 = inlined_call_operand.vmem [shape: f32[1,128], index: 3, kind: input, shape index: {}]   ;;  %s3071_s4 = inlined_call_operand.vmem [shape: bf16[2,64,128], index: 4, kind: output, shape index: {}]  }
   0x1 LB: > { %s2620_s16 = sadd.s32 4294967295, %s2587_s15   ;;  %p1843_p0 = scmp.ge.s32.totalorder %s2587_s15, 1  ;;  %s2587_s15 = sphi %s2614_s15, %s14_s15  }
   0x2   : > { %p164_p1 = scmp.lt.s32.totalorder %s2587_s15, 3 }
   0x4   : > { %p165_p2 = pnand %p1843_p0, %p164_p1 }
   0x5   : > { %s1844_s19 = sshll.u32 (!%p165_p2), %s2620_s16, 2  ;;  %p198_p4 = scmp.lt.s32.totalorder (!%p165_p2), %s2620_s16, 1 }
   0x6   : > { %168 = sbr.rel (%p165_p2) target bundleno = 338 (0x152), region = 36  ;;  %p192_p3 = scmp.lt.s32.totalorder (!%p165_p2), %s1844_s19, 7 }
   0xb   : > { %v2458_v0 = vld [vmem:[%s3068_s1 + $0x78] sm:$0xff]  ;;  %v2457_v2 = vld [vmem:[%s3068_s1 + $0x70] sm:$0xff]  ;;  %s3075_s19 = smov (!%p192_p3, %s1844_s19), 7  ;;  %v2456_v6 = vld [vmem:[%s3068_s1 + $0x68] sm:$0xff]  ;;  %vm471_vm0 = vsmask.f32 3328 }
   0xc   : > { %v2466_v1 = vld [vmem:[%s3068_s1 + $0xb8] sm:$0xff]  ;;  %2554 = vmatpush.bf16.msra.mxu1 %v2458_v0  ;;  %325 = vmatpush.bf16.msra.mxu0 %v2458_v0  ;;  %v2465_v3 = vld [vmem:[%s3068_s1 + $0xb0] sm:$0xff]  ;;  %s2570_s30 = smul.u32 72, %s3075_s19  ;;  %v2464_v7 = vld [vmem:[%s3068_s1 + $0xa8] sm:$0xff]  ;;  %vm472_vm1 = vsmask.f32 7440 }
   0xd   : > { %667 = vmatpush.bf16.msra.mxu2 %v2466_v1  ;;  %v2478_v4 = vld [vmem:[%s3068_s1 + $0xf8] sm:$0xff]  ;;  %v2477_v5 = vld [vmem:[%s3068_s1 + $0xf0] sm:$0xff]  ;;  %v2476_v8 = vld [vmem:[%s3068_s1 + $0xe8] sm:$0xff]  ;;  %s3077_s16 = smov (!%p198_p4, %s2620_s16), 1 }
   0xe   : > { %802 = vmatpush.bf16.msra.mxu3 %v2478_v4  ;;  %s2652_s11 = scalar_lea.vmem %s3067_s0, %s2570_s30  ;;  %v2455_v10 = vld [vmem:[%s3068_s1 + $0x60] sm:$0xff]  ;;  %v2454_v23 = vld [vmem:[%s3068_s1 + $0x58] sm:$0xff]  ;;  %v2453_v31 = vld [vmem:[%s3068_s1 + $0x50] sm:$0xff]  ;;  %s2434_s30 = sshll.u32 %s3077_s16, 5 }
   0xf   : > { %v455_v9 = vld [vmem:[%s2652_s11] sm:$0xf]  ;;  %v457_v11 = vld [vmem:[%s2652_s11 + $0x8] sm:$0xf]  ;;  %v456_v16 = vld [vmem:[%s2652_s11 + $0x4] sm:$0x1]  ;;  %s3037_s7 = scalar_lea.vmem %s3071_s4, %s2434_s30 }
  0x10   : > { %2555 = vmatpush.bf16.msra.mxu1 %v2457_v2  ;;  %326 = vmatpush.bf16.msra.mxu0 %v2457_v2  ;;  %v2463_v12 = vld [vmem:[%s3068_s1 + $0xa0] sm:$0xff]  ;;  %v475_v13 = vshrl.u32 %v455_v9, 16  ;;  %v478_v14 = vshll.u32 %v455_v9, 16  ;;  %v489_v15 = vshrl.u32 %v457_v11, 16  ;;  %v458_v17 = vld [vmem:[%s2652_s11 + $0xc] sm:$0x1]  ;;  %vm2686_vm2 = vmor %vm471_vm0, %vm472_vm1 }
  0x11   : > { %668 = vmatpush.bf16.msra.mxu2 %v2465_v3  ;;  %v492_v18 = vshll.u32 %v457_v11, 16  ;;  %v2475_v19 = vld [vmem:[%s3068_s1 + $0xe0] sm:$0xff]  ;;  %v2462_v25 = vld [vmem:[%s3068_s1 + $0x98] sm:$0xff]  ;;  %v484_v27 = vshll.u32 %v456_v16, 16  ;;  %v498_v28 = vshll.u32 %v458_v17, 16  ;;  %v2461_v32 = vld [vmem:[%s3068_s1 + $0x90] sm:$0xff] }
  0x12   : > { %803 = vmatpush.bf16.msra.mxu3 %v2477_v5  ;;  %v477_v20 = vrot.slane %v475_v13, 4  ;;  %v480_v21 = vrot.slane %v478_v14, 5  ;;  %v491_v22 = vrot.slane %v489_v15, 4  ;;  %v2474_v30 = vld [vmem:[%s3068_s1 + $0xd8] sm:$0xff]  ;;  %v459_v37 = vld [vmem:[%s2652_s11 + $0x10] sm:$0xf] }
  0x13   : > { %v494_v24 = vrot.slane %v492_v18, 5  ;;  %v486_v34 = vrot.slane %v484_v27, 5  ;;  %v500_v36 = vrot.slane %v498_v28, 5  ;;  %v461_v39 = vld [vmem:[%s2652_s11 + $0x18] sm:$0xf]  ;;  %v2473_v40 = vld [vmem:[%s3068_s1 + $0xd0] sm:$0xff] }
  0x14   : > { %2556 = vmatpush.bf16.msra.mxu1 %v2456_v6  ;;  %327 = vmatpush.bf16.msra.mxu0 %v2456_v6  ;;  %v481_v26 = vor.u32 %v480_v21, %v477_v20  ;;  %v2452_v41 = vld [vmem:[%s3068_s1 + $0x48] sm:$0xff]  ;;  %v503_v42 = vshrl.u32 %v459_v37, 16  ;;  %v506_v43 = vshll.u32 %v459_v37, 16  ;;  %v517_v47 = vshrl.u32 %v461_v39, 16  ;;  %v2451_v49 = vld [vmem:[%s3068_s1 + $0x40] sm:$0xff]  ;;  %v2446_v51 = vld [vmem:[%s3068_s1 + $0x38] sm:$0xff] }
  0x15   : > { %669 = vmatpush.bf16.msra.mxu2 %v2464_v7  ;;  %v495_v29 = vor.u32 %v494_v24, %v491_v22  ;;  %v2460_v44 = vld [vmem:[%s3068_s1 + $0x88] sm:$0xff]  ;;  %v520_v48 = vshll.u32 %v461_v39, 16  ;;  %v2459_v52 = vld [vmem:[%s3068_s1 + $0x80] sm:$0xff]  ;;  %v2449_v54 = vld [vmem:[%s2652_s11 + $0x6c] sm:$0xf0] }
  0x16   : > { %804 = vmatpush.bf16.msra.mxu3 %v2476_v8  ;;  %v482_v33 = vrot.slane %v481_v26, 4  ;;  %v1882_v50 = vld [vmem:[%s2652_s11 + $0x68] sm:$0xf]  ;;  %v2447_v56 = vld [vmem:[%s2652_s11 + $0x4c] sm:$0xf0]  ;;  %v505_v60 = vrot.slane %v503_v42, 4 }
  0x17   : > { %v496_v35 = vrot.slane %v495_v29, 4  ;;  %v2472_v53 = vld [vmem:[%s3068_s1 + $0xc8] sm:$0xff]  ;;  %v460_v59 = vld [vmem:[%s2652_s11 + $0x14] sm:$0x1]  ;;  %v508_v61 = vrot.slane %v506_v43, 5  ;;  %v519_v62 = vrot.slane %v517_v47, 4  ;;  %v1883_v3 = vor.u32 %v2449_v54, %v1882_v50 }
  0x18   : > { %2557 = vmatpush.bf16.msra.mxu1 %v2455_v10  ;;  %328 = vmatpush.bf16.msra.mxu0 %v2455_v10  ;;  %v487_v45 = vsel %vm2686_vm2, %v482_v33, %v486_v34  ;;  %v1874_v55 = vld [vmem:[%s2652_s11 + $0x48] sm:$0xf]  ;;  %v522_v63 = vrot.slane %v520_v48, 5  ;;  %v2490_v0 = vld [vmem:[%s3068_s1 + $0x138] sm:$0xff]  ;;  %v2471_v6 = vld [vmem:[%s3068_s1 + $0xc0] sm:$0xff]  ;;  %v512_v9 = vshll.u32 %v460_v59, 16 }
  0x19   : > { %670 = vmatpush.bf16.msra.mxu2 %v2463_v12  ;;  %v501_v46 = vsel %vm2686_vm2, %v496_v35, %v500_v36  ;;  %v603_v57 = vunpack.c.l.b16 %v487_v45  ;;  %v2510_v1 = vld [vmem:[%s3068_s1 + $0x1b8] sm:$0xff]  ;;  %v1875_v4 = vor.u32 %v2447_v56, %v1874_v55  ;;  %v2042_v7 = vld [vmem:[%s2652_s11 + $0x90] sm:$0xf]  ;;  %v509_v11 = vor.u32 %v508_v61, %v505_v60  ;;  %v2444_v18 = vld [vmem:[%s3068_s1 + $0x28] sm:$0xff] }
  0x1a   : > { %805 = vmatpush.bf16.msra.mxu3 %v2475_v19  ;;  %v604_v58 = vunpack.c.l.b16 %v501_v46  ;;  %v462_v2 = vld [vmem:[%s2652_s11 + $0x1c] sm:$0x1]  ;;  %v2467_v8 = vld [vmem:[%s2652_s11 + $0x94] sm:$0xf0]  ;;  %v2445_v10 = vld [vmem:[%s3068_s1 + $0x30] sm:$0xff]  ;;  %v523_v12 = vor.u32 %v522_v63, %v519_v62  ;;  %v514_v19 = vrot.slane %v512_v9, 5 }
  0x1b   : > { %v526_v13 = vshll.u32 %v462_v2, 16  ;;  %v2522_v14 = vld [vmem:[%s3068_s1 + $0x1f8] sm:$0xff]  ;;  %v2489_v15 = vld [vmem:[%s3068_s1 + $0x130] sm:$0xff]  ;;  %v2043_v17 = vor.u32 %v2467_v8, %v2042_v7  ;;  %v510_v20 = vrot.slane %v509_v11, 4  ;;  %v463_v24 = vld [vmem:[%s2652_s11 + $0x20] sm:$0xf] }
  0x1c   : > { %2558 = vmatpush.bf16.msra.mxu1 %v2454_v23  ;;  %329 = vmatpush.bf16.msra.mxu0 %v2454_v23  ;;  %v611_v5 = vpack.c.b16 %v604_v58, %v603_v57  ;;  %v2509_v16 = vld [vmem:[%s3068_s1 + $0x1b0] sm:$0xff]  ;;  %v524_v21 = vrot.slane %v523_v12, 4  ;;  %v2508_v26 = vld [vmem:[%s3068_s1 + $0x1a8] sm:$0xff]  ;;  %v531_v28 = vshrl.u32 %v463_v24, 16  ;;  %v534_v29 = vshll.u32 %v463_v24, 16  ;;  %v2487_v36 = vld [vmem:[%s3068_s1 + $0x120] sm:$0xff] }
  0x1d   : > { %671 = vmatpush.bf16.msra.mxu2 %v2462_v25  ;;  %v528_v22 = vrot.slane %v526_v13, 5  ;;  %v2521_v23 = vld [vmem:[%s3068_s1 + $0x1f0] sm:$0xff]  ;;  %v2488_v25 = vld [vmem:[%s3068_s1 + $0x128] sm:$0xff]  ;;  %v2507_v37 = vld [vmem:[%s3068_s1 + $0x1a0] sm:$0xff] }
  0x1e   : > { %806 = vmatpush.bf16.msra.mxu3 %v2474_v30  ;;  %v465_v27 = vld [vmem:[%s2652_s11 + $0x28] sm:$0xf]  ;;  %v2443_v30 = vld [vmem:[%s3068_s1 + $0x20] sm:$0xff]  ;;  %v1886_v39 = vld [vmem:[%s2652_s11 + $0x78] sm:$0xf]  ;;  %v533_v45 = vrot.slane %v531_v28, 4 }
  0x1f   : > { %v545_v33 = vshrl.u32 %v465_v27, 16  ;;  %v548_v34 = vshll.u32 %v465_v27, 16  ;;  %v2520_v35 = vld [vmem:[%s3068_s1 + $0x1e8] sm:$0xff]  ;;  %v2448_v42 = vld [vmem:[%s2652_s11 + $0x5c] sm:$0xf0]  ;;  %v536_v46 = vrot.slane %v534_v29, 5 }
  0x20   : > { %2559 = vmatpush.bf16.msra.mxu1 %v2453_v31  ;;  %330 = vmatpush.bf16.msra.mxu0 %v2453_v31  ;;  %v515_v31 = vsel %vm2686_vm2, %v510_v20, %v514_v19  ;;  %v2442_v47 = vld [vmem:[%s3068_s1 + $0x18] sm:$0xff]  ;;  %v2046_v56 = vld [vmem:[%s2652_s11 + $0xa0] sm:$0xf]  ;;  %v2468_v57 = vld [vmem:[%s2652_s11 + $0xa4] sm:$0xf0] }
  0x21   : > { %672 = vmatpush.bf16.msra.mxu2 %v2461_v32  ;;  %v529_v32 = vsel %vm2686_vm2, %v524_v21, %v528_v22  ;;  %v605_v43 = vunpack.c.l.b16 %v515_v31  ;;  %v547_v48 = vrot.slane %v545_v33, 4  ;;  %v2486_v50 = vld [vmem:[%s3068_s1 + $0x118] sm:$0xff]  ;;  %v537_v58 = vor.u32 %v536_v46, %v533_v45  ;;  %v2441_v59 = vld [vmem:[%s3068_s1 + $0x10] sm:$0xff]  ;;  %v2440_v2 = vld [vmem:[%s3068_s1 + $0x8] sm:$0xff] }
  0x22   : > { %807 = vmatpush.bf16.msra.mxu3 %v2473_v40  ;;  %v2450_v40 = vld [vmem:[%s2652_s11 + $0x7c] sm:$0xf0]  ;;  %v2485_v63 = vld [vmem:[%s3068_s1 + $0x110] sm:$0xff]  ;;  %v2484_v9 = vld [vmem:[%s3068_s1 + $0x108] sm:$0xff] }
  0x23   : > { %v2519_v7 = vld [vmem:[%s3068_s1 + $0x1e0] sm:$0xff]  ;;  %v467_v8 = vld [vmem:[%s2652_s11 + $0x30] sm:$0xf]  ;;  %v2498_v20 = vld [vmem:[%s3068_s1 + $0x178] sm:$0xff] }
  0x24   : > { %2560 = vmatpush.bf16.msra.mxu1 %v2452_v41  ;;  %331 = vmatpush.bf16.msra.mxu0 %v2452_v41  ;;  %v1878_v41 = vld [vmem:[%s2652_s11 + $0x58] sm:$0xf]  ;;  %v2505_v11 = vld [vmem:[%s3068_s1 + $0x190] sm:$0xff]  ;;  %v559_v12 = vshrl.u32 %v467_v8, 16  ;;  %v562_v13 = vshll.u32 %v467_v8, 16  ;;  %v2483_v21 = vld [vmem:[%s3068_s1 + $0x100] sm:$0xff] }
  0x25   : > { %673 = vmatpush.bf16.msra.mxu2 %v2460_v44  ;;  %v606_v44 = vunpack.c.l.b16 %v529_v32  ;;  %v1879_v54 = vor.u32 %v2448_v42, %v1878_v41  ;;  %v1922_v22 = vld [vmem:[%s2652_s11] sm:$0xf]  ;;  %v2530_v24 = vld [vmem:[%s3068_s1 + $0x238] sm:$0xff]  ;;  %v2497_v33 = vld [vmem:[%s3068_s1 + $0x170] sm:$0xff] }
  0x26   : > { %808 = vmatpush.bf16.msra.mxu3 %v2472_v53  ;;  %v1887_v53 = vor.u32 %v2450_v40, %v1886_v39  ;;  %v561_v29 = vrot.slane %v559_v12, 4  ;;  %v2050_v40 = vld [vmem:[%s2652_s11 + $0xb0] sm:$0xf]  ;;  %v2469_v41 = vld [vmem:[%s2652_s11 + $0xb4] sm:$0xf0]  ;;  %v2492_v12 = vld [vmem:[%s3068_s1 + $0x148] sm:$0xff] }
  0x27   : > { %v612_v55 = vpack.c.b16 %v606_v44, %v605_v43  ;;  %v2529_v43 = vld [vmem:[%s3068_s1 + $0x230] sm:$0xff] }
  0x28   : > { %2561 = vmatpush.bf16.msra.mxu1 %v2451_v49  ;;  %332 = vmatpush.bf16.msra.mxu0 %v2451_v49  ;;  %v550_v49 = vrot.slane %v548_v34, 5  ;;  %v468_v34 = vld [vmem:[%s2652_s11 + $0x34] sm:$0x1] }
  0x29   : > { %674 = vmatpush.bf16.msra.mxu2 %v2459_v52  ;;  %v466_v52 = vld [vmem:[%s2652_s11 + $0x2c] sm:$0x1]  ;;  %v568_v44 = vshll.u32 %v468_v34, 16  ;;  %v2370_v34 = vld [vmem:[%s2652_s11 + $0x10] sm:$0xf] }
  0x2a   : > { %809 = vmatpush.bf16.msra.mxu3 %v2471_v6  ;;  %v551_v61 = vor.u32 %v550_v49, %v547_v48  ;;  %v554_v62 = vshll.u32 %v466_v52, 16  ;;  %v2504_v48 = vld [vmem:[%s3068_s1 + $0x188] sm:$0xff]  ;;  %v2051_v49 = vor.u32 %v2469_v41, %v2050_v40 }
  0x2b   : > { %343 = vmatmul.bf16.vlgmr.msra.gmra.mxu1 %v1883_v3  ;;  %333 = vmatmul.bf16.vlgmr.msra.gmra.mxu0 %v1875_v4  ;;  %v538_v3 = vrot.slane %v537_v58, 4  ;;  %v2516_v58 = vld [vmem:[%s3068_s1 + $0x1c8] sm:$0xff] }
  0x2c   : > { %426 = vmatpush.bf16.msrb.mxu1 %v2446_v51  ;;  %937 = vmatpush.bf16.msrb.mxu0 %v2490_v0  ;;  %v464_v51 = vld [vmem:[%s2652_s11 + $0x24] sm:$0x1]  ;;  %v2047_v0 = vor.u32 %v2468_v57, %v2046_v56  ;;  %v556_v6 = vrot.slane %v554_v62, 5  ;;  %v2528_v56 = vld [vmem:[%s3068_s1 + $0x228] sm:$0xff]  ;;  %v2494_v62 = vld [vmem:[%s3068_s1 + $0x158] sm:$0xff] }
  0x2d   : > { %1318 = vmatpush.bf16.msrb.mxu2 %v2510_v1  ;;  %810 = vmatmul.bf16.vlgmr.msra.gmra.mxu3 %v2043_v17  ;;  %v540_v60 = vshll.u32 %v464_v51, 16  ;;  %v2506_v1 = vld [vmem:[%s3068_s1 + $0x198] sm:$0xff]  ;;  %v570_v51 = vrot.slane %v568_v44, 5  ;;  %v2495_v57 = vld [vmem:[%s3068_s1 + $0x160] sm:$0xff]  ;;  %v1934_v44 = vld [vmem:[%s2652_s11 + $0x30] sm:$0xf] }
  0x2e   : > { %675 = vmatmul.bf16.vlgmr.msra.gmra.mxu2 %v611_v5  ;;  %1453 = vmatpush.bf16.msrb.mxu3 %v2522_v14  ;;  %v552_v5 = vrot.slane %v551_v61, 4  ;;  %v2518_v14 = vld [vmem:[%s3068_s1 + $0x1d8] sm:$0xff] }
  0x2f   : > { %v542_v4 = vrot.slane %v540_v60, 5 }
  0x30   : > { %427 = vmatpush.bf16.msrb.mxu1 %v2445_v10  ;;  %938 = vmatpush.bf16.msrb.mxu0 %v2489_v15  ;;  %v469_v10 = vld [vmem:[%s2652_s11 + $0x38] sm:$0xf]  ;;  %v2439_v15 = vld [vmem:[%s3068_s1] sm:$0xff]  ;;  %v557_v17 = vsel %vm2686_vm2, %v552_v5, %v556_v6  ;;  %v2493_v5 = vld [vmem:[%s3068_s1 + $0x150] sm:$0xff] }
  0x31   : > { %1319 = vmatpush.bf16.msrb.mxu2 %v2509_v16  ;;  %v543_v16 = vsel %vm2686_vm2, %v538_v3, %v542_v4  ;;  %v576_v19 = vshll.u32 %v469_v10, 16  ;;  %v608_v28 = vunpack.c.l.b16 %v557_v17  ;;  %v1930_v17 = vld [vmem:[%s2652_s11 + $0x20] sm:$0xf] }
  0x32   : > { %1454 = vmatpush.bf16.msrb.mxu3 %v2521_v23  ;;  %v2435_v23 = vld [vmem:[%s2652_s11 + $0x4] sm:$0xf0]  ;;  %v607_v27 = vunpack.c.l.b16 %v543_v16  ;;  %v2525_v16 = vld [vmem:[%s3068_s1 + $0x210] sm:$0xff] }
  0x33   : > { %v578_v32 = vrot.slane %v576_v19, 5  ;;  %v2437_v19 = vld [vmem:[%s2652_s11 + $0x24] sm:$0xf0] }
  0x34   : > { %428 = vmatpush.bf16.msrb.mxu1 %v2444_v18  ;;  %939 = vmatpush.bf16.msrb.mxu0 %v2488_v25  ;;  %v573_v18 = vshrl.u32 %v469_v10, 16  ;;  %v2114_v25 = vld [vmem:[%s2652_s11 + $0xd8] sm:$0xf]  ;;  %v613_v39 = vpack.c.b16 %v608_v28, %v607_v27  ;;  %v2470_v10 = vld [vmem:[%s2652_s11 + $0xc4] sm:$0xf0] }
  0x35   : > { %1320 = vmatpush.bf16.msrb.mxu2 %v2508_v26  ;;  %v2479_v26 = vld [vmem:[%s2652_s11 + $0xdc] sm:$0xf0]  ;;  %v2322_v27 = vld [vmem:[%s2652_s11 + $0x50] sm:$0xf]  ;;  %v2511_v28 = vld [vmem:[%s2652_s11 + $0x54] sm:$0xf0] }
  0x36   : > { %1455 = vmatpush.bf16.msrb.mxu3 %v2520_v35  ;;  %v575_v31 = vrot.slane %v573_v18, 4  ;;  %v470_v35 = vld [vmem:[%s2652_s11 + $0x3c] sm:$0x1]  ;;  %v2524_v18 = vld [vmem:[%s3068_s1 + $0x208] sm:$0xff] }
  0x37   : > { %v582_v46 = vshll.u32 %v470_v35, 16 }
  0x38   : > { %429 = vmatpush.bf16.msrb.mxu1 %v2443_v30  ;;  %940 = vmatpush.bf16.msrb.mxu0 %v2487_v36  ;;  %v564_v30 = vrot.slane %v562_v13, 5  ;;  %v1923_v36 = vor.u32 %v2435_v23, %v1922_v22  ;;  %v579_v45 = vor.u32 %v578_v32, %v575_v31  ;;  %v2515_v13 = vld [vmem:[%s3068_s1 + $0x1c0] sm:$0xff]  ;;  %v2250_v22 = vld [vmem:[%s2652_s11 + $0x8] sm:$0xf]  ;;  %v2499_v23 = vld [vmem:[%s2652_s11 + $0xc] sm:$0xf0] }
  0x39   : > { %1321 = vmatpush.bf16.msrb.mxu2 %v2507_v37  ;;  %v2115_v37 = vor.u32 %v2479_v26, %v2114_v25  ;;  %v2251_v26 = vor.u32 %v2499_v23, %v2250_v22  ;;  %v2160_v31 = vld [vmem:[%s2652_s11 + $0x90] sm:$0xf]  ;;  %v2162_v32 = vld [vmem:[%s2652_s11 + $0x98] sm:$0xf] }
  0x3a   : > { %1456 = vmatpush.bf16.msrb.mxu3 %v2519_v7  ;;  %v565_v42 = vor.u32 %v564_v30, %v561_v29  ;;  %v580_v52 = vrot.slane %v579_v45, 4  ;;  %v2323_v29 = vor.u32 %v2511_v28, %v2322_v27  ;;  %v2523_v30 = vld [vmem:[%s3068_s1 + $0x200] sm:$0xff]  ;;  %v991_v35 = vshrl.u32 %v2160_v31, 16  ;;  %v2438_v45 = vld [vmem:[%s2652_s11 + $0x34] sm:$0xf0] }
  0x3b   : > { %348 = vmatmul.bf16.gmra.mxu1 %v1887_v53  ;;  %338 = vmatmul.bf16.gmra.mxu0 %v1879_v54  ;;  %v584_v53 = vrot.slane %v582_v46, 5  ;;  %v2503_v54 = vld [vmem:[%s3068_s1 + $0x180] sm:$0xff]  ;;  %v2126_v46 = vld [vmem:[%s2652_s11 + $0x108] sm:$0xf] }
  0x3c   : > { %430 = vmatpush.bf16.msrb.mxu1 %v2442_v47  ;;  %941 = vmatpush.bf16.msrb.mxu0 %v2486_v50  ;;  %v2496_v47 = vld [vmem:[%s3068_s1 + $0x168] sm:$0xff]  ;;  %v566_v50 = vrot.slane %v565_v42, 4  ;;  %v1521_v42 = vshrl.u32 %v2370_v34, 16 }
  0x3d   : > { %1322 = vmatpush.bf16.msrb.mxu2 %v2506_v1  ;;  %815 = vmatmul.bf16.gmra.mxu3 %v2047_v0  ;;  %v585_v61 = vsel %vm2686_vm2, %v580_v52, %v584_v53  ;;  %v2436_v0 = vld [vmem:[%s2652_s11 + $0x14] sm:$0xf0]  ;;  %v2118_v1 = vld [vmem:[%s2652_s11 + $0xe8] sm:$0xf] }
  0x3e   : > { %680 = vmatmul.bf16.gmra.mxu2 %v612_v55  ;;  %1457 = vmatpush.bf16.msrb.mxu3 %v2518_v14  ;;  %v2517_v55 = vld [vmem:[%s3068_s1 + $0x1d0] sm:$0xff]  ;;  %v571_v60 = vsel %vm2686_vm2, %v566_v50, %v570_v51  ;;  %v610_v4 = vunpack.c.l.b16 %v585_v61  ;;  %v2526_v14 = vld [vmem:[%s3068_s1 + $0x218] sm:$0xff]  ;;  %v993_v51 = vrot.slane %v991_v35, 4 }
  0x3f   : > { %v609_v3 = vunpack.c.l.b16 %v571_v60  ;;  %v2163_v50 = vld [vmem:[%s2652_s11 + $0x9c] sm:$0x1]  ;;  %v2369_v60 = vld [vmem:[%s2652_s11 + $0xc] sm:$0x1]  ;;  %v2371_v61 = vld [vmem:[%s2652_s11 + $0x14] sm:$0x1] }
  0x40   : > { %431 = vmatpush.bf16.msrb.mxu1 %v2441_v59  ;;  %942 = vmatpush.bf16.msrb.mxu0 %v2485_v63  ;;  %v2527_v59 = vld [vmem:[%s3068_s1 + $0x220] sm:$0xff]  ;;  %v1926_v63 = vld [vmem:[%s2652_s11 + $0x10] sm:$0xf] }
  0x41   : > { %1323 = vmatpush.bf16.msrb.mxu2 %v2505_v11  ;;  %v1927_v6 = vor.u32 %v2436_v0, %v1926_v63  ;;  %v614_v8 = vpack.c.b16 %v610_v4, %v609_v3  ;;  %v1014_v0 = vshll.u32 %v2163_v50, 16 }
  0x42   : > { %1458 = vmatpush.bf16.msrb.mxu3 %v2517_v55  ;;  %v2500_v55 = vld [vmem:[%s2652_s11 + $0x1c] sm:$0xf0] }
  0x44   : > { %432 = vmatpush.bf16.msrb.mxu1 %v2440_v2  ;;  %943 = vmatpush.bf16.msrb.mxu0 %v2484_v9  ;;  %v2480_v2 = vld [vmem:[%s2652_s11 + $0xec] sm:$0xf0]  ;;  %v2054_v9 = vld [vmem:[%s2652_s11 + $0xc0] sm:$0xf] }
  0x45   : > { %1324 = vmatpush.bf16.msrb.mxu2 %v2504_v48  ;;  %v2119_v7 = vor.u32 %v2480_v2, %v2118_v1  ;;  %v2055_v11 = vor.u32 %v2470_v10, %v2054_v9  ;;  %v2254_v48 = vld [vmem:[%s2652_s11 + $0x18] sm:$0xf]  ;;  %v1530_v10 = vshll.u32 %v2371_v61, 16 }
  0x46   : > { %1459 = vmatpush.bf16.msrb.mxu3 %v2516_v58  ;;  %v1523_v58 = vrot.slane %v1521_v42, 4  ;;  %v2255_v2 = vor.u32 %v2500_v55, %v2254_v48  ;;  %v2167_v42 = vld [vmem:[%s2652_s11 + $0xac] sm:$0x1] }
  0x47   : > { %v1532_v23 = vrot.slane %v1530_v10, 5 }
  0x48   : > { %433 = vmatpush.bf16.msrb.mxu1 %v2439_v15  ;;  %944 = vmatpush.bf16.msrb.mxu0 %v2483_v21  ;;  %v2491_v15 = vld [vmem:[%s3068_s1 + $0x140] sm:$0xff] }
  0x49   : > { %1325 = vmatpush.bf16.msrb.mxu2 %v2503_v54  ;;  %v2481_v21 = vld [vmem:[%s2652_s11 + $0xfc] sm:$0xf0] }
  0x4a   : > { %1460 = vmatpush.bf16.msrb.mxu3 %v2515_v13  ;;  %v2164_v13 = vld [vmem:[%s2652_s11 + $0xa0] sm:$0xf] }
  0x4b   : > { %434 = vmatmul.bf16.vlgmr.msrb.gmra.mxu1 %v1923_v36  ;;  %945 = vmatmul.bf16.vlgmr.msrb.gmra.mxu0 %v2115_v37  ;;  %v994_v36 = vshll.u32 %v2160_v31, 16  ;;  %v1005_v37 = vshrl.u32 %v2162_v32, 16 }
  0x4c   : > { %1183 = vmatpush.bf16.msra.mxu1 %v2498_v20  ;;  %1699 = vmatpush.bf16.msra.mxu0 %v2530_v24  ;;  %v2122_v20 = vld [vmem:[%s2652_s11 + $0xf8] sm:$0xf] }
  0x4d   : > { %820 = vmatmul.bf16.gmra.mxu3 %v2051_v49  ;;  %2562 = vmatpush.bf16.msra.mxu2 %v2530_v24  ;;  %v1931_v24 = vor.u32 %v2437_v19, %v1930_v17  ;;  %v2123_v25 = vor.u32 %v2481_v21, %v2122_v20  ;;  %v2161_v49 = vld [vmem:[%s2652_s11 + $0x94] sm:$0x1]  ;;  %v996_v52 = vrot.slane %v994_v36, 5  ;;  %v1007_v53 = vrot.slane %v1005_v37, 4  ;;  %v2374_v19 = vld [vmem:[%s2652_s11 + $0x20] sm:$0xf] }
  0x4e   : > { %685 = vmatmul.bf16.gmra.mxu2 %v613_v39  ;;  %v1008_v39 = vshll.u32 %v2162_v32, 16  ;;  %v1000_v63 = vshll.u32 %v2161_v49, 16  ;;  %v1552_v31 = vshll.u32 %v2374_v19, 16  ;;  %v2165_v36 = vld [vmem:[%s2652_s11 + $0xa4] sm:$0x1] }
  0x4f   : > { %v997_v3 = vor.u32 %v996_v52, %v993_v51  ;;  %v2373_v51 = vld [vmem:[%s2652_s11 + $0x1c] sm:$0x1]  ;;  %v2375_v52 = vld [vmem:[%s2652_s11 + $0x24] sm:$0x1] }
  0x50   : > { %1184 = vmatpush.bf16.msra.mxu1 %v2497_v33  ;;  %1700 = vmatpush.bf16.msra.mxu0 %v2529_v43  ;;  %v2368_v33 = vld [vmem:[%s2652_s11 + $0x8] sm:$0xf]  ;;  %v1010_v54 = vrot.slane %v1008_v39, 5 }
  0x51   : > { %2563 = vmatpush.bf16.msra.mxu2 %v2529_v43  ;;  %v1507_v40 = vshrl.u32 %v2368_v33, 16  ;;  %v1510_v41 = vshll.u32 %v2368_v33, 16  ;;  %v1524_v43 = vshll.u32 %v2370_v34, 16 }
  0x52   : > { %v1011_v4 = vor.u32 %v1010_v54, %v1007_v53  ;;  %v2258_v53 = vld [vmem:[%s2652_s11 + $0x28] sm:$0xf]  ;;  %v2501_v54 = vld [vmem:[%s2652_s11 + $0x2c] sm:$0xf0] }
  0x54   : > { %1185 = vmatpush.bf16.msra.mxu1 %v2496_v47  ;;  %1701 = vmatpush.bf16.msra.mxu0 %v2528_v56  ;;  %v2482_v47 = vld [vmem:[%s2652_s11 + $0x10c] sm:$0xf0] }
  0x55   : > { %2564 = vmatpush.bf16.msra.mxu2 %v2528_v56  ;;  %v1509_v56 = vrot.slane %v1507_v40, 4  ;;  %v2127_v1 = vor.u32 %v2482_v47, %v2126_v46  ;;  %v1554_v46 = vrot.slane %v1552_v31, 5 }
  0x58   : > { %1186 = vmatpush.bf16.msra.mxu1 %v2495_v57  ;;  %1702 = vmatpush.bf16.msra.mxu0 %v2527_v59  ;;  %v1512_v57 = vrot.slane %v1510_v41, 5 }
  0x59   : > { %2565 = vmatpush.bf16.msra.mxu2 %v2527_v59  ;;  %v1526_v59 = vrot.slane %v1524_v43, 5 }
  0x5b   : > { %439 = vmatmul.bf16.gmra.mxu1 %v1927_v6  ;;  %950 = vmatmul.bf16.gmra.mxu0 %v2119_v7  ;;  %v2512_v6 = vld [vmem:[%s2652_s11 + $0x64] sm:$0xf0]  ;;  %v1513_v7 = vor.u32 %v1512_v57, %v1509_v56  ;;  %v1527_v9 = vor.u32 %v1526_v59, %v1523_v58  ;;  %v1028_v56 = vshll.u32 %v2165_v36, 16  ;;  %v1042_v58 = vshll.u32 %v2167_v42, 16  ;;  %v2169_v42 = vld [vmem:[%s2652_s11 + $0xb4] sm:$0x1] }
  0x5c   : > { %1187 = vmatpush.bf16.msra.mxu1 %v2494_v62  ;;  %1703 = vmatpush.bf16.msra.mxu0 %v2526_v14  ;;  %v1935_v62 = vor.u32 %v2438_v45, %v1934_v44 }
  0x5d   : > { %825 = vmatmul.bf16.gmra.mxu3 %v2055_v11  ;;  %2566 = vmatpush.bf16.msra.mxu2 %v2526_v14  ;;  %v1002_v11 = vrot.slane %v1000_v63, 5  ;;  %v2166_v14 = vld [vmem:[%s2652_s11 + $0xa8] sm:$0xf]  ;;  %v1514_v20 = vrot.slane %v1513_v7, 4  ;;  %v1528_v22 = vrot.slane %v1527_v9, 4  ;;  %v1044_v7 = vrot.slane %v1042_v58, 5 }
  0x5e   : > { %690 = vmatmul.bf16.gmra.mxu2 %v614_v8  ;;  %v1516_v8 = vshll.u32 %v2369_v60, 16  ;;  %v1036_v27 = vshll.u32 %v2166_v14, 16  ;;  %v1544_v60 = vshll.u32 %v2373_v51, 16  ;;  %v2262_v51 = vld [vmem:[%s2652_s11 + $0x38] sm:$0xf] }
  0x5f   : > { %v1533_v35 = vsel %vm2686_vm2, %v1528_v22, %v1532_v23  ;;  %v2381_v58 = vld [vmem:[%s2652_s11 + $0x3c] sm:$0x1] }
  0x60   : > { %1188 = vmatpush.bf16.msra.mxu1 %v2493_v5  ;;  %1704 = vmatpush.bf16.msra.mxu0 %v2525_v16  ;;  %v2326_v5 = vld [vmem:[%s2652_s11 + $0x60] sm:$0xf]  ;;  %v1518_v21 = vrot.slane %v1516_v8, 5  ;;  %v1038_v41 = vrot.slane %v1036_v27, 5  ;;  %v1636_v50 = vunpack.c.l.b16 %v1533_v35  ;;  %v1546_v9 = vrot.slane %v1544_v60, 5 }
  0x61   : > { %2567 = vmatpush.bf16.msra.mxu2 %v2525_v16  ;;  %v1012_v16 = vrot.slane %v1011_v4, 4  ;;  %v2327_v17 = vor.u32 %v2512_v6, %v2326_v5  ;;  %v1030_v5 = vrot.slane %v1028_v56, 5  ;;  %v2502_v56 = vld [vmem:[%s2652_s11 + $0x3c] sm:$0xf0] }
  0x62   : > { %v1519_v34 = vsel %vm2686_vm2, %v1514_v20, %v1518_v21  ;;  %v2380_v21 = vld [vmem:[%s2652_s11 + $0x38] sm:$0xf] }
  0x63   : > { %v1635_v49 = vunpack.c.l.b16 %v1519_v34  ;;  %v1594_v34 = vshll.u32 %v2380_v21, 16 }
  0x64   : > { %1189 = vmatpush.bf16.msra.mxu1 %v2492_v12  ;;  %1705 = vmatpush.bf16.msra.mxu0 %v2524_v18  ;;  %v1016_v12 = vrot.slane %v1014_v0, 5 }
  0x65   : > { %2568 = vmatpush.bf16.msra.mxu2 %v2524_v18  ;;  %v2372_v18 = vld [vmem:[%s2652_s11 + $0x18] sm:$0xf]  ;;  %v1643_v0 = vpack.c.b16 %v1636_v50, %v1635_v49 }
  0x66   : > { %v1535_v28 = vshrl.u32 %v2372_v18, 16  ;;  %v1017_v33 = vsel %vm2686_vm2, %v1012_v16, %v1016_v12  ;;  %v2168_v12 = vld [vmem:[%s2652_s11 + $0xb0] sm:$0xf] }
  0x67   : > { %v1120_v48 = vunpack.c.l.b16 %v1017_v33  ;;  %v2378_v16 = vld [vmem:[%s2652_s11 + $0x30] sm:$0xf]  ;;  %v1050_v20 = vshll.u32 %v2168_v12, 16  ;;  %v1591_v33 = vshrl.u32 %v2380_v21, 16 }
  0x68   : > { %1190 = vmatpush.bf16.msra.mxu1 %v2491_v15  ;;  %1706 = vmatpush.bf16.msra.mxu0 %v2523_v30  ;;  %v998_v15 = vrot.slane %v997_v3, 4  ;;  %v1537_v43 = vrot.slane %v1535_v28, 4  ;;  %v2513_v3 = vld [vmem:[%s2652_s11 + $0x74] sm:$0xf0] }
  0x69   : > { %2569 = vmatpush.bf16.msra.mxu2 %v2523_v30  ;;  %v1549_v30 = vshrl.u32 %v2374_v19, 16  ;;  %v1047_v19 = vshrl.u32 %v2168_v12, 16  ;;  %v1052_v36 = vrot.slane %v1050_v20, 5 }
  0x6a   : > { %v1003_v32 = vsel %vm2686_vm2, %v998_v15, %v1002_v11  ;;  %v2376_v15 = vld [vmem:[%s2652_s11 + $0x28] sm:$0xf] }
  0x6b   : > { %444 = vmatmul.bf16.gmra.mxu1 %v1931_v24  ;;  %955 = vmatmul.bf16.gmra.mxu0 %v2123_v25  ;;  %v1019_v24 = vshrl.u32 %v2164_v13, 16  ;;  %v1022_v25 = vshll.u32 %v2164_v13, 16  ;;  %v1551_v45 = vrot.slane %v1549_v30, 4  ;;  %v1119_v47 = vunpack.c.l.b16 %v1003_v32 }
  0x6c   : > { %v1563_v27 = vshrl.u32 %v2376_v15, 16  ;;  %v1566_v28 = vshll.u32 %v2376_v15, 16  ;;  %v1580_v30 = vshll.u32 %v2378_v16, 16  ;;  %v1049_v35 = vrot.slane %v1047_v19, 4 }
  0x6d   : > { %1461 = vmatmul.bf16.vlgmr.msrb.gmra.mxu3 %v2323_v29  ;;  %v1538_v29 = vshll.u32 %v2372_v18, 16  ;;  %v1021_v37 = vrot.slane %v1019_v24, 4  ;;  %v1024_v39 = vrot.slane %v1022_v25, 5  ;;  %v1555_v61 = vor.u32 %v1554_v46, %v1551_v45  ;;  %v2377_v46 = vld [vmem:[%s2652_s11 + $0x2c] sm:$0x1] }
  0x6e   : > { %1326 = vmatmul.bf16.vlgmr.msrb.gmra.mxu2 %v2251_v26  ;;  %v1033_v26 = vshrl.u32 %v2166_v14, 16  ;;  %v1127_v63 = vpack.c.b16 %v1120_v48, %v1119_v47  ;;  %v2170_v14 = vld [vmem:[%s2652_s11 + $0xb8] sm:$0xf]  ;;  %v1565_v47 = vrot.slane %v1563_v27, 4  ;;  %v1568_v48 = vrot.slane %v1566_v28, 5 }
  0x6f   : > { %v1540_v44 = vrot.slane %v1538_v29, 5  ;;  %v1025_v55 = vor.u32 %v1024_v39, %v1021_v37  ;;  %v1556_v10 = vrot.slane %v1555_v61, 4  ;;  %v1061_v24 = vshrl.u32 %v2170_v14, 16  ;;  %v2174_v27 = vld [vmem:[%s2652_s11 + $0xc8] sm:$0xf] }
  0x70   : > { %v1035_v40 = vrot.slane %v1033_v26, 4  ;;  %v1064_v25 = vshll.u32 %v2170_v14, 16  ;;  %v2382_v26 = vld [vmem:[%s2652_s11 + $0x40] sm:$0xf]  ;;  %v1577_v29 = vshrl.u32 %v2378_v16, 16  ;;  %v1582_v50 = vrot.slane %v1580_v30, 5 }
  0x71   : > { %v1541_v59 = vor.u32 %v1540_v44, %v1537_v43  ;;  %v1026_v4 = vrot.slane %v1025_v55, 4  ;;  %v1605_v37 = vshrl.u32 %v2382_v26, 16  ;;  %v1608_v39 = vshll.u32 %v2382_v26, 16  ;;  %v2171_v43 = vld [vmem:[%s2652_s11 + $0xbc] sm:$0x1] }
  0x72   : > { %v1039_v57 = vor.u32 %v1038_v41, %v1035_v40  ;;  %v1063_v44 = vrot.slane %v1061_v24, 4  ;;  %v1066_v45 = vrot.slane %v1064_v25, 5  ;;  %v1579_v49 = vrot.slane %v1577_v29, 4  ;;  %v2172_v24 = vld [vmem:[%s2652_s11 + $0xc0] sm:$0xf] }
  0x73   : > { %v1542_v8 = vrot.slane %v1541_v59, 4  ;;  %v1607_v59 = vrot.slane %v1605_v37, 4  ;;  %v1610_v60 = vrot.slane %v1608_v39, 5  ;;  %v1056_v61 = vshll.u32 %v2169_v42, 16 }
  0x74   : > { %v1040_v6 = vrot.slane %v1039_v57, 4  ;;  %v1053_v57 = vor.u32 %v1052_v36, %v1049_v35  ;;  %v1089_v35 = vshrl.u32 %v2174_v27, 16  ;;  %v1092_v36 = vshll.u32 %v2174_v27, 16 }
  0x75   : > { %v1547_v22 = vsel %vm2686_vm2, %v1542_v8, %v1546_v9  ;;  %v2514_v8 = vld [vmem:[%s2652_s11 + $0x84] sm:$0xf0]  ;;  %v1611_v12 = vor.u32 %v1610_v60, %v1607_v59  ;;  %v1058_v14 = vrot.slane %v1056_v61, 5 }
  0x76   : > { %v1045_v18 = vsel %vm2686_vm2, %v1040_v6, %v1044_v7  ;;  %v1637_v40 = vunpack.c.l.b16 %v1547_v22  ;;  %v2263_v6 = vor.u32 %v2502_v56, %v2262_v51  ;;  %v2334_v7 = vld [vmem:[%s2652_s11 + $0x80] sm:$0xf] }
  0x77   : > { %v1122_v32 = vunpack.c.l.b16 %v1045_v18  ;;  %v2335_v18 = vor.u32 %v2514_v8, %v2334_v7  ;;  %v1612_v25 = vrot.slane %v1611_v12, 4 }
  0x7b   : > { %449 = vmatmul.bf16.gmra.mxu1 %v1935_v62  ;;  %960 = vmatmul.bf16.gmra.mxu0 %v2127_v1  ;;  %v1558_v62 = vshll.u32 %v2375_v52, 16  ;;  %v2259_v1 = vor.u32 %v2501_v54, %v2258_v53  ;;  %v2379_v52 = vld [vmem:[%s2652_s11 + $0x34] sm:$0x1]  ;;  %v1593_v53 = vrot.slane %v1591_v33, 4  ;;  %v1596_v54 = vrot.slane %v1594_v34, 5 }
  0x7c   : > { %v1078_v34 = vshll.u32 %v2172_v24, 16 }
  0x7d   : > { %1466 = vmatmul.bf16.gmra.mxu3 %v2327_v17  ;;  %v1560_v11 = vrot.slane %v1558_v62, 5  ;;  %v1031_v17 = vsel %vm2686_vm2, %v1026_v4, %v1030_v5  ;;  %v1067_v62 = vor.u32 %v1066_v45, %v1063_v44  ;;  %v1583_v4 = vor.u32 %v1582_v50, %v1579_v49  ;;  %v2175_v50 = vld [vmem:[%s2652_s11 + $0xcc] sm:$0x1] }
  0x7e   : > { %1331 = vmatmul.bf16.gmra.mxu2 %v2255_v2  ;;  %v2330_v2 = vld [vmem:[%s2652_s11 + $0x70] sm:$0xf]  ;;  %v1121_v31 = vunpack.c.l.b16 %v1031_v17  ;;  %v1586_v5 = vshll.u32 %v2379_v52, 16  ;;  %v1597_v9 = vor.u32 %v1596_v54, %v1593_v53  ;;  %v1094_v49 = vrot.slane %v1092_v36, 5 }
  0x7f   : > { %v2331_v13 = vor.u32 %v2513_v3, %v2330_v2  ;;  %v1561_v23 = vsel %vm2686_vm2, %v1556_v10, %v1560_v11  ;;  %v1569_v3 = vor.u32 %v1568_v48, %v1565_v47  ;;  %v1600_v10 = vshll.u32 %v2381_v58, 16 }
  0x80   : > { %v1638_v41 = vunpack.c.l.b16 %v1561_v23  ;;  %v1128_v55 = vpack.c.b16 %v1122_v32, %v1121_v31  ;;  %v1054_v11 = vrot.slane %v1053_v57, 4  ;;  %v1068_v15 = vrot.slane %v1067_v62, 4 }
  0x81   : > { %v1570_v19 = vrot.slane %v1569_v3, 4  ;;  %v1584_v20 = vrot.slane %v1583_v4, 4  ;;  %v1588_v21 = vrot.slane %v1586_v5, 5  ;;  %v1598_v22 = vrot.slane %v1597_v9, 4 }
  0x82   : > { %v1644_v2 = vpack.c.b16 %v1638_v41, %v1637_v40  ;;  %v1602_v23 = vrot.slane %v1600_v10, 5  ;;  %v1059_v28 = vsel %vm2686_vm2, %v1054_v11, %v1058_v14  ;;  %v1075_v32 = vshrl.u32 %v2172_v24, 16 }
  0x83   : > { %v1589_v31 = vsel %vm2686_vm2, %v1584_v20, %v1588_v21  ;;  %v1123_v39 = vunpack.c.l.b16 %v1059_v28  ;;  %v1080_v47 = vrot.slane %v1078_v34, 5  ;;  %v1091_v48 = vrot.slane %v1089_v35, 4 }
  0x84   : > { %v1603_v33 = vsel %vm2686_vm2, %v1598_v22, %v1602_v23  ;;  %v1640_v42 = vunpack.c.l.b16 %v1589_v31  ;;  %v1077_v44 = vrot.slane %v1075_v32, 4  ;;  %v1098_v59 = vshll.u32 %v2175_v50, 16 }
  0x85   : > { %v1095_v58 = vor.u32 %v1094_v49, %v1091_v48 }
  0x86   : > { %v1081_v57 = vor.u32 %v1080_v47, %v1077_v44 }
  0x87   : > { %v1096_v62 = vrot.slane %v1095_v58, 4 }
  0x88   : > { %v1082_v60 = vrot.slane %v1081_v57, 4 }
  0x8b   : > { %1191 = vmatmul.bf16.vlgmr.msra.gmra.mxu1 %v1127_v63  ;;  %1707 = vmatmul.bf16.vlgmr.msra.gmra.mxu0 %v1643_v0  ;;  %v1070_v63 = vshll.u32 %v2171_v43, 16  ;;  %v1572_v0 = vshll.u32 %v2377_v46, 16  ;;  %v1641_v43 = vunpack.c.l.b16 %v1603_v33  ;;  %v2173_v46 = vld [vmem:[%s2652_s11 + $0xc4] sm:$0x1] }
  0x8c   : > { %v1084_v53 = vshll.u32 %v2173_v46, 16 }
  0x8d   : > { %1471 = vmatmul.bf16.gmra.mxu3 %v2331_v13  ;;  %v1072_v16 = vrot.slane %v1070_v63, 5  ;;  %v1574_v17 = vrot.slane %v1572_v0, 5  ;;  %v1100_v63 = vrot.slane %v1098_v59, 5 }
  0x8e   : > { %1336 = vmatmul.bf16.gmra.mxu2 %v2259_v1  ;;  %v2383_v1 = vld [vmem:[%s2652_s11 + $0x44] sm:$0x1]  ;;  %v1086_v61 = vrot.slane %v1084_v53, 5 }
  0x8f   : > { %v1614_v13 = vshll.u32 %v2383_v1, 16  ;;  %v1073_v29 = vsel %vm2686_vm2, %v1068_v15, %v1072_v16  ;;  %v1575_v30 = vsel %vm2686_vm2, %v1570_v19, %v1574_v17  ;;  %v1101_v4 = vsel %vm2686_vm2, %v1096_v62, %v1100_v63 }
  0x90   : > { %v1124_v40 = vunpack.c.l.b16 %v1073_v29  ;;  %v1639_v41 = vunpack.c.l.b16 %v1575_v30  ;;  %v1087_v3 = vsel %vm2686_vm2, %v1082_v60, %v1086_v61  ;;  %v1126_v7 = vunpack.c.l.b16 %v1101_v4 }
  0x91   : > { %v1616_v26 = vrot.slane %v1614_v13, 5 }
  0x92   : > { %v1129_v51 = vpack.c.b16 %v1124_v40, %v1123_v39  ;;  %v1645_v52 = vpack.c.b16 %v1640_v42, %v1639_v41 }
  0x93   : > { %v1617_v37 = vsel %vm2686_vm2, %v1612_v25, %v1616_v26 }
  0x94   : > { %v1642_v45 = vunpack.c.l.b16 %v1617_v37 }
  0x96   : > { %v1646_v56 = vpack.c.b16 %v1642_v45, %v1641_v43 }
  0x9b   : > { %1196 = vmatmul.bf16.gmra.mxu1 %v1128_v55  ;;  %1712 = vmatmul.bf16.gmra.mxu0 %v1644_v2 }
  0x9d   : > { %1476 = vmatmul.bf16.gmra.mxu3 %v2335_v18 }
  0x9e   : > { %1341 = vmatmul.bf16.gmra.mxu2 %v2263_v6  ;;  %v1125_v6 = vunpack.c.l.b16 %v1087_v3 }
  0xa0   : > { %v1130_v8 = vpack.c.b16 %v1126_v7, %v1125_v6 }
  0xa8   : > { %v344_v54 = vpop.f32.mrf.mxu1  ;;  %v334_v55 = vpop.f32.mrf.mxu0 }
  0xab   : > { %1201 = vmatmul.bf16.gmra.mxu1 %v1129_v51  ;;  %1717 = vmatmul.bf16.gmra.mxu0 %v1645_v52 }
  0xae   : > { %1722 = vmatmul.bf16.vlgmr.msra.gmra.mxu2 %v1646_v56 }
  0xb0   : > { %v346_v1 = vpop.f32.mrf.mxu1  ;;  %v336_v2 = vpop.f32.mrf.mxu0 }
  0xb1   : > { %v676_v0 = vpop.f32.mrf.mxu2  ;;  %v811_v5 = vpop.f32.mrf.mxu3 }
  0xb8   : > { %v349_v10 = vpop.f32.mrf.mxu1  ;;  %v339_v11 = vpop.f32.mrf.mxu0 }
  0xb9   : > { %v678_v9 = vpop.f32.mrf.mxu2  ;;  %v2994_v12 = vpop.f32.mrf.mxu3 }
  0xbb   : > { %1206 = vmatmul.bf16.gmra.mxu1 %v1130_v8 }
  0xc0   : > { %v351_v14 = vpop.f32.mrf.mxu1  ;;  %v341_v15 = vpop.f32.mrf.mxu0 }
  0xc1   : > { %v681_v13 = vpop.f32.mrf.mxu2  ;;  %v816_v16 = vpop.f32.mrf.mxu3 }
  0xc8   : > { %v435_v18 = vpop.f32.mrf.mxu1  ;;  %v946_v19 = vpop.f32.mrf.mxu0 }
  0xc9   : > { %v683_v17 = vpop.f32.mrf.mxu2  ;;  %v436_v20 = vadd.f32 %v435_v18, %v334_v55  ;;  %v2996_v21 = vpop.f32.mrf.mxu3 }
  0xcb   : > { %v696_v38 = vadd.f32 %v676_v0, %v436_v20 }
  0xcd   : > { %v831_v22 = vadd.f32 %v811_v5, %v696_v38 }
  0xcf   : > { %v966_v23 = vadd.f32 %v946_v19, %v831_v22 }
  0xd0   : > { %v437_v25 = vpop.f32.mrf.mxu1  ;;  %v948_v26 = vpop.f32.mrf.mxu0 }
  0xd1   : > { %v686_v24 = vpop.f32.mrf.mxu2  ;;  %v438_v27 = vadd.f32 %v437_v25, %v336_v2  ;;  %v821_v29 = vpop.f32.mrf.mxu3 }
  0xd3   : > { %v697_v28 = vadd.f32 %v678_v9, %v438_v27 }
  0xd8   : > { %v440_v31 = vpop.f32.mrf.mxu1  ;;  %v951_v32 = vpop.f32.mrf.mxu0 }
  0xd9   : > { %v688_v30 = vpop.f32.mrf.mxu2  ;;  %v441_v33 = vadd.f32 %v440_v31, %v339_v11  ;;  %v2998_v39 = vpop.f32.mrf.mxu3 }
  0xdb   : > { %v698_v34 = vadd.f32 %v681_v13, %v441_v33 }
  0xdd   : > { %v833_v35 = vadd.f32 %v816_v16, %v698_v34 }
  0xdf   : > { %v968_v36 = vadd.f32 %v951_v32, %v833_v35 }
  0xe0   : > { %v442_v40 = vpop.f32.mrf.mxu1  ;;  %v3000_v41 = vpop.f32.mrf.mxu0 }
  0xe1   : > { %v691_v37 = vpop.f32.mrf.mxu2  ;;  %v443_v42 = vadd.f32 %v442_v40, %v341_v15  ;;  %v826_v48 = vpop.f32.mrf.mxu3 }
  0xe3   : > { %v699_v43 = vadd.f32 %v683_v17, %v443_v42 }
  0xe5   : > { %v834_v33 = vadd.f32 %v2996_v21, %v699_v43 }
  0xe8   : > { %v445_v45 = vpop.f32.mrf.mxu1  ;;  %v956_v46 = vpop.f32.mrf.mxu0 }
  0xe9   : > { %v693_v44 = vpop.f32.mrf.mxu2  ;;  %v446_v47 = vadd.f32 %v445_v45, %v344_v54  ;;  %v3008_v58 = vpop.f32.mrf.mxu3 }
  0xeb   : > { %v700_v49 = vadd.f32 %v686_v24, %v446_v47 }
  0xed   : > { %v835_v50 = vadd.f32 %v821_v29, %v700_v49 }
  0xef   : > { %v3002_v51 = vadd.f32 %v956_v46, %v835_v50  ;;  %v969_v46 = vadd.f32 %v3000_v41, %v834_v33 }
  0xf0   : > { %v447_v53 = vpop.f32.mrf.mxu1  ;;  %v3004_v55 = vpop.f32.mrf.mxu0 }
  0xf1   : > { %v1327_v52 = vpop.f32.mrf.mxu2  ;;  %v448_v56 = vadd.f32 %v447_v53, %v346_v1  ;;  %v1462_v0 = vpop.f32.mrf.mxu3 }
  0xf3   : > { %v3006_v57 = vadd.f32 %v688_v30, %v448_v56 }
  0xf8   : > { %v450_v60 = vpop.f32.mrf.mxu1  ;;  %v961_v61 = vpop.f32.mrf.mxu0 }
  0xf9   : > { %v1329_v59 = vpop.f32.mrf.mxu2  ;;  %v451_v62 = vadd.f32 %v450_v60, %v349_v10  ;;  %v1464_v1 = vpop.f32.mrf.mxu3  ;;  %v832_v10 = vadd.f32 %v2994_v12, %v697_v28  ;;  %v3027_v12 = vld [vmem:[%s3070_s3] ss:$0 sm:$0xff] }
  0xfb   : > { %v702_v63 = vadd.f32 %v691_v37, %v451_v62  ;;  %v967_v17 = vadd.f32 %v948_v26, %v832_v10 }
  0xfd   : > { %v837_v54 = vadd.f32 %v826_v48, %v702_v63 }
  0xff   : > { %v3010_v2 = vadd.f32 %v961_v61, %v837_v54  ;;  %v836_v54 = vadd.f32 %v2998_v39, %v3006_v57 }
 0x100   : > { %v452_v4 = vpop.f32.mrf.mxu1  ;;  %v3012_v5 = vpop.f32.mrf.mxu0 }
 0x101   : > { %v1332_v3 = vpop.f32.mrf.mxu2  ;;  %v453_v6 = vadd.f32 %v452_v4, %v351_v14  ;;  %v3020_v14 = vld [vmem:[%s3069_s2] ss:$0 sm:$0xff]  ;;  %v1467_v22 = vpop.f32.mrf.mxu3 }
 0x103   : > { %v3014_v7 = vadd.f32 %v693_v44, %v453_v6 }
 0x108   : > { %v1192_v8 = vpop.f32.mrf.mxu1  ;;  %v1708_v9 = vpop.f32.mrf.mxu0 }
 0x109   : > { %v1212_v11 = vadd.f32 %v1192_v8, %v966_v23  ;;  %v1334_v13 = vpop.f32.mrf.mxu2  ;;  %v1469_v37 = vpop.f32.mrf.mxu3  ;;  %v971_v8 = vadd.f32 %v3004_v55, %v836_v54 }
 0x10b   : > { %v1347_v15 = vadd.f32 %v1327_v52, %v1212_v11 }
 0x10d   : > { %v1482_v16 = vadd.f32 %v1462_v0, %v1347_v15 }
 0x10f   : > { %v1728_v20 = vadd.f32 %v1708_v9, %v1482_v16 }
 0x110   : > { %v1194_v18 = vpop.f32.mrf.mxu1  ;;  %v1710_v19 = vpop.f32.mrf.mxu0 }
 0x111   : > { %v1213_v38 = vadd.f32 %v1194_v18, %v967_v17  ;;  %v1337_v23 = vpop.f32.mrf.mxu2  ;;  %v1740_v25 = vmul.f32 %v3020_v14, %v1728_v20  ;;  %v1472_v53 = vpop.f32.mrf.mxu3 }
 0x113   : > { %v1348_v24 = vadd.f32 %v1329_v59, %v1213_v38  ;;  %v1752_v30 = vadd.f32 %v3027_v12, %v1740_v25 }
 0x115   : > { %v1483_v26 = vadd.f32 %v1464_v1, %v1348_v24  ;;  %v1760_v40 = vmax.f32 %v1752_v30, 0.0  ;;  %v838_v24 = vadd.f32 %v3008_v58, %v3014_v7 }
 0x117   : > { %v1729_v27 = vadd.f32 %v1710_v19, %v1483_v26  ;;  %v973_v30 = vadd.f32 %v3012_v5, %v838_v24 }
 0x118   : > { %v1197_v28 = vpop.f32.mrf.mxu1  ;;  %v1713_v29 = vpop.f32.mrf.mxu0 }
 0x119   : > { %v1741_v31 = vmul.f32 %v3020_v14, %v1729_v27  ;;  %v1214_v32 = vadd.f32 %v1197_v28, %v968_v36  ;;  %v1339_v45 = vpop.f32.mrf.mxu2  ;;  %v1474_v11 = vpop.f32.mrf.mxu3 }
 0x11b   : > { %v1753_v34 = vadd.f32 %v3027_v12, %v1741_v31  ;;  %v1349_v35 = vadd.f32 %v1332_v3, %v1214_v32 }
 0x11d   : > { %v1761_v42 = vmax.f32 %v1753_v34, 0.0  ;;  %v1484_v44 = vadd.f32 %v1467_v22, %v1349_v35 }
 0x11f   : > { %v2534_v36 = vpack.c.bf16 %v1761_v42, %v1760_v40  ;;  %v1730_v43 = vadd.f32 %v1713_v29, %v1484_v44 }
 0x120   : > { %v1199_v47 = vpop.f32.mrf.mxu1  ;;  %v1715_v21 = vpop.f32.mrf.mxu0 }
 0x121   : > { %2535 = vst [vmem:[%s3037_s7] sm:$0xff] %v2534_v36   ;;  %v1215_v48 = vadd.f32 %v1199_v47, %v969_v46  ;;  %v1742_v50 = vmul.f32 %v3020_v14, %v1730_v43  ;;  %v1342_v59 = vpop.f32.mrf.mxu2  ;;  %v1477_v22 = vpop.f32.mrf.mxu3 }
 0x123   : > { %v1350_v49 = vadd.f32 %v1334_v13, %v1215_v48  ;;  %v1754_v61 = vadd.f32 %v3027_v12, %v1742_v50 }
 0x125   : > { %v1485_v52 = vadd.f32 %v1469_v37, %v1350_v49  ;;  %v1762_v4 = vmax.f32 %v1754_v61, 0.0 }
 0x127   : > { %v1731_v56 = vadd.f32 %v1715_v21, %v1485_v52 }
 0x128   : > { %v1202_v60 = vpop.f32.mrf.mxu1  ;;  %v1718_v63 = vpop.f32.mrf.mxu0 }
 0x129   : > { %v1743_v62 = vmul.f32 %v3020_v14, %v1731_v56  ;;  %v1216_v41 = vadd.f32 %v1202_v60, %v3002_v51  ;;  %v1344_v16 = vpop.f32.mrf.mxu2  ;;  %v1479_v35 = vpop.f32.mrf.mxu3 }
 0x12b   : > { %v1755_v0 = vadd.f32 %v3027_v12, %v1743_v62  ;;  %v1351_v3 = vadd.f32 %v1337_v23, %v1216_v41 }
 0x12d   : > { %v1763_v6 = vmax.f32 %v1755_v0, 0.0  ;;  %v1486_v1 = vadd.f32 %v1472_v53, %v1351_v3 }
 0x12f   : > { %v2539_v9 = vpack.c.bf16 %v1763_v6, %v1762_v4  ;;  %v1732_v10 = vadd.f32 %v1718_v63, %v1486_v1 }
 0x130   : > { %v1204_v13 = vpop.f32.mrf.mxu1  ;;  %v1720_v17 = vpop.f32.mrf.mxu0 }
 0x131   : > { %2551 = vst [vmem:[%s3037_s7 + $0x8] sm:$0xff] %v2539_v9   ;;  %v1217_v15 = vadd.f32 %v1204_v13, %v971_v8  ;;  %v1744_v18 = vmul.f32 %v3020_v14, %v1732_v10  ;;  %v1723_v26 = vpop.f32.mrf.mxu2 }
 0x133   : > { %v1352_v51 = vadd.f32 %v1339_v45, %v1217_v15  ;;  %v1756_v20 = vadd.f32 %v3027_v12, %v1744_v18 }
 0x135   : > { %v1487_v39 = vadd.f32 %v1474_v11, %v1352_v51  ;;  %v1764_v27 = vmax.f32 %v1756_v20, 0.0 }
 0x137   : > { %v1733_v57 = vadd.f32 %v1720_v17, %v1487_v39 }
 0x138   : > { %v1207_v19 = vpop.f32.mrf.mxu1 }
 0x139   : > { %v1745_v38 = vmul.f32 %v3020_v14, %v1733_v57  ;;  %v1218_v55 = vadd.f32 %v1207_v19, %v3010_v2  ;;  %v1725_v7 = vpop.f32.mrf.mxu2 }
 0x13b   : > { %v1757_v23 = vadd.f32 %v3027_v12, %v1745_v38  ;;  %v1353_v25 = vadd.f32 %v1342_v59, %v1218_v55 }
 0x13d   : > { %v1765_v28 = vmax.f32 %v1757_v23, 0.0  ;;  %v1488_v29 = vadd.f32 %v1477_v22, %v1353_v25 }
 0x13f   : > { %v2544_v31 = vpack.c.bf16 %v1765_v28, %v1764_v27  ;;  %v1734_v33 = vadd.f32 %v1723_v26, %v1488_v29 }
 0x140   : > { %v1209_v32 = vpop.f32.mrf.mxu1 }
 0x141   : > { %2552 = vst [vmem:[%s3037_s7 + $0x10] sm:$0xff] %v2544_v31   ;;  %v1219_v34 = vadd.f32 %v1209_v32, %v973_v30  ;;  %v1746_v37 = vmul.f32 %v3020_v14, %v1734_v33 }
 0x143   : > { %v1354_v2 = vadd.f32 %v1344_v16, %v1219_v34  ;;  %v1758_v42 = vadd.f32 %v3027_v12, %v1746_v37 }
 0x145   : > { %v1489_v58 = vadd.f32 %v1479_v35, %v1354_v2  ;;  %v1766_v5 = vmax.f32 %v1758_v42, 0.0 }
 0x147   : > { %v1735_v40 = vadd.f32 %v1725_v7, %v1489_v58 }
 0x149   : > { %v1747_v44 = vmul.f32 %v3020_v14, %v1735_v40 }
 0x14b   : > { %v1759_v45 = vadd.f32 %v3027_v12, %v1747_v44 }
 0x14d   : > { %v1767_v46 = vmax.f32 %v1759_v45, 0.0 }
 0x14f   : > { %v2549_v36 = vpack.c.bf16 %v1767_v46, %v1766_v5 }
 0x151   : > { %2553 = vst [vmem:[%s3037_s7 + $0x18] sm:$0xff] %v2549_v36  }
 0x152 PF: > { %s14_s15 = sadd.s32 1, %s2587_s15  }
 0x153   : > { %p11_p5 = scmp.ge.s32.totalorder %s14_s15, 4  }
 0x155   :  { %13 = sbr.rel (!%p11_p5) target bundleno = 1 (0x1), region = 79 }

// kernel: conv_blocks_forward.9
= control target key start
LH: loop header
LB: loop body
LE: loop exit
PB: predicated region body
PF: predicated region fallthrough
CT: control target
= control target key end

     0   :  { %s3050_s27 = smov 0   ;;  %s3695_s0 = inlined_call_operand.vmem [shape: bf16[2,10,10,128], index: 0, kind: input, shape index: {}]   ;;  %s3696_s1 = inlined_call_operand.vmem [shape: bf16[9,128,128], index: 1, kind: input, shape index: {}]   ;;  %s3697_s2 = inlined_call_operand.vmem [shape: f32[1,128], index: 2, kind: input, shape index: {}]   ;;  %s3698_s3 = inlined_call_operand.vmem [shape: f32[1,128], index: 3, kind: input, shape index: {}]   ;;  %s3699_s4 = inlined_call_operand.vmem [shape: bf16[2,64,128], index: 4, kind: input, shape index: {}]   ;;  %s3700_s5 = inlined_call_operand.vmem [shape: bf16[128,128], index: 5, kind: input, shape index: {}]   ;;  %s3701_s6 = inlined_call_operand.vmem [shape: f32[1,128], index: 6, kind: input, shape index: {}]   ;;  %s3702_s7 = inlined_call_operand.vmem [shape: f32[1,128], index: 7, kind: input, shape index: {}]   ;;  %s3703_s8 = inlined_call_operand.vmem [shape: bf16[2,64,128], index: 8, kind: output, shape index: {}]  }
   0x1 LB: > { %s2235_s28 = sadd.s32 4294967295, %s3003_s27   ;;  %p2239_p0 = scmp.ge.s32.totalorder %s3003_s27, 1  ;;  %s3003_s27 = sphi %s3050_s27, %s18_s27  }
   0x2   : > { %p272_p1 = scmp.lt.s32.totalorder %s3003_s27, 3 }
   0x4   : > { %p273_p2 = pnand %p2239_p0, %p272_p1 }
   0x5   : > { %p311_p3 = scmp.lt.s32.totalorder (!%p273_p2), %s2235_s28, 1 }
   0x6   : > { %276 = sbr.rel (%p273_p2) target bundleno = 342 (0x156), region = 52 }
   0xb   : > { %v2868_v0 = vld [vmem:[%s3696_s1 + $0x78] sm:$0xff]  ;;  %v2867_v2 = vld [vmem:[%s3696_s1 + $0x70] sm:$0xff]  ;;  %s3709_s28 = smov (!%p311_p3, %s2235_s28), 1  ;;  %v2866_v4 = vld [vmem:[%s3696_s1 + $0x68] sm:$0xff]  ;;  %vm358_vm0 = vsmask.f32 3328 }
   0xc   : > { %v2860_v1 = vld [vmem:[%s3696_s1 + $0x38] sm:$0xff]  ;;  %2968 = vmatpush.bf16.msra.mxu2 %v2868_v0  ;;  %v2859_v3 = vld [vmem:[%s3696_s1 + $0x30] sm:$0xff]  ;;  %554 = vmatpush.bf16.msra.mxu0 %v2868_v0  ;;  %s2984_s15 = smul.u32 80, %s3709_s28  ;;  %v2858_v5 = vld [vmem:[%s3696_s1 + $0x28] sm:$0xff]  ;;  %vm359_vm1 = vsmask.f32 7440 }
   0xd   : > { %2976 = vmatpush.bf16.msra.mxu3 %v2860_v1  ;;  %655 = vmatpush.bf16.msra.mxu1 %v2860_v1  ;;  %v2865_v12 = vld [vmem:[%s3696_s1 + $0x60] sm:$0xff]  ;;  %v2864_v33 = vld [vmem:[%s3696_s1 + $0x58] sm:$0xff]  ;;  %v2863_v43 = vld [vmem:[%s3696_s1 + $0x50] sm:$0xff]  ;;  %vm708_vm3 = vcmask 1042432   ;;  %vm709_vm4 = vcmask 1046532   ;;  %s2847_s18 = sshll.u32 %s3709_s28, 5 }
   0xe   : > { %s3082_s22 = scalar_lea.vmem %s3695_s0, %s2984_s15  ;;  %v2857_v15 = vld [vmem:[%s3696_s1 + $0x20] sm:$0xff]  ;;  %v2856_v34 = vld [vmem:[%s3696_s1 + $0x18] sm:$0xff]  ;;  %v2855_v48 = vld [vmem:[%s3696_s1 + $0x10] sm:$0xff]  ;;  %s3523_s21 = scalar_lea.vmem %s3699_s4, %s2847_s18 }
   0xf   : > { %v330_v6 = vld [vmem:[%s3082_s22 + $0x20] sm:$0xf]  ;;  %v331_v7 = vld [vmem:[%s3082_s22 + $0x28] sm:$0xf]  ;;  %v3087_v8 = vld [vmem:[%s3082_s22 + $0x24] sm:$0x1]  ;;  %s3649_s12 = scalar_lea.vmem %s3703_s8, %s2847_s18 }
  0x10   : > { %2969 = vmatpush.bf16.msra.mxu2 %v2867_v2  ;;  %555 = vmatpush.bf16.msra.mxu0 %v2867_v2  ;;  %v418_v9 = vshrl.u32 %v330_v6, 16  ;;  %v421_v10 = vshll.u32 %v330_v6, 16  ;;  %v432_v11 = vshrl.u32 %v331_v7, 16  ;;  %v3093_v13 = vld [vmem:[%s3082_s22 + $0x2c] sm:$0x1]  ;;  %v435_v14 = vshll.u32 %v331_v7, 16  ;;  %vm3123_vm2 = vmor %vm358_vm0, %vm359_vm1 }
  0x11   : > { %2977 = vmatpush.bf16.msra.mxu3 %v2859_v3  ;;  %656 = vmatpush.bf16.msra.mxu1 %v2859_v3  ;;  %v326_v19 = vld [vmem:[%s3082_s22] sm:$0xf]  ;;  %v427_v20 = vshll.u32 %v3087_v8, 16  ;;  %v327_v22 = vld [vmem:[%s3082_s22 + $0x8] sm:$0xf]  ;;  %v441_v25 = vshll.u32 %v3093_v13, 16  ;;  %vm3269_vm5 = vmor %vm708_vm3, %vm709_vm4 }
  0x12   : > { %v420_v16 = vrot.slane %v418_v9, 4  ;;  %v423_v17 = vrot.slane %v421_v10, 5  ;;  %v434_v18 = vrot.slane %v432_v11, 4  ;;  %v437_v21 = vrot.slane %v435_v14, 5  ;;  %v3102_v23 = vld [vmem:[%s3082_s22 + $0x4] sm:$0x1] }
  0x13   : > { %v3106_v26 = vld [vmem:[%s3082_s22 + $0xc] sm:$0x1]  ;;  %v362_v27 = vshrl.u32 %v326_v19, 16  ;;  %v365_v28 = vshll.u32 %v326_v19, 16  ;;  %v371_v30 = vshll.u32 %v3102_v23, 16  ;;  %v376_v31 = vshrl.u32 %v327_v22, 16 }
  0x14   : > { %2970 = vmatpush.bf16.msra.mxu2 %v2866_v4  ;;  %556 = vmatpush.bf16.msra.mxu0 %v2866_v4  ;;  %v424_v24 = vor.u32 %v423_v17, %v420_v16  ;;  %v438_v29 = vor.u32 %v437_v21, %v434_v18  ;;  %v379_v32 = vshll.u32 %v327_v22, 16  ;;  %v385_v37 = vshll.u32 %v3106_v26, 16  ;;  %v332_v52 = vld [vmem:[%s3082_s22 + $0x30] sm:$0xf]  ;;  %v333_v54 = vld [vmem:[%s3082_s22 + $0x38] sm:$0xf] }
  0x15   : > { %2978 = vmatpush.bf16.msra.mxu3 %v2858_v5  ;;  %657 = vmatpush.bf16.msra.mxu1 %v2858_v5  ;;  %v364_v35 = vrot.slane %v362_v27, 4  ;;  %v367_v36 = vrot.slane %v365_v28, 5  ;;  %v378_v38 = vrot.slane %v376_v31, 4  ;;  %v429_v40 = vrot.slane %v427_v20, 5  ;;  %v2862_v55 = vld [vmem:[%s3696_s1 + $0x48] sm:$0xff]  ;;  %v2861_v3 = vld [vmem:[%s3696_s1 + $0x40] sm:$0xff] }
  0x16   : > { %v381_v39 = vrot.slane %v379_v32, 5  ;;  %v443_v41 = vrot.slane %v441_v25, 5  ;;  %v425_v44 = vrot.slane %v424_v24, 4  ;;  %v439_v45 = vrot.slane %v438_v29, 4  ;;  %v2854_v60 = vld [vmem:[%s3696_s1 + $0x8] sm:$0xff]  ;;  %v2876_v25 = vld [vmem:[%s3696_s1 + $0xb8] sm:$0xff] }
  0x17   : > { %v368_v42 = vor.u32 %v367_v36, %v364_v35  ;;  %v373_v46 = vrot.slane %v371_v30, 5  ;;  %v387_v51 = vrot.slane %v385_v37, 5  ;;  %v446_v59 = vshrl.u32 %v332_v52, 16  ;;  %v328_v1 = vld [vmem:[%s3082_s22 + $0x10] sm:$0xf]  ;;  %v2888_v31 = vld [vmem:[%s3696_s1 + $0xf8] sm:$0xff] }
  0x18   : > { %2971 = vmatpush.bf16.msra.mxu2 %v2865_v12  ;;  %557 = vmatpush.bf16.msra.mxu0 %v2865_v12  ;;  %v382_v47 = vor.u32 %v381_v39, %v378_v38  ;;  %v430_v56 = vsel %vm3123_vm2, %v425_v44, %v429_v40  ;;  %v444_v57 = vsel %vm3123_vm2, %v439_v45, %v443_v41  ;;  %v449_v62 = vshll.u32 %v332_v52, 16  ;;  %v329_v2 = vld [vmem:[%s3082_s22 + $0x18] sm:$0xf]  ;;  %v2303_v6 = vld [vmem:[%s3082_s22 + $0x20] sm:$0xf]  ;;  %v2895_v52 = vld [vmem:[%s3696_s1 + $0x130] sm:$0xff] }
  0x19   : > { %2979 = vmatpush.bf16.msra.mxu3 %v2857_v15  ;;  %658 = vmatpush.bf16.msra.mxu1 %v2857_v15  ;;  %v369_v50 = vrot.slane %v368_v42, 4  ;;  %v460_v63 = vshrl.u32 %v333_v54, 16  ;;  %v463_v0 = vshll.u32 %v333_v54, 16  ;;  %v494_v4 = vunpack.c.l.b16 %v430_v56  ;;  %v2851_v7 = vld [vmem:[%s3082_s22 + $0x24] sm:$0xf0]  ;;  %v2853_v12 = vld [vmem:[%s3696_s1] sm:$0xff] }
  0x1a   : > { %v383_v53 = vrot.slane %v382_v47, 4  ;;  %v495_v5 = vunpack.c.l.b16 %v444_v57  ;;  %v2295_v10 = vld [vmem:[%s3082_s22] sm:$0xf]  ;;  %v390_v11 = vshrl.u32 %v328_v1, 16  ;;  %v2849_v15 = vld [vmem:[%s3082_s22 + $0x4] sm:$0xf0]  ;;  %v2304_v36 = vor.u32 %v2851_v7, %v2303_v6 }
  0x1b   : > { %v374_v58 = vsel %vm3123_vm2, %v369_v50, %v373_v46  ;;  %v448_v16 = vrot.slane %v446_v59, 4  ;;  %v393_v17 = vshll.u32 %v328_v1, 16  ;;  %v404_v18 = vshrl.u32 %v329_v2, 16  ;;  %v3156_v19 = vld [vmem:[%s3082_s22 + $0x34] sm:$0x1]  ;;  %v2904_v44 = vld [vmem:[%s3696_s1 + $0x178] sm:$0xff] }
  0x1c   : > { %2972 = vmatpush.bf16.msra.mxu2 %v2864_v33  ;;  %558 = vmatpush.bf16.msra.mxu0 %v2864_v33  ;;  %v388_v61 = vsel %vm3123_vm2, %v383_v53, %v387_v51  ;;  %v490_v9 = vunpack.c.l.b16 %v374_v58  ;;  %v451_v20 = vrot.slane %v449_v62, 5  ;;  %v462_v21 = vrot.slane %v460_v63, 4  ;;  %v3162_v27 = vld [vmem:[%s3082_s22 + $0x3c] sm:$0x1]  ;;  %v3168_v32 = vld [vmem:[%s3082_s22 + $0x14] sm:$0x1] }
  0x1d   : > { %2980 = vmatpush.bf16.msra.mxu3 %v2856_v34  ;;  %659 = vmatpush.bf16.msra.mxu1 %v2856_v34  ;;  %v491_v14 = vunpack.c.l.b16 %v388_v61  ;;  %v465_v22 = vrot.slane %v463_v0, 5  ;;  %v407_v24 = vshll.u32 %v329_v2, 16  ;;  %v392_v28 = vrot.slane %v390_v11, 4  ;;  %v3171_v33 = vld [vmem:[%s3082_s22 + $0x1c] sm:$0x1]  ;;  %v2875_v50 = vld [vmem:[%s3696_s1 + $0xb0] sm:$0xff] }
  0x1e   : > { %v395_v29 = vrot.slane %v393_v17, 5  ;;  %v406_v30 = vrot.slane %v404_v18, 4  ;;  %v500_v35 = vpack.c.b16 %v495_v5, %v494_v4  ;;  %v2296_v37 = vor.u32 %v2849_v15, %v2295_v10  ;;  %v2887_v51 = vld [vmem:[%s3696_s1 + $0xf0] sm:$0xff]  ;;  %v2469_v62 = vld [vmem:[%s3082_s22 + $0x8] sm:$0xf]  ;;  %v2873_v7 = vld [vmem:[%s3696_s1 + $0xa0] sm:$0xff] }
  0x1f   : > { %v409_v34 = vrot.slane %v407_v24, 5  ;;  %v455_v38 = vshll.u32 %v3156_v19, 16  ;;  %v498_v39 = vpack.c.b16 %v491_v14, %v490_v9  ;;  %v452_v40 = vor.u32 %v451_v20, %v448_v16  ;;  %v2903_v53 = vld [vmem:[%s3696_s1 + $0x170] sm:$0xff]  ;;  %v2874_v63 = vld [vmem:[%s3696_s1 + $0xa8] sm:$0xff]  ;;  %v2885_v9 = vld [vmem:[%s3696_s1 + $0xe0] sm:$0xff] }
  0x20   : > { %2973 = vmatpush.bf16.msra.mxu2 %v2863_v43  ;;  %559 = vmatpush.bf16.msra.mxu0 %v2863_v43  ;;  %v466_v41 = vor.u32 %v465_v22, %v462_v21  ;;  %v469_v42 = vshll.u32 %v3162_v27, 16  ;;  %v2896_v43 = vld [vmem:[%s3696_s1 + $0x138] sm:$0xff]  ;;  %v396_v45 = vor.u32 %v395_v29, %v392_v28  ;;  %v399_v46 = vshll.u32 %v3168_v32, 16  ;;  %v2886_v0 = vld [vmem:[%s3696_s1 + $0xe8] sm:$0xff]  ;;  %v2471_v1 = vld [vmem:[%s3082_s22 + $0x10] sm:$0xf] }
  0x21   : > { %2981 = vmatpush.bf16.msra.mxu3 %v2855_v48  ;;  %660 = vmatpush.bf16.msra.mxu1 %v2855_v48  ;;  %v410_v47 = vor.u32 %v409_v34, %v406_v30  ;;  %v413_v48 = vshll.u32 %v3171_v33, 16  ;;  %v453_v54 = vrot.slane %v452_v40, 4  ;;  %v2894_v2 = vld [vmem:[%s3696_s1 + $0x128] sm:$0xff]  ;;  %v1013_v5 = vshrl.u32 %v2469_v62, 16  ;;  %v2307_v16 = vld [vmem:[%s3082_s22 + $0x30] sm:$0xf] }
  0x22   : > { %v467_v56 = vrot.slane %v466_v41, 4  ;;  %v471_v57 = vrot.slane %v469_v42, 5  ;;  %v397_v58 = vrot.slane %v396_v45, 4  ;;  %v401_v59 = vrot.slane %v399_v46, 5  ;;  %v2902_v10 = vld [vmem:[%s3696_s1 + $0x168] sm:$0xff]  ;;  %v2893_v18 = vld [vmem:[%s3696_s1 + $0x120] sm:$0xff] }
  0x23   : > { %v415_v61 = vrot.slane %v413_v48, 5  ;;  %v1016_v6 = vshll.u32 %v2469_v62, 16  ;;  %v1027_v14 = vshrl.u32 %v2471_v1, 16  ;;  %v1030_v15 = vshll.u32 %v2471_v1, 16  ;;  %v2852_v17 = vld [vmem:[%s3082_s22 + $0x34] sm:$0xf0] }
  0x24   : > { %2974 = vmatpush.bf16.msra.mxu2 %v2862_v55  ;;  %560 = vmatpush.bf16.msra.mxu0 %v2862_v55  ;;  %v457_v55 = vrot.slane %v455_v38, 5  ;;  %v472_v4 = vsel %vm3123_vm2, %v467_v56, %v471_v57  ;;  %v402_v11 = vsel %vm3123_vm2, %v397_v58, %v401_v59  ;;  %v2901_v22 = vld [vmem:[%s3696_s1 + $0x160] sm:$0xff]  ;;  %v2299_v24 = vld [vmem:[%s3082_s22 + $0x10] sm:$0xf]  ;;  %v3234_v28 = vld [vmem:[%s3082_s22 + $0xc] sm:$0x1]  ;;  %v2308_v38 = vor.u32 %v2852_v17, %v2307_v16 }
  0x25   : > { %2982 = vmatpush.bf16.msra.mxu3 %v2854_v60  ;;  %661 = vmatpush.bf16.msra.mxu1 %v2854_v60  ;;  %v411_v60 = vrot.slane %v410_v47, 4  ;;  %v497_v21 = vunpack.c.l.b16 %v472_v4  ;;  %v492_v29 = vunpack.c.l.b16 %v402_v11  ;;  %v1015_v34 = vrot.slane %v1013_v5, 4  ;;  %v2884_v40 = vld [vmem:[%s3696_s1 + $0xd8] sm:$0xff]  ;;  %v2883_v56 = vld [vmem:[%s3696_s1 + $0xd0] sm:$0xff]  ;;  %v2870_v1 = vld [vmem:[%s3696_s1 + $0x88] sm:$0xff] }
  0x26   : > { %v1022_v45 = vshll.u32 %v3234_v28, 16  ;;  %v713_v58 = vrot.slane %v3102_v23, 5  ;;  %v717_v62 = vrot.slane %v3106_v26, 5  ;;  %v1268_v23 = vrot.slane %v3234_v28, 5  ;;  %v2882_v11 = vld [vmem:[%s3696_s1 + $0xc8] sm:$0xff] }
  0x27   : > { %v733_v16 = vrot.slane %v3093_v13, 5  ;;  %v2890_v13 = vld [vmem:[%s3696_s1 + $0x108] sm:$0xff] }
  0x28   : > { %2975 = vmatpush.bf16.msra.mxu2 %v2861_v3  ;;  %561 = vmatpush.bf16.msra.mxu0 %v2861_v3  ;;  %v458_v3 = vsel %vm3123_vm2, %v453_v54, %v457_v55  ;;  %v2534_v54 = vld [vmem:[%s3082_s22 + $0x10] sm:$0xe]  ;;  %v2898_v28 = vld [vmem:[%s3696_s1 + $0x148] sm:$0xff] }
  0x29   : > { %2983 = vmatpush.bf16.msra.mxu3 %v2853_v12  ;;  %662 = vmatpush.bf16.msra.mxu1 %v2853_v12  ;;  %v416_v12 = vsel %vm3123_vm2, %v411_v60, %v415_v61  ;;  %v496_v20 = vunpack.c.l.b16 %v458_v3  ;;  %v2871_v55 = vld [vmem:[%s3696_s1 + $0x90] sm:$0xff]  ;;  %v2542_v26 = vrot.slane %v2534_v54, 9  ;;  %v2889_v54 = vld [vmem:[%s3696_s1 + $0x100] sm:$0xff] }
  0x2a   : > { %v493_v30 = vunpack.c.l.b16 %v416_v12  ;;  %v2891_v60 = vld [vmem:[%s3696_s1 + $0x110] sm:$0xff] }
  0x2b   : > { %572 = vmatmul.bf16.vlgmr.msra.gmra.mxu2 %v500_v35  ;;  %562 = vmatmul.bf16.vlgmr.msra.gmra.mxu0 %v498_v39  ;;  %v1018_v35 = vrot.slane %v1016_v6, 5  ;;  %v2872_v39 = vld [vmem:[%s3696_s1 + $0x98] sm:$0xff]  ;;  %v501_v41 = vpack.c.b16 %v497_v21, %v496_v20 }
  0x2c   : > { %824 = vmatpush.bf16.msrb.mxu2 %v2876_v25  ;;  %673 = vmatmul.bf16.vlgmr.msra.gmra.mxu3 %v2304_v36  ;;  %v2850_v25 = vld [vmem:[%s3082_s22 + $0x14] sm:$0xf0]  ;;  %v1029_v36 = vrot.slane %v1027_v14, 4  ;;  %v499_v46 = vpack.c.b16 %v493_v30, %v492_v29  ;;  %v688_v14 = vld [vmem:[%s3082_s22 + $0x20] sm:$0xe] }
  0x2d   : > { %959 = vmatpush.bf16.msrb.mxu3 %v2888_v31  ;;  %663 = vmatmul.bf16.vlgmr.msra.gmra.mxu1 %v2296_v37  ;;  %v3237_v31 = vld [vmem:[%s3082_s22 + $0x14] sm:$0x1]  ;;  %v1032_v37 = vrot.slane %v1030_v15, 5  ;;  %v2300_v42 = vor.u32 %v2850_v25, %v2299_v24  ;;  %v1019_v47 = vor.u32 %v1018_v35, %v1015_v34  ;;  %v689_v15 = vld [vmem:[%s3082_s22 + $0x28] sm:$0xe]  ;;  %v2869_v35 = vld [vmem:[%s3696_s1 + $0x80] sm:$0xff] }
  0x2e   : > { %1205 = vmatpush.bf16.msrb.mxu0 %v2896_v43  ;;  %1379 = vmatpush.bf16.msrb.mxu1 %v2904_v44  ;;  %v684_v43 = vld [vmem:[%s3082_s22] sm:$0xe]  ;;  %v685_v44 = vld [vmem:[%s3082_s22 + $0x8] sm:$0xe]  ;;  %v1036_v48 = vshll.u32 %v3237_v31, 16  ;;  %v1272_v5 = vrot.slane %v3237_v31, 5 }
  0x2f   : > { %v2341_v57 = vrot.slane %v684_v43, 9  ;;  %v2342_v59 = vrot.slane %v685_v44, 9  ;;  %v1020_v3 = vrot.slane %v1019_v47, 4  ;;  %v2346_v20 = vrot.slane %v689_v15, 9  ;;  %v2924_v43 = vld [vmem:[%s3696_s1 + $0x1f8] sm:$0xff] }
  0x30   : > { %825 = vmatpush.bf16.msrb.mxu2 %v2875_v50  ;;  %v2533_v50 = vld [vmem:[%s3082_s22 + $0x8] sm:$0xe]  ;;  %v1038_v4 = vrot.slane %v1036_v48, 5  ;;  %v2877_v47 = vld [vmem:[%s3082_s22 + $0xc] sm:$0xf0] }
  0x31   : > { %960 = vmatpush.bf16.msrb.mxu3 %v2887_v51  ;;  %v2892_v51 = vld [vmem:[%s3696_s1 + $0x118] sm:$0xff]  ;;  %v714_v12 = vsel %vm3269_vm5, %v2341_v57, %v713_v58  ;;  %v718_v17 = vsel %vm3269_vm5, %v2342_v59, %v717_v62 }
  0x32   : > { %1206 = vmatpush.bf16.msrb.mxu0 %v2895_v52  ;;  %1380 = vmatpush.bf16.msrb.mxu1 %v2903_v53  ;;  %v2900_v52 = vld [vmem:[%s3696_s1 + $0x158] sm:$0xff]  ;;  %v1033_v53 = vor.u32 %v1032_v37, %v1029_v36  ;;  %v2881_v36 = vld [vmem:[%s3696_s1 + $0xc0] sm:$0xff]  ;;  %v760_v37 = vunpack.c.l.b16 %v714_v12 }
  0x33   : > { %v2944_v62 = vld [vmem:[%s3700_s5 + $0x38] sm:$0xff] }
  0x34   : > { %826 = vmatpush.bf16.msrb.mxu2 %v2874_v63  ;;  %v1024_v63 = vrot.slane %v1022_v45, 5  ;;  %v1034_v6 = vrot.slane %v1033_v53, 4 }
  0x35   : > { %961 = vmatpush.bf16.msrb.mxu3 %v2886_v0  ;;  %v2541_v0 = vrot.slane %v2533_v50, 9 }
  0x36   : > { %1207 = vmatpush.bf16.msrb.mxu0 %v2894_v2  ;;  %1381 = vmatpush.bf16.msrb.mxu1 %v2902_v10  ;;  %v2899_v2 = vld [vmem:[%s3696_s1 + $0x150] sm:$0xff]  ;;  %v729_v10 = vrot.slane %v3087_v8, 5  ;;  %v2345_v8 = vrot.slane %v688_v14, 9  ;;  %v1025_v21 = vsel %vm3123_vm2, %v1020_v3, %v1024_v63  ;;  %v1039_v29 = vsel %vm3123_vm2, %v1034_v6, %v1038_v4  ;;  %v2535_v6 = vld [vmem:[%s3082_s22 + $0x18] sm:$0xe] }
  0x37   : > { %v1141_v48 = vunpack.c.l.b16 %v1025_v21  ;;  %v1142_v50 = vunpack.c.l.b16 %v1039_v29  ;;  %v721_v14 = vrot.slane %v3168_v32, 5  ;;  %v2543_v32 = vrot.slane %v2535_v6, 9 }
  0x38   : > { %827 = vmatpush.bf16.msrb.mxu2 %v2873_v7  ;;  %v2473_v7 = vld [vmem:[%s3082_s22 + $0x18] sm:$0xf]  ;;  %v730_v34 = vsel %vm3269_vm5, %v2345_v8, %v729_v10  ;;  %v2914_v8 = vld [vmem:[%s3696_s1 + $0x1a8] sm:$0xff] }
  0x39   : > { %962 = vmatpush.bf16.msrb.mxu3 %v2885_v9  ;;  %v2475_v9 = vld [vmem:[%s3082_s22 + $0x20] sm:$0xf]  ;;  %v1041_v24 = vshrl.u32 %v2473_v7, 16  ;;  %v1044_v25 = vshll.u32 %v2473_v7, 16  ;;  %v1149_v3 = vpack.c.b16 %v1142_v50, %v1141_v48  ;;  %v2915_v7 = vld [vmem:[%s3696_s1 + $0x1b0] sm:$0xff] }
  0x3a   : > { %1208 = vmatpush.bf16.msrb.mxu0 %v2893_v18  ;;  %1382 = vmatpush.bf16.msrb.mxu1 %v2901_v22  ;;  %v1269_v18 = vsel %vm3269_vm5, %v2541_v0, %v1268_v23  ;;  %v1273_v22 = vsel %vm3269_vm5, %v2542_v26, %v1272_v5  ;;  %v1055_v30 = vshrl.u32 %v2475_v9, 16  ;;  %v1058_v31 = vshll.u32 %v2475_v9, 16  ;;  %v686_v23 = vld [vmem:[%s3082_s22 + $0x10] sm:$0xe] }
  0x3b   : > { %577 = vmatmul.bf16.gmra.mxu2 %v501_v41  ;;  %567 = vmatmul.bf16.gmra.mxu0 %v499_v46  ;;  %v2423_v41 = vld [vmem:[%s3082_s22 + $0x8] sm:$0xf]  ;;  %v1315_v44 = vunpack.c.l.b16 %v1269_v18  ;;  %v1316_v45 = vunpack.c.l.b16 %v1273_v22  ;;  %v1046_v53 = vrot.slane %v1044_v25, 5  ;;  %v2923_v9 = vld [vmem:[%s3696_s1 + $0x1f0] sm:$0xff]  ;;  %v2343_v12 = vrot.slane %v686_v23, 9 }
  0x3c   : > { %828 = vmatpush.bf16.msrb.mxu2 %v2872_v39  ;;  %678 = vmatmul.bf16.gmra.mxu3 %v2308_v38  ;;  %v734_v38 = vsel %vm3269_vm5, %v2346_v20, %v733_v16  ;;  %v764_v39 = vunpack.c.l.b16 %v730_v34  ;;  %v1057_v57 = vrot.slane %v1055_v30, 4  ;;  %v1060_v58 = vrot.slane %v1058_v31, 5  ;;  %v2943_v18 = vld [vmem:[%s3700_s5 + $0x30] sm:$0xff]  ;;  %v2922_v30 = vld [vmem:[%s3696_s1 + $0x1e8] sm:$0xff] }
  0x3d   : > { %963 = vmatpush.bf16.msrb.mxu3 %v2884_v40  ;;  %668 = vmatmul.bf16.gmra.mxu1 %v2300_v42  ;;  %v761_v40 = vunpack.c.l.b16 %v718_v17  ;;  %v2916_v42 = vld [vmem:[%s3696_s1 + $0x1b8] sm:$0xff]  ;;  %v765_v46 = vunpack.c.l.b16 %v734_v38  ;;  %v2424_v0 = vor.u32 %v2877_v47, %v2423_v41  ;;  %v1323_v4 = vpack.c.b16 %v1316_v45, %v1315_v44  ;;  %v2931_v17 = vld [vmem:[%s3696_s1 + $0x230] sm:$0xff]  ;;  %v2930_v31 = vld [vmem:[%s3696_s1 + $0x228] sm:$0xff] }
  0x3e   : > { %1209 = vmatpush.bf16.msrb.mxu0 %v2892_v51  ;;  %1383 = vmatpush.bf16.msrb.mxu1 %v2900_v52  ;;  %v3328_v51 = vld [vmem:[%s3082_s22 + $0x1c] sm:$0x1]  ;;  %v1043_v52 = vrot.slane %v1041_v24, 4  ;;  %v1061_v10 = vor.u32 %v1060_v58, %v1057_v57  ;;  %v725_v16 = vrot.slane %v3171_v33, 5  ;;  %v2477_v33 = vld [vmem:[%s3082_s22 + $0x28] sm:$0xf] }
  0x3f   : > { %v3339_v59 = vpack.c.b16 %v765_v46, %v764_v39  ;;  %v768_v63 = vpack.c.b16 %v761_v40, %v760_v37  ;;  %v1276_v21 = vrot.slane %v3328_v51, 5  ;;  %v2942_v34 = vld [vmem:[%s3700_s5 + $0x28] sm:$0xff]  ;;  %v722_v37 = vsel %vm3269_vm5, %v2343_v12, %v721_v14  ;;  %v690_v40 = vld [vmem:[%s3082_s22 + $0x30] sm:$0xe]  ;;  %v691_v41 = vld [vmem:[%s3082_s22 + $0x38] sm:$0xe] }
  0x40   : > { %829 = vmatpush.bf16.msrb.mxu2 %v2871_v55  ;;  %v2897_v55 = vld [vmem:[%s3696_s1 + $0x140] sm:$0xff]  ;;  %v1047_v26 = vor.u32 %v1046_v53, %v1043_v52  ;;  %v1062_v29 = vrot.slane %v1061_v10, 4  ;;  %v1069_v38 = vshrl.u32 %v2477_v33, 16  ;;  %v1072_v39 = vshll.u32 %v2477_v33, 16  ;;  %v2478_v23 = vld [vmem:[%s3082_s22 + $0x2c] sm:$0x1] }
  0x41   : > { %964 = vmatpush.bf16.msrb.mxu3 %v2883_v56  ;;  %v3337_v56 = vld [vmem:[%s3082_s22 + $0x24] sm:$0x1]  ;;  %v2347_v44 = vrot.slane %v690_v40, 9  ;;  %v2348_v45 = vrot.slane %v691_v41, 9  ;;  %v762_v48 = vunpack.c.l.b16 %v722_v37  ;;  %v2912_v10 = vld [vmem:[%s3696_s1 + $0x198] sm:$0xff]  ;;  %v1078_v14 = vshll.u32 %v2478_v23, 16 }
  0x42   : > { %1210 = vmatpush.bf16.msrb.mxu0 %v2891_v60  ;;  %1384 = vmatpush.bf16.msrb.mxu1 %v2899_v2  ;;  %v2932_v60 = vld [vmem:[%s3696_s1 + $0x238] sm:$0xff]  ;;  %v1050_v2 = vshll.u32 %v3328_v51, 16  ;;  %v1064_v5 = vshll.u32 %v3337_v56, 16  ;;  %v1048_v22 = vrot.slane %v1047_v26, 4  ;;  %v2913_v51 = vld [vmem:[%s3696_s1 + $0x1a0] sm:$0xff]  ;;  %v2910_v40 = vld [vmem:[%s3696_s1 + $0x188] sm:$0xff] }
  0x43   : > { %v2921_v52 = vld [vmem:[%s3696_s1 + $0x1e0] sm:$0xff]  ;;  %v2481_v37 = vld [vmem:[%s3082_s22 + $0x38] sm:$0xf] }
  0x44   : > { %830 = vmatpush.bf16.msrb.mxu2 %v2870_v1  ;;  %v687_v1 = vld [vmem:[%s3082_s22 + $0x18] sm:$0xe]  ;;  %v1052_v20 = vrot.slane %v1050_v2, 5  ;;  %v1066_v24 = vrot.slane %v1064_v5, 5  ;;  %v2929_v57 = vld [vmem:[%s3696_s1 + $0x220] sm:$0xff] }
  0x45   : > { %965 = vmatpush.bf16.msrb.mxu3 %v2882_v11  ;;  %v2536_v11 = vld [vmem:[%s3082_s22 + $0x20] sm:$0xe]  ;;  %v2344_v15 = vrot.slane %v687_v1, 9  ;;  %v2480_v1 = vld [vmem:[%s3082_s22 + $0x34] sm:$0x1] }
  0x46   : > { %1211 = vmatpush.bf16.msrb.mxu0 %v2890_v13  ;;  %1385 = vmatpush.bf16.msrb.mxu1 %v2898_v28  ;;  %v2544_v25 = vrot.slane %v2536_v11, 9  ;;  %v1280_v13 = vrot.slane %v3337_v56, 5  ;;  %v2479_v28 = vld [vmem:[%s3082_s22 + $0x30] sm:$0xf]  ;;  %v1067_v50 = vsel %vm3123_vm2, %v1062_v29, %v1066_v24  ;;  %v1074_v56 = vrot.slane %v1072_v39, 5  ;;  %v2941_v58 = vld [vmem:[%s3700_s5 + $0x20] sm:$0xff] }
  0x47   : > { %v726_v46 = vsel %vm3269_vm5, %v2344_v15, %v725_v16  ;;  %v2878_v26 = vld [vmem:[%s3082_s22 + $0x1c] sm:$0xf0]  ;;  %v1144_v6 = vunpack.c.l.b16 %v1067_v50  ;;  %v2920_v11 = vld [vmem:[%s3696_s1 + $0x1d8] sm:$0xff]  ;;  %v1092_v15 = vshll.u32 %v2480_v1, 16  ;;  %v2911_v24 = vld [vmem:[%s3696_s1 + $0x190] sm:$0xff] }
  0x48   : > { %831 = vmatpush.bf16.msrb.mxu2 %v2869_v35  ;;  %v737_v35 = vrot.slane %v3156_v19, 5  ;;  %v1053_v19 = vsel %vm3123_vm2, %v1048_v22, %v1052_v20  ;;  %v1281_v47 = vsel %vm3269_vm5, %v2544_v25, %v1280_v13  ;;  %v2928_v16 = vld [vmem:[%s3696_s1 + $0x218] sm:$0xff]  ;;  %v2538_v22 = vld [vmem:[%s3082_s22 + $0x30] sm:$0xe]  ;;  %v2483_v41 = vld [vmem:[%s3082_s22 + $0x40] sm:$0xf] }
  0x49   : > { %966 = vmatpush.bf16.msrb.mxu3 %v2881_v36  ;;  %v741_v36 = vrot.slane %v3162_v27, 5  ;;  %v1277_v27 = vsel %vm3269_vm5, %v2543_v32, %v1276_v21  ;;  %v1143_v5 = vunpack.c.l.b16 %v1053_v19  ;;  %v2537_v32 = vld [vmem:[%s3082_s22 + $0x28] sm:$0xe]  ;;  %v2919_v25 = vld [vmem:[%s3696_s1 + $0x1d0] sm:$0xff]  ;;  %v1094_v29 = vrot.slane %v1092_v15, 5  ;;  %v2937_v15 = vld [vmem:[%s3700_s5] sm:$0xff] }
  0x4a   : > { %1212 = vmatpush.bf16.msrb.mxu0 %v2889_v54  ;;  %1386 = vmatpush.bf16.msrb.mxu1 %v2897_v55  ;;  %v738_v53 = vsel %vm3269_vm5, %v2347_v44, %v737_v35  ;;  %v1071_v55 = vrot.slane %v1069_v38, 4  ;;  %v2546_v35 = vrot.slane %v2538_v22, 9  ;;  %v2927_v38 = vld [vmem:[%s3696_s1 + $0x210] sm:$0xff]  ;;  %v2938_v44 = vld [vmem:[%s3700_s5 + $0x8] sm:$0xff]  ;;  %v1111_v50 = vshrl.u32 %v2483_v41, 16 }
  0x4b   : > { %832 = vmatmul.bf16.vlgmr.msrb.gmra.mxu2 %v768_v63  ;;  %v742_v54 = vsel %vm3269_vm5, %v2348_v45, %v741_v36  ;;  %v763_v63 = vunpack.c.l.b16 %v726_v46  ;;  %v1150_v21 = vpack.c.b16 %v1144_v6, %v1143_v5  ;;  %v1288_v36 = vrot.slane %v2480_v1, 5  ;;  %v2939_v39 = vld [vmem:[%s3700_s5 + $0x10] sm:$0xff] }
  0x4c   : > { %1514 = vmatpush.bf16.msra.mxu2 %v2916_v42  ;;  %967 = vmatmul.bf16.vlgmr.msrb.gmra.mxu3 %v2424_v0  ;;  %v1083_v42 = vshrl.u32 %v2479_v28, 16  ;;  %v1317_v0 = vunpack.c.l.b16 %v1277_v27  ;;  %v1075_v12 = vor.u32 %v1074_v56, %v1071_v55  ;;  %v2431_v55 = vld [vmem:[%s3082_s22 + $0x28] sm:$0xf] }
  0x4d   : > { %1760 = vmatpush.bf16.msra.mxu3 %v2924_v43  ;;  %1213 = vmatmul.bf16.vlgmr.msrb.gmra.mxu0 %v1149_v3  ;;  %v1086_v43 = vshll.u32 %v2479_v28, 16  ;;  %v1080_v28 = vrot.slane %v1078_v14, 5  ;;  %v1289_v27 = vsel %vm3269_vm5, %v2546_v35, %v1288_v36  ;;  %v2540_v14 = vld [vmem:[%s3082_s22 + $0x40] sm:$0xe] }
  0x4e   : > { %1934 = vmatpush.bf16.msra.mxu0 %v2932_v60  ;;  %2091 = vmatpush.bf16.msra.mxu1 %v2944_v62  ;;  %v766_v60 = vunpack.c.l.b16 %v738_v53  ;;  %v767_v62 = vunpack.c.l.b16 %v742_v54  ;;  %v1085_v2 = vrot.slane %v1083_v42, 4  ;;  %v1076_v13 = vrot.slane %v1075_v12, 4  ;;  %v2918_v42 = vld [vmem:[%s3696_s1 + $0x1c8] sm:$0xff]  ;;  %v2917_v53 = vld [vmem:[%s3696_s1 + $0x1c0] sm:$0xff]  ;;  %v2539_v12 = vld [vmem:[%s3082_s22 + $0x38] sm:$0xe] }
  0x4f   : > { %1387 = vmatmul.bf16.vlgmr.msrb.gmra.mxu1 %v1323_v4  ;;  %v1088_v3 = vrot.slane %v1086_v43, 5  ;;  %v2427_v4 = vld [vmem:[%s3082_s22 + $0x18] sm:$0xf]  ;;  %v2926_v43 = vld [vmem:[%s3696_s1 + $0x208] sm:$0xff]  ;;  %v2925_v54 = vld [vmem:[%s3696_s1 + $0x200] sm:$0xff]  ;;  %v2548_v22 = vrot.slane %v2540_v14, 9 }
  0x50   : > { %1515 = vmatpush.bf16.msra.mxu2 %v2915_v7  ;;  %v1318_v7 = vunpack.c.l.b16 %v1281_v47  ;;  %v1081_v45 = vsel %vm3123_vm2, %v1076_v13, %v1080_v28  ;;  %v1097_v47 = vshrl.u32 %v2481_v37, 16 }
  0x51   : > { %1761 = vmatpush.bf16.msra.mxu3 %v2923_v9  ;;  %v3419_v9 = vpack.c.b16 %v767_v62, %v766_v60  ;;  %v1089_v20 = vor.u32 %v1088_v3, %v1085_v2  ;;  %v1145_v56 = vunpack.c.l.b16 %v1081_v45  ;;  %v1320_v60 = vunpack.c.l.b16 %v1289_v27  ;;  %v2879_v62 = vld [vmem:[%s3082_s22 + $0x2c] sm:$0xf0]  ;;  %v2482_v2 = vld [vmem:[%s3082_s22 + $0x3c] sm:$0x1]  ;;  %v2484_v3 = vld [vmem:[%s3082_s22 + $0x44] sm:$0x1] }
  0x52   : > { %1935 = vmatpush.bf16.msra.mxu0 %v2931_v17  ;;  %2092 = vmatpush.bf16.msra.mxu1 %v2943_v18  ;;  %v2940_v17 = vld [vmem:[%s3700_s5 + $0x18] sm:$0xff]  ;;  %v769_v18 = vpack.c.b16 %v763_v63, %v762_v48  ;;  %v1324_v33 = vpack.c.b16 %v1318_v7, %v1317_v0  ;;  %v1100_v48 = vshll.u32 %v2481_v37, 16  ;;  %v1099_v63 = vrot.slane %v1097_v47, 4  ;;  %v2670_v37 = vld [vmem:[%s3082_s22 + $0x14] sm:$0x1] }
  0x53   : > { %v1106_v7 = vshll.u32 %v2482_v2, 16  ;;  %v1577_v27 = vshll.u32 %v2670_v37, 16 }
  0x54   : > { %1516 = vmatpush.bf16.msra.mxu2 %v2914_v8  ;;  %v2428_v8 = vor.u32 %v2878_v26, %v2427_v4  ;;  %v1102_v0 = vrot.slane %v1100_v48, 5  ;;  %v2432_v4 = vor.u32 %v2879_v62, %v2431_v55  ;;  %v1823_v62 = vrot.slane %v2670_v37, 5 }
  0x55   : > { %1762 = vmatpush.bf16.msra.mxu3 %v2922_v30  ;;  %v2545_v30 = vrot.slane %v2537_v32, 9  ;;  %v2671_v32 = vld [vmem:[%s3082_s22 + $0x18] sm:$0xf] }
  0x56   : > { %1936 = vmatpush.bf16.msra.mxu0 %v2930_v31  ;;  %2093 = vmatpush.bf16.msra.mxu1 %v2942_v34  ;;  %v1090_v31 = vrot.slane %v1089_v20, 4  ;;  %v1284_v34 = vrot.slane %v2478_v23, 5  ;;  %v1113_v23 = vrot.slane %v1111_v50, 4  ;;  %v1103_v6 = vor.u32 %v1102_v0, %v1099_v63 }
  0x57   : > { %v1582_v13 = vshrl.u32 %v2671_v32, 16  ;;  %v1585_v28 = vshll.u32 %v2671_v32, 16  ;;  %v2674_v32 = vld [vmem:[%s3082_s22 + $0x24] sm:$0x1] }
  0x58   : > { %1517 = vmatpush.bf16.msra.mxu2 %v2913_v51  ;;  %v1095_v46 = vsel %vm3123_vm2, %v1090_v31, %v1094_v29  ;;  %v1285_v19 = vsel %vm3269_vm5, %v2545_v30, %v1284_v34  ;;  %v1114_v51 = vshll.u32 %v2483_v41, 16  ;;  %v2435_v41 = vld [vmem:[%s3082_s22 + $0x38] sm:$0xf] }
  0x59   : > { %1763 = vmatpush.bf16.msra.mxu3 %v2921_v52  ;;  %v2909_v52 = vld [vmem:[%s3696_s1 + $0x180] sm:$0xff] }
  0x5a   : > { %1937 = vmatpush.bf16.msra.mxu0 %v2929_v57  ;;  %2094 = vmatpush.bf16.msra.mxu1 %v2941_v58  ;;  %v1146_v57 = vunpack.c.l.b16 %v1095_v46  ;;  %v1319_v58 = vunpack.c.l.b16 %v1285_v19  ;;  %v1116_v1 = vrot.slane %v1114_v51, 5  ;;  %v2733_v51 = vld [vmem:[%s3082_s22 + $0x10] sm:$0xe] }
  0x5b   : > { %837 = vmatmul.bf16.gmra.mxu2 %v769_v18  ;;  %v1108_v18 = vrot.slane %v1106_v7, 5 }
  0x5c   : > { %1518 = vmatpush.bf16.msra.mxu2 %v2912_v10  ;;  %972 = vmatmul.bf16.gmra.mxu3 %v2428_v8  ;;  %v1151_v26 = vpack.c.b16 %v1146_v57, %v1145_v56  ;;  %v1325_v5 = vpack.c.b16 %v1320_v60, %v1319_v58  ;;  %v1117_v10 = vor.u32 %v1116_v1, %v1113_v23  ;;  %v1579_v56 = vrot.slane %v1577_v27, 5  ;;  %v2673_v23 = vld [vmem:[%s3082_s22 + $0x20] sm:$0xf]  ;;  %v2675_v1 = vld [vmem:[%s3082_s22 + $0x28] sm:$0xf] }
  0x5d   : > { %1764 = vmatpush.bf16.msra.mxu3 %v2920_v11  ;;  %1218 = vmatmul.bf16.gmra.mxu0 %v1150_v21  ;;  %v1120_v11 = vshll.u32 %v2484_v3, 16  ;;  %v2547_v21 = vrot.slane %v2539_v12, 9  ;;  %v2741_v58 = vrot.slane %v2733_v51, 9  ;;  %v1613_v7 = vshll.u32 %v2675_v1, 16 }
  0x5e   : > { %1938 = vmatpush.bf16.msra.mxu0 %v2928_v16  ;;  %2095 = vmatpush.bf16.msra.mxu1 %v2940_v17  ;;  %v2669_v16 = vld [vmem:[%s3082_s22 + $0x10] sm:$0xf]  ;;  %v1104_v17 = vrot.slane %v1103_v6, 4  ;;  %v1118_v8 = vrot.slane %v1117_v10, 4  ;;  %v1610_v6 = vshrl.u32 %v2675_v1, 16 }
  0x5f   : > { %1392 = vmatmul.bf16.gmra.mxu1 %v1324_v33  ;;  %v1122_v20 = vrot.slane %v1120_v11, 5  ;;  %v1292_v33 = vrot.slane %v2482_v2, 5  ;;  %v2623_v10 = vld [vmem:[%s3082_s22 + $0x10] sm:$0xf] }
  0x60   : > { %1519 = vmatpush.bf16.msra.mxu2 %v2911_v24  ;;  %v1296_v24 = vrot.slane %v2484_v3, 5  ;;  %v1109_v29 = vsel %vm3123_vm2, %v1104_v17, %v1108_v18 }
  0x61   : > { %1765 = vmatpush.bf16.msra.mxu3 %v2919_v25  ;;  %v1568_v25 = vshrl.u32 %v2669_v16, 16  ;;  %v1123_v30 = vsel %vm3123_vm2, %v1118_v8, %v1122_v20  ;;  %v1293_v31 = vsel %vm3269_vm5, %v2547_v21, %v1292_v33  ;;  %v1612_v8 = vrot.slane %v1610_v6, 4  ;;  %v2676_v21 = vld [vmem:[%s3082_s22 + $0x2c] sm:$0x1]  ;;  %v2737_v6 = vld [vmem:[%s3082_s22 + $0x30] sm:$0xe] }
  0x62   : > { %1939 = vmatpush.bf16.msra.mxu0 %v2927_v38  ;;  %2096 = vmatpush.bf16.msra.mxu1 %v2939_v39  ;;  %v1297_v34 = vsel %vm3269_vm5, %v2548_v22, %v1296_v24  ;;  %v2672_v38 = vld [vmem:[%s3082_s22 + $0x1c] sm:$0x1]  ;;  %v1584_v39 = vrot.slane %v1582_v13, 4  ;;  %v1321_v45 = vunpack.c.l.b16 %v1293_v31  ;;  %v1615_v20 = vrot.slane %v1613_v7, 5  ;;  %v2736_v31 = vld [vmem:[%s3082_s22 + $0x28] sm:$0xe] }
  0x63   : > { %v1570_v35 = vrot.slane %v1568_v25, 4  ;;  %v1322_v46 = vunpack.c.l.b16 %v1297_v34  ;;  %v1591_v47 = vshll.u32 %v2672_v38, 16  ;;  %v1827_v0 = vrot.slane %v2672_v38, 5  ;;  %v2933_v25 = vld [vmem:[%s3523_s21] sm:$0xff]  ;;  %v2677_v34 = vld [vmem:[%s3082_s22 + $0x30] sm:$0xf] }
  0x64   : > { %1520 = vmatpush.bf16.msra.mxu2 %v2910_v40  ;;  %v1587_v40 = vrot.slane %v1585_v28, 5  ;;  %v1605_v13 = vshll.u32 %v2674_v32, 16  ;;  %v1616_v28 = vor.u32 %v1615_v20, %v1612_v8  ;;  %v2738_v7 = vld [vmem:[%s3082_s22 + $0x38] sm:$0xe]  ;;  %v2681_v8 = vld [vmem:[%s3082_s22 + $0x40] sm:$0xf] }
  0x65   : > { %1766 = vmatpush.bf16.msra.mxu3 %v2918_v42  ;;  %v2880_v42 = vld [vmem:[%s3082_s22 + $0x3c] sm:$0xf0]  ;;  %v1593_v57 = vrot.slane %v1591_v47, 5  ;;  %v2683_v20 = vld [vmem:[%s3082_s22 + $0x48] sm:$0xf] }
  0x66   : > { %1940 = vmatpush.bf16.msra.mxu0 %v2926_v43  ;;  %2097 = vmatpush.bf16.msra.mxu1 %v2938_v44  ;;  %v1147_v43 = vunpack.c.l.b16 %v1109_v29  ;;  %v1148_v44 = vunpack.c.l.b16 %v1123_v30  ;;  %v2436_v48 = vor.u32 %v2880_v42, %v2435_v41  ;;  %v1588_v50 = vor.u32 %v1587_v40, %v1584_v39  ;;  %v2735_v30 = vld [vmem:[%s3082_s22 + $0x20] sm:$0xe] }
  0x67   : > { %v1619_v29 = vshll.u32 %v2676_v21, 16  ;;  %v1607_v37 = vrot.slane %v1605_v13, 5  ;;  %v1617_v38 = vrot.slane %v1616_v28, 4  ;;  %v2743_v40 = vrot.slane %v2735_v30, 9  ;;  %v2631_v28 = vld [vmem:[%s3082_s22 + $0x30] sm:$0xf] }
  0x68   : > { %1521 = vmatpush.bf16.msra.mxu2 %v2909_v52  ;;  %v1152_v52 = vpack.c.b16 %v1148_v44, %v1147_v43  ;;  %v1589_v60 = vrot.slane %v1588_v50, 4  ;;  %v1831_v41 = vrot.slane %v2674_v32, 5  ;;  %v2744_v42 = vrot.slane %v2736_v31, 9 }
  0x69   : > { %1767 = vmatpush.bf16.msra.mxu3 %v2917_v53  ;;  %v1326_v53 = vpack.c.b16 %v1322_v46, %v1321_v45  ;;  %v1621_v39 = vrot.slane %v1619_v29, 5  ;;  %v1835_v43 = vrot.slane %v2676_v21, 5  ;;  %v1624_v44 = vshrl.u32 %v2677_v34, 16 }
  0x6a   : > { %1941 = vmatpush.bf16.msra.mxu0 %v2925_v54  ;;  %2098 = vmatpush.bf16.msra.mxu1 %v2937_v15  ;;  %v2734_v54 = vld [vmem:[%s3082_s22 + $0x18] sm:$0xe]  ;;  %v1594_v3 = vsel %vm3123_vm2, %v1589_v60, %v1593_v57  ;;  %v1627_v45 = vshll.u32 %v2677_v34, 16  ;;  %v2678_v57 = vld [vmem:[%s3082_s22 + $0x34] sm:$0x1]  ;;  %v1669_v13 = vshll.u32 %v2683_v20, 16 }
  0x6b   : > { %842 = vmatmul.bf16.gmra.mxu2 %v3339_v59  ;;  %v1571_v59 = vshll.u32 %v2669_v16, 16  ;;  %v2742_v63 = vrot.slane %v2734_v54, 9  ;;  %v1697_v12 = vunpack.c.l.b16 %v1594_v3  ;;  %v2905_v16 = vld [vmem:[%s3082_s22 + $0x14] sm:$0xf0]  ;;  %v1622_v47 = vsel %vm3123_vm2, %v1617_v38, %v1621_v39  ;;  %v2627_v60 = vld [vmem:[%s3082_s22 + $0x20] sm:$0xf] }
  0x6c   : > { %977 = vmatmul.bf16.gmra.mxu3 %v2432_v4  ;;  %v2624_v33 = vor.u32 %v2905_v16, %v2623_v10  ;;  %v1836_v50 = vsel %vm3269_vm5, %v2744_v42, %v1835_v43  ;;  %v1626_v51 = vrot.slane %v1624_v44, 4  ;;  %v1633_v1 = vshll.u32 %v2678_v57, 16 }
  0x6d   : > { %1223 = vmatmul.bf16.gmra.mxu0 %v1151_v26  ;;  %v1573_v36 = vrot.slane %v1571_v59, 5  ;;  %v1828_v4 = vsel %vm3269_vm5, %v2742_v63, %v1827_v0  ;;  %v1596_v26 = vshrl.u32 %v2673_v23, 16  ;;  %v1873_v0 = vunpack.c.l.b16 %v1836_v50 }
  0x6e   : > { %v1871_v15 = vunpack.c.l.b16 %v1828_v4  ;;  %v1839_v16 = vrot.slane %v2678_v57, 5  ;;  %v1671_v39 = vrot.slane %v1669_v13, 5 }
  0x6f   : > { %1397 = vmatmul.bf16.gmra.mxu1 %v1325_v5  ;;  %v1574_v19 = vor.u32 %v1573_v36, %v1570_v35  ;;  %v1599_v5 = vshll.u32 %v2673_v23, 16  ;;  %v1598_v17 = vrot.slane %v1596_v26, 4  ;;  %v2679_v35 = vld [vmem:[%s3082_s22 + $0x38] sm:$0xf] }
  0x70   : > { %v1638_v46 = vshrl.u32 %v2679_v35, 16 }
  0x71   : > { %v1575_v55 = vrot.slane %v1574_v19, 4  ;;  %v1601_v18 = vrot.slane %v1599_v5, 5  ;;  %v1641_v19 = vshll.u32 %v2679_v35, 16  ;;  %v2934_v5 = vld [vmem:[%s3523_s21 + $0x8] sm:$0xff]  ;;  %v2907_v35 = vld [vmem:[%s3082_s22 + $0x34] sm:$0xf0] }
  0x72   : > { %v2632_v42 = vor.u32 %v2907_v35, %v2631_v28 }
  0x73   : > { %v1580_v2 = vsel %vm3123_vm2, %v1575_v55, %v1579_v56  ;;  %v1602_v59 = vor.u32 %v1601_v18, %v1598_v17  ;;  %v1643_v54 = vrot.slane %v1641_v19, 5  ;;  %v1699_v56 = vunpack.c.l.b16 %v1622_v47 }
  0x74   : > { %v1696_v11 = vunpack.c.l.b16 %v1580_v2  ;;  %v2746_v17 = vrot.slane %v2738_v7, 9 }
  0x75   : > { %v1603_v36 = vrot.slane %v1602_v59, 4  ;;  %v1666_v59 = vshrl.u32 %v2683_v20, 16 }
  0x76   : > { %v1704_v22 = vpack.c.b16 %v1697_v12, %v1696_v11  ;;  %v1635_v11 = vrot.slane %v1633_v1, 5 }
  0x77   : > { %v1608_v27 = vsel %vm3123_vm2, %v1603_v36, %v1607_v37  ;;  %v1668_v38 = vrot.slane %v1666_v59, 4 }
  0x78   : > { %v1698_v55 = vunpack.c.l.b16 %v1608_v27 }
  0x79   : > { %v1672_v27 = vor.u32 %v1671_v39, %v1668_v38 }
  0x7a   : > { %v1705_v4 = vpack.c.b16 %v1699_v56, %v1698_v55 }
  0x7b   : > { %847 = vmatmul.bf16.gmra.mxu2 %v3419_v9  ;;  %v1824_v9 = vsel %vm3269_vm5, %v2741_v58, %v1823_v62  ;;  %v2680_v58 = vld [vmem:[%s3082_s22 + $0x3c] sm:$0x1]  ;;  %v2906_v62 = vld [vmem:[%s3082_s22 + $0x24] sm:$0xf0]  ;;  %v1673_v56 = vrot.slane %v1672_v27, 4 }
  0x7c   : > { %982 = vmatmul.bf16.gmra.mxu3 %v2436_v48  ;;  %v1870_v14 = vunpack.c.l.b16 %v1824_v9  ;;  %v1832_v48 = vsel %vm3269_vm5, %v2743_v40, %v1831_v41  ;;  %v1647_v3 = vshll.u32 %v2680_v58, 16  ;;  %v2628_v9 = vor.u32 %v2906_v62, %v2627_v60  ;;  %v2682_v40 = vld [vmem:[%s3082_s22 + $0x44] sm:$0x1]  ;;  %v2684_v41 = vld [vmem:[%s3082_s22 + $0x4c] sm:$0x1] }
  0x7d   : > { %1228 = vmatmul.bf16.gmra.mxu0 %v1152_v52  ;;  %v1629_v52 = vrot.slane %v1627_v45, 5  ;;  %v1872_v63 = vunpack.c.l.b16 %v1832_v48  ;;  %v1843_v18 = vrot.slane %v2680_v58, 5  ;;  %v2935_v45 = vld [vmem:[%s3523_s21 + $0x10] sm:$0xff]  ;;  %v1661_v19 = vshll.u32 %v2682_v40, 16 }
  0x7e   : > { %v1878_v24 = vpack.c.b16 %v1871_v15, %v1870_v14  ;;  %v1649_v14 = vrot.slane %v1647_v3, 5  ;;  %v2745_v15 = vrot.slane %v2737_v6, 9  ;;  %v1675_v47 = vshll.u32 %v2684_v41, 16 }
  0x7f   : > { %1402 = vmatmul.bf16.gmra.mxu1 %v1326_v53  ;;  %v1640_v53 = vrot.slane %v1638_v46, 4  ;;  %v1630_v23 = vor.u32 %v1629_v52, %v1626_v51  ;;  %v1879_v26 = vpack.c.b16 %v1873_v0, %v1872_v63  ;;  %v2739_v52 = vld [vmem:[%s3082_s22 + $0x40] sm:$0xe]  ;;  %v1663_v55 = vrot.slane %v1661_v19, 5 }
  0x80   : > { %v1677_v57 = vrot.slane %v1675_v47, 5  ;;  %v2747_v58 = vrot.slane %v2739_v52, 9  ;;  %v1847_v60 = vrot.slane %v2682_v40, 5  ;;  %v1851_v63 = vrot.slane %v2684_v41, 5 }
  0x81   : > { %v1644_v2 = vor.u32 %v1643_v54, %v1640_v53  ;;  %v1631_v10 = vrot.slane %v1630_v23, 4  ;;  %v2740_v53 = vld [vmem:[%s3082_s22 + $0x48] sm:$0xe] }
  0x82   : > { %v2748_v62 = vrot.slane %v2740_v53, 9  ;;  %v1678_v3 = vsel %vm3123_vm2, %v1673_v56, %v1677_v57 }
  0x83   : > { %v1645_v12 = vrot.slane %v1644_v2, 4  ;;  %v1636_v32 = vsel %vm3123_vm2, %v1631_v10, %v1635_v11  ;;  %v1703_v10 = vunpack.c.l.b16 %v1678_v3  ;;  %v2635_v11 = vld [vmem:[%s3082_s22 + $0x40] sm:$0xf] }
  0x84   : > { %v1700_v29 = vunpack.c.l.b16 %v1636_v32  ;;  %v2936_v32 = vld [vmem:[%s3523_s21 + $0x18] sm:$0xff] }
  0x85   : > { %v1650_v21 = vsel %vm3123_vm2, %v1645_v12, %v1649_v14  ;;  %v2908_v12 = vld [vmem:[%s3082_s22 + $0x44] sm:$0xf0] }
  0x86   : > { %v1701_v30 = vunpack.c.l.b16 %v1650_v21 }
  0x88   : > { %v1706_v43 = vpack.c.b16 %v1701_v30, %v1700_v29 }
  0x8b   : > { %1522 = vmatmul.bf16.vlgmr.msra.gmra.mxu2 %v2624_v33  ;;  %v1840_v33 = vsel %vm3269_vm5, %v2745_v15, %v1839_v16 }
  0x8c   : > { %1768 = vmatmul.bf16.vlgmr.msra.gmra.mxu3 %v1704_v22  ;;  %v1844_v22 = vsel %vm3269_vm5, %v2746_v17, %v1843_v18  ;;  %v1874_v31 = vunpack.c.l.b16 %v1840_v33  ;;  %v2636_v18 = vor.u32 %v2908_v12, %v2635_v11 }
  0x8d   : > { %1942 = vmatmul.bf16.vlgmr.msra.gmra.mxu0 %v1878_v24  ;;  %v1652_v24 = vshrl.u32 %v2681_v8, 16  ;;  %v1875_v34 = vunpack.c.l.b16 %v1844_v22 }
  0x8f   : > { %2099 = vmatmul.bf16.vlgmr.msra.gmra.mxu1 %v2933_v25  ;;  %v1655_v25 = vshll.u32 %v2681_v8, 16  ;;  %v1654_v36 = vrot.slane %v1652_v24, 4  ;;  %v1880_v44 = vpack.c.b16 %v1875_v34, %v1874_v31 }
  0x91   : > { %v1657_v37 = vrot.slane %v1655_v25, 5 }
  0x93   : > { %v1658_v46 = vor.u32 %v1657_v37, %v1654_v36 }
  0x95   : > { %v1659_v54 = vrot.slane %v1658_v46, 4 }
  0x97   : > { %v1664_v2 = vsel %vm3123_vm2, %v1659_v54, %v1663_v55 }
  0x98   : > { %v1702_v7 = vunpack.c.l.b16 %v1664_v2 }
  0x9a   : > { %v1707_v8 = vpack.c.b16 %v1703_v10, %v1702_v7 }
  0x9b   : > { %1527 = vmatmul.bf16.gmra.mxu2 %v2628_v9 }
  0x9c   : > { %1773 = vmatmul.bf16.gmra.mxu3 %v1705_v4 }
  0x9d   : > { %1947 = vmatmul.bf16.gmra.mxu0 %v1879_v26  ;;  %v1848_v26 = vsel %vm3269_vm5, %v2747_v58, %v1847_v60 }
  0x9e   : > { %v1876_v14 = vunpack.c.l.b16 %v1848_v26 }
  0x9f   : > { %2104 = vmatmul.bf16.gmra.mxu1 %v2934_v5  ;;  %v1852_v5 = vsel %vm3269_vm5, %v2748_v62, %v1851_v63 }
  0xa0   : > { %v1877_v15 = vunpack.c.l.b16 %v1852_v5 }
  0xa2   : > { %v1881_v20 = vpack.c.b16 %v1877_v15, %v1876_v14 }
  0xa8   : > { %v563_v48 = vpop.f32.mrf.mxu0 }
  0xaa   : > { %v664_v50 = vpop.f32.mrf.mxu1 }
  0xab   : > { %v665_v51 = vadd.f32 %v664_v50, %v563_v48  ;;  %1532 = vmatmul.bf16.gmra.mxu2 %v2632_v42 }
  0xac   : > { %1778 = vmatmul.bf16.gmra.mxu3 %v1706_v43 }
  0xad   : > { %1952 = vmatmul.bf16.gmra.mxu0 %v1880_v44 }
  0xae   : > { %v573_v0 = vpop.f32.mrf.mxu2 }
  0xaf   : > { %2109 = vmatmul.bf16.gmra.mxu1 %v2935_v45  ;;  %v674_v23 = vpop.f32.mrf.mxu3 }
  0xb0   : > { %v3564_v1 = vadd.f32 %v674_v23, %v573_v0  ;;  %v565_v9 = vpop.f32.mrf.mxu0 }
  0xb2   : > { %v666_v4 = vpop.f32.mrf.mxu1 }
  0xb3   : > { %v3574_v6 = vadd.f32 %v666_v4, %v565_v9 }
  0xb6   : > { %v575_v16 = vpop.f32.mrf.mxu2 }
  0xb7   : > { %v676_v49 = vpop.f32.mrf.mxu3 }
  0xb8   : > { %v3578_v17 = vadd.f32 %v676_v49, %v575_v16  ;;  %v568_v21 = vpop.f32.mrf.mxu0 }
  0xba   : > { %v669_v33 = vpop.f32.mrf.mxu1 }
  0xbb   : > { %v670_v61 = vadd.f32 %v669_v33, %v568_v21  ;;  %1537 = vmatmul.bf16.gmra.mxu2 %v2636_v18 }
  0xbc   : > { %1783 = vmatmul.bf16.gmra.mxu3 %v1707_v8 }
  0xbd   : > { %1957 = vmatmul.bf16.gmra.mxu0 %v1881_v20 }
  0xbe   : > { %v578_v22 = vpop.f32.mrf.mxu2 }
  0xbf   : > { %2114 = vmatmul.bf16.gmra.mxu1 %v2936_v32  ;;  %v679_v24 = vpop.f32.mrf.mxu3 }
  0xc0   : > { %v680_v25 = vadd.f32 %v679_v24, %v578_v22  ;;  %v570_v59 = vpop.f32.mrf.mxu0 }
  0xc2   : > { %v671_v13 = vpop.f32.mrf.mxu1 }
  0xc3   : > { %v3581_v28 = vadd.f32 %v671_v13, %v570_v59 }
  0xc6   : > { %v580_v29 = vpop.f32.mrf.mxu2 }
  0xc7   : > { %v681_v30 = vpop.f32.mrf.mxu3 }
  0xc8   : > { %v3583_v31 = vadd.f32 %v681_v30, %v580_v29  ;;  %v3616_v30 = vld [vmem:[%s3701_s6] ss:$0 sm:$0xff] }
  0xca   : > { %v1214_v34 = vpop.f32.mrf.mxu0 }
  0xcc   : > { %v1388_v35 = vpop.f32.mrf.mxu1 }
  0xce   : > { %v833_v36 = vpop.f32.mrf.mxu2 }
  0xcf   : > { %v968_v37 = vpop.f32.mrf.mxu3  ;;  %v853_v38 = vadd.f32 %v833_v36, %v665_v51 }
  0xd1   : > { %v988_v39 = vadd.f32 %v968_v37, %v853_v38 }
  0xd2   : > { %v1216_v40 = vpop.f32.mrf.mxu0 }
  0xd3   : > { %v1234_v42 = vadd.f32 %v1214_v34, %v988_v39 }
  0xd4   : > { %v1390_v41 = vpop.f32.mrf.mxu1 }
  0xd5   : > { %v1408_v43 = vadd.f32 %v1388_v35, %v1234_v42  ;;  %v3628_v42 = vld [vmem:[%s3702_s7] ss:$0 sm:$0xff] }
  0xd6   : > { %v835_v44 = vpop.f32.mrf.mxu2 }
  0xd7   : > { %v970_v45 = vpop.f32.mrf.mxu3  ;;  %v854_v20 = vadd.f32 %v835_v44, %v3574_v6  ;;  %v3621_v6 = vld [vmem:[%s3697_s2] ss:$0 sm:$0xff] }
  0xd8   : > { %v3634_v44 = vld [vmem:[%s3698_s3] ss:$0 sm:$0xff] }
  0xd9   : > { %v989_v33 = vadd.f32 %v970_v45, %v854_v20 }
  0xda   : > { %v1219_v46 = vpop.f32.mrf.mxu0 }
  0xdc   : > { %v1393_v19 = vpop.f32.mrf.mxu1 }
  0xde   : > { %v838_v27 = vpop.f32.mrf.mxu2 }
  0xdf   : > { %v973_v47 = vpop.f32.mrf.mxu3  ;;  %v855_v48 = vadd.f32 %v838_v27, %v670_v61 }
  0xe1   : > { %v990_v50 = vadd.f32 %v973_v47, %v855_v48 }
  0xe2   : > { %v3585_v52 = vpop.f32.mrf.mxu0 }
  0xe3   : > { %v1236_v54 = vadd.f32 %v1219_v46, %v990_v50 }
  0xe4   : > { %v3587_v53 = vpop.f32.mrf.mxu1 }
  0xe5   : > { %v3589_v55 = vadd.f32 %v1393_v19, %v1236_v54 }
  0xe6   : > { %v840_v51 = vpop.f32.mrf.mxu2 }
  0xe7   : > { %v975_v56 = vpop.f32.mrf.mxu3  ;;  %v856_v39 = vadd.f32 %v840_v51, %v3581_v28 }
  0xe9   : > { %v991_v27 = vadd.f32 %v975_v56, %v856_v39 }
  0xea   : > { %v1224_v57 = vpop.f32.mrf.mxu0 }
  0xec   : > { %v1398_v58 = vpop.f32.mrf.mxu1 }
  0xee   : > { %v843_v60 = vpop.f32.mrf.mxu2 }
  0xef   : > { %v978_v62 = vpop.f32.mrf.mxu3  ;;  %v857_v63 = vadd.f32 %v843_v60, %v3564_v1 }
  0xf1   : > { %v992_v0 = vadd.f32 %v978_v62, %v857_v63  ;;  %v1237_v62 = vadd.f32 %v3585_v52, %v991_v27 }
  0xf2   : > { %v3592_v23 = vpop.f32.mrf.mxu0 }
  0xf3   : > { %v1238_v3 = vadd.f32 %v1224_v57, %v992_v0 }
  0xf4   : > { %v3594_v2 = vpop.f32.mrf.mxu1 }
  0xf5   : > { %v3596_v9 = vadd.f32 %v1398_v58, %v1238_v3 }
  0xf6   : > { %v3598_v4 = vpop.f32.mrf.mxu2 }
  0xf7   : > { %v3600_v26 = vpop.f32.mrf.mxu3 }
  0xfa   : > { %v1229_v5 = vpop.f32.mrf.mxu0 }
  0xfc   : > { %v1403_v7 = vpop.f32.mrf.mxu1 }
  0xfe   : > { %v848_v10 = vpop.f32.mrf.mxu2 }
  0xff   : > { %v983_v11 = vpop.f32.mrf.mxu3  ;;  %v859_v12 = vadd.f32 %v848_v10, %v680_v25  ;;  %v1235_v25 = vadd.f32 %v1216_v40, %v989_v33 }
 0x101   : > { %v994_v14 = vadd.f32 %v983_v11, %v859_v12  ;;  %v1409_v35 = vadd.f32 %v1390_v41, %v1235_v25  ;;  %v1411_v11 = vadd.f32 %v3587_v53, %v1237_v62 }
 0x102   : > { %v3602_v15 = vpop.f32.mrf.mxu0 }
 0x103   : > { %v1240_v16 = vadd.f32 %v1229_v5, %v994_v14  ;;  %v858_v14 = vadd.f32 %v3598_v4, %v3578_v17 }
 0x104   : > { %v3604_v1 = vpop.f32.mrf.mxu1 }
 0x105   : > { %v3606_v49 = vadd.f32 %v1403_v7, %v1240_v16 }
 0x106   : > { %v3608_v18 = vpop.f32.mrf.mxu2 }
 0x107   : > { %v3610_v8 = vpop.f32.mrf.mxu3 }
 0x10a   : > { %v1943_v32 = vpop.f32.mrf.mxu0 }
 0x10c   : > { %v2100_v21 = vpop.f32.mrf.mxu1 }
 0x10d   : > { %v2124_v40 = vmul.f32 %v3616_v30, %v2100_v21 }
 0x10e   : > { %v1523_v61 = vpop.f32.mrf.mxu2 }
 0x10f   : > { %v1769_v22 = vpop.f32.mrf.mxu3  ;;  %v1543_v24 = vadd.f32 %v1523_v61, %v1408_v43  ;;  %v2136_v47 = vadd.f32 %v3628_v42, %v2124_v40 }
 0x111   : > { %v1789_v59 = vadd.f32 %v1769_v22, %v1543_v24  ;;  %v993_v24 = vadd.f32 %v3600_v26, %v858_v14 }
 0x112   : > { %v1945_v13 = vpop.f32.mrf.mxu0 }
 0x113   : > { %v1963_v34 = vadd.f32 %v1943_v32, %v1789_v59 }
 0x114   : > { %v2102_v29 = vpop.f32.mrf.mxu1 }
 0x115   : > { %v1975_v43 = vmul.f32 %v3621_v6, %v1963_v34  ;;  %v2125_v19 = vmul.f32 %v3616_v30, %v2102_v29 }
 0x116   : > { %v1525_v36 = vpop.f32.mrf.mxu2 }
 0x117   : > { %v1771_v37 = vpop.f32.mrf.mxu3  ;;  %v1544_v38 = vadd.f32 %v1525_v36, %v1409_v35  ;;  %v1987_v48 = vadd.f32 %v3634_v44, %v1975_v43  ;;  %v2137_v57 = vadd.f32 %v3628_v42, %v2125_v19  ;;  %v1239_v35 = vadd.f32 %v3592_v23, %v993_v24 }
 0x119   : > { %v1790_v41 = vadd.f32 %v1771_v37, %v1544_v38  ;;  %v2144_v63 = vadd.f32 %v2136_v47, %v1987_v48 }
 0x11a   : > { %v1948_v45 = vpop.f32.mrf.mxu0 }
 0x11b   : > { %v1964_v28 = vadd.f32 %v1945_v13, %v1790_v41  ;;  %v1413_v41 = vadd.f32 %v3594_v2, %v1239_v35 }
 0x11c   : > { %v2105_v46 = vpop.f32.mrf.mxu1 }
 0x11d   : > { %v1976_v50 = vmul.f32 %v3621_v6, %v1964_v28  ;;  %v2126_v16 = vmul.f32 %v3616_v30, %v2105_v46  ;;  %v860_v28 = vadd.f32 %v3608_v18, %v3583_v31 }
 0x11e   : > { %v1528_v54 = vpop.f32.mrf.mxu2 }
 0x11f   : > { %v1774_v51 = vpop.f32.mrf.mxu3  ;;  %v1988_v58 = vadd.f32 %v3634_v44, %v1976_v50  ;;  %v1545_v60 = vadd.f32 %v1528_v54, %v3589_v55  ;;  %v2138_v53 = vadd.f32 %v3628_v42, %v2126_v16  ;;  %v995_v50 = vadd.f32 %v3610_v8, %v860_v28 }
 0x121   : > { %v2145_v0 = vadd.f32 %v2137_v57, %v1988_v58  ;;  %v1791_v3 = vadd.f32 %v1774_v51, %v1545_v60 }
 0x122   : > { %v1950_v56 = vpop.f32.mrf.mxu0 }
 0x123   : > { %v2948_v7 = vpack.c.bf16 %v2145_v0, %v2144_v63  ;;  %v1965_v10 = vadd.f32 %v1948_v45, %v1791_v3  ;;  %v1241_v0 = vadd.f32 %v3602_v15, %v995_v50 }
 0x124   : > { %v2107_v5 = vpop.f32.mrf.mxu1 }
 0x125   : > { %2949 = vst [vmem:[%s3649_s12] sm:$0xff] %v2948_v7   ;;  %v1977_v20 = vmul.f32 %v3621_v6, %v1965_v10  ;;  %v2127_v33 = vmul.f32 %v3616_v30, %v2107_v5  ;;  %v1415_v10 = vadd.f32 %v3604_v1, %v1241_v0 }
 0x126   : > { %v1530_v55 = vpop.f32.mrf.mxu2 }
 0x127   : > { %v1776_v12 = vpop.f32.mrf.mxu3  ;;  %v1546_v52 = vadd.f32 %v1530_v55, %v1411_v11  ;;  %v1989_v25 = vadd.f32 %v3634_v44, %v1977_v20  ;;  %v2139_v13 = vadd.f32 %v3628_v42, %v2127_v33 }
 0x129   : > { %v1792_v32 = vadd.f32 %v1776_v12, %v1546_v52  ;;  %v2146_v36 = vadd.f32 %v2138_v53, %v1989_v25 }
 0x12a   : > { %v1953_v22 = vpop.f32.mrf.mxu0 }
 0x12b   : > { %v1966_v61 = vadd.f32 %v1950_v56, %v1792_v32 }
 0x12c   : > { %v2110_v21 = vpop.f32.mrf.mxu1 }
 0x12d   : > { %v1978_v59 = vmul.f32 %v3621_v6, %v1966_v61 }
 0x12e   : > { %v1533_v17 = vpop.f32.mrf.mxu2 }
 0x12f   : > { %v1779_v4 = vpop.f32.mrf.mxu3  ;;  %v1990_v29 = vadd.f32 %v3634_v44, %v1978_v59  ;;  %v1547_v34 = vadd.f32 %v1533_v17, %v3596_v9  ;;  %v2128_v9 = vmul.f32 %v3616_v30, %v2110_v21 }
 0x131   : > { %v2147_v37 = vadd.f32 %v2139_v13, %v1990_v29  ;;  %v1793_v38 = vadd.f32 %v1779_v4, %v1547_v34  ;;  %v2140_v54 = vadd.f32 %v3628_v42, %v2128_v9 }
 0x132   : > { %v1955_v43 = vpop.f32.mrf.mxu0 }
 0x133   : > { %v2953_v26 = vpack.c.bf16 %v2147_v37, %v2146_v36  ;;  %v1967_v40 = vadd.f32 %v1953_v22, %v1793_v38 }
 0x134   : > { %v2112_v39 = vpop.f32.mrf.mxu1 }
 0x135   : > { %2965 = vst [vmem:[%s3649_s12 + $0x8] sm:$0xff] %v2953_v26   ;;  %v1979_v23 = vmul.f32 %v3621_v6, %v1967_v40  ;;  %v2129_v47 = vmul.f32 %v3616_v30, %v2112_v39 }
 0x136   : > { %v1535_v45 = vpop.f32.mrf.mxu2 }
 0x137   : > { %v1781_v46 = vpop.f32.mrf.mxu3  ;;  %v1548_v19 = vadd.f32 %v1535_v45, %v1413_v41  ;;  %v1991_v2 = vadd.f32 %v3634_v44, %v1979_v23  ;;  %v2141_v18 = vadd.f32 %v3628_v42, %v2129_v47 }
 0x139   : > { %v1794_v27 = vadd.f32 %v1781_v46, %v1548_v19  ;;  %v2148_v8 = vadd.f32 %v2140_v54, %v1991_v2 }
 0x13a   : > { %v1958_v63 = vpop.f32.mrf.mxu0 }
 0x13b   : > { %v1968_v48 = vadd.f32 %v1955_v43, %v1794_v27 }
 0x13c   : > { %v2115_v57 = vpop.f32.mrf.mxu1 }
 0x13d   : > { %v1980_v51 = vmul.f32 %v3621_v6, %v1968_v48  ;;  %v2130_v14 = vmul.f32 %v3616_v30, %v2115_v57 }
 0x13e   : > { %v1538_v58 = vpop.f32.mrf.mxu2 }
 0x13f   : > { %v1784_v31 = vpop.f32.mrf.mxu3  ;;  %v1992_v60 = vadd.f32 %v3634_v44, %v1980_v51  ;;  %v1549_v62 = vadd.f32 %v1538_v58, %v3606_v49  ;;  %v2142_v21 = vadd.f32 %v3628_v42, %v2130_v14 }
 0x141   : > { %v2149_v3 = vadd.f32 %v2141_v18, %v1992_v60  ;;  %v1795_v56 = vadd.f32 %v1784_v31, %v1549_v62 }
 0x142   : > { %v1960_v20 = vpop.f32.mrf.mxu0 }
 0x143   : > { %v2958_v5 = vpack.c.bf16 %v2149_v3, %v2148_v8  ;;  %v1969_v7 = vadd.f32 %v1958_v63, %v1795_v56 }
 0x144   : > { %v2117_v12 = vpop.f32.mrf.mxu1 }
 0x145   : > { %2966 = vst [vmem:[%s3649_s12 + $0x10] sm:$0xff] %v2958_v5   ;;  %v1981_v49 = vmul.f32 %v3621_v6, %v1969_v7  ;;  %v2131_v15 = vmul.f32 %v3616_v30, %v2117_v12 }
 0x146   : > { %v1540_v11 = vpop.f32.mrf.mxu2 }
 0x147   : > { %v1550_v55 = vadd.f32 %v1540_v11, %v1415_v10  ;;  %v1786_v52 = vpop.f32.mrf.mxu3  ;;  %v1993_v33 = vadd.f32 %v3634_v44, %v1981_v49  ;;  %v2143_v61 = vadd.f32 %v3628_v42, %v2131_v15 }
 0x149   : > { %v1796_v16 = vadd.f32 %v1786_v52, %v1550_v55  ;;  %v2150_v24 = vadd.f32 %v2142_v21, %v1993_v33 }
 0x14b   : > { %v1970_v32 = vadd.f32 %v1960_v20, %v1796_v16 }
 0x14d   : > { %v1982_v1 = vmul.f32 %v3621_v6, %v1970_v32 }
 0x14f   : > { %v1994_v22 = vadd.f32 %v3634_v44, %v1982_v1 }
 0x151   : > { %v2151_v53 = vadd.f32 %v2143_v61, %v1994_v22 }
 0x153   : > { %v2963_v25 = vpack.c.bf16 %v2151_v53, %v2150_v24 }
 0x155   : > { %2967 = vst [vmem:[%s3649_s12 + $0x18] sm:$0xff] %v2963_v25  }
 0x156 PF: > { %s18_s27 = sadd.s32 1, %s3003_s27  }
 0x157   : > { %p15_p4 = scmp.ge.s32.totalorder %s18_s27, 4  }
 0x159   :  { %17 = sbr.rel (!%p15_p4) target bundleno = 1 (0x1), region = 95 }

// kernel: conv_blocks_forward.10
= control target key start
LH: loop header
LB: loop body
LE: loop exit
PB: predicated region body
PF: predicated region fallthrough
CT: control target
= control target key end

     0   :  { %s2676_s15 = smov 0   ;;  %s3304_s0 = inlined_call_operand.vmem [shape: bf16[2,10,10,128], index: 0, kind: input, shape index: {}]   ;;  %s3305_s1 = inlined_call_operand.vmem [shape: bf16[9,128,128], index: 1, kind: input, shape index: {}]   ;;  %s3306_s2 = inlined_call_operand.vmem [shape: f32[1,128], index: 2, kind: input, shape index: {}]   ;;  %s3307_s3 = inlined_call_operand.vmem [shape: f32[1,128], index: 3, kind: input, shape index: {}]   ;;  %s3308_s4 = inlined_call_operand.vmem [shape: bf16[2,64,128], index: 4, kind: output, shape index: {}]  }
   0x1 LB: > { %s1946_s16 = sadd.s32 4294967295, %s2649_s15   ;;  %p1950_p0 = scmp.ge.s32.totalorder %s2649_s15, 1  ;;  %s2649_s15 = sphi %s2676_s15, %s14_s15  }
   0x2   : > { %p162_p1 = scmp.lt.s32.totalorder %s2649_s15, 3 }
   0x4   : > { %p163_p2 = pnand %p1950_p0, %p162_p1 }
   0x5   : > { %p188_p3 = scmp.lt.s32.totalorder (!%p163_p2), %s1946_s16, 1 }
   0x6   : > { %166 = sbr.rel (%p163_p2) target bundleno = 338 (0x152), region = 36 }
   0xb   : > { %v2528_v0 = vld [vmem:[%s3305_s1 + $0x78] sm:$0xff]  ;;  %v2527_v2 = vld [vmem:[%s3305_s1 + $0x70] sm:$0xff]  ;;  %s3314_s16 = smov (!%p188_p3, %s1946_s16), 1  ;;  %v2526_v6 = vld [vmem:[%s3305_s1 + $0x68] sm:$0xff]  ;;  %vm230_vm0 = vsmask.f32 3328 }
   0xc   : > { %v2536_v1 = vld [vmem:[%s3305_s1 + $0xb8] sm:$0xff]  ;;  %2616 = vmatpush.bf16.msra.mxu1 %v2528_v0  ;;  %426 = vmatpush.bf16.msra.mxu0 %v2528_v0  ;;  %v2535_v3 = vld [vmem:[%s3305_s1 + $0xb0] sm:$0xff]  ;;  %s2632_s27 = smul.u32 80, %s3314_s16  ;;  %v2534_v7 = vld [vmem:[%s3305_s1 + $0xa8] sm:$0xff]  ;;  %vm231_vm1 = vsmask.f32 7440 }
   0xd   : > { %696 = vmatpush.bf16.msra.mxu2 %v2536_v1  ;;  %v2548_v4 = vld [vmem:[%s3305_s1 + $0xf8] sm:$0xff]  ;;  %v2547_v5 = vld [vmem:[%s3305_s1 + $0xf0] sm:$0xff]  ;;  %v2525_v11 = vld [vmem:[%s3305_s1 + $0x60] sm:$0xff]  ;;  %vm580_vm2 = vcmask 1042432   ;;  %vm581_vm3 = vcmask 1046532   ;;  %s2508_s29 = sshll.u32 %s3314_s16, 5 }
   0xe   : > { %831 = vmatpush.bf16.msra.mxu3 %v2548_v4  ;;  %s2714_s10 = scalar_lea.vmem %s3304_s0, %s2632_s27  ;;  %v2533_v16 = vld [vmem:[%s3305_s1 + $0xa0] sm:$0xff]  ;;  %v2546_v17 = vld [vmem:[%s3305_s1 + $0xe8] sm:$0xff]  ;;  %v2524_v29 = vld [vmem:[%s3305_s1 + $0x58] sm:$0xff]  ;;  %s3274_s6 = scalar_lea.vmem %s3308_s4, %s2508_s29 }
   0xf   : > { %v202_v8 = vld [vmem:[%s2714_s10 + $0x20] sm:$0xf]  ;;  %v203_v9 = vld [vmem:[%s2714_s10 + $0x28] sm:$0xf]  ;;  %v2719_v10 = vld [vmem:[%s2714_s10 + $0x24] sm:$0x1] }
  0x10   : > { %2617 = vmatpush.bf16.msra.mxu1 %v2527_v2  ;;  %427 = vmatpush.bf16.msra.mxu0 %v2527_v2  ;;  %v2725_v12 = vld [vmem:[%s2714_s10 + $0x2c] sm:$0x1]  ;;  %v290_v13 = vshrl.u32 %v202_v8, 16  ;;  %v293_v14 = vshll.u32 %v202_v8, 16  ;;  %v304_v15 = vshrl.u32 %v203_v9, 16  ;;  %v307_v18 = vshll.u32 %v203_v9, 16  ;;  %vm2752_vm4 = vmor %vm230_vm0, %vm231_vm1 }
  0x11   : > { %697 = vmatpush.bf16.msra.mxu2 %v2535_v3  ;;  %v198_v19 = vld [vmem:[%s2714_s10] sm:$0xf]  ;;  %v299_v22 = vshll.u32 %v2719_v10, 16  ;;  %v199_v24 = vld [vmem:[%s2714_s10 + $0x8] sm:$0xf]  ;;  %v313_v26 = vshll.u32 %v2725_v12, 16  ;;  %vm2761_vm5 = vmor %vm580_vm2, %vm581_vm3 }
  0x12   : > { %832 = vmatpush.bf16.msra.mxu3 %v2547_v5  ;;  %v292_v20 = vrot.slane %v290_v13, 4  ;;  %v295_v21 = vrot.slane %v293_v14, 5  ;;  %v306_v23 = vrot.slane %v304_v15, 4  ;;  %v309_v25 = vrot.slane %v307_v18, 5  ;;  %v222_v27 = vld [vmem:[%s2714_s10 + $0x4] sm:$0x1] }
  0x13   : > { %v223_v28 = vld [vmem:[%s2714_s10 + $0xc] sm:$0x1]  ;;  %v234_v31 = vshrl.u32 %v198_v19, 16  ;;  %v237_v32 = vshll.u32 %v198_v19, 16  ;;  %v2545_v34 = vld [vmem:[%s3305_s1 + $0xe0] sm:$0xff]  ;;  %v243_v35 = vshll.u32 %v222_v27, 16 }
  0x14   : > { %2618 = vmatpush.bf16.msra.mxu1 %v2526_v6  ;;  %428 = vmatpush.bf16.msra.mxu0 %v2526_v6  ;;  %v296_v30 = vor.u32 %v295_v21, %v292_v20  ;;  %v310_v33 = vor.u32 %v309_v25, %v306_v23  ;;  %v248_v36 = vshrl.u32 %v199_v24, 16  ;;  %v251_v37 = vshll.u32 %v199_v24, 16  ;;  %v556_v38 = vld [vmem:[%s2714_s10] sm:$0xe]  ;;  %v557_v43 = vld [vmem:[%s2714_s10 + $0x8] sm:$0xe] }
  0x15   : > { %698 = vmatpush.bf16.msra.mxu2 %v2534_v7  ;;  %v301_v39 = vrot.slane %v299_v22, 5  ;;  %v236_v40 = vrot.slane %v234_v31, 4  ;;  %v239_v41 = vrot.slane %v237_v32, 5  ;;  %v257_v42 = vshll.u32 %v223_v28, 16  ;;  %v2532_v44 = vld [vmem:[%s3305_s1 + $0x98] sm:$0xff]  ;;  %v2523_v60 = vld [vmem:[%s3305_s1 + $0x50] sm:$0xff] }
  0x16   : > { %833 = vmatpush.bf16.msra.mxu3 %v2546_v17  ;;  %v297_v45 = vrot.slane %v296_v30, 4  ;;  %v315_v46 = vrot.slane %v313_v26, 5  ;;  %v250_v47 = vrot.slane %v248_v36, 4  ;;  %v253_v48 = vrot.slane %v251_v37, 5  ;;  %v2544_v56 = vld [vmem:[%s3305_s1 + $0xd8] sm:$0xff]  ;;  %v2531_v0 = vld [vmem:[%s3305_s1 + $0x90] sm:$0xff] }
  0x17   : > { %v311_v50 = vrot.slane %v310_v33, 4  ;;  %v240_v51 = vor.u32 %v239_v41, %v236_v40  ;;  %v2050_v52 = vrot.slane %v556_v38, 9  ;;  %v585_v53 = vrot.slane %v222_v27, 5  ;;  %v204_v59 = vld [vmem:[%s2714_s10 + $0x30] sm:$0xf]  ;;  %v2522_v14 = vld [vmem:[%s3305_s1 + $0x48] sm:$0xff] }
  0x18   : > { %2619 = vmatpush.bf16.msra.mxu1 %v2525_v11  ;;  %429 = vmatpush.bf16.msra.mxu0 %v2525_v11  ;;  %v245_v54 = vrot.slane %v243_v35, 5  ;;  %v254_v55 = vor.u32 %v253_v48, %v250_v47  ;;  %v2051_v58 = vrot.slane %v557_v43, 9  ;;  %v259_v62 = vrot.slane %v257_v42, 5  ;;  %v205_v3 = vld [vmem:[%s2714_s10 + $0x38] sm:$0xf]  ;;  %v2543_v11 = vld [vmem:[%s3305_s1 + $0xd0] sm:$0xff] }
  0x19   : > { %699 = vmatpush.bf16.msra.mxu2 %v2533_v16  ;;  %v241_v61 = vrot.slane %v240_v51, 4  ;;  %v589_v63 = vrot.slane %v223_v28, 5  ;;  %v302_v1 = vsel %vm2752_vm4, %v297_v45, %v301_v39  ;;  %v316_v4 = vsel %vm2752_vm4, %v311_v50, %v315_v46  ;;  %v200_v7 = vld [vmem:[%s2714_s10 + $0x10] sm:$0xf]  ;;  %v2530_v19 = vld [vmem:[%s3305_s1 + $0x88] sm:$0xff]  ;;  %v2521_v24 = vld [vmem:[%s3305_s1 + $0x40] sm:$0xff] }
  0x1a   : > { %834 = vmatpush.bf16.msra.mxu3 %v2545_v34  ;;  %v255_v2 = vrot.slane %v254_v55, 4  ;;  %v586_v5 = vsel %vm2761_vm5, %v2050_v52, %v585_v53  ;;  %v318_v6 = vshrl.u32 %v204_v59, 16  ;;  %v321_v13 = vshll.u32 %v204_v59, 16  ;;  %v201_v22 = vld [vmem:[%s2714_s10 + $0x18] sm:$0xf]  ;;  %v2542_v31 = vld [vmem:[%s3305_s1 + $0xc8] sm:$0xff] }
  0x1b   : > { %v246_v8 = vsel %vm2752_vm4, %v241_v61, %v245_v54  ;;  %v590_v9 = vsel %vm2761_vm5, %v2051_v58, %v589_v63  ;;  %v2790_v15 = vunpack.c.l.b16 %v302_v1  ;;  %v332_v17 = vshrl.u32 %v205_v3, 16  ;;  %v2808_v32 = vld [vmem:[%s2714_s10 + $0x34] sm:$0x1]  ;;  %v2811_v36 = vld [vmem:[%s2714_s10 + $0x3c] sm:$0x1]  ;;  %v2529_v42 = vld [vmem:[%s3305_s1 + $0x80] sm:$0xff] }
  0x1c   : > { %2620 = vmatpush.bf16.msra.mxu1 %v2524_v29  ;;  %430 = vmatpush.bf16.msra.mxu0 %v2524_v29  ;;  %v260_v16 = vsel %vm2752_vm4, %v255_v2, %v259_v62  ;;  %v367_v18 = vunpack.c.l.b16 %v316_v4  ;;  %v632_v20 = vunpack.c.l.b16 %v586_v5  ;;  %v335_v21 = vshll.u32 %v205_v3, 16  ;;  %v2520_v29 = vld [vmem:[%s3305_s1 + $0x38] sm:$0xff]  ;;  %v2818_v43 = vld [vmem:[%s2714_s10 + $0x14] sm:$0x1]  ;;  %v2541_v58 = vld [vmem:[%s3305_s1 + $0xc0] sm:$0xff] }
  0x1d   : > { %700 = vmatpush.bf16.msra.mxu2 %v2532_v44  ;;  %v262_v23 = vshrl.u32 %v200_v7, 16  ;;  %v362_v25 = vunpack.c.l.b16 %v246_v8  ;;  %v633_v26 = vunpack.c.l.b16 %v590_v9  ;;  %v320_v27 = vrot.slane %v318_v6, 4  ;;  %v2821_v44 = vld [vmem:[%s2714_s10 + $0x1c] sm:$0x1]  ;;  %v2519_v52 = vld [vmem:[%s3305_s1 + $0x30] sm:$0xff] }
  0x1e   : > { %835 = vmatpush.bf16.msra.mxu3 %v2544_v56  ;;  %v265_v28 = vshll.u32 %v200_v7, 16  ;;  %v363_v30 = vunpack.c.l.b16 %v260_v16  ;;  %v323_v33 = vrot.slane %v321_v13, 5  ;;  %v334_v34 = vrot.slane %v332_v17, 4  ;;  %v2556_v45 = vld [vmem:[%s3305_s1 + $0x138] sm:$0xff]  ;;  %v2555_v59 = vld [vmem:[%s3305_s1 + $0x130] sm:$0xff] }
  0x1f   : > { %v337_v35 = vrot.slane %v335_v21, 5  ;;  %v264_v37 = vrot.slane %v262_v23, 4  ;;  %v276_v39 = vshrl.u32 %v201_v22, 16  ;;  %v279_v40 = vshll.u32 %v201_v22, 16  ;;  %v2576_v48 = vld [vmem:[%s3305_s1 + $0x1b8] sm:$0xff]  ;;  %v2575_v6 = vld [vmem:[%s3305_s1 + $0x1b0] sm:$0xff] }
  0x20   : > { %2621 = vmatpush.bf16.msra.mxu1 %v2523_v60  ;;  %431 = vmatpush.bf16.msra.mxu0 %v2523_v60  ;;  %v267_v38 = vrot.slane %v265_v28, 5  ;;  %v372_v41 = vpack.c.b16 %v367_v18, %v2790_v15  ;;  %v640_v46 = vpack.c.b16 %v633_v26, %v632_v20  ;;  %v327_v47 = vshll.u32 %v2808_v32, 16  ;;  %v2537_v1 = vld [vmem:[%s2714_s10 + $0xc] sm:$0xf0]  ;;  %v2584_v2 = vld [vmem:[%s3305_s1 + $0x1f8] sm:$0xff]  ;;  %v2574_v26 = vld [vmem:[%s3305_s1 + $0x1a8] sm:$0xff] }
  0x21   : > { %701 = vmatpush.bf16.msra.mxu2 %v2531_v0  ;;  %v278_v50 = vrot.slane %v276_v39, 4  ;;  %v281_v51 = vrot.slane %v279_v40, 5  ;;  %v370_v53 = vpack.c.b16 %v363_v30, %v362_v25  ;;  %v324_v54 = vor.u32 %v323_v33, %v320_v27  ;;  %v2132_v0 = vld [vmem:[%s2714_s10 + $0x8] sm:$0xf]  ;;  %v558_v4 = vld [vmem:[%s2714_s10 + $0x10] sm:$0xe] }
  0x22   : > { %836 = vmatpush.bf16.msra.mxu3 %v2543_v11  ;;  %v338_v55 = vor.u32 %v337_v35, %v334_v34  ;;  %v341_v56 = vshll.u32 %v2811_v36, 16  ;;  %v268_v60 = vor.u32 %v267_v38, %v264_v37  ;;  %v271_v61 = vshll.u32 %v2818_v43, 16  ;;  %v559_v5 = vld [vmem:[%s2714_s10 + $0x18] sm:$0xe]  ;;  %v2178_v13 = vld [vmem:[%s2714_s10 + $0x8] sm:$0xf] }
  0x23   : > { %v282_v62 = vor.u32 %v281_v51, %v278_v50  ;;  %v285_v63 = vshll.u32 %v2821_v44, 16  ;;  %v329_v3 = vrot.slane %v327_v47, 5  ;;  %v325_v7 = vrot.slane %v324_v54, 4  ;;  %v2180_v18 = vld [vmem:[%s2714_s10 + $0x10] sm:$0xf]  ;;  %v2554_v25 = vld [vmem:[%s3305_s1 + $0x128] sm:$0xff] }
  0x24   : > { %2622 = vmatpush.bf16.msra.mxu1 %v2522_v14  ;;  %432 = vmatpush.bf16.msra.mxu0 %v2522_v14  ;;  %v339_v8 = vrot.slane %v338_v55, 4  ;;  %v343_v9 = vrot.slane %v341_v56, 5  ;;  %v2133_v11 = vor.u32 %v2537_v1, %v2132_v0  ;;  %v269_v14 = vrot.slane %v268_v60, 4  ;;  %v2517_v37 = vld [vmem:[%s3305_s1 + $0x20] sm:$0xff]  ;;  %v2582_v40 = vld [vmem:[%s3305_s1 + $0x1e8] sm:$0xff]  ;;  %v2516_v55 = vld [vmem:[%s3305_s1 + $0x18] sm:$0xff] }
  0x25   : > { %702 = vmatpush.bf16.msra.mxu2 %v2530_v19  ;;  %v273_v15 = vrot.slane %v271_v61, 5  ;;  %v283_v16 = vrot.slane %v282_v62, 4  ;;  %v287_v17 = vrot.slane %v285_v63, 5  ;;  %v2518_v19 = vld [vmem:[%s3305_s1 + $0x28] sm:$0xff]  ;;  %v2052_v20 = vrot.slane %v558_v4, 9 }
  0x26   : > { %837 = vmatpush.bf16.msra.mxu3 %v2542_v31  ;;  %v593_v21 = vrot.slane %v2818_v43, 5  ;;  %v2053_v22 = vrot.slane %v559_v5, 9  ;;  %v597_v23 = vrot.slane %v2821_v44, 5  ;;  %v330_v27 = vsel %vm2752_vm4, %v325_v7, %v329_v3  ;;  %v2553_v43 = vld [vmem:[%s3305_s1 + $0x120] sm:$0xff]  ;;  %v2893_v47 = vld [vmem:[%s2714_s10 + $0xc] sm:$0x1] }
  0x27   : > { %v344_v28 = vsel %vm2752_vm4, %v339_v8, %v343_v9  ;;  %v888_v30 = vshll.u32 %v2178_v13, 16  ;;  %v274_v31 = vsel %vm2752_vm4, %v269_v14, %v273_v15  ;;  %v288_v33 = vsel %vm2752_vm4, %v283_v16, %v287_v17  ;;  %v2573_v44 = vld [vmem:[%s3305_s1 + $0x1a0] sm:$0xff]  ;;  %v2899_v56 = vld [vmem:[%s2714_s10 + $0x14] sm:$0x1]  ;;  %v2136_v62 = vld [vmem:[%s2714_s10 + $0x18] sm:$0xf] }
  0x28   : > { %2623 = vmatpush.bf16.msra.mxu1 %v2521_v24  ;;  %433 = vmatpush.bf16.msra.mxu0 %v2521_v24  ;;  %v2583_v24 = vld [vmem:[%s3305_s1 + $0x1f0] sm:$0xff]  ;;  %v899_v34 = vshrl.u32 %v2180_v18, 16  ;;  %v902_v35 = vshll.u32 %v2180_v18, 16  ;;  %v594_v38 = vsel %vm2761_vm5, %v2052_v20, %v593_v21  ;;  %v598_v39 = vsel %vm2761_vm5, %v2053_v22, %v597_v23  ;;  %v2538_v63 = vld [vmem:[%s2714_s10 + $0x1c] sm:$0xf0]  ;;  %v2572_v17 = vld [vmem:[%s3305_s1 + $0x198] sm:$0xff] }
  0x29   : > { %703 = vmatpush.bf16.msra.mxu2 %v2529_v42  ;;  %v369_v42 = vunpack.c.l.b16 %v344_v28  ;;  %v890_v50 = vrot.slane %v888_v30, 5  ;;  %v634_v51 = vunpack.c.l.b16 %v594_v38  ;;  %v560_v1 = vld [vmem:[%s2714_s10 + $0x20] sm:$0xe]  ;;  %v908_v4 = vshll.u32 %v2899_v56, 16  ;;  %v561_v5 = vld [vmem:[%s2714_s10 + $0x28] sm:$0xe] }
  0x2a   : > { %838 = vmatpush.bf16.msra.mxu3 %v2541_v58  ;;  %v904_v54 = vrot.slane %v902_v35, 5  ;;  %v2552_v58 = vld [vmem:[%s3305_s1 + $0x118] sm:$0xff]  ;;  %v2551_v7 = vld [vmem:[%s3305_s1 + $0x110] sm:$0xff]  ;;  %v2137_v8 = vor.u32 %v2538_v63, %v2136_v62  ;;  %v601_v14 = vrot.slane %v2719_v10, 5  ;;  %v2055_v15 = vrot.slane %v561_v5, 9  ;;  %v2581_v21 = vld [vmem:[%s3305_s1 + $0x1e0] sm:$0xff] }
  0x2b   : > { %444 = vmatmul.bf16.vlgmr.msra.gmra.mxu1 %v372_v41  ;;  %434 = vmatmul.bf16.vlgmr.msra.gmra.mxu0 %v370_v53  ;;  %v368_v41 = vunpack.c.l.b16 %v330_v27  ;;  %v901_v53 = vrot.slane %v899_v34, 4  ;;  %v605_v16 = vrot.slane %v2725_v12, 5  ;;  %v2182_v20 = vld [vmem:[%s2714_s10 + $0x18] sm:$0xf]  ;;  %v2514_v10 = vld [vmem:[%s3305_s1 + $0x8] sm:$0xff]  ;;  %v2571_v23 = vld [vmem:[%s3305_s1 + $0x190] sm:$0xff] }
  0x2c   : > { %527 = vmatpush.bf16.msrb.mxu1 %v2520_v29  ;;  %1077 = vmatpush.bf16.msrb.mxu0 %v2556_v45  ;;  %v885_v29 = vshrl.u32 %v2178_v13, 16  ;;  %v364_v45 = vunpack.c.l.b16 %v274_v31  ;;  %v2184_v22 = vld [vmem:[%s2714_s10 + $0x20] sm:$0xf]  ;;  %v2550_v12 = vld [vmem:[%s3305_s1 + $0x108] sm:$0xff]  ;;  %v913_v28 = vshrl.u32 %v2182_v20, 16  ;;  %v916_v30 = vshll.u32 %v2182_v20, 16 }
  0x2d   : > { %1386 = vmatpush.bf16.msrb.mxu2 %v2576_v48  ;;  %839 = vmatmul.bf16.vlgmr.msra.gmra.mxu3 %v2133_v11  ;;  %v373_v60 = vpack.c.b16 %v369_v42, %v368_v41  ;;  %v905_v3 = vor.u32 %v904_v54, %v901_v53  ;;  %v2054_v11 = vrot.slane %v560_v1, 9  ;;  %v606_v27 = vsel %vm2761_vm5, %v2055_v15, %v605_v16  ;;  %v2513_v34 = vld [vmem:[%s3305_s1] sm:$0xff]  ;;  %v2563_v53 = vld [vmem:[%s3305_s1 + $0x170] sm:$0xff]  ;;  %v563_v5 = vld [vmem:[%s2714_s10 + $0x38] sm:$0xe] }
  0x2e   : > { %704 = vmatmul.bf16.vlgmr.msra.gmra.mxu2 %v640_v46  ;;  %1632 = vmatpush.bf16.msrb.mxu3 %v2584_v2  ;;  %v365_v46 = vunpack.c.l.b16 %v288_v33  ;;  %v887_v48 = vrot.slane %v885_v29, 4  ;;  %v927_v31 = vshrl.u32 %v2184_v22, 16  ;;  %v930_v33 = vshll.u32 %v2184_v22, 16  ;;  %v2004_v35 = vld [vmem:[%s2714_s10] sm:$0xf]  ;;  %v2979_v1 = vld [vmem:[%s3305_s1 + $0x230] sm:$0xff] }
  0x2f   : > { %v906_v18 = vrot.slane %v905_v3, 4  ;;  %v2549_v38 = vld [vmem:[%s3305_s1 + $0x100] sm:$0xff]  ;;  %v2539_v62 = vld [vmem:[%s2714_s10 + $0x2c] sm:$0xf0]  ;;  %v2186_v3 = vld [vmem:[%s2714_s10 + $0x28] sm:$0xf] }
  0x30   : > { %528 = vmatpush.bf16.msrb.mxu1 %v2519_v52  ;;  %1078 = vmatpush.bf16.msrb.mxu0 %v2555_v59  ;;  %v635_v52 = vunpack.c.l.b16 %v598_v39  ;;  %v894_v59 = vshll.u32 %v2893_v47, 16  ;;  %v371_v61 = vpack.c.b16 %v365_v46, %v364_v45  ;;  %v891_v0 = vor.u32 %v890_v50, %v887_v48  ;;  %v2509_v39 = vld [vmem:[%s2714_s10 + $0x4] sm:$0xf0]  ;;  %v2963_v45 = vld [vmem:[%s3305_s1 + $0x238] sm:$0xff]  ;;  %v2966_v46 = vld [vmem:[%s2714_s10 + $0x24] sm:$0x1] }
  0x31   : > { %1387 = vmatpush.bf16.msrb.mxu2 %v2575_v6  ;;  %v2515_v6 = vld [vmem:[%s3305_s1 + $0x10] sm:$0xff]  ;;  %v915_v48 = vrot.slane %v913_v28, 4  ;;  %v918_v50 = vrot.slane %v916_v30, 5  ;;  %v2005_v54 = vor.u32 %v2509_v39, %v2004_v35  ;;  %v941_v15 = vshrl.u32 %v2186_v3, 16  ;;  %v2569_v22 = vld [vmem:[%s3305_s1 + $0x180] sm:$0xff] }
  0x32   : > { %1633 = vmatpush.bf16.msrb.mxu3 %v2583_v24  ;;  %v641_v2 = vpack.c.b16 %v635_v52, %v634_v51  ;;  %v896_v9 = vrot.slane %v894_v59, 5  ;;  %v892_v13 = vrot.slane %v891_v0, 4  ;;  %v2580_v24 = vld [vmem:[%s3305_s1 + $0x1d8] sm:$0xff]  ;;  %v929_v51 = vrot.slane %v927_v31, 4  ;;  %v3019_v28 = vld [vmem:[%s3305_s1 + $0x220] sm:$0xff] }
  0x33   : > { %v932_v52 = vrot.slane %v930_v33, 5  ;;  %v936_v59 = vshll.u32 %v2966_v46, 16  ;;  %v919_v63 = vor.u32 %v918_v50, %v915_v48  ;;  %v944_v16 = vshll.u32 %v2186_v3, 16  ;;  %v2560_v31 = vld [vmem:[%s3305_s1 + $0x158] sm:$0xff]  ;;  %v3029_v33 = vld [vmem:[%s2714_s10 + $0x2c] sm:$0x1] }
  0x34   : > { %529 = vmatpush.bf16.msrb.mxu1 %v2518_v19  ;;  %1079 = vmatpush.bf16.msrb.mxu0 %v2554_v25  ;;  %v910_v19 = vrot.slane %v908_v4, 5  ;;  %v897_v25 = vsel %vm2752_vm4, %v892_v13, %v896_v9  ;;  %v562_v4 = vld [vmem:[%s2714_s10 + $0x30] sm:$0xe]  ;;  %v609_v20 = vrot.slane %v2808_v32, 5  ;;  %v2578_v32 = vld [vmem:[%s3305_s1 + $0x1c8] sm:$0xff] }
  0x35   : > { %1388 = vmatpush.bf16.msrb.mxu2 %v2574_v26  ;;  %v602_v26 = vsel %vm2761_vm5, %v2054_v11, %v601_v14  ;;  %v933_v0 = vor.u32 %v932_v52, %v929_v51  ;;  %v938_v9 = vrot.slane %v936_v59, 5  ;;  %v2188_v11 = vld [vmem:[%s2714_s10 + $0x30] sm:$0xf]  ;;  %v920_v13 = vrot.slane %v919_v63, 4  ;;  %v3032_v39 = vld [vmem:[%s2714_s10 + $0x34] sm:$0x1] }
  0x36   : > { %1634 = vmatpush.bf16.msrb.mxu3 %v2582_v40  ;;  %v911_v29 = vsel %vm2752_vm4, %v906_v18, %v910_v19  ;;  %v1013_v40 = vunpack.c.l.b16 %v897_v25  ;;  %v636_v42 = vunpack.c.l.b16 %v602_v26  ;;  %v2998_v18 = vld [vmem:[%s3305_s1 + $0x228] sm:$0xff]  ;;  %v2056_v19 = vrot.slane %v562_v4, 9  ;;  %v2380_v51 = vld [vmem:[%s2714_s10 + $0x18] sm:$0xf]  ;;  %v2540_v63 = vld [vmem:[%s2714_s10 + $0x3c] sm:$0xf0] }
  0x37   : > { %v1014_v41 = vunpack.c.l.b16 %v911_v29  ;;  %v934_v14 = vrot.slane %v933_v0, 4  ;;  %v943_v26 = vrot.slane %v941_v15, 4  ;;  %v950_v52 = vshll.u32 %v3029_v33, 16  ;;  %v2190_v0 = vld [vmem:[%s2714_s10 + $0x38] sm:$0xf] }
  0x38   : > { %530 = vmatpush.bf16.msrb.mxu1 %v2517_v37  ;;  %1080 = vmatpush.bf16.msrb.mxu0 %v2553_v43  ;;  %v2564_v37 = vld [vmem:[%s3305_s1 + $0x178] sm:$0xff]  ;;  %v637_v43 = vunpack.c.l.b16 %v606_v27  ;;  %v946_v27 = vrot.slane %v944_v16, 5  ;;  %v610_v29 = vsel %vm2761_vm5, %v2056_v19, %v609_v20  ;;  %v964_v59 = vshll.u32 %v3032_v39, 16  ;;  %v2192_v16 = vld [vmem:[%s2714_s10 + $0x40] sm:$0xf] }
  0x39   : > { %1389 = vmatpush.bf16.msrb.mxu2 %v2573_v44  ;;  %v2958_v44 = vld [vmem:[%s2714_s10 + $0x1c] sm:$0x1]  ;;  %v939_v25 = vsel %vm2752_vm4, %v934_v14, %v938_v9  ;;  %v2577_v19 = vld [vmem:[%s3305_s1 + $0x1c0] sm:$0xff]  ;;  %v972_v20 = vshll.u32 %v2190_v0, 16 }
  0x3a   : > { %1635 = vmatpush.bf16.msrb.mxu3 %v2581_v21  ;;  %v2057_v21 = vrot.slane %v563_v5, 9  ;;  %v947_v50 = vor.u32 %v946_v27, %v943_v26  ;;  %v3050_v5 = vld [vmem:[%s2714_s10 + $0x14] sm:$0x1]  ;;  %v966_v15 = vrot.slane %v964_v59, 5 }
  0x3b   : > { %449 = vmatmul.bf16.gmra.mxu1 %v373_v60  ;;  %439 = vmatmul.bf16.gmra.mxu0 %v371_v61  ;;  %v642_v60 = vpack.c.b16 %v637_v43, %v636_v42  ;;  %v2140_v61 = vld [vmem:[%s2714_s10 + $0x28] sm:$0xf]  ;;  %v2510_v42 = vld [vmem:[%s2714_s10 + $0x14] sm:$0xf0]  ;;  %v638_v43 = vunpack.c.l.b16 %v610_v29  ;;  %v3072_v27 = vld [vmem:[%s3305_s1 + $0x210] sm:$0xff] }
  0x3c   : > { %531 = vmatpush.bf16.msrb.mxu1 %v2516_v55  ;;  %1081 = vmatpush.bf16.msrb.mxu0 %v2552_v58  ;;  %v1021_v55 = vpack.c.b16 %v1014_v41, %v1013_v40  ;;  %v922_v58 = vshll.u32 %v2958_v44, 16  ;;  %v2378_v40 = vld [vmem:[%s2714_s10 + $0x10] sm:$0xf]  ;;  %v948_v4 = vrot.slane %v947_v50, 4  ;;  %v2242_v29 = vld [vmem:[%s2714_s10 + $0x8] sm:$0xe] }
  0x3d   : > { %1390 = vmatpush.bf16.msrb.mxu2 %v2572_v17  ;;  %844 = vmatmul.bf16.gmra.mxu3 %v2137_v8  ;;  %v2579_v17 = vld [vmem:[%s3305_s1 + $0x1d0] sm:$0xff] }
  0x3e   : > { %709 = vmatmul.bf16.gmra.mxu2 %v641_v2  ;;  %1636 = vmatpush.bf16.msrb.mxu3 %v2580_v24  ;;  %v2562_v2 = vld [vmem:[%s3305_s1 + $0x168] sm:$0xff]  ;;  %v924_v8 = vrot.slane %v922_v58, 5  ;;  %v958_v24 = vshll.u32 %v2188_v11, 16  ;;  %v2008_v41 = vld [vmem:[%s2714_s10 + $0x10] sm:$0xf] }
  0x40   : > { %532 = vmatpush.bf16.msrb.mxu1 %v2515_v6  ;;  %1082 = vmatpush.bf16.msrb.mxu0 %v2551_v7  ;;  %v2570_v6 = vld [vmem:[%s3305_s1 + $0x188] sm:$0xff]  ;;  %v2141_v7 = vor.u32 %v2539_v62, %v2140_v61  ;;  %v960_v35 = vrot.slane %v958_v24, 5  ;;  %v2009_v61 = vor.u32 %v2510_v42, %v2008_v41  ;;  %v3085_v42 = vld [vmem:[%s2714_s10 + $0x3c] sm:$0x1] }
  0x41   : > { %1391 = vmatpush.bf16.msrb.mxu2 %v2571_v23  ;;  %v955_v23 = vshrl.u32 %v2188_v11, 16 }
  0x42   : > { %1637 = vmatpush.bf16.msrb.mxu3 %v2579_v17  ;;  %v969_v17 = vshrl.u32 %v2190_v0, 16 }
  0x44   : > { %533 = vmatpush.bf16.msrb.mxu1 %v2514_v10  ;;  %1083 = vmatpush.bf16.msrb.mxu0 %v2550_v12  ;;  %v613_v10 = vrot.slane %v2811_v36, 5  ;;  %v2561_v12 = vld [vmem:[%s3305_s1 + $0x160] sm:$0xff]  ;;  %v925_v36 = vsel %vm2752_vm4, %v920_v13, %v924_v8 }
  0x45   : > { %1392 = vmatpush.bf16.msrb.mxu2 %v2570_v6  ;;  %v952_v6 = vrot.slane %v950_v52, 5 }
  0x46   : > { %v614_v30 = vsel %vm2761_vm5, %v2057_v21, %v613_v10  ;;  %1638 = vmatpush.bf16.msrb.mxu3 %v2578_v32  ;;  %v1449_v10 = vshll.u32 %v3050_v5, 16  ;;  %v1144_v32 = vrot.slane %v2899_v56, 5  ;;  %v971_v56 = vrot.slane %v969_v17, 4 }
  0x47   : > { %v639_v48 = vunpack.c.l.b16 %v614_v30 }
  0x48   : > { %534 = vmatpush.bf16.msrb.mxu1 %v2513_v34  ;;  %1084 = vmatpush.bf16.msrb.mxu0 %v2549_v38  ;;  %v957_v34 = vrot.slane %v955_v23, 4  ;;  %v1016_v38 = vunpack.c.l.b16 %v939_v25  ;;  %v1140_v23 = vrot.slane %v2893_v47, 5  ;;  %v986_v25 = vshll.u32 %v2192_v16, 16 }
  0x49   : > { %1393 = vmatpush.bf16.msrb.mxu2 %v2569_v22  ;;  %v643_v3 = vpack.c.b16 %v639_v48, %v638_v43  ;;  %v953_v47 = vsel %vm2752_vm4, %v948_v4, %v952_v6  ;;  %v2332_v4 = vld [vmem:[%s2714_s10 + $0x10] sm:$0xf] }
  0x4a   : > { %v961_v58 = vor.u32 %v960_v35, %v957_v34  ;;  %1639 = vmatpush.bf16.msrb.mxu3 %v2577_v19  ;;  %v2243_v34 = vld [vmem:[%s2714_s10 + $0x10] sm:$0xe]  ;;  %v2250_v35 = vrot.slane %v2242_v29, 9  ;;  %v988_v52 = vrot.slane %v986_v25, 5 }
  0x4b   : > { %535 = vmatmul.bf16.vlgmr.msrb.gmra.mxu1 %v2005_v54  ;;  %1085 = vmatmul.bf16.vlgmr.msrb.gmra.mxu0 %v1021_v55  ;;  %v1443_v54 = vshll.u32 %v2378_v40, 16  ;;  %v1454_v55 = vshrl.u32 %v2380_v51, 16  ;;  %v2251_v41 = vrot.slane %v2243_v34, 9  ;;  %v2585_v34 = vld [vmem:[%s3305_s1 + $0x200] sm:$0xff] }
  0x4c   : > { %1251 = vmatpush.bf16.msra.mxu1 %v2564_v37  ;;  %1806 = vmatpush.bf16.msra.mxu0 %v2963_v45  ;;  %v1015_v37 = vunpack.c.l.b16 %v925_v36  ;;  %v962_v14 = vrot.slane %v961_v58, 4  ;;  %v983_v36 = vshrl.u32 %v2192_v16, 16  ;;  %v1141_v50 = vsel %vm2761_vm5, %v2250_v35, %v1140_v23  ;;  %v3117_v23 = vld [vmem:[%s2714_s10 + $0x2c] sm:$0x1] }
  0x4d   : > { %849 = vmatmul.bf16.gmra.mxu3 %v2141_v7  ;;  %2624 = vmatpush.bf16.msra.mxu2 %v2963_v45  ;;  %v2144_v45 = vld [vmem:[%s2714_s10 + $0x38] sm:$0xf]  ;;  %v3053_v7 = vld [vmem:[%s2714_s10 + $0x1c] sm:$0x1]  ;;  %v1445_v9 = vrot.slane %v1443_v54, 5  ;;  %v1456_v11 = vrot.slane %v1454_v55, 4  ;;  %v1187_v54 = vunpack.c.l.b16 %v1141_v50  ;;  %v1017_v58 = vunpack.c.l.b16 %v953_v47 }
  0x4e   : > { %714 = vmatmul.bf16.gmra.mxu2 %v642_v60  ;;  %v2559_v60 = vld [vmem:[%s3305_s1 + $0x150] sm:$0xff]  ;;  %v1022_v62 = vpack.c.b16 %v1016_v38, %v1015_v37  ;;  %v2145_v13 = vor.u32 %v2540_v63, %v2144_v45  ;;  %v1463_v24 = vshll.u32 %v3053_v7, 16  ;;  %v967_v30 = vsel %vm2752_vm4, %v962_v14, %v966_v15  ;;  %v2012_v55 = vld [vmem:[%s2714_s10 + $0x20] sm:$0xf]  ;;  %v2511_v45 = vld [vmem:[%s2714_s10 + $0x24] sm:$0xf0] }
  0x4f   : > { %v974_v37 = vrot.slane %v972_v20, 5  ;;  %v1018_v59 = vunpack.c.l.b16 %v967_v30  ;;  %v978_v63 = vshll.u32 %v3085_v42, 16  ;;  %v2013_v17 = vor.u32 %v2511_v45, %v2012_v55  ;;  %v2016_v55 = vld [vmem:[%s2714_s10 + $0x30] sm:$0xf] }
  0x50   : > { %1252 = vmatpush.bf16.msra.mxu1 %v2563_v53  ;;  %1807 = vmatpush.bf16.msra.mxu0 %v2979_v1  ;;  %v1440_v53 = vshrl.u32 %v2378_v40, 16  ;;  %v1451_v40 = vrot.slane %v1449_v10, 5  ;;  %v1465_v48 = vrot.slane %v1463_v24, 5 }
  0x51   : > { %2625 = vmatpush.bf16.msra.mxu2 %v2979_v1  ;;  %v2558_v1 = vld [vmem:[%s3305_s1 + $0x148] sm:$0xff] }
  0x52   : > { %v1442_v8 = vrot.slane %v1440_v53, 4  ;;  %v1145_v53 = vsel %vm2761_vm5, %v2251_v41, %v1144_v32 }
  0x54   : > { %1253 = vmatpush.bf16.msra.mxu1 %v2562_v2  ;;  %1808 = vmatpush.bf16.msra.mxu0 %v2998_v18  ;;  %v1457_v2 = vshll.u32 %v2380_v51, 16  ;;  %v1446_v21 = vor.u32 %v1445_v9, %v1442_v8  ;;  %v985_v51 = vrot.slane %v983_v36, 4 }
  0x55   : > { %2626 = vmatpush.bf16.msra.mxu2 %v2998_v18  ;;  %v2586_v18 = vld [vmem:[%s3305_s1 + $0x208] sm:$0xff] }
  0x56   : > { %v1459_v22 = vrot.slane %v1457_v2, 5  ;;  %v1447_v38 = vrot.slane %v1446_v21, 4  ;;  %v2382_v2 = vld [vmem:[%s2714_s10 + $0x20] sm:$0xf] }
  0x57   : > { %v1468_v9 = vshrl.u32 %v2382_v2, 16 }
  0x58   : > { %1254 = vmatpush.bf16.msra.mxu1 %v2561_v12  ;;  %1809 = vmatpush.bf16.msra.mxu0 %v3019_v28  ;;  %v2588_v12 = vld [vmem:[%s3305_s1 + $0x218] sm:$0xff]  ;;  %v1460_v26 = vor.u32 %v1459_v22, %v1456_v11  ;;  %v1452_v0 = vsel %vm2752_vm4, %v1447_v38, %v1451_v40  ;;  %v1471_v11 = vshll.u32 %v2382_v2, 16  ;;  %v3114_v22 = vld [vmem:[%s2714_s10 + $0x24] sm:$0x1]  ;;  %v2245_v38 = vld [vmem:[%s2714_s10 + $0x20] sm:$0xe] }
  0x59   : > { %2627 = vmatpush.bf16.msra.mxu2 %v3019_v28  ;;  %v989_v28 = vor.u32 %v988_v52, %v985_v51  ;;  %v1470_v19 = vrot.slane %v1468_v9, 4  ;;  %v1568_v21 = vunpack.c.l.b16 %v1452_v0  ;;  %v1148_v52 = vrot.slane %v2958_v44, 5 }
  0x5a   : > { %v1461_v43 = vrot.slane %v1460_v26, 4  ;;  %v1473_v20 = vrot.slane %v1471_v11, 5  ;;  %v980_v26 = vrot.slane %v978_v63, 5  ;;  %v2442_v63 = vld [vmem:[%s2714_s10 + $0x10] sm:$0xe] }
  0x5b   : > { %540 = vmatmul.bf16.gmra.mxu1 %v2009_v61  ;;  %1090 = vmatmul.bf16.gmra.mxu0 %v1022_v62  ;;  %v1188_v61 = vunpack.c.l.b16 %v1145_v53  ;;  %v975_v62 = vor.u32 %v974_v37, %v971_v56  ;;  %v990_v29 = vrot.slane %v989_v28, 4  ;;  %v1477_v56 = vshll.u32 %v3114_v22, 16  ;;  %v2244_v37 = vld [vmem:[%s2714_s10 + $0x18] sm:$0xe] }
  0x5c   : > { %1255 = vmatpush.bf16.msra.mxu1 %v2560_v31  ;;  %1810 = vmatpush.bf16.msra.mxu0 %v2588_v12  ;;  %v2557_v31 = vld [vmem:[%s3305_s1 + $0x140] sm:$0xff]  ;;  %v1466_v6 = vsel %vm2752_vm4, %v1461_v43, %v1465_v48  ;;  %v1474_v30 = vor.u32 %v1473_v20, %v1470_v19  ;;  %v2252_v50 = vrot.slane %v2244_v37, 9  ;;  %v2253_v53 = vrot.slane %v2245_v38, 9 }
  0x5d   : > { %854 = vmatmul.bf16.gmra.mxu3 %v2145_v13  ;;  %v3109_v8 = vpack.c.b16 %v1188_v61, %v1187_v54  ;;  %v2565_v13 = vld [vmem:[%s2714_s10 + $0x14] sm:$0xf0]  ;;  %2628 = vmatpush.bf16.msra.mxu2 %v2588_v12  ;;  %v1569_v10 = vunpack.c.l.b16 %v1466_v6  ;;  %v976_v25 = vrot.slane %v975_v62, 4  ;;  %v1491_v12 = vshll.u32 %v3117_v23, 16 }
  0x5e   : > { %719 = vmatmul.bf16.gmra.mxu2 %v643_v3  ;;  %v2384_v3 = vld [vmem:[%s2714_s10 + $0x28] sm:$0xf]  ;;  %v2333_v36 = vor.u32 %v2565_v13, %v2332_v4  ;;  %v1479_v43 = vrot.slane %v1477_v56, 5  ;;  %v1152_v54 = vrot.slane %v2966_v46, 5  ;;  %v1695_v62 = vrot.slane %v3050_v5, 5 }
  0x5f   : > { %v1482_v15 = vshrl.u32 %v2384_v3, 16  ;;  %v1485_v16 = vshll.u32 %v2384_v3, 16  ;;  %v981_v40 = vsel %vm2752_vm4, %v976_v25, %v980_v26  ;;  %v1493_v48 = vrot.slane %v1491_v12, 5  ;;  %v2443_v3 = vld [vmem:[%s2714_s10 + $0x18] sm:$0xe] }
  0x60   : > { %1256 = vmatpush.bf16.msra.mxu1 %v2559_v60  ;;  %1811 = vmatpush.bf16.msra.mxu0 %v3072_v27  ;;  %v3098_v60 = vld [vmem:[%s2714_s10 + $0x44] sm:$0x1]  ;;  %v1019_v45 = vunpack.c.l.b16 %v981_v40  ;;  %v1153_v61 = vsel %vm2761_vm5, %v2253_v53, %v1152_v54  ;;  %v2386_v4 = vld [vmem:[%s2714_s10 + $0x30] sm:$0xf]  ;;  %v2388_v6 = vld [vmem:[%s2714_s10 + $0x38] sm:$0xf] }
  0x61   : > { %v992_v14 = vshll.u32 %v3098_v60, 16  ;;  %v1484_v24 = vrot.slane %v1482_v15, 4  ;;  %v1487_v32 = vrot.slane %v1485_v16, 5  ;;  %2629 = vmatpush.bf16.msra.mxu2 %v3072_v27  ;;  %v1475_v27 = vrot.slane %v1474_v30, 4  ;;  %v2336_v16 = vld [vmem:[%s2714_s10 + $0x20] sm:$0xf] }
  0x62   : > { %v1190_v0 = vunpack.c.l.b16 %v1153_v61  ;;  %v1496_v11 = vshrl.u32 %v2386_v4, 16  ;;  %v1499_v13 = vshll.u32 %v2386_v4, 16  ;;  %v1510_v5 = vshrl.u32 %v2388_v6, 16  ;;  %v2246_v53 = vld [vmem:[%s2714_s10 + $0x28] sm:$0xe] }
  0x63   : > { %v994_v47 = vrot.slane %v992_v14, 5  ;;  %v1488_v35 = vor.u32 %v1487_v32, %v1484_v24  ;;  %v1480_v46 = vsel %vm2752_vm4, %v1475_v27, %v1479_v43  ;;  %v1699_v15 = vrot.slane %v3053_v7, 5  ;;  %v2247_v54 = vld [vmem:[%s2714_s10 + $0x30] sm:$0xe]  ;;  %v2444_v4 = vld [vmem:[%s2714_s10 + $0x20] sm:$0xe] }
  0x64   : > { %1257 = vmatpush.bf16.msra.mxu1 %v2558_v1  ;;  %1812 = vmatpush.bf16.msra.mxu0 %v2586_v18  ;;  %v1023_v1 = vpack.c.b16 %v1018_v59, %v1017_v58  ;;  %v1149_v59 = vsel %vm2761_vm5, %v2252_v50, %v1148_v52  ;;  %v1570_v19 = vunpack.c.l.b16 %v1480_v46  ;;  %v1498_v24 = vrot.slane %v1496_v11, 4  ;;  %v2340_v50 = vld [vmem:[%s2714_s10 + $0x30] sm:$0xf]  ;;  %v2445_v11 = vld [vmem:[%s2714_s10 + $0x28] sm:$0xe] }
  0x65   : > { %v995_v41 = vsel %vm2752_vm4, %v990_v29, %v994_v47  ;;  %2630 = vmatpush.bf16.msra.mxu2 %v2586_v18  ;;  %v1489_v51 = vrot.slane %v1488_v35, 4  ;;  %v2512_v18 = vld [vmem:[%s2714_s10 + $0x34] sm:$0xf0]  ;;  %v1189_v44 = vunpack.c.l.b16 %v1149_v59  ;;  %v1501_v32 = vrot.slane %v1499_v13, 5  ;;  %v3154_v29 = vld [vmem:[%s2714_s10 + $0x34] sm:$0x1] }
  0x66   : > { %v1020_v58 = vunpack.c.l.b16 %v995_v41  ;;  %v2017_v28 = vor.u32 %v2512_v18, %v2016_v55  ;;  %v3157_v47 = vld [vmem:[%s2714_s10 + $0x3c] sm:$0x1]  ;;  %v2390_v55 = vld [vmem:[%s2714_s10 + $0x40] sm:$0xf]  ;;  %v2255_v59 = vrot.slane %v2247_v54, 9  ;;  %v1160_v61 = vrot.slane %v3032_v39, 5 }
  0x67   : > { %v1494_v2 = vsel %vm2752_vm4, %v1489_v51, %v1493_v48  ;;  %v3148_v9 = vpack.c.b16 %v1190_v0, %v1189_v44  ;;  %v1502_v12 = vor.u32 %v1501_v32, %v1498_v24  ;;  %v1519_v35 = vshll.u32 %v3157_v47, 16  ;;  %v2392_v18 = vld [vmem:[%s2714_s10 + $0x48] sm:$0xf] }
  0x68   : > { %1258 = vmatpush.bf16.msra.mxu1 %v2557_v31  ;;  %v1576_v31 = vpack.c.b16 %v1569_v10, %v1568_v21  ;;  %1813 = vmatpush.bf16.msra.mxu0 %v2585_v34  ;;  %v1024_v14 = vpack.c.b16 %v1020_v58, %v1019_v45  ;;  %v1571_v20 = vunpack.c.l.b16 %v1494_v2  ;;  %v2450_v21 = vrot.slane %v2442_v63, 9 }
  0x69   : > { %2631 = vmatpush.bf16.msra.mxu2 %v2585_v34  ;;  %v2451_v10 = vrot.slane %v2443_v3, 9  ;;  %v1503_v40 = vrot.slane %v1502_v12, 4  ;;  %v1521_v43 = vrot.slane %v1519_v35, 5  ;;  %v2254_v45 = vrot.slane %v2246_v53, 9 }
  0x6a   : > { %v1577_v30 = vpack.c.b16 %v1571_v20, %v1570_v19  ;;  %v1696_v7 = vsel %vm2761_vm5, %v2450_v21, %v1695_v62  ;;  %v1156_v58 = vrot.slane %v3029_v33, 5  ;;  %v2567_v62 = vld [vmem:[%s2714_s10 + $0x34] sm:$0xf0]  ;;  %v1524_v63 = vshrl.u32 %v2390_v55, 16 }
  0x6b   : > { %545 = vmatmul.bf16.gmra.mxu1 %v2013_v17  ;;  %1095 = vmatmul.bf16.gmra.mxu0 %v1023_v1  ;;  %v2566_v17 = vld [vmem:[%s2714_s10 + $0x24] sm:$0xf0]  ;;  %v1513_v1 = vshll.u32 %v2388_v6, 16  ;;  %v1700_v56 = vsel %vm2761_vm5, %v2451_v10, %v1699_v15  ;;  %v1742_v37 = vunpack.c.l.b16 %v1696_v7  ;;  %v1527_v44 = vshll.u32 %v2390_v55, 16  ;;  %v3184_v15 = vld [vmem:[%s2714_s10 + $0x44] sm:$0x1] }
  0x6c   : > { %v2337_v26 = vor.u32 %v2566_v17, %v2336_v16  ;;  %v1743_v38 = vunpack.c.l.b16 %v1700_v56  ;;  %v1538_v0 = vshrl.u32 %v2392_v18, 16  ;;  %v1541_v46 = vshll.u32 %v2392_v18, 16  ;;  %v3187_v16 = vld [vmem:[%s2714_s10 + $0x4c] sm:$0x1] }
  0x6d   : > { %1640 = vmatmul.bf16.vlgmr.msrb.gmra.mxu3 %v1576_v31  ;;  %v1515_v25 = vrot.slane %v1513_v1, 5  ;;  %v1505_v31 = vshll.u32 %v3154_v29, 16  ;;  %v1157_v6 = vsel %vm2761_vm5, %v2254_v45, %v1156_v58  ;;  %v1161_v33 = vsel %vm2761_vm5, %v2255_v59, %v1160_v61  ;;  %v2447_v61 = vld [vmem:[%s2714_s10 + $0x38] sm:$0xe] }
  0x6e   : > { %1394 = vmatmul.bf16.vlgmr.msrb.gmra.mxu2 %v2333_v36  ;;  %v1512_v36 = vrot.slane %v1510_v5, 4  ;;  %v1750_v48 = vpack.c.b16 %v1743_v38, %v1742_v37  ;;  %v1191_v13 = vunpack.c.l.b16 %v1157_v6  ;;  %v1192_v39 = vunpack.c.l.b16 %v1161_v33  ;;  %v2248_v38 = vld [vmem:[%s2714_s10 + $0x38] sm:$0xe] }
  0x6f   : > { %v1507_v41 = vrot.slane %v1505_v31, 5  ;;  %v1526_v5 = vrot.slane %v1524_v63, 4  ;;  %v1540_v17 = vrot.slane %v1538_v0, 4  ;;  %v1543_v1 = vrot.slane %v1541_v46, 5  ;;  %v2449_v63 = vld [vmem:[%s2714_s10 + $0x48] sm:$0xe] }
  0x70   : > { %v1516_v34 = vor.u32 %v1515_v25, %v1512_v36  ;;  %v2452_v19 = vrot.slane %v2444_v4, 9  ;;  %v3189_v20 = vpack.c.b16 %v1192_v39, %v1191_v13  ;;  %v1703_v10 = vrot.slane %v3114_v22, 5 }
  0x71   : > { %v1508_v51 = vsel %vm2752_vm4, %v1503_v40, %v1507_v41  ;;  %v2453_v24 = vrot.slane %v2445_v11, 9  ;;  %v1707_v32 = vrot.slane %v3117_v23, 5  ;;  %v1533_v25 = vshll.u32 %v3184_v15, 16  ;;  %v2249_v40 = vld [vmem:[%s2714_s10 + $0x40] sm:$0xe] }
  0x72   : > { %v1517_v27 = vrot.slane %v1516_v34, 4  ;;  %v1572_v2 = vunpack.c.l.b16 %v1508_v51  ;;  %v1704_v7 = vsel %vm2761_vm5, %v2452_v19, %v1703_v10  ;;  %v2256_v41 = vrot.slane %v2248_v38, 9  ;;  %v2568_v51 = vld [vmem:[%s2714_s10 + $0x44] sm:$0xf0] }
  0x73   : > { %v1708_v22 = vsel %vm2761_vm5, %v2453_v24, %v1707_v32  ;;  %v1535_v23 = vrot.slane %v1533_v25, 5  ;;  %v1744_v31 = vunpack.c.l.b16 %v1704_v7  ;;  %v1711_v0 = vrot.slane %v3154_v29, 5 }
  0x74   : > { %v1522_v52 = vsel %vm2752_vm4, %v1517_v27, %v1521_v43  ;;  %v1745_v34 = vunpack.c.l.b16 %v1708_v22  ;;  %v1164_v27 = vrot.slane %v3085_v42, 5  ;;  %v2257_v43 = vrot.slane %v2249_v40, 9  ;;  %v2446_v42 = vld [vmem:[%s2714_s10 + $0x30] sm:$0xe] }
  0x75   : > { %v1573_v3 = vunpack.c.l.b16 %v1522_v52  ;;  %v2455_v46 = vrot.slane %v2447_v61, 9  ;;  %v1723_v4 = vrot.slane %v3187_v16, 5  ;;  %v2457_v33 = vrot.slane %v2449_v63, 9 }
  0x76   : > { %v1751_v52 = vpack.c.b16 %v1745_v34, %v1744_v31  ;;  %v1165_v53 = vsel %vm2761_vm5, %v2256_v41, %v1164_v27 }
  0x77   : > { %v1578_v21 = vpack.c.b16 %v1573_v3, %v1572_v2  ;;  %v1193_v45 = vunpack.c.l.b16 %v1165_v53  ;;  %v1715_v2 = vrot.slane %v3157_v47, 5  ;;  %v1719_v3 = vrot.slane %v3184_v15, 5 }
  0x78   : > { %v1724_v29 = vsel %vm2761_vm5, %v2457_v33, %v1723_v4 }
  0x7b   : > { %550 = vmatmul.bf16.gmra.mxu1 %v2017_v28  ;;  %1100 = vmatmul.bf16.gmra.mxu0 %v1024_v14  ;;  %v1529_v28 = vrot.slane %v1527_v44, 5  ;;  %v2341_v14 = vor.u32 %v2567_v62, %v2340_v50  ;;  %v2344_v50 = vld [vmem:[%s2714_s10 + $0x40] sm:$0xf]  ;;  %v2454_v44 = vrot.slane %v2446_v42, 9 }
  0x7c   : > { %v2345_v59 = vor.u32 %v2568_v51, %v2344_v50  ;;  %v2448_v62 = vld [vmem:[%s2714_s10 + $0x40] sm:$0xe] }
  0x7d   : > { %1645 = vmatmul.bf16.gmra.mxu3 %v1577_v30  ;;  %v1530_v36 = vor.u32 %v1529_v28, %v1526_v5  ;;  %v1547_v30 = vshll.u32 %v3187_v16, 16  ;;  %v2456_v6 = vrot.slane %v2448_v62, 9  ;;  %v1712_v11 = vsel %vm2761_vm5, %v2454_v44, %v1711_v0 }
  0x7e   : > { %1399 = vmatmul.bf16.gmra.mxu2 %v2337_v26  ;;  %v1544_v26 = vor.u32 %v1543_v1, %v1540_v17  ;;  %v1746_v47 = vunpack.c.l.b16 %v1712_v11  ;;  %v1749_v28 = vunpack.c.l.b16 %v1724_v29 }
  0x7f   : > { %v1549_v12 = vrot.slane %v1547_v30, 5  ;;  %v1720_v13 = vsel %vm2761_vm5, %v2456_v6, %v1719_v3 }
  0x80   : > { %v1545_v56 = vrot.slane %v1544_v26, 4  ;;  %v1748_v5 = vunpack.c.l.b16 %v1720_v13 }
  0x82   : > { %v1550_v37 = vsel %vm2752_vm4, %v1545_v56, %v1549_v12  ;;  %v1753_v17 = vpack.c.b16 %v1749_v28, %v1748_v5 }
  0x83   : > { %v1575_v55 = vunpack.c.l.b16 %v1550_v37 }
  0x8b   : > { %1259 = vmatmul.bf16.vlgmr.msra.gmra.mxu1 %v3109_v8  ;;  %1814 = vmatmul.bf16.vlgmr.msra.gmra.mxu0 %v1750_v48  ;;  %v1531_v8 = vrot.slane %v1530_v36, 4  ;;  %v1168_v48 = vrot.slane %v3098_v60, 5 }
  0x8d   : > { %1650 = vmatmul.bf16.gmra.mxu3 %v1578_v21  ;;  %v1536_v35 = vsel %vm2752_vm4, %v1531_v8, %v1535_v23  ;;  %v1169_v49 = vsel %vm2761_vm5, %v2257_v43, %v1168_v48 }
  0x8e   : > { %1404 = vmatmul.bf16.gmra.mxu2 %v2341_v14  ;;  %v1574_v54 = vunpack.c.l.b16 %v1536_v35  ;;  %v1194_v58 = vunpack.c.l.b16 %v1169_v49 }
  0x90   : > { %v1198_v18 = vpack.c.b16 %v1194_v58, %v1193_v45  ;;  %v1579_v60 = vpack.c.b16 %v1575_v55, %v1574_v54 }
  0x9b   : > { %1264 = vmatmul.bf16.gmra.mxu1 %v3148_v9  ;;  %1819 = vmatmul.bf16.gmra.mxu0 %v1751_v52  ;;  %v1716_v9 = vsel %vm2761_vm5, %v2455_v46, %v1715_v2 }
  0x9c   : > { %v1747_v39 = vunpack.c.l.b16 %v1716_v9 }
  0x9d   : > { %1655 = vmatmul.bf16.gmra.mxu3 %v1579_v60 }
  0x9e   : > { %1409 = vmatmul.bf16.gmra.mxu2 %v2345_v59  ;;  %v1752_v14 = vpack.c.b16 %v1747_v39, %v1746_v47 }
  0xa8   : > { %v445_v15 = vpop.f32.mrf.mxu1  ;;  %v435_v16 = vpop.f32.mrf.mxu0 }
  0xab   : > { %1269 = vmatmul.bf16.gmra.mxu1 %v3189_v20  ;;  %1824 = vmatmul.bf16.gmra.mxu0 %v1752_v14 }
  0xae   : > { %1829 = vmatmul.bf16.vlgmr.msra.gmra.mxu2 %v1753_v17 }
  0xb0   : > { %v447_v19 = vpop.f32.mrf.mxu1  ;;  %v437_v21 = vpop.f32.mrf.mxu0 }
  0xb1   : > { %v705_v1 = vpop.f32.mrf.mxu2  ;;  %v840_v10 = vpop.f32.mrf.mxu3 }
  0xb8   : > { %v450_v32 = vpop.f32.mrf.mxu1  ;;  %v440_v57 = vpop.f32.mrf.mxu0 }
  0xb9   : > { %v707_v24 = vpop.f32.mrf.mxu2  ;;  %v3232_v36 = vpop.f32.mrf.mxu3 }
  0xbb   : > { %1274 = vmatmul.bf16.gmra.mxu1 %v1198_v18 }
  0xc0   : > { %v452_v26 = vpop.f32.mrf.mxu1  ;;  %v442_v30 = vpop.f32.mrf.mxu0 }
  0xc1   : > { %v710_v25 = vpop.f32.mrf.mxu2  ;;  %v845_v7 = vpop.f32.mrf.mxu3 }
  0xc8   : > { %v536_v8 = vpop.f32.mrf.mxu1  ;;  %v1086_v23 = vpop.f32.mrf.mxu0 }
  0xc9   : > { %v712_v22 = vpop.f32.mrf.mxu2  ;;  %v537_v20 = vadd.f32 %v536_v8, %v435_v16  ;;  %v3234_v12 = vpop.f32.mrf.mxu3 }
  0xcb   : > { %v725_v56 = vadd.f32 %v705_v1, %v537_v20 }
  0xcd   : > { %v860_v31 = vadd.f32 %v840_v10, %v725_v56 }
  0xcf   : > { %v1106_v34 = vadd.f32 %v1086_v23, %v860_v31 }
  0xd0   : > { %v538_v37 = vpop.f32.mrf.mxu1  ;;  %v1088_v38 = vpop.f32.mrf.mxu0 }
  0xd1   : > { %v715_v35 = vpop.f32.mrf.mxu2  ;;  %v539_v40 = vadd.f32 %v538_v37, %v437_v21  ;;  %v850_v27 = vpop.f32.mrf.mxu3 }
  0xd3   : > { %v726_v41 = vadd.f32 %v707_v24, %v539_v40 }
  0xd8   : > { %v541_v48 = vpop.f32.mrf.mxu1  ;;  %v1091_v50 = vpop.f32.mrf.mxu0 }
  0xd9   : > { %v717_v43 = vpop.f32.mrf.mxu2  ;;  %v542_v51 = vadd.f32 %v541_v48, %v440_v57  ;;  %v3236_v55 = vpop.f32.mrf.mxu3 }
  0xdb   : > { %v727_v52 = vadd.f32 %v710_v25, %v542_v51 }
  0xdd   : > { %v862_v53 = vadd.f32 %v845_v7, %v727_v52 }
  0xdf   : > { %v1108_v49 = vadd.f32 %v1091_v50, %v862_v53 }
  0xe0   : > { %v543_v45 = vpop.f32.mrf.mxu1  ;;  %v3238_v58 = vpop.f32.mrf.mxu0 }
  0xe1   : > { %v720_v54 = vpop.f32.mrf.mxu2  ;;  %v544_v59 = vadd.f32 %v543_v45, %v442_v30  ;;  %v855_v60 = vpop.f32.mrf.mxu3  ;;  %v861_v30 = vadd.f32 %v3232_v36, %v726_v41  ;;  %v3264_v36 = vld [vmem:[%s3307_s3] ss:$0 sm:$0xff] }
  0xe3   : > { %v728_v42 = vadd.f32 %v712_v22, %v544_v59  ;;  %v1107_v22 = vadd.f32 %v1088_v38, %v861_v30 }
  0xe5   : > { %v863_v51 = vadd.f32 %v3234_v12, %v728_v42 }
  0xe8   : > { %v546_v18 = vpop.f32.mrf.mxu1  ;;  %v1096_v62 = vpop.f32.mrf.mxu0 }
  0xe9   : > { %v722_v61 = vpop.f32.mrf.mxu2  ;;  %v547_v63 = vadd.f32 %v546_v18, %v445_v15  ;;  %v3246_v11 = vpop.f32.mrf.mxu3 }
  0xeb   : > { %v729_v44 = vadd.f32 %v715_v35, %v547_v63 }
  0xed   : > { %v864_v0 = vadd.f32 %v850_v27, %v729_v44 }
  0xef   : > { %v3240_v46 = vadd.f32 %v1096_v62, %v864_v0  ;;  %v1109_v62 = vadd.f32 %v3238_v58, %v863_v51 }
  0xf0   : > { %v548_v3 = vpop.f32.mrf.mxu1  ;;  %v3242_v4 = vpop.f32.mrf.mxu0 }
  0xf1   : > { %v1395_v2 = vpop.f32.mrf.mxu2  ;;  %v549_v6 = vadd.f32 %v548_v3, %v447_v19  ;;  %v1641_v28 = vpop.f32.mrf.mxu3 }
  0xf3   : > { %v3244_v33 = vadd.f32 %v717_v43, %v549_v6 }
  0xf8   : > { %v551_v13 = vpop.f32.mrf.mxu1  ;;  %v1101_v29 = vpop.f32.mrf.mxu0 }
  0xf9   : > { %v1397_v9 = vpop.f32.mrf.mxu2  ;;  %v552_v47 = vadd.f32 %v551_v13, %v450_v32  ;;  %v1643_v19 = vpop.f32.mrf.mxu3 }
  0xfb   : > { %v731_v39 = vadd.f32 %v720_v54, %v552_v47 }
  0xfd   : > { %v866_v5 = vadd.f32 %v855_v60, %v731_v39 }
  0xff   : > { %v3248_v14 = vadd.f32 %v1101_v29, %v866_v5  ;;  %v865_v5 = vadd.f32 %v3236_v55, %v3244_v33 }
 0x100   : > { %v553_v16 = vpop.f32.mrf.mxu1  ;;  %v3250_v17 = vpop.f32.mrf.mxu0 }
 0x101   : > { %v1400_v15 = vpop.f32.mrf.mxu2  ;;  %v554_v1 = vadd.f32 %v553_v16, %v452_v26  ;;  %v3258_v26 = vld [vmem:[%s3306_s2] ss:$0 sm:$0xff]  ;;  %v1646_v31 = vpop.f32.mrf.mxu3 }
 0x103   : > { %v3252_v21 = vadd.f32 %v722_v61, %v554_v1 }
 0x108   : > { %v1260_v10 = vpop.f32.mrf.mxu1  ;;  %v1815_v24 = vpop.f32.mrf.mxu0 }
 0x109   : > { %v1280_v57 = vadd.f32 %v1260_v10, %v1106_v34  ;;  %v1402_v25 = vpop.f32.mrf.mxu2  ;;  %v1648_v54 = vpop.f32.mrf.mxu3  ;;  %v1111_v10 = vadd.f32 %v3242_v4, %v865_v5 }
 0x10b   : > { %v1415_v32 = vadd.f32 %v1395_v2, %v1280_v57 }
 0x10d   : > { %v1661_v7 = vadd.f32 %v1641_v28, %v1415_v32 }
 0x10f   : > { %v1835_v20 = vadd.f32 %v1815_v24, %v1661_v7 }
 0x110   : > { %v1262_v8 = vpop.f32.mrf.mxu1  ;;  %v1817_v23 = vpop.f32.mrf.mxu0 }
 0x111   : > { %v1281_v56 = vadd.f32 %v1262_v8, %v1107_v22  ;;  %v1405_v37 = vpop.f32.mrf.mxu2  ;;  %v1847_v34 = vmul.f32 %v3258_v26, %v1835_v20  ;;  %v1651_v3 = vpop.f32.mrf.mxu3 }
 0x113   : > { %v1416_v35 = vadd.f32 %v1397_v9, %v1281_v56  ;;  %v1859_v43 = vadd.f32 %v3264_v36, %v1847_v34 }
 0x115   : > { %v1662_v38 = vadd.f32 %v1643_v19, %v1416_v35  ;;  %v1867_v45 = vmax.f32 %v1859_v43, 0.0  ;;  %v867_v35 = vadd.f32 %v3246_v11, %v3252_v21 }
 0x117   : > { %v1836_v40 = vadd.f32 %v1817_v23, %v1662_v38  ;;  %v1113_v43 = vadd.f32 %v3250_v17, %v867_v35 }
 0x118   : > { %v1265_v41 = vpop.f32.mrf.mxu1  ;;  %v1820_v27 = vpop.f32.mrf.mxu0 }
 0x119   : > { %v1848_v48 = vmul.f32 %v3258_v26, %v1836_v40  ;;  %v1282_v50 = vadd.f32 %v1265_v41, %v1108_v49  ;;  %v1407_v18 = vpop.f32.mrf.mxu2  ;;  %v1653_v57 = vpop.f32.mrf.mxu3 }
 0x11b   : > { %v1860_v52 = vadd.f32 %v3264_v36, %v1848_v48  ;;  %v1417_v53 = vadd.f32 %v1400_v15, %v1282_v50 }
 0x11d   : > { %v1868_v59 = vmax.f32 %v1860_v52, 0.0  ;;  %v1663_v61 = vadd.f32 %v1646_v31, %v1417_v53 }
 0x11f   : > { %v2596_v49 = vpack.c.bf16 %v1868_v59, %v1867_v45  ;;  %v1837_v42 = vadd.f32 %v1820_v27, %v1663_v61 }
 0x120   : > { %v1267_v63 = vpop.f32.mrf.mxu1  ;;  %v1822_v12 = vpop.f32.mrf.mxu0 }
 0x121   : > { %2597 = vst [vmem:[%s3274_s6] sm:$0xff] %v2596_v49   ;;  %v1283_v60 = vadd.f32 %v1267_v63, %v1109_v62  ;;  %v1849_v0 = vmul.f32 %v3258_v26, %v1837_v42  ;;  %v1410_v9 = vpop.f32.mrf.mxu2  ;;  %v1656_v31 = vpop.f32.mrf.mxu3 }
 0x123   : > { %v1418_v44 = vadd.f32 %v1402_v25, %v1283_v60  ;;  %v1861_v29 = vadd.f32 %v3264_v36, %v1849_v0 }
 0x125   : > { %v1664_v2 = vadd.f32 %v1648_v54, %v1418_v44  ;;  %v1869_v16 = vmax.f32 %v1861_v29, 0.0 }
 0x127   : > { %v1838_v6 = vadd.f32 %v1822_v12, %v1664_v2 }
 0x128   : > { %v1270_v13 = vpop.f32.mrf.mxu1  ;;  %v1825_v39 = vpop.f32.mrf.mxu0 }
 0x129   : > { %v1850_v47 = vmul.f32 %v3258_v26, %v1838_v6  ;;  %v1284_v58 = vadd.f32 %v1270_v13, %v3240_v46  ;;  %v1412_v7 = vpop.f32.mrf.mxu2  ;;  %v1658_v53 = vpop.f32.mrf.mxu3 }
 0x12b   : > { %v1862_v28 = vadd.f32 %v3264_v36, %v1850_v47  ;;  %v1419_v15 = vadd.f32 %v1405_v37, %v1284_v58 }
 0x12d   : > { %v1870_v1 = vmax.f32 %v1862_v28, 0.0  ;;  %v1665_v19 = vadd.f32 %v1651_v3, %v1419_v15 }
 0x12f   : > { %v2601_v24 = vpack.c.bf16 %v1870_v1, %v1869_v16  ;;  %v1839_v30 = vadd.f32 %v1825_v39, %v1665_v19 }
 0x130   : > { %v1272_v25 = vpop.f32.mrf.mxu1  ;;  %v1827_v22 = vpop.f32.mrf.mxu0 }
 0x131   : > { %2613 = vst [vmem:[%s3274_s6 + $0x8] sm:$0xff] %v2601_v24   ;;  %v1285_v32 = vadd.f32 %v1272_v25, %v1111_v10  ;;  %v1851_v8 = vmul.f32 %v3258_v26, %v1839_v30  ;;  %v1830_v38 = vpop.f32.mrf.mxu2 }
 0x133   : > { %v1420_v46 = vadd.f32 %v1407_v18, %v1285_v32  ;;  %v1863_v20 = vadd.f32 %v3264_v36, %v1851_v8 }
 0x135   : > { %v1666_v55 = vadd.f32 %v1653_v57, %v1420_v46  ;;  %v1871_v40 = vmax.f32 %v1863_v20, 0.0 }
 0x137   : > { %v1840_v33 = vadd.f32 %v1827_v22, %v1666_v55 }
 0x138   : > { %v1275_v23 = vpop.f32.mrf.mxu1 }
 0x139   : > { %v1852_v56 = vmul.f32 %v3258_v26, %v1840_v33  ;;  %v1286_v4 = vadd.f32 %v1275_v23, %v3248_v14  ;;  %v1832_v21 = vpop.f32.mrf.mxu2 }
 0x13b   : > { %v1864_v37 = vadd.f32 %v3264_v36, %v1852_v56  ;;  %v1421_v34 = vadd.f32 %v1410_v9, %v1286_v4 }
 0x13d   : > { %v1872_v41 = vmax.f32 %v1864_v37, 0.0  ;;  %v1667_v27 = vadd.f32 %v1656_v31, %v1421_v34 }
 0x13f   : > { %v2606_v48 = vpack.c.bf16 %v1872_v41, %v1871_v40  ;;  %v1841_v51 = vadd.f32 %v1830_v38, %v1667_v27 }
 0x140   : > { %v1277_v50 = vpop.f32.mrf.mxu1 }
 0x141   : > { %2614 = vst [vmem:[%s3274_s6 + $0x10] sm:$0xff] %v2606_v48   ;;  %v1287_v52 = vadd.f32 %v1277_v50, %v1113_v43  ;;  %v1853_v54 = vmul.f32 %v3258_v26, %v1841_v51 }
 0x143   : > { %v1422_v14 = vadd.f32 %v1412_v7, %v1287_v52  ;;  %v1865_v59 = vadd.f32 %v3264_v36, %v1853_v54 }
 0x145   : > { %v1668_v11 = vadd.f32 %v1658_v53, %v1422_v14  ;;  %v1873_v17 = vmax.f32 %v1865_v59, 0.0 }
 0x147   : > { %v1842_v45 = vadd.f32 %v1832_v21, %v1668_v11 }
 0x149   : > { %v1854_v61 = vmul.f32 %v3258_v26, %v1842_v45 }
 0x14b   : > { %v1866_v18 = vadd.f32 %v3264_v36, %v1854_v61 }
 0x14d   : > { %v1874_v62 = vmax.f32 %v1866_v18, 0.0 }
 0x14f   : > { %v2611_v49 = vpack.c.bf16 %v1874_v62, %v1873_v17 }
 0x151   : > { %2615 = vst [vmem:[%s3274_s6 + $0x18] sm:$0xff] %v2611_v49  }
 0x152 PF: > { %s14_s15 = sadd.s32 1, %s2649_s15  }
 0x153   : > { %p11_p4 = scmp.ge.s32.totalorder %s14_s15, 4  }
 0x155   :  { %13 = sbr.rel (!%p11_p4) target bundleno = 1 (0x1), region = 76 }

// kernel: conv_blocks_forward.11
= control target key start
LH: loop header
LB: loop body
LE: loop exit
PB: predicated region body
PF: predicated region fallthrough
CT: control target
= control target key end

     0   :  { %s2668_s15 = smov 0   ;;  %s3296_s0 = inlined_call_operand.vmem [shape: bf16[2,10,10,128], index: 0, kind: input, shape index: {}]   ;;  %s3297_s1 = inlined_call_operand.vmem [shape: bf16[9,128,128], index: 1, kind: input, shape index: {}]   ;;  %s3298_s2 = inlined_call_operand.vmem [shape: f32[1,128], index: 2, kind: input, shape index: {}]   ;;  %s3299_s3 = inlined_call_operand.vmem [shape: f32[1,128], index: 3, kind: input, shape index: {}]   ;;  %s3300_s4 = inlined_call_operand.vmem [shape: bf16[2,64,128], index: 4, kind: output, shape index: {}]  }
   0x1 LB: > { %s1938_s16 = sadd.s32 4294967295, %s2641_s15   ;;  %p1942_p0 = scmp.ge.s32.totalorder %s2641_s15, 1  ;;  %s2641_s15 = sphi %s2668_s15, %s14_s15  }
   0x2   : > { %p162_p1 = scmp.lt.s32.totalorder %s2641_s15, 3 }
   0x4   : > { %p163_p2 = pnand %p1942_p0, %p162_p1 }
   0x5   : > { %p188_p3 = scmp.lt.s32.totalorder (!%p163_p2), %s1938_s16, 1 }
   0x6   : > { %166 = sbr.rel (%p163_p2) target bundleno = 336 (0x150), region = 36 }
   0xb   : > { %v2520_v0 = vld [vmem:[%s3297_s1 + $0x78] sm:$0xff]  ;;  %v2519_v2 = vld [vmem:[%s3297_s1 + $0x70] sm:$0xff]  ;;  %s3306_s16 = smov (!%p188_p3, %s1938_s16), 1  ;;  %v2518_v6 = vld [vmem:[%s3297_s1 + $0x68] sm:$0xff]  ;;  %vm230_vm0 = vsmask.f32 3328 }
   0xc   : > { %v2528_v1 = vld [vmem:[%s3297_s1 + $0xb8] sm:$0xff]  ;;  %2608 = vmatpush.bf16.msra.mxu1 %v2520_v0  ;;  %426 = vmatpush.bf16.msra.mxu0 %v2520_v0  ;;  %v2527_v3 = vld [vmem:[%s3297_s1 + $0xb0] sm:$0xff]  ;;  %s2624_s27 = smul.u32 80, %s3306_s16  ;;  %v2526_v7 = vld [vmem:[%s3297_s1 + $0xa8] sm:$0xff]  ;;  %vm231_vm1 = vsmask.f32 7440 }
   0xd   : > { %696 = vmatpush.bf16.msra.mxu2 %v2528_v1  ;;  %v2540_v4 = vld [vmem:[%s3297_s1 + $0xf8] sm:$0xff]  ;;  %v2539_v5 = vld [vmem:[%s3297_s1 + $0xf0] sm:$0xff]  ;;  %v2517_v11 = vld [vmem:[%s3297_s1 + $0x60] sm:$0xff]  ;;  %vm580_vm2 = vcmask 1042432   ;;  %vm581_vm3 = vcmask 1046532   ;;  %s2500_s29 = sshll.u32 %s3306_s16, 5 }
   0xe   : > { %831 = vmatpush.bf16.msra.mxu3 %v2540_v4  ;;  %s2706_s10 = scalar_lea.vmem %s3296_s0, %s2624_s27  ;;  %v2525_v16 = vld [vmem:[%s3297_s1 + $0xa0] sm:$0xff]  ;;  %v2538_v17 = vld [vmem:[%s3297_s1 + $0xe8] sm:$0xff]  ;;  %v2516_v29 = vld [vmem:[%s3297_s1 + $0x58] sm:$0xff]  ;;  %s3266_s6 = scalar_lea.vmem %s3300_s4, %s2500_s29 }
   0xf   : > { %v202_v8 = vld [vmem:[%s2706_s10 + $0x20] sm:$0xf]  ;;  %v203_v9 = vld [vmem:[%s2706_s10 + $0x28] sm:$0xf]  ;;  %v2711_v10 = vld [vmem:[%s2706_s10 + $0x24] sm:$0x1] }
  0x10   : > { %2609 = vmatpush.bf16.msra.mxu1 %v2519_v2  ;;  %427 = vmatpush.bf16.msra.mxu0 %v2519_v2  ;;  %v2717_v12 = vld [vmem:[%s2706_s10 + $0x2c] sm:$0x1]  ;;  %v290_v13 = vshrl.u32 %v202_v8, 16  ;;  %v293_v14 = vshll.u32 %v202_v8, 16  ;;  %v304_v15 = vshrl.u32 %v203_v9, 16  ;;  %v307_v18 = vshll.u32 %v203_v9, 16  ;;  %vm2744_vm4 = vmor %vm230_vm0, %vm231_vm1 }
  0x11   : > { %697 = vmatpush.bf16.msra.mxu2 %v2527_v3  ;;  %v198_v19 = vld [vmem:[%s2706_s10] sm:$0xf]  ;;  %v299_v22 = vshll.u32 %v2711_v10, 16  ;;  %v199_v24 = vld [vmem:[%s2706_s10 + $0x8] sm:$0xf]  ;;  %v313_v26 = vshll.u32 %v2717_v12, 16  ;;  %vm2753_vm5 = vmor %vm580_vm2, %vm581_vm3 }
  0x12   : > { %832 = vmatpush.bf16.msra.mxu3 %v2539_v5  ;;  %v292_v20 = vrot.slane %v290_v13, 4  ;;  %v295_v21 = vrot.slane %v293_v14, 5  ;;  %v306_v23 = vrot.slane %v304_v15, 4  ;;  %v309_v25 = vrot.slane %v307_v18, 5  ;;  %v222_v27 = vld [vmem:[%s2706_s10 + $0x4] sm:$0x1] }
  0x13   : > { %v223_v28 = vld [vmem:[%s2706_s10 + $0xc] sm:$0x1]  ;;  %v234_v31 = vshrl.u32 %v198_v19, 16  ;;  %v237_v32 = vshll.u32 %v198_v19, 16  ;;  %v2537_v34 = vld [vmem:[%s3297_s1 + $0xe0] sm:$0xff]  ;;  %v243_v35 = vshll.u32 %v222_v27, 16 }
  0x14   : > { %2610 = vmatpush.bf16.msra.mxu1 %v2518_v6  ;;  %428 = vmatpush.bf16.msra.mxu0 %v2518_v6  ;;  %v296_v30 = vor.u32 %v295_v21, %v292_v20  ;;  %v310_v33 = vor.u32 %v309_v25, %v306_v23  ;;  %v248_v36 = vshrl.u32 %v199_v24, 16  ;;  %v251_v37 = vshll.u32 %v199_v24, 16  ;;  %v556_v38 = vld [vmem:[%s2706_s10] sm:$0xe]  ;;  %v557_v43 = vld [vmem:[%s2706_s10 + $0x8] sm:$0xe] }
  0x15   : > { %698 = vmatpush.bf16.msra.mxu2 %v2526_v7  ;;  %v301_v39 = vrot.slane %v299_v22, 5  ;;  %v236_v40 = vrot.slane %v234_v31, 4  ;;  %v239_v41 = vrot.slane %v237_v32, 5  ;;  %v257_v42 = vshll.u32 %v223_v28, 16  ;;  %v2524_v44 = vld [vmem:[%s3297_s1 + $0x98] sm:$0xff]  ;;  %v2515_v60 = vld [vmem:[%s3297_s1 + $0x50] sm:$0xff] }
  0x16   : > { %833 = vmatpush.bf16.msra.mxu3 %v2538_v17  ;;  %v297_v45 = vrot.slane %v296_v30, 4  ;;  %v315_v46 = vrot.slane %v313_v26, 5  ;;  %v250_v47 = vrot.slane %v248_v36, 4  ;;  %v253_v48 = vrot.slane %v251_v37, 5  ;;  %v2536_v56 = vld [vmem:[%s3297_s1 + $0xd8] sm:$0xff]  ;;  %v2523_v0 = vld [vmem:[%s3297_s1 + $0x90] sm:$0xff] }
  0x17   : > { %v311_v50 = vrot.slane %v310_v33, 4  ;;  %v240_v51 = vor.u32 %v239_v41, %v236_v40  ;;  %v2042_v52 = vrot.slane %v556_v38, 9  ;;  %v585_v53 = vrot.slane %v222_v27, 5  ;;  %v204_v59 = vld [vmem:[%s2706_s10 + $0x30] sm:$0xf]  ;;  %v2514_v14 = vld [vmem:[%s3297_s1 + $0x48] sm:$0xff] }
  0x18   : > { %2611 = vmatpush.bf16.msra.mxu1 %v2517_v11  ;;  %429 = vmatpush.bf16.msra.mxu0 %v2517_v11  ;;  %v245_v54 = vrot.slane %v243_v35, 5  ;;  %v254_v55 = vor.u32 %v253_v48, %v250_v47  ;;  %v2043_v58 = vrot.slane %v557_v43, 9  ;;  %v259_v62 = vrot.slane %v257_v42, 5  ;;  %v205_v3 = vld [vmem:[%s2706_s10 + $0x38] sm:$0xf]  ;;  %v2535_v11 = vld [vmem:[%s3297_s1 + $0xd0] sm:$0xff] }
  0x19   : > { %699 = vmatpush.bf16.msra.mxu2 %v2525_v16  ;;  %v241_v61 = vrot.slane %v240_v51, 4  ;;  %v589_v63 = vrot.slane %v223_v28, 5  ;;  %v302_v1 = vsel %vm2744_vm4, %v297_v45, %v301_v39  ;;  %v316_v4 = vsel %vm2744_vm4, %v311_v50, %v315_v46  ;;  %v200_v7 = vld [vmem:[%s2706_s10 + $0x10] sm:$0xf]  ;;  %v2522_v19 = vld [vmem:[%s3297_s1 + $0x88] sm:$0xff]  ;;  %v2513_v24 = vld [vmem:[%s3297_s1 + $0x40] sm:$0xff] }
  0x1a   : > { %834 = vmatpush.bf16.msra.mxu3 %v2537_v34  ;;  %v255_v2 = vrot.slane %v254_v55, 4  ;;  %v586_v5 = vsel %vm2753_vm5, %v2042_v52, %v585_v53  ;;  %v318_v6 = vshrl.u32 %v204_v59, 16  ;;  %v321_v13 = vshll.u32 %v204_v59, 16  ;;  %v201_v22 = vld [vmem:[%s2706_s10 + $0x18] sm:$0xf]  ;;  %v2534_v31 = vld [vmem:[%s3297_s1 + $0xc8] sm:$0xff] }
  0x1b   : > { %v246_v8 = vsel %vm2744_vm4, %v241_v61, %v245_v54  ;;  %v590_v9 = vsel %vm2753_vm5, %v2043_v58, %v589_v63  ;;  %v2782_v15 = vunpack.c.l.b16 %v302_v1  ;;  %v332_v17 = vshrl.u32 %v205_v3, 16  ;;  %v2800_v32 = vld [vmem:[%s2706_s10 + $0x34] sm:$0x1]  ;;  %v2803_v36 = vld [vmem:[%s2706_s10 + $0x3c] sm:$0x1]  ;;  %v2521_v42 = vld [vmem:[%s3297_s1 + $0x80] sm:$0xff] }
  0x1c   : > { %2612 = vmatpush.bf16.msra.mxu1 %v2516_v29  ;;  %430 = vmatpush.bf16.msra.mxu0 %v2516_v29  ;;  %v260_v16 = vsel %vm2744_vm4, %v255_v2, %v259_v62  ;;  %v367_v18 = vunpack.c.l.b16 %v316_v4  ;;  %v632_v20 = vunpack.c.l.b16 %v586_v5  ;;  %v335_v21 = vshll.u32 %v205_v3, 16  ;;  %v2512_v29 = vld [vmem:[%s3297_s1 + $0x38] sm:$0xff]  ;;  %v2810_v43 = vld [vmem:[%s2706_s10 + $0x14] sm:$0x1]  ;;  %v2533_v58 = vld [vmem:[%s3297_s1 + $0xc0] sm:$0xff] }
  0x1d   : > { %700 = vmatpush.bf16.msra.mxu2 %v2524_v44  ;;  %v262_v23 = vshrl.u32 %v200_v7, 16  ;;  %v362_v25 = vunpack.c.l.b16 %v246_v8  ;;  %v633_v26 = vunpack.c.l.b16 %v590_v9  ;;  %v320_v27 = vrot.slane %v318_v6, 4  ;;  %v2813_v44 = vld [vmem:[%s2706_s10 + $0x1c] sm:$0x1]  ;;  %v2511_v52 = vld [vmem:[%s3297_s1 + $0x30] sm:$0xff] }
  0x1e   : > { %835 = vmatpush.bf16.msra.mxu3 %v2536_v56  ;;  %v265_v28 = vshll.u32 %v200_v7, 16  ;;  %v363_v30 = vunpack.c.l.b16 %v260_v16  ;;  %v323_v33 = vrot.slane %v321_v13, 5  ;;  %v334_v34 = vrot.slane %v332_v17, 4  ;;  %v2548_v45 = vld [vmem:[%s3297_s1 + $0x138] sm:$0xff]  ;;  %v2547_v59 = vld [vmem:[%s3297_s1 + $0x130] sm:$0xff] }
  0x1f   : > { %v337_v35 = vrot.slane %v335_v21, 5  ;;  %v264_v37 = vrot.slane %v262_v23, 4  ;;  %v276_v39 = vshrl.u32 %v201_v22, 16  ;;  %v279_v40 = vshll.u32 %v201_v22, 16  ;;  %v2568_v48 = vld [vmem:[%s3297_s1 + $0x1b8] sm:$0xff]  ;;  %v2567_v6 = vld [vmem:[%s3297_s1 + $0x1b0] sm:$0xff] }
  0x20   : > { %2613 = vmatpush.bf16.msra.mxu1 %v2515_v60  ;;  %431 = vmatpush.bf16.msra.mxu0 %v2515_v60  ;;  %v267_v38 = vrot.slane %v265_v28, 5  ;;  %v372_v41 = vpack.c.b16 %v367_v18, %v2782_v15  ;;  %v640_v46 = vpack.c.b16 %v633_v26, %v632_v20  ;;  %v327_v47 = vshll.u32 %v2800_v32, 16  ;;  %v2529_v1 = vld [vmem:[%s2706_s10 + $0xc] sm:$0xf0]  ;;  %v2576_v2 = vld [vmem:[%s3297_s1 + $0x1f8] sm:$0xff]  ;;  %v2566_v26 = vld [vmem:[%s3297_s1 + $0x1a8] sm:$0xff] }
  0x21   : > { %701 = vmatpush.bf16.msra.mxu2 %v2523_v0  ;;  %v278_v50 = vrot.slane %v276_v39, 4  ;;  %v281_v51 = vrot.slane %v279_v40, 5  ;;  %v370_v53 = vpack.c.b16 %v363_v30, %v362_v25  ;;  %v324_v54 = vor.u32 %v323_v33, %v320_v27  ;;  %v2124_v0 = vld [vmem:[%s2706_s10 + $0x8] sm:$0xf]  ;;  %v558_v4 = vld [vmem:[%s2706_s10 + $0x10] sm:$0xe] }
  0x22   : > { %836 = vmatpush.bf16.msra.mxu3 %v2535_v11  ;;  %v338_v55 = vor.u32 %v337_v35, %v334_v34  ;;  %v341_v56 = vshll.u32 %v2803_v36, 16  ;;  %v268_v60 = vor.u32 %v267_v38, %v264_v37  ;;  %v271_v61 = vshll.u32 %v2810_v43, 16  ;;  %v559_v5 = vld [vmem:[%s2706_s10 + $0x18] sm:$0xe]  ;;  %v2170_v13 = vld [vmem:[%s2706_s10 + $0x8] sm:$0xf] }
  0x23   : > { %v282_v62 = vor.u32 %v281_v51, %v278_v50  ;;  %v285_v63 = vshll.u32 %v2813_v44, 16  ;;  %v329_v3 = vrot.slane %v327_v47, 5  ;;  %v325_v7 = vrot.slane %v324_v54, 4  ;;  %v2172_v18 = vld [vmem:[%s2706_s10 + $0x10] sm:$0xf]  ;;  %v2546_v25 = vld [vmem:[%s3297_s1 + $0x128] sm:$0xff] }
  0x24   : > { %2614 = vmatpush.bf16.msra.mxu1 %v2514_v14  ;;  %432 = vmatpush.bf16.msra.mxu0 %v2514_v14  ;;  %v339_v8 = vrot.slane %v338_v55, 4  ;;  %v343_v9 = vrot.slane %v341_v56, 5  ;;  %v2125_v11 = vor.u32 %v2529_v1, %v2124_v0  ;;  %v269_v14 = vrot.slane %v268_v60, 4  ;;  %v2509_v37 = vld [vmem:[%s3297_s1 + $0x20] sm:$0xff]  ;;  %v2574_v40 = vld [vmem:[%s3297_s1 + $0x1e8] sm:$0xff]  ;;  %v2508_v55 = vld [vmem:[%s3297_s1 + $0x18] sm:$0xff] }
  0x25   : > { %702 = vmatpush.bf16.msra.mxu2 %v2522_v19  ;;  %v273_v15 = vrot.slane %v271_v61, 5  ;;  %v283_v16 = vrot.slane %v282_v62, 4  ;;  %v287_v17 = vrot.slane %v285_v63, 5  ;;  %v2510_v19 = vld [vmem:[%s3297_s1 + $0x28] sm:$0xff]  ;;  %v2044_v20 = vrot.slane %v558_v4, 9 }
  0x26   : > { %837 = vmatpush.bf16.msra.mxu3 %v2534_v31  ;;  %v593_v21 = vrot.slane %v2810_v43, 5  ;;  %v2045_v22 = vrot.slane %v559_v5, 9  ;;  %v597_v23 = vrot.slane %v2813_v44, 5  ;;  %v330_v27 = vsel %vm2744_vm4, %v325_v7, %v329_v3  ;;  %v2545_v43 = vld [vmem:[%s3297_s1 + $0x120] sm:$0xff]  ;;  %v2885_v47 = vld [vmem:[%s2706_s10 + $0xc] sm:$0x1] }
  0x27   : > { %v344_v28 = vsel %vm2744_vm4, %v339_v8, %v343_v9  ;;  %v888_v30 = vshll.u32 %v2170_v13, 16  ;;  %v274_v31 = vsel %vm2744_vm4, %v269_v14, %v273_v15  ;;  %v288_v33 = vsel %vm2744_vm4, %v283_v16, %v287_v17  ;;  %v2565_v44 = vld [vmem:[%s3297_s1 + $0x1a0] sm:$0xff]  ;;  %v2891_v56 = vld [vmem:[%s2706_s10 + $0x14] sm:$0x1]  ;;  %v2128_v62 = vld [vmem:[%s2706_s10 + $0x18] sm:$0xf] }
  0x28   : > { %2615 = vmatpush.bf16.msra.mxu1 %v2513_v24  ;;  %433 = vmatpush.bf16.msra.mxu0 %v2513_v24  ;;  %v2575_v24 = vld [vmem:[%s3297_s1 + $0x1f0] sm:$0xff]  ;;  %v899_v34 = vshrl.u32 %v2172_v18, 16  ;;  %v902_v35 = vshll.u32 %v2172_v18, 16  ;;  %v594_v38 = vsel %vm2753_vm5, %v2044_v20, %v593_v21  ;;  %v598_v39 = vsel %vm2753_vm5, %v2045_v22, %v597_v23  ;;  %v2530_v63 = vld [vmem:[%s2706_s10 + $0x1c] sm:$0xf0]  ;;  %v2564_v17 = vld [vmem:[%s3297_s1 + $0x198] sm:$0xff] }
  0x29   : > { %703 = vmatpush.bf16.msra.mxu2 %v2521_v42  ;;  %v369_v42 = vunpack.c.l.b16 %v344_v28  ;;  %v890_v50 = vrot.slane %v888_v30, 5  ;;  %v634_v51 = vunpack.c.l.b16 %v594_v38  ;;  %v560_v1 = vld [vmem:[%s2706_s10 + $0x20] sm:$0xe]  ;;  %v908_v4 = vshll.u32 %v2891_v56, 16  ;;  %v561_v5 = vld [vmem:[%s2706_s10 + $0x28] sm:$0xe] }
  0x2a   : > { %838 = vmatpush.bf16.msra.mxu3 %v2533_v58  ;;  %v904_v54 = vrot.slane %v902_v35, 5  ;;  %v2544_v58 = vld [vmem:[%s3297_s1 + $0x118] sm:$0xff]  ;;  %v2543_v7 = vld [vmem:[%s3297_s1 + $0x110] sm:$0xff]  ;;  %v2129_v8 = vor.u32 %v2530_v63, %v2128_v62  ;;  %v601_v14 = vrot.slane %v2711_v10, 5  ;;  %v2047_v15 = vrot.slane %v561_v5, 9  ;;  %v2573_v21 = vld [vmem:[%s3297_s1 + $0x1e0] sm:$0xff] }
  0x2b   : > { %444 = vmatmul.bf16.vlgmr.msra.gmra.mxu1 %v372_v41  ;;  %434 = vmatmul.bf16.vlgmr.msra.gmra.mxu0 %v370_v53  ;;  %v368_v41 = vunpack.c.l.b16 %v330_v27  ;;  %v901_v53 = vrot.slane %v899_v34, 4  ;;  %v605_v16 = vrot.slane %v2717_v12, 5  ;;  %v2174_v20 = vld [vmem:[%s2706_s10 + $0x18] sm:$0xf]  ;;  %v2506_v10 = vld [vmem:[%s3297_s1 + $0x8] sm:$0xff]  ;;  %v2563_v23 = vld [vmem:[%s3297_s1 + $0x190] sm:$0xff] }
  0x2c   : > { %527 = vmatpush.bf16.msrb.mxu1 %v2512_v29  ;;  %1077 = vmatpush.bf16.msrb.mxu0 %v2548_v45  ;;  %v885_v29 = vshrl.u32 %v2170_v13, 16  ;;  %v364_v45 = vunpack.c.l.b16 %v274_v31  ;;  %v2176_v22 = vld [vmem:[%s2706_s10 + $0x20] sm:$0xf]  ;;  %v2542_v12 = vld [vmem:[%s3297_s1 + $0x108] sm:$0xff]  ;;  %v913_v28 = vshrl.u32 %v2174_v20, 16  ;;  %v916_v30 = vshll.u32 %v2174_v20, 16 }
  0x2d   : > { %1386 = vmatpush.bf16.msrb.mxu2 %v2568_v48  ;;  %839 = vmatmul.bf16.vlgmr.msra.gmra.mxu3 %v2125_v11  ;;  %v373_v60 = vpack.c.b16 %v369_v42, %v368_v41  ;;  %v905_v3 = vor.u32 %v904_v54, %v901_v53  ;;  %v2046_v11 = vrot.slane %v560_v1, 9  ;;  %v606_v27 = vsel %vm2753_vm5, %v2047_v15, %v605_v16  ;;  %v2505_v34 = vld [vmem:[%s3297_s1] sm:$0xff]  ;;  %v2555_v53 = vld [vmem:[%s3297_s1 + $0x170] sm:$0xff]  ;;  %v563_v5 = vld [vmem:[%s2706_s10 + $0x38] sm:$0xe] }
  0x2e   : > { %704 = vmatmul.bf16.vlgmr.msra.gmra.mxu2 %v640_v46  ;;  %1632 = vmatpush.bf16.msrb.mxu3 %v2576_v2  ;;  %v365_v46 = vunpack.c.l.b16 %v288_v33  ;;  %v887_v48 = vrot.slane %v885_v29, 4  ;;  %v927_v31 = vshrl.u32 %v2176_v22, 16  ;;  %v930_v33 = vshll.u32 %v2176_v22, 16  ;;  %v1996_v35 = vld [vmem:[%s2706_s10] sm:$0xf]  ;;  %v2971_v1 = vld [vmem:[%s3297_s1 + $0x230] sm:$0xff] }
  0x2f   : > { %v906_v18 = vrot.slane %v905_v3, 4  ;;  %v2541_v38 = vld [vmem:[%s3297_s1 + $0x100] sm:$0xff]  ;;  %v2531_v62 = vld [vmem:[%s2706_s10 + $0x2c] sm:$0xf0]  ;;  %v2178_v3 = vld [vmem:[%s2706_s10 + $0x28] sm:$0xf] }
  0x30   : > { %528 = vmatpush.bf16.msrb.mxu1 %v2511_v52  ;;  %1078 = vmatpush.bf16.msrb.mxu0 %v2547_v59  ;;  %v635_v52 = vunpack.c.l.b16 %v598_v39  ;;  %v894_v59 = vshll.u32 %v2885_v47, 16  ;;  %v371_v61 = vpack.c.b16 %v365_v46, %v364_v45  ;;  %v891_v0 = vor.u32 %v890_v50, %v887_v48  ;;  %v2501_v39 = vld [vmem:[%s2706_s10 + $0x4] sm:$0xf0]  ;;  %v2955_v45 = vld [vmem:[%s3297_s1 + $0x238] sm:$0xff]  ;;  %v2958_v46 = vld [vmem:[%s2706_s10 + $0x24] sm:$0x1] }
  0x31   : > { %1387 = vmatpush.bf16.msrb.mxu2 %v2567_v6  ;;  %v2507_v6 = vld [vmem:[%s3297_s1 + $0x10] sm:$0xff]  ;;  %v915_v48 = vrot.slane %v913_v28, 4  ;;  %v918_v50 = vrot.slane %v916_v30, 5  ;;  %v1997_v54 = vor.u32 %v2501_v39, %v1996_v35  ;;  %v941_v15 = vshrl.u32 %v2178_v3, 16  ;;  %v2561_v22 = vld [vmem:[%s3297_s1 + $0x180] sm:$0xff] }
  0x32   : > { %1633 = vmatpush.bf16.msrb.mxu3 %v2575_v24  ;;  %v641_v2 = vpack.c.b16 %v635_v52, %v634_v51  ;;  %v896_v9 = vrot.slane %v894_v59, 5  ;;  %v892_v13 = vrot.slane %v891_v0, 4  ;;  %v2572_v24 = vld [vmem:[%s3297_s1 + $0x1d8] sm:$0xff]  ;;  %v929_v51 = vrot.slane %v927_v31, 4  ;;  %v3011_v28 = vld [vmem:[%s3297_s1 + $0x220] sm:$0xff] }
  0x33   : > { %v932_v52 = vrot.slane %v930_v33, 5  ;;  %v936_v59 = vshll.u32 %v2958_v46, 16  ;;  %v919_v63 = vor.u32 %v918_v50, %v915_v48  ;;  %v944_v16 = vshll.u32 %v2178_v3, 16  ;;  %v2552_v31 = vld [vmem:[%s3297_s1 + $0x158] sm:$0xff]  ;;  %v3021_v33 = vld [vmem:[%s2706_s10 + $0x2c] sm:$0x1] }
  0x34   : > { %529 = vmatpush.bf16.msrb.mxu1 %v2510_v19  ;;  %1079 = vmatpush.bf16.msrb.mxu0 %v2546_v25  ;;  %v910_v19 = vrot.slane %v908_v4, 5  ;;  %v897_v25 = vsel %vm2744_vm4, %v892_v13, %v896_v9  ;;  %v562_v4 = vld [vmem:[%s2706_s10 + $0x30] sm:$0xe]  ;;  %v609_v20 = vrot.slane %v2800_v32, 5  ;;  %v2570_v32 = vld [vmem:[%s3297_s1 + $0x1c8] sm:$0xff] }
  0x35   : > { %1388 = vmatpush.bf16.msrb.mxu2 %v2566_v26  ;;  %v602_v26 = vsel %vm2753_vm5, %v2046_v11, %v601_v14  ;;  %v933_v0 = vor.u32 %v932_v52, %v929_v51  ;;  %v938_v9 = vrot.slane %v936_v59, 5  ;;  %v2180_v11 = vld [vmem:[%s2706_s10 + $0x30] sm:$0xf]  ;;  %v920_v13 = vrot.slane %v919_v63, 4  ;;  %v3024_v39 = vld [vmem:[%s2706_s10 + $0x34] sm:$0x1] }
  0x36   : > { %1634 = vmatpush.bf16.msrb.mxu3 %v2574_v40  ;;  %v911_v29 = vsel %vm2744_vm4, %v906_v18, %v910_v19  ;;  %v1013_v40 = vunpack.c.l.b16 %v897_v25  ;;  %v636_v42 = vunpack.c.l.b16 %v602_v26  ;;  %v2990_v18 = vld [vmem:[%s3297_s1 + $0x228] sm:$0xff]  ;;  %v2048_v19 = vrot.slane %v562_v4, 9  ;;  %v2372_v51 = vld [vmem:[%s2706_s10 + $0x18] sm:$0xf]  ;;  %v2532_v63 = vld [vmem:[%s2706_s10 + $0x3c] sm:$0xf0] }
  0x37   : > { %v1014_v41 = vunpack.c.l.b16 %v911_v29  ;;  %v934_v14 = vrot.slane %v933_v0, 4  ;;  %v943_v26 = vrot.slane %v941_v15, 4  ;;  %v950_v52 = vshll.u32 %v3021_v33, 16  ;;  %v2182_v0 = vld [vmem:[%s2706_s10 + $0x38] sm:$0xf] }
  0x38   : > { %530 = vmatpush.bf16.msrb.mxu1 %v2509_v37  ;;  %1080 = vmatpush.bf16.msrb.mxu0 %v2545_v43  ;;  %v2556_v37 = vld [vmem:[%s3297_s1 + $0x178] sm:$0xff]  ;;  %v637_v43 = vunpack.c.l.b16 %v606_v27  ;;  %v946_v27 = vrot.slane %v944_v16, 5  ;;  %v610_v29 = vsel %vm2753_vm5, %v2048_v19, %v609_v20  ;;  %v964_v59 = vshll.u32 %v3024_v39, 16  ;;  %v2184_v16 = vld [vmem:[%s2706_s10 + $0x40] sm:$0xf] }
  0x39   : > { %1389 = vmatpush.bf16.msrb.mxu2 %v2565_v44  ;;  %v2950_v44 = vld [vmem:[%s2706_s10 + $0x1c] sm:$0x1]  ;;  %v939_v25 = vsel %vm2744_vm4, %v934_v14, %v938_v9  ;;  %v2569_v19 = vld [vmem:[%s3297_s1 + $0x1c0] sm:$0xff]  ;;  %v972_v20 = vshll.u32 %v2182_v0, 16 }
  0x3a   : > { %1635 = vmatpush.bf16.msrb.mxu3 %v2573_v21  ;;  %v2049_v21 = vrot.slane %v563_v5, 9  ;;  %v947_v50 = vor.u32 %v946_v27, %v943_v26  ;;  %v3042_v5 = vld [vmem:[%s2706_s10 + $0x14] sm:$0x1]  ;;  %v966_v15 = vrot.slane %v964_v59, 5 }
  0x3b   : > { %449 = vmatmul.bf16.gmra.mxu1 %v373_v60  ;;  %439 = vmatmul.bf16.gmra.mxu0 %v371_v61  ;;  %v642_v60 = vpack.c.b16 %v637_v43, %v636_v42  ;;  %v2132_v61 = vld [vmem:[%s2706_s10 + $0x28] sm:$0xf]  ;;  %v2502_v42 = vld [vmem:[%s2706_s10 + $0x14] sm:$0xf0]  ;;  %v638_v43 = vunpack.c.l.b16 %v610_v29  ;;  %v3064_v27 = vld [vmem:[%s3297_s1 + $0x210] sm:$0xff] }
  0x3c   : > { %531 = vmatpush.bf16.msrb.mxu1 %v2508_v55  ;;  %1081 = vmatpush.bf16.msrb.mxu0 %v2544_v58  ;;  %v1021_v55 = vpack.c.b16 %v1014_v41, %v1013_v40  ;;  %v922_v58 = vshll.u32 %v2950_v44, 16  ;;  %v2370_v40 = vld [vmem:[%s2706_s10 + $0x10] sm:$0xf]  ;;  %v948_v4 = vrot.slane %v947_v50, 4  ;;  %v2234_v29 = vld [vmem:[%s2706_s10 + $0x8] sm:$0xe] }
  0x3d   : > { %1390 = vmatpush.bf16.msrb.mxu2 %v2564_v17  ;;  %844 = vmatmul.bf16.gmra.mxu3 %v2129_v8  ;;  %v2571_v17 = vld [vmem:[%s3297_s1 + $0x1d0] sm:$0xff] }
  0x3e   : > { %709 = vmatmul.bf16.gmra.mxu2 %v641_v2  ;;  %1636 = vmatpush.bf16.msrb.mxu3 %v2572_v24  ;;  %v2554_v2 = vld [vmem:[%s3297_s1 + $0x168] sm:$0xff]  ;;  %v924_v8 = vrot.slane %v922_v58, 5  ;;  %v958_v24 = vshll.u32 %v2180_v11, 16  ;;  %v2000_v41 = vld [vmem:[%s2706_s10 + $0x10] sm:$0xf] }
  0x40   : > { %532 = vmatpush.bf16.msrb.mxu1 %v2507_v6  ;;  %1082 = vmatpush.bf16.msrb.mxu0 %v2543_v7  ;;  %v2562_v6 = vld [vmem:[%s3297_s1 + $0x188] sm:$0xff]  ;;  %v2133_v7 = vor.u32 %v2531_v62, %v2132_v61  ;;  %v960_v35 = vrot.slane %v958_v24, 5  ;;  %v2001_v61 = vor.u32 %v2502_v42, %v2000_v41  ;;  %v3077_v42 = vld [vmem:[%s2706_s10 + $0x3c] sm:$0x1] }
  0x41   : > { %1391 = vmatpush.bf16.msrb.mxu2 %v2563_v23  ;;  %v955_v23 = vshrl.u32 %v2180_v11, 16 }
  0x42   : > { %1637 = vmatpush.bf16.msrb.mxu3 %v2571_v17  ;;  %v969_v17 = vshrl.u32 %v2182_v0, 16 }
  0x44   : > { %533 = vmatpush.bf16.msrb.mxu1 %v2506_v10  ;;  %1083 = vmatpush.bf16.msrb.mxu0 %v2542_v12  ;;  %v613_v10 = vrot.slane %v2803_v36, 5  ;;  %v2553_v12 = vld [vmem:[%s3297_s1 + $0x160] sm:$0xff]  ;;  %v925_v36 = vsel %vm2744_vm4, %v920_v13, %v924_v8 }
  0x45   : > { %1392 = vmatpush.bf16.msrb.mxu2 %v2562_v6  ;;  %v952_v6 = vrot.slane %v950_v52, 5 }
  0x46   : > { %v614_v30 = vsel %vm2753_vm5, %v2049_v21, %v613_v10  ;;  %1638 = vmatpush.bf16.msrb.mxu3 %v2570_v32  ;;  %v1449_v10 = vshll.u32 %v3042_v5, 16  ;;  %v1144_v32 = vrot.slane %v2891_v56, 5  ;;  %v971_v56 = vrot.slane %v969_v17, 4 }
  0x47   : > { %v639_v48 = vunpack.c.l.b16 %v614_v30 }
  0x48   : > { %534 = vmatpush.bf16.msrb.mxu1 %v2505_v34  ;;  %1084 = vmatpush.bf16.msrb.mxu0 %v2541_v38  ;;  %v957_v34 = vrot.slane %v955_v23, 4  ;;  %v1016_v38 = vunpack.c.l.b16 %v939_v25  ;;  %v1140_v23 = vrot.slane %v2885_v47, 5  ;;  %v986_v25 = vshll.u32 %v2184_v16, 16 }
  0x49   : > { %1393 = vmatpush.bf16.msrb.mxu2 %v2561_v22  ;;  %v643_v3 = vpack.c.b16 %v639_v48, %v638_v43  ;;  %v953_v47 = vsel %vm2744_vm4, %v948_v4, %v952_v6  ;;  %v2324_v4 = vld [vmem:[%s2706_s10 + $0x10] sm:$0xf] }
  0x4a   : > { %v961_v58 = vor.u32 %v960_v35, %v957_v34  ;;  %1639 = vmatpush.bf16.msrb.mxu3 %v2569_v19  ;;  %v2235_v34 = vld [vmem:[%s2706_s10 + $0x10] sm:$0xe]  ;;  %v2242_v35 = vrot.slane %v2234_v29, 9  ;;  %v988_v52 = vrot.slane %v986_v25, 5 }
  0x4b   : > { %535 = vmatmul.bf16.vlgmr.msrb.gmra.mxu1 %v1997_v54  ;;  %1085 = vmatmul.bf16.vlgmr.msrb.gmra.mxu0 %v1021_v55  ;;  %v1443_v54 = vshll.u32 %v2370_v40, 16  ;;  %v1454_v55 = vshrl.u32 %v2372_v51, 16  ;;  %v2243_v41 = vrot.slane %v2235_v34, 9  ;;  %v2577_v34 = vld [vmem:[%s3297_s1 + $0x200] sm:$0xff] }
  0x4c   : > { %1251 = vmatpush.bf16.msra.mxu1 %v2556_v37  ;;  %1806 = vmatpush.bf16.msra.mxu0 %v2955_v45  ;;  %v1015_v37 = vunpack.c.l.b16 %v925_v36  ;;  %v962_v14 = vrot.slane %v961_v58, 4  ;;  %v983_v36 = vshrl.u32 %v2184_v16, 16  ;;  %v1141_v50 = vsel %vm2753_vm5, %v2242_v35, %v1140_v23  ;;  %v3109_v23 = vld [vmem:[%s2706_s10 + $0x2c] sm:$0x1] }
  0x4d   : > { %849 = vmatmul.bf16.gmra.mxu3 %v2133_v7  ;;  %2616 = vmatpush.bf16.msra.mxu2 %v2955_v45  ;;  %v2136_v45 = vld [vmem:[%s2706_s10 + $0x38] sm:$0xf]  ;;  %v3045_v7 = vld [vmem:[%s2706_s10 + $0x1c] sm:$0x1]  ;;  %v1445_v9 = vrot.slane %v1443_v54, 5  ;;  %v1456_v11 = vrot.slane %v1454_v55, 4  ;;  %v1187_v54 = vunpack.c.l.b16 %v1141_v50  ;;  %v1017_v58 = vunpack.c.l.b16 %v953_v47 }
  0x4e   : > { %714 = vmatmul.bf16.gmra.mxu2 %v642_v60  ;;  %v2551_v60 = vld [vmem:[%s3297_s1 + $0x150] sm:$0xff]  ;;  %v1022_v62 = vpack.c.b16 %v1016_v38, %v1015_v37  ;;  %v2137_v13 = vor.u32 %v2532_v63, %v2136_v45  ;;  %v1463_v24 = vshll.u32 %v3045_v7, 16  ;;  %v967_v30 = vsel %vm2744_vm4, %v962_v14, %v966_v15  ;;  %v2004_v55 = vld [vmem:[%s2706_s10 + $0x20] sm:$0xf]  ;;  %v2503_v45 = vld [vmem:[%s2706_s10 + $0x24] sm:$0xf0] }
  0x4f   : > { %v974_v37 = vrot.slane %v972_v20, 5  ;;  %v1018_v59 = vunpack.c.l.b16 %v967_v30  ;;  %v978_v63 = vshll.u32 %v3077_v42, 16  ;;  %v2005_v17 = vor.u32 %v2503_v45, %v2004_v55  ;;  %v2008_v55 = vld [vmem:[%s2706_s10 + $0x30] sm:$0xf] }
  0x50   : > { %1252 = vmatpush.bf16.msra.mxu1 %v2555_v53  ;;  %1807 = vmatpush.bf16.msra.mxu0 %v2971_v1  ;;  %v1440_v53 = vshrl.u32 %v2370_v40, 16  ;;  %v1451_v40 = vrot.slane %v1449_v10, 5  ;;  %v1465_v48 = vrot.slane %v1463_v24, 5 }
  0x51   : > { %2617 = vmatpush.bf16.msra.mxu2 %v2971_v1  ;;  %v2550_v1 = vld [vmem:[%s3297_s1 + $0x148] sm:$0xff] }
  0x52   : > { %v1442_v8 = vrot.slane %v1440_v53, 4  ;;  %v1145_v53 = vsel %vm2753_vm5, %v2243_v41, %v1144_v32 }
  0x54   : > { %1253 = vmatpush.bf16.msra.mxu1 %v2554_v2  ;;  %1808 = vmatpush.bf16.msra.mxu0 %v2990_v18  ;;  %v1457_v2 = vshll.u32 %v2372_v51, 16  ;;  %v1446_v21 = vor.u32 %v1445_v9, %v1442_v8  ;;  %v985_v51 = vrot.slane %v983_v36, 4 }
  0x55   : > { %2618 = vmatpush.bf16.msra.mxu2 %v2990_v18  ;;  %v2578_v18 = vld [vmem:[%s3297_s1 + $0x208] sm:$0xff] }
  0x56   : > { %v1459_v22 = vrot.slane %v1457_v2, 5  ;;  %v1447_v38 = vrot.slane %v1446_v21, 4  ;;  %v2374_v2 = vld [vmem:[%s2706_s10 + $0x20] sm:$0xf] }
  0x57   : > { %v1468_v9 = vshrl.u32 %v2374_v2, 16 }
  0x58   : > { %1254 = vmatpush.bf16.msra.mxu1 %v2553_v12  ;;  %1809 = vmatpush.bf16.msra.mxu0 %v3011_v28  ;;  %v2580_v12 = vld [vmem:[%s3297_s1 + $0x218] sm:$0xff]  ;;  %v1460_v26 = vor.u32 %v1459_v22, %v1456_v11  ;;  %v1452_v0 = vsel %vm2744_vm4, %v1447_v38, %v1451_v40  ;;  %v1471_v11 = vshll.u32 %v2374_v2, 16  ;;  %v3106_v22 = vld [vmem:[%s2706_s10 + $0x24] sm:$0x1]  ;;  %v2237_v38 = vld [vmem:[%s2706_s10 + $0x20] sm:$0xe] }
  0x59   : > { %2619 = vmatpush.bf16.msra.mxu2 %v3011_v28  ;;  %v989_v28 = vor.u32 %v988_v52, %v985_v51  ;;  %v1470_v19 = vrot.slane %v1468_v9, 4  ;;  %v1568_v21 = vunpack.c.l.b16 %v1452_v0  ;;  %v1148_v52 = vrot.slane %v2950_v44, 5 }
  0x5a   : > { %v1461_v43 = vrot.slane %v1460_v26, 4  ;;  %v1473_v20 = vrot.slane %v1471_v11, 5  ;;  %v980_v26 = vrot.slane %v978_v63, 5  ;;  %v2434_v63 = vld [vmem:[%s2706_s10 + $0x10] sm:$0xe] }
  0x5b   : > { %540 = vmatmul.bf16.gmra.mxu1 %v2001_v61  ;;  %1090 = vmatmul.bf16.gmra.mxu0 %v1022_v62  ;;  %v1188_v61 = vunpack.c.l.b16 %v1145_v53  ;;  %v975_v62 = vor.u32 %v974_v37, %v971_v56  ;;  %v990_v29 = vrot.slane %v989_v28, 4  ;;  %v1477_v56 = vshll.u32 %v3106_v22, 16  ;;  %v2236_v37 = vld [vmem:[%s2706_s10 + $0x18] sm:$0xe] }
  0x5c   : > { %1255 = vmatpush.bf16.msra.mxu1 %v2552_v31  ;;  %1810 = vmatpush.bf16.msra.mxu0 %v2580_v12  ;;  %v2549_v31 = vld [vmem:[%s3297_s1 + $0x140] sm:$0xff]  ;;  %v1466_v6 = vsel %vm2744_vm4, %v1461_v43, %v1465_v48  ;;  %v1474_v30 = vor.u32 %v1473_v20, %v1470_v19  ;;  %v2244_v50 = vrot.slane %v2236_v37, 9  ;;  %v2245_v53 = vrot.slane %v2237_v38, 9 }
  0x5d   : > { %854 = vmatmul.bf16.gmra.mxu3 %v2137_v13  ;;  %v3101_v8 = vpack.c.b16 %v1188_v61, %v1187_v54  ;;  %v2557_v13 = vld [vmem:[%s2706_s10 + $0x14] sm:$0xf0]  ;;  %2620 = vmatpush.bf16.msra.mxu2 %v2580_v12  ;;  %v1569_v10 = vunpack.c.l.b16 %v1466_v6  ;;  %v976_v25 = vrot.slane %v975_v62, 4  ;;  %v1491_v12 = vshll.u32 %v3109_v23, 16 }
  0x5e   : > { %719 = vmatmul.bf16.gmra.mxu2 %v643_v3  ;;  %v2376_v3 = vld [vmem:[%s2706_s10 + $0x28] sm:$0xf]  ;;  %v2325_v36 = vor.u32 %v2557_v13, %v2324_v4  ;;  %v1479_v43 = vrot.slane %v1477_v56, 5  ;;  %v1152_v54 = vrot.slane %v2958_v46, 5  ;;  %v1695_v62 = vrot.slane %v3042_v5, 5 }
  0x5f   : > { %v1482_v15 = vshrl.u32 %v2376_v3, 16  ;;  %v1485_v16 = vshll.u32 %v2376_v3, 16  ;;  %v981_v40 = vsel %vm2744_vm4, %v976_v25, %v980_v26  ;;  %v1493_v48 = vrot.slane %v1491_v12, 5  ;;  %v2435_v3 = vld [vmem:[%s2706_s10 + $0x18] sm:$0xe] }
  0x60   : > { %1256 = vmatpush.bf16.msra.mxu1 %v2551_v60  ;;  %1811 = vmatpush.bf16.msra.mxu0 %v3064_v27  ;;  %v3090_v60 = vld [vmem:[%s2706_s10 + $0x44] sm:$0x1]  ;;  %v1019_v45 = vunpack.c.l.b16 %v981_v40  ;;  %v1153_v61 = vsel %vm2753_vm5, %v2245_v53, %v1152_v54  ;;  %v2378_v4 = vld [vmem:[%s2706_s10 + $0x30] sm:$0xf]  ;;  %v2380_v6 = vld [vmem:[%s2706_s10 + $0x38] sm:$0xf] }
  0x61   : > { %v992_v14 = vshll.u32 %v3090_v60, 16  ;;  %v1484_v24 = vrot.slane %v1482_v15, 4  ;;  %v1487_v32 = vrot.slane %v1485_v16, 5  ;;  %2621 = vmatpush.bf16.msra.mxu2 %v3064_v27  ;;  %v1475_v27 = vrot.slane %v1474_v30, 4  ;;  %v2328_v16 = vld [vmem:[%s2706_s10 + $0x20] sm:$0xf] }
  0x62   : > { %v1190_v0 = vunpack.c.l.b16 %v1153_v61  ;;  %v1496_v11 = vshrl.u32 %v2378_v4, 16  ;;  %v1499_v13 = vshll.u32 %v2378_v4, 16  ;;  %v1510_v5 = vshrl.u32 %v2380_v6, 16  ;;  %v2238_v53 = vld [vmem:[%s2706_s10 + $0x28] sm:$0xe] }
  0x63   : > { %v994_v47 = vrot.slane %v992_v14, 5  ;;  %v1488_v35 = vor.u32 %v1487_v32, %v1484_v24  ;;  %v1480_v46 = vsel %vm2744_vm4, %v1475_v27, %v1479_v43  ;;  %v1699_v15 = vrot.slane %v3045_v7, 5  ;;  %v2239_v54 = vld [vmem:[%s2706_s10 + $0x30] sm:$0xe]  ;;  %v2436_v4 = vld [vmem:[%s2706_s10 + $0x20] sm:$0xe] }
  0x64   : > { %1257 = vmatpush.bf16.msra.mxu1 %v2550_v1  ;;  %1812 = vmatpush.bf16.msra.mxu0 %v2578_v18  ;;  %v1023_v1 = vpack.c.b16 %v1018_v59, %v1017_v58  ;;  %v1149_v59 = vsel %vm2753_vm5, %v2244_v50, %v1148_v52  ;;  %v1570_v19 = vunpack.c.l.b16 %v1480_v46  ;;  %v1498_v24 = vrot.slane %v1496_v11, 4  ;;  %v2332_v50 = vld [vmem:[%s2706_s10 + $0x30] sm:$0xf]  ;;  %v2437_v11 = vld [vmem:[%s2706_s10 + $0x28] sm:$0xe] }
  0x65   : > { %v995_v41 = vsel %vm2744_vm4, %v990_v29, %v994_v47  ;;  %2622 = vmatpush.bf16.msra.mxu2 %v2578_v18  ;;  %v1489_v51 = vrot.slane %v1488_v35, 4  ;;  %v2504_v18 = vld [vmem:[%s2706_s10 + $0x34] sm:$0xf0]  ;;  %v1189_v44 = vunpack.c.l.b16 %v1149_v59  ;;  %v1501_v32 = vrot.slane %v1499_v13, 5  ;;  %v3146_v29 = vld [vmem:[%s2706_s10 + $0x34] sm:$0x1] }
  0x66   : > { %v1020_v58 = vunpack.c.l.b16 %v995_v41  ;;  %v2009_v28 = vor.u32 %v2504_v18, %v2008_v55  ;;  %v3149_v47 = vld [vmem:[%s2706_s10 + $0x3c] sm:$0x1]  ;;  %v2382_v55 = vld [vmem:[%s2706_s10 + $0x40] sm:$0xf]  ;;  %v2247_v59 = vrot.slane %v2239_v54, 9  ;;  %v1160_v61 = vrot.slane %v3024_v39, 5 }
  0x67   : > { %v1494_v2 = vsel %vm2744_vm4, %v1489_v51, %v1493_v48  ;;  %v3140_v9 = vpack.c.b16 %v1190_v0, %v1189_v44  ;;  %v1502_v12 = vor.u32 %v1501_v32, %v1498_v24  ;;  %v1519_v35 = vshll.u32 %v3149_v47, 16  ;;  %v2384_v18 = vld [vmem:[%s2706_s10 + $0x48] sm:$0xf] }
  0x68   : > { %1258 = vmatpush.bf16.msra.mxu1 %v2549_v31  ;;  %v1576_v31 = vpack.c.b16 %v1569_v10, %v1568_v21  ;;  %1813 = vmatpush.bf16.msra.mxu0 %v2577_v34  ;;  %v1024_v14 = vpack.c.b16 %v1020_v58, %v1019_v45  ;;  %v1571_v20 = vunpack.c.l.b16 %v1494_v2  ;;  %v2442_v21 = vrot.slane %v2434_v63, 9 }
  0x69   : > { %2623 = vmatpush.bf16.msra.mxu2 %v2577_v34  ;;  %v2443_v10 = vrot.slane %v2435_v3, 9  ;;  %v1503_v40 = vrot.slane %v1502_v12, 4  ;;  %v1521_v43 = vrot.slane %v1519_v35, 5  ;;  %v2246_v45 = vrot.slane %v2238_v53, 9 }
  0x6a   : > { %v1577_v30 = vpack.c.b16 %v1571_v20, %v1570_v19  ;;  %v1696_v7 = vsel %vm2753_vm5, %v2442_v21, %v1695_v62  ;;  %v1156_v58 = vrot.slane %v3021_v33, 5  ;;  %v2559_v62 = vld [vmem:[%s2706_s10 + $0x34] sm:$0xf0]  ;;  %v1524_v63 = vshrl.u32 %v2382_v55, 16 }
  0x6b   : > { %545 = vmatmul.bf16.gmra.mxu1 %v2005_v17  ;;  %1095 = vmatmul.bf16.gmra.mxu0 %v1023_v1  ;;  %v2558_v17 = vld [vmem:[%s2706_s10 + $0x24] sm:$0xf0]  ;;  %v1513_v1 = vshll.u32 %v2380_v6, 16  ;;  %v1700_v56 = vsel %vm2753_vm5, %v2443_v10, %v1699_v15  ;;  %v1742_v37 = vunpack.c.l.b16 %v1696_v7  ;;  %v1527_v44 = vshll.u32 %v2382_v55, 16  ;;  %v3176_v15 = vld [vmem:[%s2706_s10 + $0x44] sm:$0x1] }
  0x6c   : > { %v2329_v26 = vor.u32 %v2558_v17, %v2328_v16  ;;  %v1743_v38 = vunpack.c.l.b16 %v1700_v56  ;;  %v1538_v0 = vshrl.u32 %v2384_v18, 16  ;;  %v1541_v46 = vshll.u32 %v2384_v18, 16  ;;  %v3179_v16 = vld [vmem:[%s2706_s10 + $0x4c] sm:$0x1] }
  0x6d   : > { %1640 = vmatmul.bf16.vlgmr.msrb.gmra.mxu3 %v1576_v31  ;;  %v1515_v25 = vrot.slane %v1513_v1, 5  ;;  %v1505_v31 = vshll.u32 %v3146_v29, 16  ;;  %v1157_v6 = vsel %vm2753_vm5, %v2246_v45, %v1156_v58  ;;  %v1161_v33 = vsel %vm2753_vm5, %v2247_v59, %v1160_v61  ;;  %v2439_v61 = vld [vmem:[%s2706_s10 + $0x38] sm:$0xe] }
  0x6e   : > { %1394 = vmatmul.bf16.vlgmr.msrb.gmra.mxu2 %v2325_v36  ;;  %v1512_v36 = vrot.slane %v1510_v5, 4  ;;  %v1750_v48 = vpack.c.b16 %v1743_v38, %v1742_v37  ;;  %v1191_v13 = vunpack.c.l.b16 %v1157_v6  ;;  %v1192_v39 = vunpack.c.l.b16 %v1161_v33  ;;  %v2240_v38 = vld [vmem:[%s2706_s10 + $0x38] sm:$0xe] }
  0x6f   : > { %v1507_v41 = vrot.slane %v1505_v31, 5  ;;  %v1526_v5 = vrot.slane %v1524_v63, 4  ;;  %v1540_v17 = vrot.slane %v1538_v0, 4  ;;  %v1543_v1 = vrot.slane %v1541_v46, 5  ;;  %v2441_v63 = vld [vmem:[%s2706_s10 + $0x48] sm:$0xe] }
  0x70   : > { %v1516_v34 = vor.u32 %v1515_v25, %v1512_v36  ;;  %v2444_v19 = vrot.slane %v2436_v4, 9  ;;  %v3181_v20 = vpack.c.b16 %v1192_v39, %v1191_v13  ;;  %v1703_v10 = vrot.slane %v3106_v22, 5 }
  0x71   : > { %v1508_v51 = vsel %vm2744_vm4, %v1503_v40, %v1507_v41  ;;  %v2445_v24 = vrot.slane %v2437_v11, 9  ;;  %v1707_v32 = vrot.slane %v3109_v23, 5  ;;  %v1533_v25 = vshll.u32 %v3176_v15, 16  ;;  %v2241_v40 = vld [vmem:[%s2706_s10 + $0x40] sm:$0xe] }
  0x72   : > { %v1517_v27 = vrot.slane %v1516_v34, 4  ;;  %v1572_v2 = vunpack.c.l.b16 %v1508_v51  ;;  %v1704_v7 = vsel %vm2753_vm5, %v2444_v19, %v1703_v10  ;;  %v2248_v41 = vrot.slane %v2240_v38, 9  ;;  %v2560_v51 = vld [vmem:[%s2706_s10 + $0x44] sm:$0xf0] }
  0x73   : > { %v1708_v22 = vsel %vm2753_vm5, %v2445_v24, %v1707_v32  ;;  %v1535_v23 = vrot.slane %v1533_v25, 5  ;;  %v1744_v31 = vunpack.c.l.b16 %v1704_v7  ;;  %v1711_v0 = vrot.slane %v3146_v29, 5 }
  0x74   : > { %v1522_v52 = vsel %vm2744_vm4, %v1517_v27, %v1521_v43  ;;  %v1745_v34 = vunpack.c.l.b16 %v1708_v22  ;;  %v1164_v27 = vrot.slane %v3077_v42, 5  ;;  %v2249_v43 = vrot.slane %v2241_v40, 9  ;;  %v2438_v42 = vld [vmem:[%s2706_s10 + $0x30] sm:$0xe] }
  0x75   : > { %v1573_v3 = vunpack.c.l.b16 %v1522_v52  ;;  %v2447_v46 = vrot.slane %v2439_v61, 9  ;;  %v1723_v4 = vrot.slane %v3179_v16, 5  ;;  %v2449_v33 = vrot.slane %v2441_v63, 9 }
  0x76   : > { %v1751_v52 = vpack.c.b16 %v1745_v34, %v1744_v31  ;;  %v1165_v53 = vsel %vm2753_vm5, %v2248_v41, %v1164_v27 }
  0x77   : > { %v1578_v21 = vpack.c.b16 %v1573_v3, %v1572_v2  ;;  %v1193_v45 = vunpack.c.l.b16 %v1165_v53  ;;  %v1715_v2 = vrot.slane %v3149_v47, 5  ;;  %v1719_v3 = vrot.slane %v3176_v15, 5 }
  0x78   : > { %v1724_v29 = vsel %vm2753_vm5, %v2449_v33, %v1723_v4 }
  0x7b   : > { %550 = vmatmul.bf16.gmra.mxu1 %v2009_v28  ;;  %1100 = vmatmul.bf16.gmra.mxu0 %v1024_v14  ;;  %v1529_v28 = vrot.slane %v1527_v44, 5  ;;  %v2333_v14 = vor.u32 %v2559_v62, %v2332_v50  ;;  %v2336_v50 = vld [vmem:[%s2706_s10 + $0x40] sm:$0xf]  ;;  %v2446_v44 = vrot.slane %v2438_v42, 9 }
  0x7c   : > { %v2337_v59 = vor.u32 %v2560_v51, %v2336_v50  ;;  %v2440_v62 = vld [vmem:[%s2706_s10 + $0x40] sm:$0xe] }
  0x7d   : > { %1645 = vmatmul.bf16.gmra.mxu3 %v1577_v30  ;;  %v1530_v36 = vor.u32 %v1529_v28, %v1526_v5  ;;  %v1547_v30 = vshll.u32 %v3179_v16, 16  ;;  %v2448_v6 = vrot.slane %v2440_v62, 9  ;;  %v1712_v11 = vsel %vm2753_vm5, %v2446_v44, %v1711_v0 }
  0x7e   : > { %1399 = vmatmul.bf16.gmra.mxu2 %v2329_v26  ;;  %v1544_v26 = vor.u32 %v1543_v1, %v1540_v17  ;;  %v1746_v47 = vunpack.c.l.b16 %v1712_v11  ;;  %v1749_v28 = vunpack.c.l.b16 %v1724_v29 }
  0x7f   : > { %v1549_v12 = vrot.slane %v1547_v30, 5  ;;  %v1720_v13 = vsel %vm2753_vm5, %v2448_v6, %v1719_v3 }
  0x80   : > { %v1545_v56 = vrot.slane %v1544_v26, 4  ;;  %v1748_v5 = vunpack.c.l.b16 %v1720_v13 }
  0x82   : > { %v1550_v37 = vsel %vm2744_vm4, %v1545_v56, %v1549_v12  ;;  %v1753_v17 = vpack.c.b16 %v1749_v28, %v1748_v5 }
  0x83   : > { %v1575_v55 = vunpack.c.l.b16 %v1550_v37 }
  0x8b   : > { %1259 = vmatmul.bf16.vlgmr.msra.gmra.mxu1 %v3101_v8  ;;  %1814 = vmatmul.bf16.vlgmr.msra.gmra.mxu0 %v1750_v48  ;;  %v1531_v8 = vrot.slane %v1530_v36, 4  ;;  %v1168_v48 = vrot.slane %v3090_v60, 5 }
  0x8d   : > { %1650 = vmatmul.bf16.gmra.mxu3 %v1578_v21  ;;  %v1536_v35 = vsel %vm2744_vm4, %v1531_v8, %v1535_v23  ;;  %v1169_v49 = vsel %vm2753_vm5, %v2249_v43, %v1168_v48 }
  0x8e   : > { %1404 = vmatmul.bf16.gmra.mxu2 %v2333_v14  ;;  %v1574_v54 = vunpack.c.l.b16 %v1536_v35  ;;  %v1194_v58 = vunpack.c.l.b16 %v1169_v49 }
  0x90   : > { %v1198_v18 = vpack.c.b16 %v1194_v58, %v1193_v45  ;;  %v1579_v60 = vpack.c.b16 %v1575_v55, %v1574_v54 }
  0x9b   : > { %1264 = vmatmul.bf16.gmra.mxu1 %v3140_v9  ;;  %1819 = vmatmul.bf16.gmra.mxu0 %v1751_v52  ;;  %v1716_v9 = vsel %vm2753_vm5, %v2447_v46, %v1715_v2 }
  0x9c   : > { %v1747_v39 = vunpack.c.l.b16 %v1716_v9 }
  0x9d   : > { %1655 = vmatmul.bf16.gmra.mxu3 %v1579_v60 }
  0x9e   : > { %1409 = vmatmul.bf16.gmra.mxu2 %v2337_v59  ;;  %v1752_v14 = vpack.c.b16 %v1747_v39, %v1746_v47 }
  0xa8   : > { %v445_v15 = vpop.f32.mrf.mxu1  ;;  %v435_v16 = vpop.f32.mrf.mxu0 }
  0xab   : > { %1269 = vmatmul.bf16.gmra.mxu1 %v3181_v20  ;;  %1824 = vmatmul.bf16.gmra.mxu0 %v1752_v14 }
  0xae   : > { %1829 = vmatmul.bf16.vlgmr.msra.gmra.mxu2 %v1753_v17 }
  0xb0   : > { %v447_v19 = vpop.f32.mrf.mxu1  ;;  %v437_v21 = vpop.f32.mrf.mxu0 }
  0xb1   : > { %v705_v1 = vpop.f32.mrf.mxu2  ;;  %v840_v10 = vpop.f32.mrf.mxu3 }
  0xb8   : > { %v450_v32 = vpop.f32.mrf.mxu1  ;;  %v440_v57 = vpop.f32.mrf.mxu0 }
  0xb9   : > { %v707_v24 = vpop.f32.mrf.mxu2  ;;  %v3224_v36 = vpop.f32.mrf.mxu3 }
  0xbb   : > { %1274 = vmatmul.bf16.gmra.mxu1 %v1198_v18 }
  0xc0   : > { %v452_v26 = vpop.f32.mrf.mxu1  ;;  %v442_v30 = vpop.f32.mrf.mxu0 }
  0xc1   : > { %v710_v25 = vpop.f32.mrf.mxu2  ;;  %v845_v7 = vpop.f32.mrf.mxu3 }
  0xc8   : > { %v536_v8 = vpop.f32.mrf.mxu1  ;;  %v1086_v23 = vpop.f32.mrf.mxu0 }
  0xc9   : > { %v712_v22 = vpop.f32.mrf.mxu2  ;;  %v537_v20 = vadd.f32 %v536_v8, %v435_v16  ;;  %v3226_v12 = vpop.f32.mrf.mxu3 }
  0xcb   : > { %v725_v56 = vadd.f32 %v705_v1, %v537_v20 }
  0xcd   : > { %v860_v31 = vadd.f32 %v840_v10, %v725_v56 }
  0xcf   : > { %v1106_v34 = vadd.f32 %v1086_v23, %v860_v31 }
  0xd0   : > { %v538_v37 = vpop.f32.mrf.mxu1  ;;  %v1088_v38 = vpop.f32.mrf.mxu0 }
  0xd1   : > { %v715_v35 = vpop.f32.mrf.mxu2  ;;  %v539_v40 = vadd.f32 %v538_v37, %v437_v21  ;;  %v850_v27 = vpop.f32.mrf.mxu3 }
  0xd3   : > { %v726_v41 = vadd.f32 %v707_v24, %v539_v40 }
  0xd8   : > { %v541_v48 = vpop.f32.mrf.mxu1  ;;  %v1091_v50 = vpop.f32.mrf.mxu0 }
  0xd9   : > { %v717_v43 = vpop.f32.mrf.mxu2  ;;  %v542_v51 = vadd.f32 %v541_v48, %v440_v57  ;;  %v3228_v55 = vpop.f32.mrf.mxu3 }
  0xdb   : > { %v727_v52 = vadd.f32 %v710_v25, %v542_v51 }
  0xdd   : > { %v862_v53 = vadd.f32 %v845_v7, %v727_v52 }
  0xdf   : > { %v1108_v49 = vadd.f32 %v1091_v50, %v862_v53 }
  0xe0   : > { %v543_v45 = vpop.f32.mrf.mxu1  ;;  %v3230_v58 = vpop.f32.mrf.mxu0 }
  0xe1   : > { %v720_v54 = vpop.f32.mrf.mxu2  ;;  %v544_v59 = vadd.f32 %v543_v45, %v442_v30  ;;  %v855_v60 = vpop.f32.mrf.mxu3  ;;  %v861_v30 = vadd.f32 %v3224_v36, %v726_v41  ;;  %v3256_v36 = vld [vmem:[%s3299_s3] ss:$0 sm:$0xff] }
  0xe3   : > { %v728_v42 = vadd.f32 %v712_v22, %v544_v59  ;;  %v1107_v7 = vadd.f32 %v1088_v38, %v861_v30 }
  0xe5   : > { %v863_v50 = vadd.f32 %v3226_v12, %v728_v42 }
  0xe8   : > { %v546_v18 = vpop.f32.mrf.mxu1  ;;  %v1096_v62 = vpop.f32.mrf.mxu0 }
  0xe9   : > { %v722_v61 = vpop.f32.mrf.mxu2  ;;  %v547_v63 = vadd.f32 %v546_v18, %v445_v15  ;;  %v3238_v11 = vpop.f32.mrf.mxu3 }
  0xeb   : > { %v729_v44 = vadd.f32 %v715_v35, %v547_v63 }
  0xed   : > { %v864_v0 = vadd.f32 %v850_v27, %v729_v44 }
  0xef   : > { %v3232_v46 = vadd.f32 %v1096_v62, %v864_v0 }
  0xf0   : > { %v548_v3 = vpop.f32.mrf.mxu1  ;;  %v3234_v4 = vpop.f32.mrf.mxu0 }
  0xf1   : > { %v1395_v2 = vpop.f32.mrf.mxu2  ;;  %v549_v6 = vadd.f32 %v548_v3, %v447_v19  ;;  %v1641_v28 = vpop.f32.mrf.mxu3 }
  0xf3   : > { %v3236_v33 = vadd.f32 %v717_v43, %v549_v6 }
  0xf8   : > { %v551_v13 = vpop.f32.mrf.mxu1  ;;  %v1101_v29 = vpop.f32.mrf.mxu0 }
  0xf9   : > { %v1397_v9 = vpop.f32.mrf.mxu2  ;;  %v552_v47 = vadd.f32 %v551_v13, %v450_v32  ;;  %v1643_v19 = vpop.f32.mrf.mxu3 }
  0xfb   : > { %v731_v39 = vadd.f32 %v720_v54, %v552_v47 }
  0xfd   : > { %v866_v5 = vadd.f32 %v855_v60, %v731_v39 }
  0xff   : > { %v3240_v14 = vadd.f32 %v1101_v29, %v866_v5  ;;  %v865_v29 = vadd.f32 %v3228_v55, %v3236_v33 }
 0x100   : > { %v553_v16 = vpop.f32.mrf.mxu1  ;;  %v3242_v17 = vpop.f32.mrf.mxu0 }
 0x101   : > { %v1400_v15 = vpop.f32.mrf.mxu2  ;;  %v554_v1 = vadd.f32 %v553_v16, %v452_v26  ;;  %v1646_v56 = vpop.f32.mrf.mxu3  ;;  %v3250_v26 = vld [vmem:[%s3298_s2] ss:$0 sm:$0xff] }
 0x103   : > { %v3244_v21 = vadd.f32 %v722_v61, %v554_v1  ;;  %v1109_v61 = vadd.f32 %v3230_v58, %v863_v50 }
 0x108   : > { %v1260_v10 = vpop.f32.mrf.mxu1  ;;  %v1815_v24 = vpop.f32.mrf.mxu0 }
 0x109   : > { %v1280_v57 = vadd.f32 %v1260_v10, %v1106_v34  ;;  %v1402_v25 = vpop.f32.mrf.mxu2  ;;  %v1648_v54 = vpop.f32.mrf.mxu3 }
 0x10b   : > { %v1415_v32 = vadd.f32 %v1395_v2, %v1280_v57 }
 0x10d   : > { %v1661_v22 = vadd.f32 %v1641_v28, %v1415_v32 }
 0x10f   : > { %v1835_v31 = vadd.f32 %v1815_v24, %v1661_v22 }
 0x110   : > { %v1262_v8 = vpop.f32.mrf.mxu1  ;;  %v1817_v23 = vpop.f32.mrf.mxu0 }
 0x111   : > { %v1281_v20 = vadd.f32 %v1262_v8, %v1107_v7  ;;  %v1405_v37 = vpop.f32.mrf.mxu2  ;;  %v1847_v40 = vmul.f32 %v3250_v26, %v1835_v31  ;;  %v1651_v44 = vpop.f32.mrf.mxu3  ;;  %v867_v8 = vadd.f32 %v3238_v11, %v3244_v21 }
 0x113   : > { %v1416_v35 = vadd.f32 %v1397_v9, %v1281_v20  ;;  %v1859_v51 = vadd.f32 %v3256_v36, %v1847_v40 }
 0x115   : > { %v1662_v34 = vadd.f32 %v1643_v19, %v1416_v35 }
 0x117   : > { %v1836_v38 = vadd.f32 %v1817_v23, %v1662_v34 }
 0x118   : > { %v1265_v41 = vpop.f32.mrf.mxu1  ;;  %v1820_v27 = vpop.f32.mrf.mxu0 }
 0x119   : > { %v1848_v43 = vmul.f32 %v3250_v26, %v1836_v38  ;;  %v1282_v48 = vadd.f32 %v1265_v41, %v1108_v49  ;;  %v1407_v59 = vpop.f32.mrf.mxu2  ;;  %v1653_v1 = vpop.f32.mrf.mxu3 }
 0x11b   : > { %v1860_v52 = vadd.f32 %v3256_v36, %v1848_v43  ;;  %v1417_v53 = vadd.f32 %v1400_v15, %v1282_v48  ;;  %v1111_v15 = vadd.f32 %v3234_v4, %v865_v29 }
 0x11d   : > { %v2588_v45 = vpack.c.bf16 %v1860_v52, %v1859_v51  ;;  %v1663_v49 = vadd.f32 %v1646_v56, %v1417_v53 }
 0x11f   : > { %2589 = vst [vmem:[%s3266_s6] sm:$0xff] %v2588_v45   ;;  %v1837_v62 = vadd.f32 %v1820_v27, %v1663_v49 }
 0x120   : > { %v1267_v18 = vpop.f32.mrf.mxu1  ;;  %v1822_v12 = vpop.f32.mrf.mxu0 }
 0x121   : > { %v1283_v42 = vadd.f32 %v1267_v18, %v1109_v61  ;;  %v1849_v0 = vmul.f32 %v3250_v26, %v1837_v62  ;;  %v1410_v3 = vpop.f32.mrf.mxu2  ;;  %v1656_v4 = vpop.f32.mrf.mxu3 }
 0x123   : > { %v1418_v63 = vadd.f32 %v1402_v25, %v1283_v42  ;;  %v1861_v47 = vadd.f32 %v3256_v36, %v1849_v0 }
 0x125   : > { %v1664_v60 = vadd.f32 %v1648_v54, %v1418_v63 }
 0x127   : > { %v1838_v2 = vadd.f32 %v1822_v12, %v1664_v60 }
 0x128   : > { %v1270_v6 = vpop.f32.mrf.mxu1  ;;  %v1825_v58 = vpop.f32.mrf.mxu0 }
 0x129   : > { %v1850_v9 = vmul.f32 %v3250_v26, %v1838_v2  ;;  %v1284_v13 = vadd.f32 %v1270_v6, %v3232_v46  ;;  %v1412_v24 = vpop.f32.mrf.mxu2  ;;  %v1658_v27 = vpop.f32.mrf.mxu3 }
 0x12b   : > { %v1862_v39 = vadd.f32 %v3256_v36, %v1850_v9  ;;  %v1419_v5 = vadd.f32 %v1405_v37, %v1284_v13  ;;  %v1113_v37 = vadd.f32 %v3242_v17, %v867_v8 }
 0x12d   : > { %v2593_v28 = vpack.c.bf16 %v1862_v39, %v1861_v47  ;;  %v1665_v16 = vadd.f32 %v1651_v44, %v1419_v5 }
 0x12f   : > { %2605 = vst [vmem:[%s3266_s6 + $0x8] sm:$0xff] %v2593_v28   ;;  %v1839_v57 = vadd.f32 %v1825_v58, %v1665_v16 }
 0x130   : > { %v1272_v19 = vpop.f32.mrf.mxu1  ;;  %v1827_v25 = vpop.f32.mrf.mxu0 }
 0x131   : > { %v1285_v10 = vadd.f32 %v1272_v19, %v1111_v15  ;;  %v1851_v55 = vmul.f32 %v3250_v26, %v1839_v57  ;;  %v1830_v31 = vpop.f32.mrf.mxu2 }
 0x133   : > { %v1420_v46 = vadd.f32 %v1407_v59, %v1285_v10  ;;  %v1863_v23 = vadd.f32 %v3256_v36, %v1851_v55 }
 0x135   : > { %v1666_v30 = vadd.f32 %v1653_v1, %v1420_v46 }
 0x137   : > { %v1840_v33 = vadd.f32 %v1827_v25, %v1666_v30 }
 0x138   : > { %v1275_v32 = vpop.f32.mrf.mxu1 }
 0x139   : > { %v1852_v7 = vmul.f32 %v3250_v26, %v1840_v33  ;;  %v1286_v22 = vadd.f32 %v1275_v32, %v3240_v14  ;;  %v1832_v48 = vpop.f32.mrf.mxu2 }
 0x13b   : > { %v1864_v20 = vadd.f32 %v3256_v36, %v1852_v7  ;;  %v1421_v56 = vadd.f32 %v1410_v3, %v1286_v22 }
 0x13d   : > { %v2598_v35 = vpack.c.bf16 %v1864_v20, %v1863_v23  ;;  %v1667_v34 = vadd.f32 %v1656_v4, %v1421_v56 }
 0x13f   : > { %2606 = vst [vmem:[%s3266_s6 + $0x10] sm:$0xff] %v2598_v35   ;;  %v1841_v41 = vadd.f32 %v1830_v31, %v1667_v34 }
 0x140   : > { %v1277_v40 = vpop.f32.mrf.mxu1 }
 0x141   : > { %v1287_v38 = vadd.f32 %v1277_v40, %v1113_v37  ;;  %v1853_v11 = vmul.f32 %v3250_v26, %v1841_v41 }
 0x143   : > { %v1422_v14 = vadd.f32 %v1412_v24, %v1287_v38  ;;  %v1865_v51 = vadd.f32 %v3256_v36, %v1853_v11 }
 0x145   : > { %v1668_v43 = vadd.f32 %v1658_v27, %v1422_v14 }
 0x147   : > { %v1842_v21 = vadd.f32 %v1832_v48, %v1668_v43 }
 0x149   : > { %v1854_v50 = vmul.f32 %v3250_v26, %v1842_v21 }
 0x14b   : > { %v1866_v52 = vadd.f32 %v3256_v36, %v1854_v50 }
 0x14d   : > { %v2603_v17 = vpack.c.bf16 %v1866_v52, %v1865_v51 }
 0x14f   : > { %2607 = vst [vmem:[%s3266_s6 + $0x18] sm:$0xff] %v2603_v17  }
 0x150 PF: > { %s14_s15 = sadd.s32 1, %s2641_s15  }
 0x151   : > { %p11_p4 = scmp.ge.s32.totalorder %s14_s15, 4  }
 0x153   :  { %13 = sbr.rel (!%p11_p4) target bundleno = 1 (0x1), region = 76 }

// kernel: tile.8
= control target key start
LH: loop header
LB: loop body
LE: loop exit
PB: predicated region body
PF: predicated region fallthrough
CT: control target
= control target key end

     0   :  { %s22_s0 = inlined_call_operand.vmem [shape: f32[8], index: 0, kind: input, shape index: {}]   ;;  %s23_s1 = inlined_call_operand.vmem [shape: f32[4,8], index: 1, kind: output, shape index: {}]  }
   0x1   :  { %v4_v0 = vld [vmem:[%s22_s0] ss:$0 sm:$0xff] }
   0x2   :  { %5 = vst [vmem:[%s23_s1] sm:$0xf] %v4_v0 }

// kernel: tile.0
= control target key start
LH: loop header
LB: loop body
LE: loop exit
PB: predicated region body
PF: predicated region fallthrough
CT: control target
= control target key end

     0   :  { %s66_s8 = smov 125   ;;  %s67_s9 = smov 123   ;;  %vm7_vm0 = vcmask 7168   ;;  %s117_s0 = inlined_call_operand.vmem [shape: f32[4,8], index: 0, kind: input, shape index: {}]   ;;  %s118_s1 = inlined_call_operand.vmem [shape: f32[32,1], index: 1, kind: output, shape index: {}]  }
   0x1   :  { %v4_v0 = vld [vmem:[%s117_s0] sm:$0xf]  ;;  %s65_s0 = smov 127   ;;  %s68_s10 = smov 126  }
   0x2   :  { %5 = vst [vmem:[#allocation0] sm:$0xf] %v4_v0  ;;  %s69_s11 = smov 124   ;;  %s70_s12 = smov 122  }
   0x3   :  { %s71_s13 = smov 121  }
   0x9   :  { %v9_v1 = vld [vmem:[#allocation0] sm:$0xf]  }
   0xa   :  { %v21_v2 = vld [vmem:[#allocation0] sm:$0xf]   ;;  %10 = vrot.lane.b32.xlu0 %v9_v1, %s65_s0 }
   0xb   :  { %22 = vrot.lane.b32.xlu1 %v21_v2, %s66_s8  ;;  %v33_v3 = vld [vmem:[#allocation0] sm:$0xf]  }
   0xc   :  { %34 = vrot.lane.b32.xlu2 %v33_v3, %s67_s9  ;;  %v15_v4 = vld [vmem:[#allocation0] sm:$0xf]  }
   0xd   :  { %v27_v5 = vld [vmem:[#allocation0] sm:$0xf]  }
   0xe   :  { %v39_v6 = vld [vmem:[#allocation0] sm:$0xf]  }
   0xf   :  { %v45_v7 = vld [vmem:[#allocation0] sm:$0xf]  }
  0x10   :  { %v6_v8 = vld [vmem:[#allocation0] sm:$0xf]  }
  0x11   :  { %8 = vst.msk [vmem:[%s118_s1] ss:$8 sm:$0xf] %vm7_vm0, %v6_v8  }
  0x12   :  { %16 = vrot.lane.b32.xlu0 %v15_v4, %s68_s10 }
  0x13   :  { %28 = vrot.lane.b32.xlu1 %v27_v5, %s69_s11 }
  0x14   :  { %40 = vrot.lane.b32.xlu2 %v39_v6, %s70_s12 }
  0x1a   :  { %46 = vrot.lane.b32.xlu0 %v45_v7, %s71_s13 }
  0x66   :  { %v35_v9 = vpop.permute.xlu2 %34  }
  0x67   :  { %55 = vst.msk [vmem:[%s118_s1 + $0x5] ss:$8 sm:$0xf] %vm7_vm0, %v35_v9  }
  0x6e   :  { %v41_v10 = vpop.permute.xlu2 %40  }
  0x6f   :  { %56 = vst.msk [vmem:[%s118_s1 + $0x6] ss:$8 sm:$0xf] %vm7_vm0, %v41_v10  }
  0x7c   :  { %v11_v11 = vpop.permute.xlu0 %10  }
  0x7d   :  { %v23_v12 = vpop.permute.xlu1 %22   ;;  %51 = vst.msk [vmem:[%s118_s1 + $0x1] ss:$8 sm:$0xf] %vm7_vm0, %v11_v11  }
  0x7e   :  { %53 = vst.msk [vmem:[%s118_s1 + $0x3] ss:$8 sm:$0xf] %vm7_vm0, %v23_v12  }
  0x84   :  { %v17_v13 = vpop.permute.xlu0 %16  }
  0x85   :  { %v29_v14 = vpop.permute.xlu1 %28   ;;  %52 = vst.msk [vmem:[%s118_s1 + $0x2] ss:$8 sm:$0xf] %vm7_vm0, %v17_v13  }
  0x86   :  { %54 = vst.msk [vmem:[%s118_s1 + $0x4] ss:$8 sm:$0xf] %vm7_vm0, %v29_v14  }
  0x8c   :  { %v47_v15 = vpop.permute.xlu0 %46  }
  0x8d   :  { %57 = vst.msk [vmem:[%s118_s1 + $0x7] ss:$8 sm:$0xf] %vm7_vm0, %v47_v15  }

// kernel: conv_blocks_forward.12
= control target key start
LH: loop header
LB: loop body
LE: loop exit
PB: predicated region body
PF: predicated region fallthrough
CT: control target
= control target key end

     0   :  { %s2048_s15 = smov 0   ;;  %s2371_s0 = inlined_call_operand.vmem [shape: bf16[8,5,9,128], index: 0, kind: input, shape index: {}]   ;;  %s2372_s1 = inlined_call_operand.vmem [shape: bf16[9,128,128], index: 1, kind: input, shape index: {}]   ;;  %s2373_s2 = inlined_call_operand.vmem [shape: f32[1,128], index: 2, kind: input, shape index: {}]   ;;  %s2374_s3 = inlined_call_operand.vmem [shape: f32[1,128], index: 3, kind: input, shape index: {}]   ;;  %s2375_s4 = inlined_call_operand.vmem [shape: bf16[2,32,128], index: 4, kind: output, shape index: {}]  }
   0x1 LB: > { %s2054_s16 = sadd.s32 4294967295, %s2021_s15   ;;  %p1393_p0 = scmp.ge.s32.totalorder %s2021_s15, 1  ;;  %s2021_s15 = sphi %s2048_s15, %s14_s15  }
   0x2   : > { %p164_p1 = scmp.lt.s32.totalorder %s2021_s15, 3 }
   0x4   : > { %p165_p2 = pnand %p1393_p0, %p164_p1 }
   0x5   : > { %s1394_s23 = sshll.u32 (!%p165_p2), %s2054_s16, 2  ;;  %p198_p4 = scmp.lt.s32.totalorder (!%p165_p2), %s2054_s16, 1 }
   0x6   : > { %168 = sbr.rel (%p165_p2) target bundleno = 253 (0xfd), region = 36  ;;  %p192_p3 = scmp.lt.s32.totalorder (!%p165_p2), %s1394_s23, 7 }
   0xb   : > { %v1920_v0 = vld [vmem:[%s2372_s1 + $0x78] sm:$0xff]  ;;  %v1919_v4 = vld [vmem:[%s2372_s1 + $0x70] sm:$0xff]  ;;  %s2379_s23 = smov (!%p192_p3, %s1394_s23), 7  ;;  %v1918_v8 = vld [vmem:[%s2372_s1 + $0x68] sm:$0xff]  ;;  %vm411_vm0 = vsmask.f32 3328 }
   0xc   : > { %v1910_v1 = vld [vmem:[%s2372_s1 + $0x38] sm:$0xff]  ;;  %305 = vmatpush.bf16.msra.mxu0 %v1920_v0  ;;  %v1909_v5 = vld [vmem:[%s2372_s1 + $0x30] sm:$0xff]  ;;  %s2004_s8 = smul.u32 40, %s2379_s23  ;;  %v1908_v9 = vld [vmem:[%s2372_s1 + $0x28] sm:$0xff]  ;;  %vm412_vm1 = vsmask.f32 7440 }
   0xd   : > { %v1928_v2 = vld [vmem:[%s2372_s1 + $0xb8] sm:$0xff]  ;;  %384 = vmatpush.bf16.msra.mxu1 %v1910_v1  ;;  %v1927_v6 = vld [vmem:[%s2372_s1 + $0xb0] sm:$0xff]  ;;  %v1926_v10 = vld [vmem:[%s2372_s1 + $0xa8] sm:$0xff]  ;;  %s2381_s16 = smov (!%p198_p4, %s2054_s16), 1 }
   0xe   : > { %v1938_v3 = vld [vmem:[%s2372_s1 + $0xf8] sm:$0xff]  ;;  %543 = vmatpush.bf16.msra.mxu2 %v1928_v2  ;;  %v1937_v7 = vld [vmem:[%s2372_s1 + $0xf0] sm:$0xff]  ;;  %v1936_v11 = vld [vmem:[%s2372_s1 + $0xe8] sm:$0xff]  ;;  %s2098_s21 = scalar_lea.vmem %s2371_s0, %s2004_s8  ;;  %s1900_s30 = sshll.u32 %s2381_s16, 4 }
   0xf   : > { %648 = vmatpush.bf16.msra.mxu3 %v1938_v3  ;;  %v1917_v12 = vld [vmem:[%s2372_s1 + $0x60] sm:$0xff]  ;;  %v405_v18 = vld [vmem:[%s2098_s21 + $0x8] sm:$0xf]  ;;  %v406_v19 = vld [vmem:[%s2098_s21 + $0xc] sm:$0x1]  ;;  %s202_s7 = scalar_lea.vmem %s2375_s4, %s1900_s30 }
  0x10   : > { %306 = vmatpush.bf16.msra.mxu0 %v1919_v4  ;;  %v1907_v13 = vld [vmem:[%s2372_s1 + $0x20] sm:$0xff]  ;;  %v429_v22 = vshrl.u32 %v405_v18, 16  ;;  %v1916_v23 = vld [vmem:[%s2372_s1 + $0x58] sm:$0xff]  ;;  %v432_v26 = vshll.u32 %v405_v18, 16  ;;  %v438_v32 = vshll.u32 %v406_v19, 16  ;;  %v1915_v35 = vld [vmem:[%s2372_s1 + $0x50] sm:$0xff] }
  0x11   : > { %385 = vmatpush.bf16.msra.mxu1 %v1909_v5  ;;  %v1925_v14 = vld [vmem:[%s2372_s1 + $0xa0] sm:$0xff]  ;;  %v1906_v24 = vld [vmem:[%s2372_s1 + $0x18] sm:$0xff]  ;;  %v1905_v36 = vld [vmem:[%s2372_s1 + $0x10] sm:$0xff] }
  0x12   : > { %544 = vmatpush.bf16.msra.mxu2 %v1927_v6  ;;  %v1935_v15 = vld [vmem:[%s2372_s1 + $0xe0] sm:$0xff]  ;;  %v1924_v27 = vld [vmem:[%s2372_s1 + $0x98] sm:$0xff]  ;;  %v431_v31 = vrot.slane %v429_v22, 4  ;;  %v434_v33 = vrot.slane %v432_v26, 5  ;;  %v1923_v38 = vld [vmem:[%s2372_s1 + $0x90] sm:$0xff]  ;;  %v440_v42 = vrot.slane %v438_v32, 5 }
  0x13   : > { %649 = vmatpush.bf16.msra.mxu3 %v1937_v7  ;;  %v403_v16 = vld [vmem:[%s2098_s21] sm:$0xf]  ;;  %v404_v17 = vld [vmem:[%s2098_s21 + $0x4] sm:$0x1]  ;;  %v1934_v28 = vld [vmem:[%s2372_s1 + $0xd8] sm:$0xff] }
  0x14   : > { %307 = vmatpush.bf16.msra.mxu0 %v1918_v8  ;;  %v415_v20 = vshrl.u32 %v403_v16, 16  ;;  %v418_v21 = vshll.u32 %v403_v16, 16  ;;  %v424_v25 = vshll.u32 %v404_v17, 16  ;;  %v435_v37 = vor.u32 %v434_v33, %v431_v31  ;;  %v1933_v39 = vld [vmem:[%s2372_s1 + $0xd0] sm:$0xff]  ;;  %vm2141_vm2 = vmor %vm411_vm0, %vm412_vm1  ;;  %v1914_v45 = vld [vmem:[%s2372_s1 + $0x48] sm:$0xff] }
  0x15   : > { %386 = vmatpush.bf16.msra.mxu1 %v1908_v9  ;;  %v1904_v46 = vld [vmem:[%s2372_s1 + $0x8] sm:$0xff]  ;;  %v407_v47 = vld [vmem:[%s2098_s21 + $0x10] sm:$0xf]  ;;  %v409_v48 = vld [vmem:[%s2098_s21 + $0x18] sm:$0xf] }
  0x16   : > { %545 = vmatpush.bf16.msra.mxu2 %v1926_v10  ;;  %v417_v29 = vrot.slane %v415_v20, 4  ;;  %v420_v30 = vrot.slane %v418_v21, 5  ;;  %v426_v41 = vrot.slane %v424_v25, 5  ;;  %v436_v44 = vrot.slane %v435_v37, 4  ;;  %v1922_v49 = vld [vmem:[%s2372_s1 + $0x88] sm:$0xff]  ;;  %v1913_v55 = vld [vmem:[%s2372_s1 + $0x40] sm:$0xff] }
  0x17   : > { %650 = vmatpush.bf16.msra.mxu3 %v1936_v11  ;;  %v1932_v50 = vld [vmem:[%s2372_s1 + $0xc8] sm:$0xff]  ;;  %v443_v53 = vshrl.u32 %v407_v47, 16  ;;  %v446_v54 = vshll.u32 %v407_v47, 16  ;;  %v1903_v56 = vld [vmem:[%s2372_s1] sm:$0xff]  ;;  %v1911_v58 = vld [vmem:[%s2098_s21 + $0x2c] sm:$0xf0] }
  0x18   : > { %308 = vmatpush.bf16.msra.mxu0 %v1917_v12  ;;  %v421_v34 = vor.u32 %v420_v30, %v417_v29  ;;  %v441_v52 = vsel %vm2141_vm2, %v436_v44, %v440_v42  ;;  %v1420_v57 = vld [vmem:[%s2098_s21 + $0x28] sm:$0xf]  ;;  %v457_v59 = vshrl.u32 %v409_v48, 16  ;;  %v460_v60 = vshll.u32 %v409_v48, 16  ;;  %v1921_v61 = vld [vmem:[%s2372_s1 + $0x80] sm:$0xff]  ;;  %v1966_v21 = vld [vmem:[%s2372_s1 + $0x1b8] sm:$0xff] }
  0x19   : > { %387 = vmatpush.bf16.msra.mxu1 %v1907_v13  ;;  %v1460_v62 = vld [vmem:[%s2098_s21] sm:$0xf]  ;;  %v1901_v63 = vld [vmem:[%s2098_s21 + $0x4] sm:$0xf0]  ;;  %v445_v0 = vrot.slane %v443_v53, 4  ;;  %v448_v1 = vrot.slane %v446_v54, 5  ;;  %v488_v3 = vunpack.c.l.b16 %v441_v52  ;;  %v1421_v11 = vor.u32 %v1911_v58, %v1420_v57 }
  0x1a   : > { %546 = vmatpush.bf16.msra.mxu2 %v1925_v14  ;;  %v422_v40 = vrot.slane %v421_v34, 4  ;;  %v408_v4 = vld [vmem:[%s2098_s21 + $0x14] sm:$0x1]  ;;  %v410_v5 = vld [vmem:[%s2098_s21 + $0x1c] sm:$0x1]  ;;  %v459_v6 = vrot.slane %v457_v59, 4  ;;  %v1461_v12 = vor.u32 %v1901_v63, %v1460_v62 }
  0x1b   : > { %651 = vmatpush.bf16.msra.mxu3 %v1935_v15  ;;  %v462_v7 = vrot.slane %v460_v60, 5  ;;  %v1931_v8 = vld [vmem:[%s2372_s1 + $0xc0] sm:$0xff]  ;;  %v1568_v9 = vld [vmem:[%s2098_s21 + $0x50] sm:$0xf]  ;;  %v1929_v10 = vld [vmem:[%s2098_s21 + $0x54] sm:$0xf0]  ;;  %v449_v15 = vor.u32 %v448_v1, %v445_v0 }
  0x1c   : > { %309 = vmatpush.bf16.msra.mxu0 %v1916_v23  ;;  %v427_v51 = vsel %vm2141_vm2, %v422_v40, %v426_v41  ;;  %v1948_v13 = vld [vmem:[%s2372_s1 + $0x138] sm:$0xff]  ;;  %v452_v16 = vshll.u32 %v408_v4, 16  ;;  %v466_v18 = vshll.u32 %v410_v5, 16  ;;  %v1569_v20 = vor.u32 %v1929_v10, %v1568_v9  ;;  %v1947_v23 = vld [vmem:[%s2372_s1 + $0x130] sm:$0xff]  ;;  %v1946_v33 = vld [vmem:[%s2372_s1 + $0x128] sm:$0xff] }
  0x1d   : > { %388 = vmatpush.bf16.msra.mxu1 %v1906_v24  ;;  %v487_v2 = vunpack.c.l.b16 %v427_v51  ;;  %v1956_v14 = vld [vmem:[%s2372_s1 + $0x178] sm:$0xff]  ;;  %v463_v17 = vor.u32 %v462_v7, %v459_v6  ;;  %v1955_v24 = vld [vmem:[%s2372_s1 + $0x170] sm:$0xff]  ;;  %v450_v25 = vrot.slane %v449_v15, 4  ;;  %v1954_v34 = vld [vmem:[%s2372_s1 + $0x168] sm:$0xff] }
  0x1e   : > { %547 = vmatpush.bf16.msra.mxu2 %v1924_v27  ;;  %v1976_v22 = vld [vmem:[%s2372_s1 + $0x1f8] sm:$0xff]  ;;  %v454_v26 = vrot.slane %v452_v16, 5  ;;  %v1965_v29 = vld [vmem:[%s2372_s1 + $0x1b0] sm:$0xff]  ;;  %v1974_v42 = vld [vmem:[%s2372_s1 + $0x1e8] sm:$0xff] }
  0x1f   : > { %652 = vmatpush.bf16.msra.mxu3 %v1934_v28  ;;  %v491_v19 = vpack.c.b16 %v488_v3, %v487_v2  ;;  %v464_v27 = vrot.slane %v463_v17, 4  ;;  %v468_v28 = vrot.slane %v466_v18, 5  ;;  %v1975_v30 = vld [vmem:[%s2372_s1 + $0x1f0] sm:$0xff]  ;;  %v1668_v32 = vld [vmem:[%s2098_s21 + $0x58] sm:$0xf]  ;;  %v1945_v44 = vld [vmem:[%s2372_s1 + $0x120] sm:$0xff] }
  0x20   : > { %310 = vmatpush.bf16.msra.mxu0 %v1915_v35  ;;  %v1666_v31 = vld [vmem:[%s2098_s21 + $0x50] sm:$0xf]  ;;  %v1964_v35 = vld [vmem:[%s2372_s1 + $0x1a8] sm:$0xff]  ;;  %v799_v40 = vshrl.u32 %v1668_v32, 16  ;;  %v802_v41 = vshll.u32 %v1668_v32, 16  ;;  %v1963_v59 = vld [vmem:[%s2372_s1 + $0x1a0] sm:$0xff] }
  0x21   : > { %389 = vmatpush.bf16.msra.mxu1 %v1905_v36  ;;  %v455_v36 = vsel %vm2141_vm2, %v450_v25, %v454_v26  ;;  %v469_v37 = vsel %vm2141_vm2, %v464_v27, %v468_v28  ;;  %v1912_v47 = vld [vmem:[%s2098_s21 + $0x3c] sm:$0xf0]  ;;  %v1464_v48 = vld [vmem:[%s2098_s21 + $0x10] sm:$0xf]  ;;  %v1930_v53 = vld [vmem:[%s2098_s21 + $0x64] sm:$0xf0] }
  0x22   : > { %548 = vmatpush.bf16.msra.mxu2 %v1923_v38  ;;  %v785_v38 = vshrl.u32 %v1666_v31, 16  ;;  %v490_v51 = vunpack.c.l.b16 %v469_v37  ;;  %v1572_v52 = vld [vmem:[%s2098_s21 + $0x60] sm:$0xf]  ;;  %v1667_v54 = vld [vmem:[%s2098_s21 + $0x54] sm:$0x1]  ;;  %v801_v57 = vrot.slane %v799_v40, 4 }
  0x23   : > { %653 = vmatpush.bf16.msra.mxu3 %v1933_v39  ;;  %v788_v39 = vshll.u32 %v1666_v31, 16  ;;  %v804_v58 = vrot.slane %v802_v41, 5  ;;  %v1973_v60 = vld [vmem:[%s2372_s1 + $0x1e0] sm:$0xff]  ;;  %v1944_v62 = vld [vmem:[%s2372_s1 + $0x118] sm:$0xff]  ;;  %v1573_v2 = vor.u32 %v1930_v53, %v1572_v52  ;;  %v794_v3 = vshll.u32 %v1667_v54, 16  ;;  %v1943_v10 = vld [vmem:[%s2372_s1 + $0x110] sm:$0xff] }
  0x24   : > { %311 = vmatpush.bf16.msra.mxu0 %v1914_v45  ;;  %v1953_v45 = vld [vmem:[%s2372_s1 + $0x160] sm:$0xff]  ;;  %v1952_v63 = vld [vmem:[%s2372_s1 + $0x158] sm:$0xff]  ;;  %v1961_v18 = vld [vmem:[%s2372_s1 + $0x190] sm:$0xff] }
  0x25   : > { %390 = vmatpush.bf16.msra.mxu1 %v1904_v46  ;;  %v1424_v46 = vld [vmem:[%s2098_s21 + $0x38] sm:$0xf]  ;;  %v805_v6 = vor.u32 %v804_v58, %v801_v57  ;;  %v796_v15 = vrot.slane %v794_v3, 5  ;;  %v1960_v28 = vld [vmem:[%s2372_s1 + $0x188] sm:$0xff]  ;;  %v1949_v31 = vld [vmem:[%s2372_s1 + $0x140] sm:$0xff] }
  0x26   : > { %549 = vmatpush.bf16.msra.mxu2 %v1922_v49  ;;  %v1902_v49 = vld [vmem:[%s2098_s21 + $0x14] sm:$0xf0]  ;;  %v1425_v0 = vor.u32 %v1912_v47, %v1424_v46  ;;  %v1969_v37 = vld [vmem:[%s2372_s1 + $0x1c0] sm:$0xff]  ;;  %v1744_v46 = vld [vmem:[%s2098_s21 + $0x8] sm:$0xf] }
  0x27   : > { %654 = vmatpush.bf16.msra.mxu3 %v1932_v50  ;;  %v489_v50 = vunpack.c.l.b16 %v455_v36  ;;  %v1465_v1 = vor.u32 %v1902_v49, %v1464_v48  ;;  %v1972_v9 = vld [vmem:[%s2372_s1 + $0x1d8] sm:$0xff]  ;;  %v806_v16 = vrot.slane %v805_v6, 4  ;;  %v1959_v36 = vld [vmem:[%s2372_s1 + $0x180] sm:$0xff]  ;;  %v1957_v47 = vld [vmem:[%s2098_s21 + $0xc] sm:$0xf0] }
  0x28   : > { %312 = vmatpush.bf16.msra.mxu0 %v1913_v55  ;;  %v787_v55 = vrot.slane %v785_v38, 4  ;;  %v1984_v40 = vld [vmem:[%s2372_s1 + $0x238] sm:$0xff]  ;;  %v1671_v41 = vld [vmem:[%s2098_s21 + $0x64] sm:$0x1]  ;;  %v1804_v48 = vld [vmem:[%s2098_s21 + $0x30] sm:$0xf] }
  0x29   : > { %391 = vmatpush.bf16.msra.mxu1 %v1903_v56  ;;  %v790_v56 = vrot.slane %v788_v39, 5  ;;  %v492_v4 = vpack.c.b16 %v490_v51, %v489_v50  ;;  %v1967_v49 = vld [vmem:[%s2098_s21 + $0x34] sm:$0xf0]  ;;  %v822_v51 = vshll.u32 %v1671_v41, 16  ;;  %v1983_v58 = vld [vmem:[%s2372_s1 + $0x230] sm:$0xff] }
  0x2a   : > { %550 = vmatpush.bf16.msra.mxu2 %v1921_v61  ;;  %v1669_v61 = vld [vmem:[%s2098_s21 + $0x5c] sm:$0x1]  ;;  %v1805_v57 = vor.u32 %v1967_v49, %v1804_v48  ;;  %v1848_v3 = vld [vmem:[%s2098_s21 + $0x20] sm:$0xf]  ;;  %v1979_v49 = vld [vmem:[%s2372_s1 + $0x210] sm:$0xff] }
  0x2b   : > { %655 = vmatpush.bf16.msra.mxu3 %v1931_v8  ;;  %313 = vmatmul.bf16.vlgmr.msra.gmra.mxu0 %v1421_v11  ;;  %v791_v5 = vor.u32 %v790_v56, %v787_v55  ;;  %v808_v7 = vshll.u32 %v1669_v61, 16  ;;  %v1962_v8 = vld [vmem:[%s2372_s1 + $0x198] sm:$0xff]  ;;  %v1951_v11 = vld [vmem:[%s2372_s1 + $0x150] sm:$0xff]  ;;  %v1745_v56 = vor.u32 %v1957_v47, %v1744_v46 }
  0x2c   : > { %753 = vmatpush.bf16.msrb.mxu0 %v1948_v13  ;;  %392 = vmatmul.bf16.vlgmr.msra.gmra.mxu1 %v1461_v12  ;;  %v1670_v12 = vld [vmem:[%s2098_s21 + $0x60] sm:$0xf]  ;;  %v1672_v13 = vld [vmem:[%s2098_s21 + $0x68] sm:$0xf] }
  0x2d   : > { %913 = vmatpush.bf16.msrb.mxu1 %v1956_v14  ;;  %551 = vmatmul.bf16.vlgmr.msra.gmra.mxu2 %v491_v19  ;;  %v792_v14 = vrot.slane %v791_v5, 4  ;;  %v810_v17 = vrot.slane %v808_v7, 5  ;;  %v1971_v19 = vld [vmem:[%s2372_s1 + $0x1d0] sm:$0xff]  ;;  %v830_v25 = vshll.u32 %v1672_v13, 16 }
  0x2e   : > { %656 = vmatmul.bf16.vlgmr.msra.gmra.mxu3 %v1569_v20  ;;  %1018 = vmatpush.bf16.msrb.mxu2 %v1966_v21  ;;  %v1942_v20 = vld [vmem:[%s2372_s1 + $0x108] sm:$0xff] }
  0x2f   : > { %1123 = vmatpush.bf16.msrb.mxu3 %v1976_v22  ;;  %v1950_v21 = vld [vmem:[%s2372_s1 + $0x148] sm:$0xff]  ;;  %v813_v22 = vshrl.u32 %v1670_v12, 16  ;;  %v797_v26 = vsel %vm2141_vm2, %v792_v14, %v796_v15  ;;  %v811_v27 = vsel %vm2141_vm2, %v806_v16, %v810_v17  ;;  %v1200_v14 = vshll.u32 %v1848_v3, 16  ;;  %v1940_v16 = vld [vmem:[%s2098_s21 + $0x8c] sm:$0xf0] }
  0x30   : > { %754 = vmatpush.bf16.msrb.mxu0 %v1947_v23  ;;  %v816_v23 = vshll.u32 %v1670_v12, 16  ;;  %v857_v38 = vunpack.c.l.b16 %v797_v26  ;;  %v858_v39 = vunpack.c.l.b16 %v811_v27  ;;  %v1632_v15 = vld [vmem:[%s2098_s21 + $0x88] sm:$0xf]  ;;  %v1748_v17 = vld [vmem:[%s2098_s21 + $0x18] sm:$0xf] }
  0x31   : > { %914 = vmatpush.bf16.msrb.mxu1 %v1955_v24  ;;  %v827_v24 = vshrl.u32 %v1672_v13, 16  ;;  %v815_v32 = vrot.slane %v813_v22, 4  ;;  %v1197_v13 = vshrl.u32 %v1848_v3, 16  ;;  %v1968_v22 = vld [vmem:[%s2098_s21 + $0x44] sm:$0xf0] }
  0x32   : > { %1019 = vmatpush.bf16.msrb.mxu2 %v1965_v29  ;;  %v1970_v29 = vld [vmem:[%s2372_s1 + $0x1c8] sm:$0xff]  ;;  %v861_v55 = vpack.c.b16 %v858_v39, %v857_v38 }
  0x33   : > { %1124 = vmatpush.bf16.msrb.mxu3 %v1975_v30  ;;  %v1941_v30 = vld [vmem:[%s2372_s1 + $0x100] sm:$0xff] }
  0x34   : > { %755 = vmatpush.bf16.msrb.mxu0 %v1946_v33  ;;  %v818_v33 = vrot.slane %v816_v23, 5  ;;  %v1843_v23 = vld [vmem:[%s2098_s21 + $0xc] sm:$0x1] }
  0x35   : > { %915 = vmatpush.bf16.msrb.mxu1 %v1954_v34  ;;  %v829_v34 = vrot.slane %v827_v24, 4  ;;  %v1164_v41 = vshll.u32 %v1843_v23, 16 }
  0x36   : > { %1020 = vmatpush.bf16.msrb.mxu2 %v1964_v35  ;;  %v832_v35 = vrot.slane %v830_v25, 5  ;;  %v819_v50 = vor.u32 %v818_v33, %v815_v32  ;;  %v1202_v32 = vrot.slane %v1200_v14, 5  ;;  %v1980_v33 = vld [vmem:[%s2372_s1 + $0x218] sm:$0xff] }
  0x37   : > { %1125 = vmatpush.bf16.msrb.mxu3 %v1974_v42  ;;  %v1673_v42 = vld [vmem:[%s2098_s21 + $0x6c] sm:$0x1] }
  0x38   : > { %756 = vmatpush.bf16.msrb.mxu0 %v1945_v44  ;;  %v1628_v44 = vld [vmem:[%s2098_s21 + $0x78] sm:$0xf]  ;;  %v833_v52 = vor.u32 %v832_v35, %v829_v34  ;;  %v836_v53 = vshll.u32 %v1673_v42, 16  ;;  %v1847_v34 = vld [vmem:[%s2098_s21 + $0x1c] sm:$0x1] }
  0x39   : > { %916 = vmatpush.bf16.msrb.mxu1 %v1953_v45  ;;  %v1939_v45 = vld [vmem:[%s2098_s21 + $0x7c] sm:$0xf0]  ;;  %v1849_v35 = vld [vmem:[%s2098_s21 + $0x24] sm:$0x1]  ;;  %v1192_v46 = vshll.u32 %v1847_v34, 16 }
  0x3a   : > { %1021 = vmatpush.bf16.msrb.mxu2 %v1963_v59  ;;  %v1629_v54 = vor.u32 %v1939_v45, %v1628_v44  ;;  %v820_v59 = vrot.slane %v819_v50, 4  ;;  %v834_v61 = vrot.slane %v833_v52, 4  ;;  %v1206_v48 = vshll.u32 %v1849_v35, 16 }
  0x3b   : > { %1126 = vmatpush.bf16.msrb.mxu3 %v1973_v60  ;;  %318 = vmatmul.bf16.gmra.mxu0 %v1425_v0  ;;  %v824_v60 = vrot.slane %v822_v51, 5  ;;  %v1844_v0 = vld [vmem:[%s2098_s21 + $0x10] sm:$0xf]  ;;  %v1166_v51 = vrot.slane %v1164_v41, 5 }
  0x3c   : > { %757 = vmatpush.bf16.msrb.mxu0 %v1944_v62  ;;  %397 = vmatmul.bf16.gmra.mxu1 %v1465_v1  ;;  %v838_v62 = vrot.slane %v836_v53, 5  ;;  %v1982_v1 = vld [vmem:[%s2372_s1 + $0x228] sm:$0xff] }
  0x3d   : > { %917 = vmatpush.bf16.msrb.mxu1 %v1952_v63  ;;  %556 = vmatmul.bf16.gmra.mxu2 %v492_v4  ;;  %v1842_v63 = vld [vmem:[%s2098_s21 + $0x8] sm:$0xf]  ;;  %v825_v4 = vsel %vm2141_vm2, %v820_v59, %v824_v60 }
  0x3e   : > { %661 = vmatmul.bf16.gmra.mxu3 %v1573_v2  ;;  %1022 = vmatpush.bf16.msrb.mxu2 %v1962_v8  ;;  %v1846_v2 = vld [vmem:[%s2098_s21 + $0x18] sm:$0xf]  ;;  %v839_v5 = vsel %vm2141_vm2, %v834_v61, %v838_v62  ;;  %v1155_v6 = vshrl.u32 %v1842_v63, 16  ;;  %v1158_v7 = vshll.u32 %v1842_v63, 16  ;;  %v1169_v8 = vshrl.u32 %v1844_v0, 16  ;;  %v1977_v63 = vld [vmem:[%s2372_s1 + $0x200] sm:$0xff] }
  0x3f   : > { %1127 = vmatpush.bf16.msrb.mxu3 %v1972_v9  ;;  %v1172_v9 = vshll.u32 %v1844_v0, 16  ;;  %v1186_v12 = vshll.u32 %v1846_v2, 16 }
  0x40   : > { %758 = vmatpush.bf16.msrb.mxu0 %v1943_v10  ;;  %v1981_v10 = vld [vmem:[%s2372_s1 + $0x220] sm:$0xff]  ;;  %v1157_v24 = vrot.slane %v1155_v6, 4  ;;  %v1160_v25 = vrot.slane %v1158_v7, 5  ;;  %v1171_v26 = vrot.slane %v1169_v8, 4 }
  0x41   : > { %918 = vmatpush.bf16.msrb.mxu1 %v1951_v11  ;;  %v1183_v11 = vshrl.u32 %v1846_v2, 16  ;;  %v1174_v27 = vrot.slane %v1172_v9, 5 }
  0x42   : > { %1023 = vmatpush.bf16.msrb.mxu2 %v1961_v18  ;;  %v859_v18 = vunpack.c.l.b16 %v825_v4 }
  0x43   : > { %1128 = vmatpush.bf16.msrb.mxu3 %v1971_v19  ;;  %v860_v19 = vunpack.c.l.b16 %v839_v5  ;;  %v1175_v42 = vor.u32 %v1174_v27, %v1171_v26 }
  0x44   : > { %759 = vmatpush.bf16.msrb.mxu0 %v1942_v20  ;;  %v1958_v20 = vld [vmem:[%s2098_s21 + $0x1c] sm:$0xf0] }
  0x45   : > { %919 = vmatpush.bf16.msrb.mxu1 %v1950_v21  ;;  %v1808_v21 = vld [vmem:[%s2098_s21 + $0x40] sm:$0xf]  ;;  %v1749_v38 = vor.u32 %v1958_v20, %v1748_v17  ;;  %v1176_v52 = vrot.slane %v1175_v42, 4 }
  0x46   : > { %1024 = vmatpush.bf16.msrb.mxu2 %v1960_v28  ;;  %v1845_v28 = vld [vmem:[%s2098_s21 + $0x14] sm:$0x1]  ;;  %v1809_v39 = vor.u32 %v1968_v22, %v1808_v21 }
  0x47   : > { %1129 = vmatpush.bf16.msrb.mxu3 %v1970_v29  ;;  %v1185_v29 = vrot.slane %v1183_v11, 4  ;;  %v1178_v44 = vshll.u32 %v1845_v28, 16 }
  0x48   : > { %760 = vmatpush.bf16.msrb.mxu0 %v1941_v30  ;;  %v1188_v30 = vrot.slane %v1186_v12, 5 }
  0x49   : > { %920 = vmatpush.bf16.msrb.mxu1 %v1949_v31  ;;  %v1199_v31 = vrot.slane %v1197_v13, 4  ;;  %v1180_v53 = vrot.slane %v1178_v44, 5 }
  0x4a   : > { %1025 = vmatpush.bf16.msrb.mxu2 %v1959_v36  ;;  %v1633_v36 = vor.u32 %v1940_v16, %v1632_v15  ;;  %v1189_v45 = vor.u32 %v1188_v30, %v1185_v29 }
  0x4b   : > { %1130 = vmatpush.bf16.msrb.mxu3 %v1969_v37  ;;  %761 = vmatmul.bf16.vlgmr.msrb.gmra.mxu0 %v1629_v54  ;;  %v862_v37 = vpack.c.b16 %v860_v19, %v859_v18  ;;  %v1203_v47 = vor.u32 %v1202_v32, %v1199_v31  ;;  %v1181_v60 = vsel %vm2141_vm2, %v1176_v52, %v1180_v53 }
  0x4c   : > { %1283 = vmatpush.bf16.msra.mxu0 %v1984_v40  ;;  %921 = vmatmul.bf16.vlgmr.msrb.gmra.mxu1 %v861_v55  ;;  %v1190_v54 = vrot.slane %v1189_v45, 4  ;;  %v1194_v55 = vrot.slane %v1192_v46, 5 }
  0x4d   : > { %1996 = vmatpush.bf16.msra.mxu1 %v1984_v40  ;;  %1026 = vmatmul.bf16.vlgmr.msrb.gmra.mxu2 %v1745_v56  ;;  %v1161_v40 = vor.u32 %v1160_v25, %v1157_v24  ;;  %v1204_v56 = vrot.slane %v1203_v47, 4 }
  0x4e   : > { %1131 = vmatmul.bf16.vlgmr.msrb.gmra.mxu3 %v1805_v57  ;;  %v1208_v57 = vrot.slane %v1206_v48, 5  ;;  %v1195_v61 = vsel %vm2141_vm2, %v1190_v54, %v1194_v55 }
  0x4f   : > { %v1162_v50 = vrot.slane %v1161_v40, 4  ;;  %v1229_v2 = vunpack.c.l.b16 %v1195_v61 }
  0x50   : > { %1284 = vmatpush.bf16.msra.mxu0 %v1983_v58  ;;  %v1209_v62 = vsel %vm2141_vm2, %v1204_v56, %v1208_v57 }
  0x51   : > { %1997 = vmatpush.bf16.msra.mxu1 %v1983_v58  ;;  %v1978_v58 = vld [vmem:[%s2372_s1 + $0x208] sm:$0xff]  ;;  %v1167_v59 = vsel %vm2141_vm2, %v1162_v50, %v1166_v51  ;;  %v1230_v3 = vunpack.c.l.b16 %v1209_v62 }
  0x52   : > { %v1227_v0 = vunpack.c.l.b16 %v1167_v59 }
  0x53   : > { %v1232_v5 = vpack.c.b16 %v1230_v3, %v1229_v2  ;;  %v2013_v2 = vld [vmem:[%s2373_s2] ss:$0 sm:$0xff] }
  0x54   : > { %1285 = vmatpush.bf16.msra.mxu0 %v1982_v1 }
  0x55   : > { %1998 = vmatpush.bf16.msra.mxu1 %v1982_v1  ;;  %v1228_v1 = vunpack.c.l.b16 %v1181_v60 }
  0x57   : > { %v1231_v4 = vpack.c.b16 %v1228_v1, %v1227_v0 }
  0x58   : > { %1286 = vmatpush.bf16.msra.mxu0 %v1981_v10 }
  0x59   : > { %1999 = vmatpush.bf16.msra.mxu1 %v1981_v10 }
  0x5b   : > { %766 = vmatmul.bf16.gmra.mxu0 %v1633_v36 }
  0x5c   : > { %1287 = vmatpush.bf16.msra.mxu0 %v1980_v33  ;;  %926 = vmatmul.bf16.gmra.mxu1 %v862_v37 }
  0x5d   : > { %2000 = vmatpush.bf16.msra.mxu1 %v1980_v33  ;;  %1031 = vmatmul.bf16.gmra.mxu2 %v1749_v38 }
  0x5e   : > { %1136 = vmatmul.bf16.gmra.mxu3 %v1809_v39 }
  0x60   : > { %1288 = vmatpush.bf16.msra.mxu0 %v1979_v49 }
  0x61   : > { %2001 = vmatpush.bf16.msra.mxu1 %v1979_v49 }
  0x64   : > { %1289 = vmatpush.bf16.msra.mxu0 %v1978_v58 }
  0x65   : > { %2002 = vmatpush.bf16.msra.mxu1 %v1978_v58 }
  0x68   : > { %1290 = vmatpush.bf16.msra.mxu0 %v1977_v63 }
  0x69   : > { %2003 = vmatpush.bf16.msra.mxu1 %v1977_v63 }
  0x6b   : > { %1291 = vmatmul.bf16.vlgmr.msra.gmra.mxu0 %v1231_v4 }
  0x6c   : > { %1296 = vmatmul.bf16.vlgmr.msra.gmra.mxu1 %v1232_v5 }
  0xa8   : > { %v314_v6 = vpop.f32.mrf.mxu0 }
  0xa9   : > { %v393_v7 = vpop.f32.mrf.mxu1 }
  0xaa   : > { %v394_v27 = vadd.f32 %v393_v7, %v314_v6 }
  0xb0   : > { %v552_v43 = vpop.f32.mrf.mxu2  ;;  %v316_v9 = vpop.f32.mrf.mxu0 }
  0xb1   : > { %v657_v8 = vpop.f32.mrf.mxu3  ;;  %v395_v10 = vpop.f32.mrf.mxu1  ;;  %v562_v32 = vadd.f32 %v552_v43, %v394_v27  ;;  %v2014_v43 = vld [vmem:[%s2374_s3] ss:$0 sm:$0xff] }
  0xb2   : > { %v396_v36 = vadd.f32 %v395_v10, %v316_v9 }
  0xb3   : > { %v667_v35 = vadd.f32 %v657_v8, %v562_v32 }
  0xb8   : > { %v554_v11 = vpop.f32.mrf.mxu2  ;;  %v319_v13 = vpop.f32.mrf.mxu0 }
  0xb9   : > { %v659_v12 = vpop.f32.mrf.mxu3  ;;  %v398_v14 = vpop.f32.mrf.mxu1  ;;  %v563_v39 = vadd.f32 %v554_v11, %v396_v36 }
  0xba   : > { %v399_v28 = vadd.f32 %v398_v14, %v319_v13 }
  0xbb   : > { %v668_v47 = vadd.f32 %v659_v12, %v563_v39 }
  0xc0   : > { %v557_v15 = vpop.f32.mrf.mxu2  ;;  %v321_v17 = vpop.f32.mrf.mxu0 }
  0xc1   : > { %v662_v16 = vpop.f32.mrf.mxu3  ;;  %v400_v18 = vpop.f32.mrf.mxu1  ;;  %v564_v33 = vadd.f32 %v557_v15, %v399_v28 }
  0xc2   : > { %v401_v38 = vadd.f32 %v400_v18, %v321_v17 }
  0xc3   : > { %v669_v37 = vadd.f32 %v662_v16, %v564_v33 }
  0xc8   : > { %v559_v19 = vpop.f32.mrf.mxu2  ;;  %v762_v21 = vpop.f32.mrf.mxu0 }
  0xc9   : > { %v664_v20 = vpop.f32.mrf.mxu3  ;;  %v922_v22 = vpop.f32.mrf.mxu1  ;;  %v565_v40 = vadd.f32 %v559_v19, %v401_v38  ;;  %v772_v41 = vadd.f32 %v762_v21, %v667_v35 }
  0xcb   : > { %v670_v48 = vadd.f32 %v664_v20, %v565_v40  ;;  %v932_v49 = vadd.f32 %v922_v22, %v772_v41 }
  0xd0   : > { %v1027_v23 = vpop.f32.mrf.mxu2  ;;  %v764_v25 = vpop.f32.mrf.mxu0 }
  0xd1   : > { %v1132_v24 = vpop.f32.mrf.mxu3  ;;  %v924_v26 = vpop.f32.mrf.mxu1  ;;  %v1037_v52 = vadd.f32 %v1027_v23, %v932_v49  ;;  %v773_v53 = vadd.f32 %v764_v25, %v668_v47 }
  0xd3   : > { %v1142_v59 = vadd.f32 %v1132_v24, %v1037_v52  ;;  %v933_v60 = vadd.f32 %v924_v26, %v773_v53 }
  0xd8   : > { %v1029_v29 = vpop.f32.mrf.mxu2  ;;  %v767_v30 = vpop.f32.mrf.mxu0 }
  0xd9   : > { %v927_v31 = vpop.f32.mrf.mxu1  ;;  %v1134_v34 = vpop.f32.mrf.mxu3  ;;  %v774_v42 = vadd.f32 %v767_v30, %v669_v37  ;;  %v1038_v63 = vadd.f32 %v1029_v29, %v933_v60 }
  0xdb   : > { %v934_v50 = vadd.f32 %v927_v31, %v774_v42  ;;  %v1143_v5 = vadd.f32 %v1134_v34, %v1038_v63 }
  0xe0   : > { %v1032_v44 = vpop.f32.mrf.mxu2  ;;  %v769_v45 = vpop.f32.mrf.mxu0 }
  0xe1   : > { %v929_v46 = vpop.f32.mrf.mxu1  ;;  %v1137_v51 = vpop.f32.mrf.mxu3  ;;  %v1039_v54 = vadd.f32 %v1032_v44, %v934_v50  ;;  %v775_v55 = vadd.f32 %v769_v45, %v670_v48 }
  0xe3   : > { %v1144_v61 = vadd.f32 %v1137_v51, %v1039_v54  ;;  %v935_v62 = vadd.f32 %v929_v46, %v775_v55 }
  0xe8   : > { %v1034_v56 = vpop.f32.mrf.mxu2  ;;  %v1292_v57 = vpop.f32.mrf.mxu0 }
  0xe9   : > { %v1297_v58 = vpop.f32.mrf.mxu1  ;;  %v1040_v0 = vadd.f32 %v1034_v56, %v935_v62  ;;  %v1302_v1 = vadd.f32 %v1292_v57, %v1142_v59  ;;  %v1139_v4 = vpop.f32.mrf.mxu3 }
  0xea   : > { %v1304_v3 = vadd.f32 %v1297_v58, %v1144_v61 }
  0xeb   : > { %v1145_v6 = vadd.f32 %v1139_v4, %v1040_v0  ;;  %v1310_v7 = vmul.f32 %v2013_v2, %v1302_v1 }
  0xec   : > { %v1312_v8 = vmul.f32 %v2013_v2, %v1304_v3 }
  0xed   : > { %v1318_v13 = vadd.f32 %v2014_v43, %v1310_v7 }
  0xee   : > { %v1320_v14 = vadd.f32 %v2014_v43, %v1312_v8 }
  0xef   : > { %v1322_v19 = vmax.f32 %v1318_v13, 0.0 }
  0xf0   : > { %v1294_v9 = vpop.f32.mrf.mxu0  ;;  %v1324_v20 = vmax.f32 %v1320_v14, 0.0 }
  0xf1   : > { %v1299_v10 = vpop.f32.mrf.mxu1  ;;  %v1303_v11 = vadd.f32 %v1294_v9, %v1143_v5 }
  0xf2   : > { %v1305_v12 = vadd.f32 %v1299_v10, %v1145_v6 }
  0xf3   : > { %v1311_v15 = vmul.f32 %v2013_v2, %v1303_v11 }
  0xf4   : > { %v1313_v16 = vmul.f32 %v2013_v2, %v1305_v12 }
  0xf5   : > { %v1319_v17 = vadd.f32 %v2014_v43, %v1311_v15 }
  0xf6   : > { %v1321_v18 = vadd.f32 %v2014_v43, %v1313_v16 }
  0xf7   : > { %v1323_v21 = vmax.f32 %v1319_v17, 0.0 }
  0xf8   : > { %v1325_v22 = vmax.f32 %v1321_v18, 0.0 }
  0xf9   : > { %v1988_v23 = vpack.c.bf16 %v1323_v21, %v1322_v19 }
  0xfa   : > { %v1993_v24 = vpack.c.bf16 %v1325_v22, %v1324_v20 }
  0xfb   : > { %1989 = vst [vmem:[%s202_s7] sm:$0xff] %v1988_v23  }
  0xfc   : > { %1995 = vst [vmem:[%s202_s7 + $0x8] sm:$0xff] %v1993_v24  }
  0xfd PF: > { %s14_s15 = sadd.s32 1, %s2021_s15  }
  0xfe   : > { %p11_p5 = scmp.ge.s32.totalorder %s14_s15, 4  }
 0x100   :  { %13 = sbr.rel (!%p11_p5) target bundleno = 1 (0x1), region = 79 }

// kernel: conv_blocks_forward.13
= control target key start
LH: loop header
LB: loop body
LE: loop exit
PB: predicated region body
PF: predicated region fallthrough
CT: control target
= control target key end

     0   :  { %s2414_s27 = smov 0   ;;  %s2849_s0 = inlined_call_operand.vmem [shape: bf16[2,6,10,128], index: 0, kind: input, shape index: {}]   ;;  %s2850_s1 = inlined_call_operand.vmem [shape: bf16[9,128,128], index: 1, kind: input, shape index: {}]   ;;  %s2851_s2 = inlined_call_operand.vmem [shape: f32[1,128], index: 2, kind: input, shape index: {}]   ;;  %s2852_s3 = inlined_call_operand.vmem [shape: f32[1,128], index: 3, kind: input, shape index: {}]   ;;  %s2853_s4 = inlined_call_operand.vmem [shape: bf16[2,32,128], index: 4, kind: input, shape index: {}]   ;;  %s2854_s5 = inlined_call_operand.vmem [shape: bf16[128,128], index: 5, kind: input, shape index: {}]   ;;  %s2855_s6 = inlined_call_operand.vmem [shape: f32[1,128], index: 6, kind: input, shape index: {}]   ;;  %s2856_s7 = inlined_call_operand.vmem [shape: f32[1,128], index: 7, kind: input, shape index: {}]   ;;  %s2857_s8 = inlined_call_operand.vmem [shape: bf16[2,32,128], index: 8, kind: output, shape index: {}]  }
   0x1 LB: > { %s1695_s28 = sadd.s32 4294967295, %s2367_s27   ;;  %p1699_p0 = scmp.ge.s32.totalorder %s2367_s27, 1  ;;  %s2367_s27 = sphi %s2414_s27, %s18_s27  }
   0x2   : > { %p272_p1 = scmp.lt.s32.totalorder %s2367_s27, 3 }
   0x4   : > { %p273_p2 = pnand %p1699_p0, %p272_p1 }
   0x5   : > { %p311_p3 = scmp.lt.s32.totalorder (!%p273_p2), %s1695_s28, 1 }
   0x6   : > { %276 = sbr.rel (%p273_p2) target bundleno = 260 (0x104), region = 52 }
   0xb   : > { %v2250_v0 = vld [vmem:[%s2850_s1 + $0x78] sm:$0xff]  ;;  %v2249_v4 = vld [vmem:[%s2850_s1 + $0x70] sm:$0xff]  ;;  %s2863_s28 = smov (!%p311_p3, %s1695_s28), 1  ;;  %v2248_v8 = vld [vmem:[%s2850_s1 + $0x68] sm:$0xff]  ;;  %vm350_vm0 = vsmask.f32 3328 }
   0xc   : > { %v2242_v1 = vld [vmem:[%s2850_s1 + $0x38] sm:$0xff]  ;;  %482 = vmatpush.bf16.msra.mxu0 %v2250_v0  ;;  %v2241_v5 = vld [vmem:[%s2850_s1 + $0x30] sm:$0xff]  ;;  %s2348_s23 = smul.u32 48, %s2863_s28  ;;  %v2240_v9 = vld [vmem:[%s2850_s1 + $0x28] sm:$0xff]  ;;  %vm351_vm1 = vsmask.f32 7440 }
   0xd   : > { %v2258_v2 = vld [vmem:[%s2850_s1 + $0xb8] sm:$0xff]  ;;  %561 = vmatpush.bf16.msra.mxu1 %v2242_v1  ;;  %v2257_v6 = vld [vmem:[%s2850_s1 + $0xb0] sm:$0xff]  ;;  %v2256_v10 = vld [vmem:[%s2850_s1 + $0xa8] sm:$0xff]  ;;  %vm592_vm2 = vcmask 1042432   ;;  %vm593_vm3 = vcmask 1046532   ;;  %s2231_s17 = sshll.u32 %s2863_s28, 4 }
   0xe   : > { %v2268_v3 = vld [vmem:[%s2850_s1 + $0xf8] sm:$0xff]  ;;  %684 = vmatpush.bf16.msra.mxu2 %v2258_v2  ;;  %v2267_v7 = vld [vmem:[%s2850_s1 + $0xf0] sm:$0xff]  ;;  %v2266_v11 = vld [vmem:[%s2850_s1 + $0xe8] sm:$0xff]  ;;  %s2464_s14 = scalar_lea.vmem %s2849_s0, %s2348_s23  ;;  %s320_s20 = scalar_lea.vmem %s2853_s4, %s2231_s17 }
   0xf   : > { %789 = vmatpush.bf16.msra.mxu3 %v2268_v3  ;;  %v2247_v12 = vld [vmem:[%s2850_s1 + $0x60] sm:$0xff]  ;;  %v327_v17 = vld [vmem:[%s2464_s14 + $0x8] sm:$0xf]  ;;  %v347_v19 = vld [vmem:[%s2464_s14 + $0xc] sm:$0x1] }
  0x10   : > { %483 = vmatpush.bf16.msra.mxu0 %v2249_v4  ;;  %v2239_v13 = vld [vmem:[%s2850_s1 + $0x20] sm:$0xff]  ;;  %v368_v22 = vshrl.u32 %v327_v17, 16  ;;  %v371_v24 = vshll.u32 %v327_v17, 16  ;;  %v2246_v25 = vld [vmem:[%s2850_s1 + $0x58] sm:$0xff]  ;;  %v377_v30 = vshll.u32 %v347_v19, 16  ;;  %v2245_v39 = vld [vmem:[%s2850_s1 + $0x50] sm:$0xff] }
  0x11   : > { %562 = vmatpush.bf16.msra.mxu1 %v2241_v5  ;;  %v2255_v14 = vld [vmem:[%s2850_s1 + $0xa0] sm:$0xff]  ;;  %v2238_v26 = vld [vmem:[%s2850_s1 + $0x18] sm:$0xff]  ;;  %v581_v36 = vld [vmem:[%s2464_s14 + $0x8] sm:$0xe]  ;;  %v601_v51 = vrot.slane %v347_v19, 5 }
  0x12   : > { %685 = vmatpush.bf16.msra.mxu2 %v2257_v6  ;;  %v2265_v15 = vld [vmem:[%s2850_s1 + $0xe0] sm:$0xff]  ;;  %v370_v29 = vrot.slane %v368_v22, 4  ;;  %v2254_v31 = vld [vmem:[%s2850_s1 + $0x98] sm:$0xff]  ;;  %v373_v33 = vrot.slane %v371_v24, 5  ;;  %v2237_v40 = vld [vmem:[%s2850_s1 + $0x10] sm:$0xff]  ;;  %v379_v43 = vrot.slane %v377_v30, 5 }
  0x13   : > { %790 = vmatpush.bf16.msra.mxu3 %v2267_v7  ;;  %v326_v16 = vld [vmem:[%s2464_s14] sm:$0xf]  ;;  %v346_v18 = vld [vmem:[%s2464_s14 + $0x4] sm:$0x1]  ;;  %v2264_v32 = vld [vmem:[%s2850_s1 + $0xd8] sm:$0xff]  ;;  %v1794_v50 = vrot.slane %v581_v36, 9 }
  0x14   : > { %484 = vmatpush.bf16.msra.mxu0 %v2248_v8  ;;  %v354_v20 = vshrl.u32 %v326_v16, 16  ;;  %v357_v21 = vshll.u32 %v326_v16, 16  ;;  %v363_v23 = vshll.u32 %v346_v18, 16  ;;  %v580_v34 = vld [vmem:[%s2464_s14] sm:$0xe]  ;;  %v374_v38 = vor.u32 %v373_v33, %v370_v29  ;;  %vm2504_vm4 = vmor %vm350_vm0, %vm351_vm1  ;;  %v2253_v46 = vld [vmem:[%s2850_s1 + $0x90] sm:$0xff] }
  0x15   : > { %563 = vmatpush.bf16.msra.mxu1 %v2240_v9  ;;  %v1793_v44 = vrot.slane %v580_v34, 9  ;;  %v597_v45 = vrot.slane %v346_v18, 5  ;;  %v2263_v47 = vld [vmem:[%s2850_s1 + $0xd0] sm:$0xff]  ;;  %vm2516_vm5 = vmor %vm592_vm2, %vm593_vm3  ;;  %v2244_v54 = vld [vmem:[%s2850_s1 + $0x48] sm:$0xff] }
  0x16   : > { %686 = vmatpush.bf16.msra.mxu2 %v2256_v10  ;;  %v356_v27 = vrot.slane %v354_v20, 4  ;;  %v359_v28 = vrot.slane %v357_v21, 5  ;;  %v365_v37 = vrot.slane %v363_v23, 5  ;;  %v375_v48 = vrot.slane %v374_v38, 4  ;;  %v328_v53 = vld [vmem:[%s2464_s14 + $0x10] sm:$0xf] }
  0x17   : > { %791 = vmatpush.bf16.msra.mxu3 %v2266_v11  ;;  %v2236_v55 = vld [vmem:[%s2850_s1 + $0x8] sm:$0xff]  ;;  %v598_v57 = vsel %vm2516_vm5, %v1793_v44, %v597_v45  ;;  %v329_v58 = vld [vmem:[%s2464_s14 + $0x18] sm:$0xf]  ;;  %v602_v61 = vsel %vm2516_vm5, %v1794_v50, %v601_v51  ;;  %v382_v62 = vshrl.u32 %v328_v53, 16  ;;  %v385_v63 = vshll.u32 %v328_v53, 16  ;;  %v2243_v1 = vld [vmem:[%s2850_s1 + $0x40] sm:$0xff] }
  0x18   : > { %485 = vmatpush.bf16.msra.mxu0 %v2247_v12  ;;  %v360_v35 = vor.u32 %v359_v28, %v356_v27  ;;  %v380_v56 = vsel %vm2504_vm4, %v375_v48, %v379_v43  ;;  %v2252_v59 = vld [vmem:[%s2850_s1 + $0x88] sm:$0xff]  ;;  %v396_v0 = vshrl.u32 %v329_v58, 16  ;;  %v2546_v3 = vld [vmem:[%s2464_s14 + $0x14] sm:$0x1]  ;;  %v399_v4 = vshll.u32 %v329_v58, 16  ;;  %v2235_v5 = vld [vmem:[%s2850_s1] sm:$0xff] }
  0x19   : > { %564 = vmatpush.bf16.msra.mxu1 %v2239_v13  ;;  %v2262_v60 = vld [vmem:[%s2850_s1 + $0xc8] sm:$0xff]  ;;  %v427_v6 = vunpack.c.l.b16 %v380_v56  ;;  %v2552_v7 = vld [vmem:[%s2464_s14 + $0x1c] sm:$0x1]  ;;  %v384_v8 = vrot.slane %v382_v62, 4  ;;  %v387_v9 = vrot.slane %v385_v63, 5  ;;  %v2251_v11 = vld [vmem:[%s2850_s1 + $0x80] sm:$0xff] }
  0x1a   : > { %687 = vmatpush.bf16.msra.mxu2 %v2255_v14  ;;  %v361_v42 = vrot.slane %v360_v35, 4  ;;  %v398_v10 = vrot.slane %v396_v0, 4  ;;  %v1755_v12 = vld [vmem:[%s2464_s14] sm:$0xf]  ;;  %v2233_v13 = vld [vmem:[%s2464_s14 + $0x4] sm:$0xf0]  ;;  %v628_v14 = vunpack.c.l.b16 %v598_v57 }
  0x1b   : > { %792 = vmatpush.bf16.msra.mxu3 %v2265_v15  ;;  %v629_v15 = vunpack.c.l.b16 %v602_v61  ;;  %v401_v16 = vrot.slane %v399_v4, 5  ;;  %v2261_v17 = vld [vmem:[%s2850_s1 + $0xc0] sm:$0xff]  ;;  %v1867_v18 = vld [vmem:[%s2464_s14 + $0x8] sm:$0xf]  ;;  %v2259_v19 = vld [vmem:[%s2464_s14 + $0xc] sm:$0xf0]  ;;  %v388_v22 = vor.u32 %v387_v9, %v384_v8  ;;  %v1756_v27 = vor.u32 %v2233_v13, %v1755_v12 }
  0x1c   : > { %486 = vmatpush.bf16.msra.mxu0 %v2246_v25  ;;  %v366_v52 = vsel %vm2504_vm4, %v361_v42, %v365_v37  ;;  %v2294_v20 = vld [vmem:[%s2850_s1 + $0x1b8] sm:$0xff]  ;;  %v391_v23 = vshll.u32 %v2546_v3, 16  ;;  %v405_v25 = vshll.u32 %v2552_v7, 16  ;;  %v1868_v29 = vor.u32 %v2259_v19, %v1867_v18  ;;  %v2275_v33 = vld [vmem:[%s2850_s1 + $0x130] sm:$0xff]  ;;  %v2292_v50 = vld [vmem:[%s2850_s1 + $0x1a8] sm:$0xff] }
  0x1d   : > { %565 = vmatpush.bf16.msra.mxu1 %v2238_v26  ;;  %v426_v2 = vunpack.c.l.b16 %v366_v52  ;;  %v2276_v21 = vld [vmem:[%s2850_s1 + $0x138] sm:$0xff]  ;;  %v402_v24 = vor.u32 %v401_v16, %v398_v10  ;;  %v632_v28 = vpack.c.b16 %v629_v15, %v628_v14  ;;  %v582_v34 = vld [vmem:[%s2464_s14 + $0x10] sm:$0xe]  ;;  %v389_v35 = vrot.slane %v388_v22, 4  ;;  %v2274_v51 = vld [vmem:[%s2850_s1 + $0x128] sm:$0xff] }
  0x1e   : > { %688 = vmatpush.bf16.msra.mxu2 %v2254_v31  ;;  %v2284_v30 = vld [vmem:[%s2850_s1 + $0x178] sm:$0xff]  ;;  %v393_v36 = vrot.slane %v391_v23, 5  ;;  %v407_v38 = vrot.slane %v405_v25, 5  ;;  %v1907_v42 = vld [vmem:[%s2464_s14 + $0x10] sm:$0xf]  ;;  %v1795_v45 = vrot.slane %v582_v34, 9 }
  0x1f   : > { %793 = vmatpush.bf16.msra.mxu3 %v2264_v32  ;;  %v430_v26 = vpack.c.b16 %v427_v6, %v426_v2  ;;  %v2302_v31 = vld [vmem:[%s2850_s1 + $0x1f8] sm:$0xff]  ;;  %v2293_v32 = vld [vmem:[%s2850_s1 + $0x1b0] sm:$0xff]  ;;  %v403_v37 = vrot.slane %v402_v24, 4  ;;  %v609_v48 = vrot.slane %v2552_v7, 5  ;;  %v835_v56 = vshrl.u32 %v1907_v42, 16  ;;  %v2282_v58 = vld [vmem:[%s2850_s1 + $0x168] sm:$0xff] }
  0x20   : > { %487 = vmatpush.bf16.msra.mxu0 %v2245_v39  ;;  %v583_v39 = vld [vmem:[%s2464_s14 + $0x18] sm:$0xe]  ;;  %v2283_v43 = vld [vmem:[%s2850_s1 + $0x170] sm:$0xff]  ;;  %v394_v52 = vsel %vm2504_vm4, %v389_v35, %v393_v36  ;;  %v838_v57 = vshll.u32 %v1907_v42, 16  ;;  %v2291_v61 = vld [vmem:[%s2850_s1 + $0x1a0] sm:$0xff] }
  0x21   : > { %566 = vmatpush.bf16.msra.mxu1 %v2237_v40  ;;  %v1905_v40 = vld [vmem:[%s2464_s14 + $0x8] sm:$0xf]  ;;  %v2301_v44 = vld [vmem:[%s2850_s1 + $0x1f0] sm:$0xff]  ;;  %v408_v53 = vsel %vm2504_vm4, %v403_v37, %v407_v38  ;;  %v2273_v62 = vld [vmem:[%s2850_s1 + $0x120] sm:$0xff]  ;;  %v428_v4 = vunpack.c.l.b16 %v394_v52  ;;  %v837_v14 = vrot.slane %v835_v56, 4 }
  0x22   : > { %689 = vmatpush.bf16.msra.mxu2 %v2253_v46  ;;  %v605_v46 = vrot.slane %v2546_v3, 5  ;;  %v1759_v6 = vld [vmem:[%s2464_s14 + $0x10] sm:$0xf]  ;;  %v2626_v7 = vld [vmem:[%s2464_s14 + $0xc] sm:$0x1]  ;;  %v2281_v9 = vld [vmem:[%s2850_s1 + $0x160] sm:$0xff] }
  0x23   : > { %794 = vmatpush.bf16.msra.mxu3 %v2263_v47  ;;  %v1796_v47 = vrot.slane %v583_v39, 9  ;;  %v2629_v8 = vld [vmem:[%s2464_s14 + $0x14] sm:$0x1]  ;;  %v2299_v10 = vld [vmem:[%s2850_s1 + $0x1e0] sm:$0xff]  ;;  %v840_v15 = vrot.slane %v838_v57, 5  ;;  %v2290_v22 = vld [vmem:[%s2850_s1 + $0x198] sm:$0xff] }
  0x24   : > { %488 = vmatpush.bf16.msra.mxu0 %v2244_v54  ;;  %v821_v54 = vshrl.u32 %v1905_v40, 16  ;;  %v606_v63 = vsel %vm2516_vm5, %v1795_v45, %v605_v46  ;;  %v1871_v18 = vld [vmem:[%s2464_s14 + $0x18] sm:$0xf]  ;;  %v2260_v19 = vld [vmem:[%s2464_s14 + $0x1c] sm:$0xf0]  ;;  %v830_v24 = vshll.u32 %v2626_v7, 16 }
  0x25   : > { %567 = vmatpush.bf16.msra.mxu1 %v2236_v55  ;;  %v824_v55 = vshll.u32 %v1905_v40, 16  ;;  %v610_v0 = vsel %vm2516_vm5, %v1796_v47, %v609_v48  ;;  %v630_v16 = vunpack.c.l.b16 %v606_v63  ;;  %v2272_v23 = vld [vmem:[%s2850_s1 + $0x118] sm:$0xff]  ;;  %v844_v25 = vshll.u32 %v2629_v8, 16  ;;  %v1961_v36 = vld [vmem:[%s2464_s14 + $0x8] sm:$0xe]  ;;  %v2289_v47 = vld [vmem:[%s2850_s1 + $0x190] sm:$0xff] }
  0x26   : > { %690 = vmatpush.bf16.msra.mxu2 %v2252_v59  ;;  %v2300_v59 = vld [vmem:[%s2850_s1 + $0x1e8] sm:$0xff]  ;;  %v823_v12 = vrot.slane %v821_v54, 4  ;;  %v841_v35 = vor.u32 %v840_v15, %v837_v14  ;;  %v1872_v38 = vor.u32 %v2260_v19, %v1871_v18  ;;  %v1962_v39 = vld [vmem:[%s2464_s14 + $0x10] sm:$0xe]  ;;  %v2280_v40 = vld [vmem:[%s2850_s1 + $0x158] sm:$0xff]  ;;  %v1965_v52 = vrot.slane %v1961_v36, 9 }
  0x27   : > { %795 = vmatpush.bf16.msra.mxu3 %v2262_v60  ;;  %v2077_v60 = vld [vmem:[%s2464_s14 + $0x10] sm:$0xf]  ;;  %v826_v13 = vrot.slane %v824_v55, 5  ;;  %v2298_v42 = vld [vmem:[%s2850_s1 + $0x1d8] sm:$0xff]  ;;  %v1966_v57 = vrot.slane %v1962_v39, 9 }
  0x28   : > { %489 = vmatpush.bf16.msra.mxu0 %v2243_v1  ;;  %v2079_v1 = vld [vmem:[%s2464_s14 + $0x18] sm:$0xf]  ;;  %v1210_v2 = vshrl.u32 %v2077_v60, 16  ;;  %v1213_v3 = vshll.u32 %v2077_v60, 16  ;;  %v2271_v48 = vld [vmem:[%s2850_s1 + $0x110] sm:$0xff]  ;;  %v842_v56 = vrot.slane %v841_v35, 4 }
  0x29   : > { %568 = vmatpush.bf16.msra.mxu1 %v2235_v5  ;;  %v429_v5 = vunpack.c.l.b16 %v408_v53  ;;  %v827_v34 = vor.u32 %v826_v13, %v823_v12  ;;  %v986_v53 = vrot.slane %v2626_v7, 5  ;;  %v2279_v54 = vld [vmem:[%s2850_s1 + $0x150] sm:$0xff]  ;;  %v2288_v60 = vld [vmem:[%s2850_s1 + $0x188] sm:$0xff]  ;;  %v2728_v35 = vld [vmem:[%s2464_s14 + $0x1c] sm:$0x1] }
  0x2a   : > { %691 = vmatpush.bf16.msra.mxu2 %v2251_v11  ;;  %v2234_v11 = vld [vmem:[%s2464_s14 + $0x14] sm:$0xf0]  ;;  %v2709_v18 = vld [vmem:[%s2464_s14 + $0x10] sm:$0xf] }
  0x2b   : > { %796 = vmatpush.bf16.msra.mxu3 %v2261_v17  ;;  %490 = vmatmul.bf16.vlgmr.msra.gmra.mxu0 %v430_v26  ;;  %v631_v17 = vunpack.c.l.b16 %v610_v0  ;;  %v1212_v26 = vrot.slane %v1210_v2, 4  ;;  %v828_v55 = vrot.slane %v827_v34, 4  ;;  %v1911_v2 = vld [vmem:[%s2464_s14 + $0x20] sm:$0xf]  ;;  %v2310_v34 = vld [vmem:[%s2850_s1 + $0x238] sm:$0xff] }
  0x2c   : > { %949 = vmatpush.bf16.msrb.mxu0 %v2276_v21  ;;  %569 = vmatmul.bf16.vlgmr.msra.gmra.mxu1 %v1756_v27  ;;  %v1227_v21 = vshll.u32 %v2079_v1, 16  ;;  %v1215_v27 = vrot.slane %v1213_v3, 5  ;;  %v2270_v3 = vld [vmem:[%s2850_s1 + $0x108] sm:$0xff]  ;;  %v863_v14 = vshrl.u32 %v1911_v2, 16  ;;  %v866_v15 = vshll.u32 %v1911_v2, 16  ;;  %v2316_v41 = vld [vmem:[%s2854_s5 + $0x18] sm:$0xff] }
  0x2d   : > { %692 = vmatmul.bf16.vlgmr.msra.gmra.mxu2 %v632_v28  ;;  %1073 = vmatpush.bf16.msrb.mxu1 %v2284_v30  ;;  %v2649_v28 = vld [vmem:[%s2464_s14 + $0x14] sm:$0x1]  ;;  %v633_v37 = vpack.c.b16 %v631_v17, %v630_v16  ;;  %v2287_v16 = vld [vmem:[%s2850_s1 + $0x180] sm:$0xff] }
  0x2e   : > { %1178 = vmatpush.bf16.msrb.mxu2 %v2294_v20  ;;  %797 = vmatmul.bf16.vlgmr.msra.gmra.mxu3 %v1868_v29  ;;  %v1224_v20 = vshrl.u32 %v2079_v1, 16  ;;  %v2652_v29 = vld [vmem:[%s2464_s14 + $0x1c] sm:$0x1]  ;;  %v2269_v17 = vld [vmem:[%s2850_s1 + $0x100] sm:$0xff]  ;;  %v868_v39 = vrot.slane %v866_v15, 5 }
  0x2f   : > { %1338 = vmatpush.bf16.msrb.mxu3 %v2302_v31  ;;  %v1229_v31 = vrot.slane %v1227_v21, 5  ;;  %v1233_v46 = vshll.u32 %v2652_v29, 16  ;;  %v2716_v21 = vld [vmem:[%s2464_s14 + $0x14] sm:$0xf0] }
  0x30   : > { %950 = vmatpush.bf16.msrb.mxu0 %v2275_v33  ;;  %v1226_v30 = vrot.slane %v1224_v20, 4  ;;  %v1760_v33 = vor.u32 %v2234_v11, %v1759_v6  ;;  %v2296_v6 = vld [vmem:[%s2850_s1 + $0x1c8] sm:$0xff] }
  0x31   : > { %1074 = vmatpush.bf16.msrb.mxu1 %v2283_v43  ;;  %v1216_v43 = vor.u32 %v1215_v27, %v1212_v26  ;;  %v1235_v1 = vrot.slane %v1233_v46, 5  ;;  %v2083_v11 = vld [vmem:[%s2464_s14 + $0x28] sm:$0xf]  ;;  %v2277_v26 = vld [vmem:[%s2850_s1 + $0x140] sm:$0xff]  ;;  %v2309_v46 = vld [vmem:[%s2850_s1 + $0x230] sm:$0xff] }
  0x32   : > { %1179 = vmatpush.bf16.msrb.mxu2 %v2293_v32  ;;  %v431_v32 = vpack.c.b16 %v429_v5, %v428_v4  ;;  %v1230_v45 = vor.u32 %v1229_v31, %v1226_v30  ;;  %v2081_v4 = vld [vmem:[%s2464_s14 + $0x20] sm:$0xf]  ;;  %v2278_v5 = vld [vmem:[%s2850_s1 + $0x148] sm:$0xff] }
  0x33   : > { %1339 = vmatpush.bf16.msrb.mxu3 %v2301_v44  ;;  %v1219_v44 = vshll.u32 %v2649_v28, 16  ;;  %v2295_v27 = vld [vmem:[%s2850_s1 + $0x1c0] sm:$0xff] }
  0x34   : > { %951 = vmatpush.bf16.msrb.mxu0 %v2274_v51  ;;  %v846_v51 = vrot.slane %v844_v25, 5  ;;  %v1231_v0 = vrot.slane %v1230_v45, 4  ;;  %v1255_v25 = vshll.u32 %v2083_v11, 16  ;;  %v2320_v45 = vld [vmem:[%s2854_s5 + $0x38] sm:$0xff] }
  0x35   : > { %1075 = vmatpush.bf16.msrb.mxu1 %v2282_v58  ;;  %v990_v58 = vrot.slane %v2629_v8, 5  ;;  %v1221_v63 = vrot.slane %v1219_v44, 5 }
  0x36   : > { %1180 = vmatpush.bf16.msrb.mxu2 %v2292_v50  ;;  %v832_v50 = vrot.slane %v830_v24, 5  ;;  %v847_v8 = vsel %vm2504_vm4, %v842_v56, %v846_v51  ;;  %v1236_v20 = vsel %vm2504_vm4, %v1231_v0, %v1235_v1  ;;  %v1252_v24 = vshrl.u32 %v2083_v11, 16  ;;  %v1963_v0 = vld [vmem:[%s2464_s14 + $0x18] sm:$0xe]  ;;  %v2308_v11 = vld [vmem:[%s2850_s1 + $0x228] sm:$0xff] }
  0x37   : > { %1340 = vmatpush.bf16.msrb.mxu3 %v2300_v59  ;;  %v2297_v59 = vld [vmem:[%s2850_s1 + $0x1d0] sm:$0xff]  ;;  %v894_v31 = vunpack.c.l.b16 %v847_v8  ;;  %v1283_v44 = vunpack.c.l.b16 %v1236_v20 }
  0x38   : > { %952 = vmatpush.bf16.msrb.mxu0 %v2273_v62  ;;  %v1217_v62 = vrot.slane %v1216_v43, 4  ;;  %v833_v7 = vsel %vm2504_vm4, %v828_v55, %v832_v50 }
  0x39   : > { %1076 = vmatpush.bf16.msrb.mxu1 %v2281_v9  ;;  %v987_v9 = vsel %vm2516_vm5, %v1965_v52, %v986_v53  ;;  %v893_v30 = vunpack.c.l.b16 %v833_v7  ;;  %v1254_v52 = vrot.slane %v1252_v24, 4  ;;  %v1257_v53 = vrot.slane %v1255_v25, 5 }
  0x3a   : > { %1181 = vmatpush.bf16.msrb.mxu2 %v2291_v61  ;;  %v1909_v61 = vld [vmem:[%s2464_s14 + $0x18] sm:$0xf]  ;;  %v1222_v19 = vsel %vm2504_vm4, %v1217_v62, %v1221_v63 }
  0x3b   : > { %1341 = vmatpush.bf16.msrb.mxu3 %v2299_v10  ;;  %495 = vmatmul.bf16.gmra.mxu0 %v431_v32  ;;  %v991_v10 = vsel %vm2516_vm5, %v1966_v57, %v990_v58  ;;  %v849_v12 = vshrl.u32 %v1909_v61, 16  ;;  %v852_v13 = vshll.u32 %v1909_v61, 16  ;;  %v1017_v32 = vunpack.c.l.b16 %v987_v9  ;;  %v2084_v58 = vld [vmem:[%s2464_s14 + $0x2c] sm:$0x1] }
  0x3c   : > { %953 = vmatpush.bf16.msrb.mxu0 %v2272_v23  ;;  %574 = vmatmul.bf16.gmra.mxu1 %v1760_v33  ;;  %v1241_v23 = vshll.u32 %v2081_v4, 16  ;;  %v1018_v33 = vunpack.c.l.b16 %v991_v10  ;;  %v1282_v43 = vunpack.c.l.b16 %v1222_v19  ;;  %v897_v55 = vpack.c.b16 %v894_v31, %v893_v30  ;;  %v2307_v30 = vld [vmem:[%s2850_s1 + $0x220] sm:$0xff] }
  0x3d   : > { %697 = vmatmul.bf16.gmra.mxu2 %v633_v37  ;;  %1077 = vmatpush.bf16.msrb.mxu1 %v2280_v40  ;;  %v851_v36 = vrot.slane %v849_v12, 4  ;;  %v854_v37 = vrot.slane %v852_v13, 5  ;;  %v2731_v40 = vld [vmem:[%s2464_s14 + $0x24] sm:$0x1]  ;;  %v858_v57 = vshll.u32 %v2728_v35, 16  ;;  %v1387_v1 = vrot.slane %v2084_v58, 5 }
  0x3e   : > { %1182 = vmatpush.bf16.msrb.mxu2 %v2290_v22  ;;  %802 = vmatmul.bf16.gmra.mxu3 %v1872_v38  ;;  %v1238_v22 = vshrl.u32 %v2081_v4, 16  ;;  %v865_v38 = vrot.slane %v863_v14, 4  ;;  %v1243_v51 = vrot.slane %v1241_v23, 5  ;;  %v1021_v56 = vpack.c.b16 %v1018_v33, %v1017_v32  ;;  %v2318_v23 = vld [vmem:[%s2854_s5 + $0x28] sm:$0xff] }
  0x3f   : > { %1342 = vmatpush.bf16.msrb.mxu3 %v2298_v42  ;;  %v2040_v42 = vor.u32 %v2716_v21, %v2709_v18  ;;  %v855_v61 = vor.u32 %v854_v37, %v851_v36  ;;  %v1286_v2 = vpack.c.b16 %v1283_v44, %v1282_v43  ;;  %v1258_v8 = vor.u32 %v1257_v53, %v1254_v52  ;;  %v2317_v36 = vld [vmem:[%s2854_s5 + $0x20] sm:$0xff] }
  0x40   : > { %954 = vmatpush.bf16.msrb.mxu0 %v2271_v48  ;;  %v1383_v48 = vrot.slane %v2731_v40, 5  ;;  %v1240_v50 = vrot.slane %v1238_v22, 4  ;;  %v869_v62 = vor.u32 %v868_v39, %v865_v38  ;;  %v1261_v9 = vshll.u32 %v2084_v58, 16  ;;  %v2304_v58 = vld [vmem:[%s2850_s1 + $0x208] sm:$0xff] }
  0x41   : > { %1078 = vmatpush.bf16.msrb.mxu1 %v2279_v54  ;;  %v2135_v54 = vld [vmem:[%s2464_s14 + $0x20] sm:$0xe]  ;;  %v860_v12 = vrot.slane %v858_v57, 5  ;;  %v1967_v13 = vrot.slane %v1963_v0, 9  ;;  %v856_v15 = vrot.slane %v855_v61, 4  ;;  %v994_v19 = vrot.slane %v2728_v35, 5 }
  0x42   : > { %1183 = vmatpush.bf16.msrb.mxu2 %v2289_v47  ;;  %v2742_v47 = vld [vmem:[%s2464_s14 + $0x24] sm:$0x1]  ;;  %v1244_v7 = vor.u32 %v1243_v51, %v1240_v50  ;;  %v2305_v51 = vld [vmem:[%s2850_s1 + $0x210] sm:$0xff] }
  0x43   : > { %1343 = vmatpush.bf16.msrb.mxu3 %v2297_v59  ;;  %v2136_v59 = vld [vmem:[%s2464_s14 + $0x28] sm:$0xe]  ;;  %v872_v63 = vshll.u32 %v2742_v47, 16  ;;  %v998_v21 = vrot.slane %v2742_v47, 5  ;;  %v861_v32 = vsel %vm2504_vm4, %v856_v15, %v860_v12  ;;  %v2315_v57 = vld [vmem:[%s2854_s5 + $0x10] sm:$0xff] }
  0x44   : > { %955 = vmatpush.bf16.msrb.mxu0 %v2270_v3  ;;  %v1247_v3 = vshll.u32 %v2731_v40, 16  ;;  %v2140_v10 = vrot.slane %v2136_v59, 9  ;;  %v1245_v24 = vrot.slane %v1244_v7, 4  ;;  %v895_v39 = vunpack.c.l.b16 %v861_v32 }
  0x45   : > { %1079 = vmatpush.bf16.msrb.mxu1 %v2278_v5  ;;  %v2319_v5 = vld [vmem:[%s2854_s5 + $0x30] sm:$0xff]  ;;  %v1375_v59 = vrot.slane %v2649_v28, 5  ;;  %v2303_v28 = vld [vmem:[%s2850_s1 + $0x200] sm:$0xff] }
  0x46   : > { %1184 = vmatpush.bf16.msrb.mxu2 %v2288_v60  ;;  %v2139_v60 = vrot.slane %v2135_v54, 9  ;;  %v1388_v18 = vsel %vm2516_vm5, %v2140_v10, %v1387_v1  ;;  %v1249_v25 = vrot.slane %v1247_v3, 5  ;;  %v2313_v1 = vld [vmem:[%s2854_s5] sm:$0xff] }
  0x47   : > { %1344 = vmatpush.bf16.msrb.mxu3 %v2296_v6  ;;  %v1964_v6 = vld [vmem:[%s2464_s14 + $0x20] sm:$0xe]  ;;  %v1409_v22 = vunpack.c.l.b16 %v1388_v18 }
  0x48   : > { %956 = vmatpush.bf16.msrb.mxu0 %v2269_v17  ;;  %v1384_v4 = vsel %vm2516_vm5, %v2139_v60, %v1383_v48  ;;  %v874_v17 = vrot.slane %v872_v63, 5  ;;  %v1968_v20 = vrot.slane %v1964_v6, 9  ;;  %v1250_v37 = vsel %vm2504_vm4, %v1245_v24, %v1249_v25  ;;  %v2314_v63 = vld [vmem:[%s2854_s5 + $0x8] sm:$0xff] }
  0x49   : > { %1080 = vmatpush.bf16.msrb.mxu1 %v2277_v26  ;;  %v1408_v14 = vunpack.c.l.b16 %v1384_v4  ;;  %v1259_v26 = vrot.slane %v1258_v8, 4  ;;  %v1284_v47 = vunpack.c.l.b16 %v1250_v37  ;;  %v1379_v60 = vrot.slane %v2652_v29, 5  ;;  %v2311_v4 = vld [vmem:[%s320_s20] sm:$0xff] }
  0x4a   : > { %1185 = vmatpush.bf16.msrb.mxu2 %v2287_v16  ;;  %v870_v16 = vrot.slane %v869_v62, 4  ;;  %v999_v35 = vsel %vm2516_vm5, %v1968_v20, %v998_v21 }
  0x4b   : > { %1345 = vmatpush.bf16.msrb.mxu3 %v2295_v27  ;;  %957 = vmatmul.bf16.vlgmr.msrb.gmra.mxu0 %v897_v55  ;;  %v1263_v27 = vrot.slane %v1261_v9, 5  ;;  %v2771_v31 = vpack.c.b16 %v1409_v22, %v1408_v14  ;;  %v1020_v44 = vunpack.c.l.b16 %v999_v35  ;;  %v2133_v55 = vld [vmem:[%s2464_s14 + $0x10] sm:$0xe] }
  0x4c   : > { %1462 = vmatpush.bf16.msra.mxu0 %v2310_v34  ;;  %1081 = vmatmul.bf16.vlgmr.msrb.gmra.mxu1 %v1021_v56  ;;  %v875_v33 = vsel %vm2504_vm4, %v870_v16, %v874_v17  ;;  %v2134_v56 = vld [vmem:[%s2464_s14 + $0x18] sm:$0xe]  ;;  %v2137_v61 = vrot.slane %v2133_v55, 9 }
  0x4d   : > { %1581 = vmatpush.bf16.msra.mxu1 %v2320_v45  ;;  %1186 = vmatmul.bf16.vlgmr.msrb.gmra.mxu2 %v2040_v42  ;;  %v1264_v38 = vsel %vm2504_vm4, %v1259_v26, %v1263_v27  ;;  %v896_v40 = vunpack.c.l.b16 %v875_v33  ;;  %v2306_v42 = vld [vmem:[%s2850_s1 + $0x218] sm:$0xff]  ;;  %v2138_v62 = vrot.slane %v2134_v56, 9 }
  0x4e   : > { %2332 = vmatpush.bf16.msra.mxu2 %v2310_v34  ;;  %1346 = vmatmul.bf16.vlgmr.msrb.gmra.mxu3 %v1286_v2  ;;  %v995_v34 = vsel %vm2516_vm5, %v1967_v13, %v994_v19  ;;  %v1285_v48 = vunpack.c.l.b16 %v1264_v38  ;;  %v1376_v29 = vsel %vm2516_vm5, %v2137_v61, %v1375_v59 }
  0x4f   : > { %2340 = vmatpush.bf16.msra.mxu3 %v2320_v45  ;;  %v1019_v43 = vunpack.c.l.b16 %v995_v34  ;;  %v2043_v45 = vld [vmem:[%s2464_s14 + $0x20] sm:$0xf]  ;;  %v898_v50 = vpack.c.b16 %v896_v40, %v895_v39  ;;  %v1380_v0 = vsel %vm2516_vm5, %v2138_v62, %v1379_v60  ;;  %v1406_v2 = vunpack.c.l.b16 %v1376_v29 }
  0x50   : > { %1463 = vmatpush.bf16.msra.mxu0 %v2309_v46  ;;  %v1287_v54 = vpack.c.b16 %v1285_v48, %v1284_v47  ;;  %v1407_v3 = vunpack.c.l.b16 %v1380_v0  ;;  %v2357_v29 = vld [vmem:[%s2851_s2] ss:$0 sm:$0xff] }
  0x51   : > { %1582 = vmatpush.bf16.msra.mxu1 %v2319_v5  ;;  %v1022_v52 = vpack.c.b16 %v1020_v44, %v1019_v43  ;;  %v2359_v0 = vld [vmem:[%s2855_s6] ss:$0 sm:$0xff] }
  0x52   : > { %2333 = vmatpush.bf16.msra.mxu2 %v2309_v46  ;;  %v2286_v46 = vld [vmem:[%s2464_s14 + $0x24] sm:$0xf0]  ;;  %v1410_v49 = vpack.c.b16 %v1407_v3, %v1406_v2  ;;  %s325_s14 = scalar_lea.vmem %s2857_s8, %s2231_s17 }
  0x53   : > { %2341 = vmatpush.bf16.msra.mxu3 %v2319_v5  ;;  %v2044_v53 = vor.u32 %v2286_v46, %v2043_v45  ;;  %v2312_v5 = vld [vmem:[%s320_s20 + $0x8] sm:$0xff] }
  0x54   : > { %1464 = vmatpush.bf16.msra.mxu0 %v2308_v11 }
  0x55   : > { %1583 = vmatpush.bf16.msra.mxu1 %v2318_v23 }
  0x56   : > { %2334 = vmatpush.bf16.msra.mxu2 %v2308_v11 }
  0x57   : > { %2342 = vmatpush.bf16.msra.mxu3 %v2318_v23 }
  0x58   : > { %1465 = vmatpush.bf16.msra.mxu0 %v2307_v30 }
  0x59   : > { %1584 = vmatpush.bf16.msra.mxu1 %v2317_v36 }
  0x5a   : > { %2335 = vmatpush.bf16.msra.mxu2 %v2307_v30 }
  0x5b   : > { %2343 = vmatpush.bf16.msra.mxu3 %v2317_v36  ;;  %962 = vmatmul.bf16.gmra.mxu0 %v898_v50 }
  0x5c   : > { %1466 = vmatpush.bf16.msra.mxu0 %v2306_v42  ;;  %1086 = vmatmul.bf16.gmra.mxu1 %v1022_v52 }
  0x5d   : > { %1585 = vmatpush.bf16.msra.mxu1 %v2316_v41  ;;  %1191 = vmatmul.bf16.gmra.mxu2 %v2044_v53 }
  0x5e   : > { %2336 = vmatpush.bf16.msra.mxu2 %v2306_v42  ;;  %1351 = vmatmul.bf16.gmra.mxu3 %v1287_v54 }
  0x5f   : > { %2344 = vmatpush.bf16.msra.mxu3 %v2316_v41 }
  0x60   : > { %1467 = vmatpush.bf16.msra.mxu0 %v2305_v51 }
  0x61   : > { %1586 = vmatpush.bf16.msra.mxu1 %v2315_v57 }
  0x62   : > { %2337 = vmatpush.bf16.msra.mxu2 %v2305_v51 }
  0x63   : > { %2345 = vmatpush.bf16.msra.mxu3 %v2315_v57 }
  0x64   : > { %1468 = vmatpush.bf16.msra.mxu0 %v2304_v58 }
  0x65   : > { %1587 = vmatpush.bf16.msra.mxu1 %v2314_v63 }
  0x66   : > { %2338 = vmatpush.bf16.msra.mxu2 %v2304_v58 }
  0x67   : > { %2346 = vmatpush.bf16.msra.mxu3 %v2314_v63 }
  0x68   : > { %1469 = vmatpush.bf16.msra.mxu0 %v2303_v28 }
  0x69   : > { %1588 = vmatpush.bf16.msra.mxu1 %v2313_v1 }
  0x6a   : > { %2339 = vmatpush.bf16.msra.mxu2 %v2303_v28 }
  0x6b   : > { %2347 = vmatpush.bf16.msra.mxu3 %v2313_v1  ;;  %1470 = vmatmul.bf16.vlgmr.msra.gmra.mxu0 %v1410_v49 }
  0x6c   : > { %1589 = vmatmul.bf16.vlgmr.msra.gmra.mxu1 %v2311_v4  ;;  %v2358_v4 = vld [vmem:[%s2852_s3] ss:$0 sm:$0xff] }
  0x6d   : > { %1475 = vmatmul.bf16.vlgmr.msra.gmra.mxu2 %v2771_v31 }
  0x6e   : > { %1594 = vmatmul.bf16.vlgmr.msra.gmra.mxu3 %v2312_v5 }
  0xa8   : > { %v491_v6 = vpop.f32.mrf.mxu0 }
  0xa9   : > { %v570_v7 = vpop.f32.mrf.mxu1 }
  0xaa   : > { %v571_v30 = vadd.f32 %v570_v7, %v491_v6  ;;  %v2360_v6 = vld [vmem:[%s2856_s7] ss:$0 sm:$0xff] }
  0xb0   : > { %v693_v8 = vpop.f32.mrf.mxu2  ;;  %v493_v10 = vpop.f32.mrf.mxu0 }
  0xb1   : > { %v798_v9 = vpop.f32.mrf.mxu3  ;;  %v572_v11 = vpop.f32.mrf.mxu1  ;;  %v703_v34 = vadd.f32 %v693_v8, %v571_v30 }
  0xb2   : > { %v573_v38 = vadd.f32 %v572_v11, %v493_v10 }
  0xb3   : > { %v808_v37 = vadd.f32 %v798_v9, %v703_v34 }
  0xb8   : > { %v695_v12 = vpop.f32.mrf.mxu2  ;;  %v496_v14 = vpop.f32.mrf.mxu0 }
  0xb9   : > { %v800_v13 = vpop.f32.mrf.mxu3  ;;  %v575_v15 = vpop.f32.mrf.mxu1  ;;  %v704_v39 = vadd.f32 %v695_v12, %v573_v38 }
  0xba   : > { %v576_v36 = vadd.f32 %v575_v15, %v496_v14 }
  0xbb   : > { %v809_v47 = vadd.f32 %v800_v13, %v704_v39 }
  0xc0   : > { %v698_v16 = vpop.f32.mrf.mxu2  ;;  %v498_v18 = vpop.f32.mrf.mxu0 }
  0xc1   : > { %v803_v17 = vpop.f32.mrf.mxu3  ;;  %v577_v19 = vpop.f32.mrf.mxu1  ;;  %v705_v43 = vadd.f32 %v698_v16, %v576_v36 }
  0xc2   : > { %v578_v50 = vadd.f32 %v577_v19, %v498_v18 }
  0xc3   : > { %v810_v41 = vadd.f32 %v803_v17, %v705_v43 }
  0xc8   : > { %v700_v20 = vpop.f32.mrf.mxu2  ;;  %v958_v22 = vpop.f32.mrf.mxu0 }
  0xc9   : > { %v805_v21 = vpop.f32.mrf.mxu3  ;;  %v1082_v23 = vpop.f32.mrf.mxu1  ;;  %v968_v40 = vadd.f32 %v958_v22, %v808_v37  ;;  %v706_v53 = vadd.f32 %v700_v20, %v578_v50 }
  0xcb   : > { %v1092_v48 = vadd.f32 %v1082_v23, %v968_v40  ;;  %v811_v61 = vadd.f32 %v805_v21, %v706_v53 }
  0xd0   : > { %v1187_v24 = vpop.f32.mrf.mxu2  ;;  %v960_v26 = vpop.f32.mrf.mxu0 }
  0xd1   : > { %v1347_v25 = vpop.f32.mrf.mxu3  ;;  %v1084_v27 = vpop.f32.mrf.mxu1  ;;  %v1197_v51 = vadd.f32 %v1187_v24, %v1092_v48  ;;  %v969_v52 = vadd.f32 %v960_v26, %v809_v47 }
  0xd3   : > { %v1357_v58 = vadd.f32 %v1347_v25, %v1197_v51  ;;  %v1093_v59 = vadd.f32 %v1084_v27, %v969_v52 }
  0xd8   : > { %v1189_v31 = vpop.f32.mrf.mxu2  ;;  %v963_v33 = vpop.f32.mrf.mxu0 }
  0xd9   : > { %v1349_v32 = vpop.f32.mrf.mxu3  ;;  %v1087_v35 = vpop.f32.mrf.mxu1  ;;  %v970_v54 = vadd.f32 %v963_v33, %v810_v41  ;;  %v1198_v63 = vadd.f32 %v1189_v31, %v1093_v59 }
  0xdb   : > { %v1094_v62 = vadd.f32 %v1087_v35, %v970_v54  ;;  %v1358_v3 = vadd.f32 %v1349_v32, %v1198_v63 }
  0xe0   : > { %v1192_v42 = vpop.f32.mrf.mxu2  ;;  %v965_v45 = vpop.f32.mrf.mxu0 }
  0xe1   : > { %v1352_v44 = vpop.f32.mrf.mxu3  ;;  %v1089_v46 = vpop.f32.mrf.mxu1  ;;  %v1199_v1 = vadd.f32 %v1192_v42, %v1094_v62  ;;  %v971_v2 = vadd.f32 %v965_v45, %v811_v61 }
  0xe3   : > { %v1359_v8 = vadd.f32 %v1352_v44, %v1199_v1  ;;  %v1095_v9 = vadd.f32 %v1089_v46, %v971_v2 }
  0xe8   : > { %v1194_v55 = vpop.f32.mrf.mxu2  ;;  %v1471_v57 = vpop.f32.mrf.mxu0 }
  0xe9   : > { %v1354_v56 = vpop.f32.mrf.mxu3  ;;  %v1590_v60 = vpop.f32.mrf.mxu1  ;;  %v1481_v28 = vadd.f32 %v1471_v57, %v1357_v58  ;;  %v1200_v14 = vadd.f32 %v1194_v55, %v1095_v9 }
  0xea   : > { %v1604_v5 = vmul.f32 %v2359_v0, %v1590_v60 }
  0xeb   : > { %v1489_v49 = vmul.f32 %v2357_v29, %v1481_v28  ;;  %v1360_v22 = vadd.f32 %v1354_v56, %v1200_v14 }
  0xec   : > { %v1612_v18 = vadd.f32 %v2360_v6, %v1604_v5 }
  0xed   : > { %v1497_v17 = vadd.f32 %v2358_v4, %v1489_v49 }
  0xef   : > { %v1616_v25 = vadd.f32 %v1612_v18, %v1497_v17 }
  0xf0   : > { %v1476_v7 = vpop.f32.mrf.mxu2  ;;  %v1473_v11 = vpop.f32.mrf.mxu0 }
  0xf1   : > { %v1595_v10 = vpop.f32.mrf.mxu3  ;;  %v1482_v12 = vadd.f32 %v1473_v11, %v1358_v3  ;;  %v1592_v13 = vpop.f32.mrf.mxu1  ;;  %v1483_v15 = vadd.f32 %v1476_v7, %v1359_v8 }
  0xf2   : > { %v1605_v16 = vmul.f32 %v2359_v0, %v1592_v13  ;;  %v1606_v24 = vmul.f32 %v2359_v0, %v1595_v10 }
  0xf3   : > { %v1490_v19 = vmul.f32 %v2357_v29, %v1482_v12  ;;  %v1491_v23 = vmul.f32 %v2357_v29, %v1483_v15 }
  0xf4   : > { %v1613_v21 = vadd.f32 %v2360_v6, %v1605_v16  ;;  %v1614_v35 = vadd.f32 %v2360_v6, %v1606_v24 }
  0xf5   : > { %v1498_v20 = vadd.f32 %v2358_v4, %v1490_v19  ;;  %v1499_v34 = vadd.f32 %v2358_v4, %v1491_v23 }
  0xf7   : > { %v1617_v26 = vadd.f32 %v1613_v21, %v1498_v20  ;;  %v1618_v39 = vadd.f32 %v1614_v35, %v1499_v34 }
  0xf8   : > { %v1478_v27 = vpop.f32.mrf.mxu2 }
  0xf9   : > { %v1484_v30 = vadd.f32 %v1478_v27, %v1360_v22  ;;  %v1597_v31 = vpop.f32.mrf.mxu3  ;;  %v2324_v32 = vpack.c.bf16 %v1617_v26, %v1616_v25 }
  0xfa   : > { %v1607_v33 = vmul.f32 %v2359_v0, %v1597_v31 }
  0xfb   : > { %v1492_v36 = vmul.f32 %v2357_v29, %v1484_v30  ;;  %2325 = vst [vmem:[%s325_s14] sm:$0xff] %v2324_v32  }
  0xfc   : > { %v1615_v38 = vadd.f32 %v2360_v6, %v1607_v33 }
  0xfd   : > { %v1500_v37 = vadd.f32 %v2358_v4, %v1492_v36 }
  0xff   : > { %v1619_v40 = vadd.f32 %v1615_v38, %v1500_v37 }
 0x101   : > { %v2329_v42 = vpack.c.bf16 %v1619_v40, %v1618_v39 }
 0x103   : > { %2331 = vst [vmem:[%s325_s14 + $0x8] sm:$0xff] %v2329_v42  }
 0x104 PF: > { %s18_s27 = sadd.s32 1, %s2367_s27  }
 0x105   : > { %p15_p4 = scmp.ge.s32.totalorder %s18_s27, 4  }
 0x107   :  { %17 = sbr.rel (!%p15_p4) target bundleno = 1 (0x1), region = 95 }

// kernel: conv_blocks_forward.14
= control target key start
LH: loop header
LB: loop body
LE: loop exit
PB: predicated region body
PF: predicated region fallthrough
CT: control target
= control target key end

     0   :  { %s2076_s15 = smov 0   ;;  %s2461_s0 = inlined_call_operand.vmem [shape: bf16[2,6,10,128], index: 0, kind: input, shape index: {}]   ;;  %s2462_s1 = inlined_call_operand.vmem [shape: bf16[9,128,128], index: 1, kind: input, shape index: {}]   ;;  %s2463_s2 = inlined_call_operand.vmem [shape: f32[1,128], index: 2, kind: input, shape index: {}]   ;;  %s2464_s3 = inlined_call_operand.vmem [shape: f32[1,128], index: 3, kind: input, shape index: {}]   ;;  %s2465_s4 = inlined_call_operand.vmem [shape: bf16[2,32,128], index: 4, kind: output, shape index: {}]  }
   0x1 LB: > { %s1440_s16 = sadd.s32 4294967295, %s2049_s15   ;;  %p1444_p0 = scmp.ge.s32.totalorder %s2049_s15, 1  ;;  %s2049_s15 = sphi %s2076_s15, %s14_s15  }
   0x2   : > { %p162_p1 = scmp.lt.s32.totalorder %s2049_s15, 3 }
   0x4   : > { %p163_p2 = pnand %p1444_p0, %p162_p1 }
   0x5   : > { %p188_p3 = scmp.lt.s32.totalorder (!%p163_p2), %s1440_s16, 1 }
   0x6   : > { %166 = sbr.rel (%p163_p2) target bundleno = 253 (0xfd), region = 36 }
   0xb   : > { %v1952_v0 = vld [vmem:[%s2462_s1 + $0x78] sm:$0xff]  ;;  %v1951_v4 = vld [vmem:[%s2462_s1 + $0x70] sm:$0xff]  ;;  %s2471_s16 = smov (!%p188_p3, %s1440_s16), 1  ;;  %v1950_v8 = vld [vmem:[%s2462_s1 + $0x68] sm:$0xff]  ;;  %vm222_vm0 = vsmask.f32 3328 }
   0xc   : > { %v1944_v1 = vld [vmem:[%s2462_s1 + $0x38] sm:$0xff]  ;;  %354 = vmatpush.bf16.msra.mxu0 %v1952_v0  ;;  %v1943_v5 = vld [vmem:[%s2462_s1 + $0x30] sm:$0xff]  ;;  %s2032_s7 = smul.u32 48, %s2471_s16  ;;  %v1942_v9 = vld [vmem:[%s2462_s1 + $0x28] sm:$0xff]  ;;  %vm223_vm1 = vsmask.f32 7440 }
   0xd   : > { %v1960_v2 = vld [vmem:[%s2462_s1 + $0xb8] sm:$0xff]  ;;  %433 = vmatpush.bf16.msra.mxu1 %v1944_v1  ;;  %v1959_v6 = vld [vmem:[%s2462_s1 + $0xb0] sm:$0xff]  ;;  %v1958_v10 = vld [vmem:[%s2462_s1 + $0xa8] sm:$0xff]  ;;  %vm464_vm2 = vcmask 1042432   ;;  %vm465_vm3 = vcmask 1046532   ;;  %s1934_s29 = sshll.u32 %s2471_s16, 4 }
   0xe   : > { %v1970_v3 = vld [vmem:[%s2462_s1 + $0xf8] sm:$0xff]  ;;  %556 = vmatpush.bf16.msra.mxu2 %v1960_v2  ;;  %v1969_v7 = vld [vmem:[%s2462_s1 + $0xf0] sm:$0xff]  ;;  %v1968_v11 = vld [vmem:[%s2462_s1 + $0xe8] sm:$0xff]  ;;  %s2126_s20 = scalar_lea.vmem %s2461_s0, %s2032_s7  ;;  %s197_s6 = scalar_lea.vmem %s2465_s4, %s1934_s29 }
   0xf   : > { %661 = vmatpush.bf16.msra.mxu3 %v1970_v3  ;;  %v1949_v12 = vld [vmem:[%s2462_s1 + $0x60] sm:$0xff]  ;;  %v199_v17 = vld [vmem:[%s2126_s20 + $0x8] sm:$0xf]  ;;  %v219_v19 = vld [vmem:[%s2126_s20 + $0xc] sm:$0x1] }
  0x10   : > { %355 = vmatpush.bf16.msra.mxu0 %v1951_v4  ;;  %v1941_v13 = vld [vmem:[%s2462_s1 + $0x20] sm:$0xff]  ;;  %v240_v22 = vshrl.u32 %v199_v17, 16  ;;  %v243_v24 = vshll.u32 %v199_v17, 16  ;;  %v1948_v25 = vld [vmem:[%s2462_s1 + $0x58] sm:$0xff]  ;;  %v249_v30 = vshll.u32 %v219_v19, 16  ;;  %v1947_v39 = vld [vmem:[%s2462_s1 + $0x50] sm:$0xff] }
  0x11   : > { %434 = vmatpush.bf16.msra.mxu1 %v1943_v5  ;;  %v1957_v14 = vld [vmem:[%s2462_s1 + $0xa0] sm:$0xff]  ;;  %v1940_v26 = vld [vmem:[%s2462_s1 + $0x18] sm:$0xff]  ;;  %v453_v36 = vld [vmem:[%s2126_s20 + $0x8] sm:$0xe]  ;;  %v473_v51 = vrot.slane %v219_v19, 5 }
  0x12   : > { %557 = vmatpush.bf16.msra.mxu2 %v1959_v6  ;;  %v1967_v15 = vld [vmem:[%s2462_s1 + $0xe0] sm:$0xff]  ;;  %v242_v29 = vrot.slane %v240_v22, 4  ;;  %v1956_v31 = vld [vmem:[%s2462_s1 + $0x98] sm:$0xff]  ;;  %v245_v33 = vrot.slane %v243_v24, 5  ;;  %v1939_v40 = vld [vmem:[%s2462_s1 + $0x10] sm:$0xff]  ;;  %v251_v43 = vrot.slane %v249_v30, 5 }
  0x13   : > { %662 = vmatpush.bf16.msra.mxu3 %v1969_v7  ;;  %v198_v16 = vld [vmem:[%s2126_s20] sm:$0xf]  ;;  %v218_v18 = vld [vmem:[%s2126_s20 + $0x4] sm:$0x1]  ;;  %v1966_v32 = vld [vmem:[%s2462_s1 + $0xd8] sm:$0xff]  ;;  %v1537_v50 = vrot.slane %v453_v36, 9 }
  0x14   : > { %356 = vmatpush.bf16.msra.mxu0 %v1950_v8  ;;  %v226_v20 = vshrl.u32 %v198_v16, 16  ;;  %v229_v21 = vshll.u32 %v198_v16, 16  ;;  %v235_v23 = vshll.u32 %v218_v18, 16  ;;  %v452_v34 = vld [vmem:[%s2126_s20] sm:$0xe]  ;;  %v246_v38 = vor.u32 %v245_v33, %v242_v29  ;;  %vm2166_vm4 = vmor %vm222_vm0, %vm223_vm1  ;;  %v1955_v46 = vld [vmem:[%s2462_s1 + $0x90] sm:$0xff] }
  0x15   : > { %435 = vmatpush.bf16.msra.mxu1 %v1942_v9  ;;  %v1536_v44 = vrot.slane %v452_v34, 9  ;;  %v469_v45 = vrot.slane %v218_v18, 5  ;;  %v1965_v47 = vld [vmem:[%s2462_s1 + $0xd0] sm:$0xff]  ;;  %vm2178_vm5 = vmor %vm464_vm2, %vm465_vm3  ;;  %v1946_v54 = vld [vmem:[%s2462_s1 + $0x48] sm:$0xff] }
  0x16   : > { %558 = vmatpush.bf16.msra.mxu2 %v1958_v10  ;;  %v228_v27 = vrot.slane %v226_v20, 4  ;;  %v231_v28 = vrot.slane %v229_v21, 5  ;;  %v237_v37 = vrot.slane %v235_v23, 5  ;;  %v247_v48 = vrot.slane %v246_v38, 4  ;;  %v200_v53 = vld [vmem:[%s2126_s20 + $0x10] sm:$0xf] }
  0x17   : > { %663 = vmatpush.bf16.msra.mxu3 %v1968_v11  ;;  %v1938_v55 = vld [vmem:[%s2462_s1 + $0x8] sm:$0xff]  ;;  %v470_v57 = vsel %vm2178_vm5, %v1536_v44, %v469_v45  ;;  %v201_v58 = vld [vmem:[%s2126_s20 + $0x18] sm:$0xf]  ;;  %v474_v61 = vsel %vm2178_vm5, %v1537_v50, %v473_v51  ;;  %v254_v62 = vshrl.u32 %v200_v53, 16  ;;  %v257_v63 = vshll.u32 %v200_v53, 16  ;;  %v1945_v5 = vld [vmem:[%s2462_s1 + $0x40] sm:$0xff] }
  0x18   : > { %357 = vmatpush.bf16.msra.mxu0 %v1949_v12  ;;  %v232_v35 = vor.u32 %v231_v28, %v228_v27  ;;  %v252_v56 = vsel %vm2166_vm4, %v247_v48, %v251_v43  ;;  %v1954_v59 = vld [vmem:[%s2462_s1 + $0x88] sm:$0xff]  ;;  %v268_v0 = vshrl.u32 %v201_v58, 16  ;;  %v2205_v2 = vld [vmem:[%s2126_s20 + $0x14] sm:$0x1]  ;;  %v2208_v3 = vld [vmem:[%s2126_s20 + $0x1c] sm:$0x1]  ;;  %v501_v16 = vunpack.c.l.b16 %v474_v61 }
  0x19   : > { %436 = vmatpush.bf16.msra.mxu1 %v1941_v13  ;;  %v1964_v60 = vld [vmem:[%s2462_s1 + $0xc8] sm:$0xff]  ;;  %v271_v4 = vshll.u32 %v201_v58, 16  ;;  %v1937_v6 = vld [vmem:[%s2462_s1] sm:$0xff]  ;;  %v299_v8 = vunpack.c.l.b16 %v252_v56  ;;  %v256_v9 = vrot.slane %v254_v62, 4  ;;  %v259_v10 = vrot.slane %v257_v63, 5  ;;  %v1978_v22 = vld [vmem:[%s2462_s1 + $0x138] sm:$0xff] }
  0x1a   : > { %559 = vmatpush.bf16.msra.mxu2 %v1957_v14  ;;  %v233_v42 = vrot.slane %v232_v35, 4  ;;  %v1953_v7 = vld [vmem:[%s2462_s1 + $0x80] sm:$0xff]  ;;  %v270_v11 = vrot.slane %v268_v0, 4  ;;  %v1935_v14 = vld [vmem:[%s2126_s20 + $0x4] sm:$0xf0]  ;;  %v263_v20 = vshll.u32 %v2205_v2, 16 }
  0x1b   : > { %664 = vmatpush.bf16.msra.mxu3 %v1967_v15  ;;  %v1963_v12 = vld [vmem:[%s2462_s1 + $0xc0] sm:$0xff]  ;;  %v500_v15 = vunpack.c.l.b16 %v470_v57  ;;  %v273_v17 = vrot.slane %v271_v4, 5  ;;  %v1610_v18 = vld [vmem:[%s2126_s20 + $0x8] sm:$0xf]  ;;  %v1961_v19 = vld [vmem:[%s2126_s20 + $0xc] sm:$0xf0]  ;;  %v260_v24 = vor.u32 %v259_v10, %v256_v9 }
  0x1c   : > { %358 = vmatpush.bf16.msra.mxu0 %v1948_v25  ;;  %v238_v52 = vsel %vm2166_vm4, %v233_v42, %v237_v37  ;;  %v1498_v13 = vld [vmem:[%s2126_s20] sm:$0xf]  ;;  %v277_v21 = vshll.u32 %v2208_v3, 16  ;;  %v1986_v23 = vld [vmem:[%s2462_s1 + $0x178] sm:$0xff]  ;;  %v265_v34 = vrot.slane %v263_v20, 5  ;;  %v477_v37 = vrot.slane %v2205_v2, 5 }
  0x1d   : > { %437 = vmatpush.bf16.msra.mxu1 %v1940_v26  ;;  %v298_v1 = vunpack.c.l.b16 %v238_v52  ;;  %v274_v25 = vor.u32 %v273_v17, %v270_v11  ;;  %v454_v26 = vld [vmem:[%s2126_s20 + $0x10] sm:$0xe]  ;;  %v1499_v28 = vor.u32 %v1935_v14, %v1498_v13  ;;  %v455_v29 = vld [vmem:[%s2126_s20 + $0x18] sm:$0xe]  ;;  %v504_v30 = vpack.c.b16 %v501_v16, %v500_v15  ;;  %v1648_v45 = vld [vmem:[%s2126_s20 + $0x8] sm:$0xf] }
  0x1e   : > { %560 = vmatpush.bf16.msra.mxu2 %v1956_v31  ;;  %v1611_v31 = vor.u32 %v1961_v19, %v1610_v18  ;;  %v2004_v33 = vld [vmem:[%s2462_s1 + $0x1f8] sm:$0xff]  ;;  %v279_v35 = vrot.slane %v277_v21, 5  ;;  %v1538_v36 = vrot.slane %v454_v26, 9  ;;  %v1977_v38 = vld [vmem:[%s2462_s1 + $0x130] sm:$0xff]  ;;  %v1539_v43 = vrot.slane %v455_v29, 9  ;;  %v1976_v51 = vld [vmem:[%s2462_s1 + $0x128] sm:$0xff] }
  0x1f   : > { %665 = vmatpush.bf16.msra.mxu3 %v1966_v32  ;;  %v302_v27 = vpack.c.b16 %v299_v8, %v298_v1  ;;  %v1996_v32 = vld [vmem:[%s2462_s1 + $0x1b8] sm:$0xff]  ;;  %v275_v42 = vrot.slane %v274_v25, 4  ;;  %v481_v44 = vrot.slane %v2208_v3, 5  ;;  %v2003_v48 = vld [vmem:[%s2462_s1 + $0x1f0] sm:$0xff]  ;;  %v1984_v52 = vld [vmem:[%s2462_s1 + $0x168] sm:$0xff]  ;;  %v693_v56 = vshrl.u32 %v1648_v45, 16 }
  0x20   : > { %359 = vmatpush.bf16.msra.mxu0 %v1947_v39  ;;  %v1985_v39 = vld [vmem:[%s2462_s1 + $0x170] sm:$0xff]  ;;  %v478_v50 = vsel %vm2178_vm5, %v1538_v36, %v477_v37  ;;  %v696_v57 = vshll.u32 %v1648_v45, 16  ;;  %v2002_v61 = vld [vmem:[%s2462_s1 + $0x1e8] sm:$0xff]  ;;  %v1975_v63 = vld [vmem:[%s2462_s1 + $0x120] sm:$0xff] }
  0x21   : > { %438 = vmatpush.bf16.msra.mxu1 %v1939_v40  ;;  %v261_v40 = vrot.slane %v260_v24, 4  ;;  %v1820_v62 = vld [vmem:[%s2126_s20 + $0x10] sm:$0xf]  ;;  %v1983_v0 = vld [vmem:[%s2462_s1 + $0x160] sm:$0xff]  ;;  %v1822_v1 = vld [vmem:[%s2126_s20 + $0x18] sm:$0xf]  ;;  %v502_v8 = vunpack.c.l.b16 %v478_v50 }
  0x22   : > { %561 = vmatpush.bf16.msra.mxu2 %v1955_v46  ;;  %v1650_v46 = vld [vmem:[%s2126_s20 + $0x10] sm:$0xf]  ;;  %v1082_v2 = vshrl.u32 %v1820_v62, 16  ;;  %v1085_v3 = vshll.u32 %v1820_v62, 16  ;;  %v2289_v10 = vld [vmem:[%s2126_s20 + $0xc] sm:$0x1] }
  0x23   : > { %666 = vmatpush.bf16.msra.mxu3 %v1965_v47  ;;  %v1995_v47 = vld [vmem:[%s2462_s1 + $0x1b0] sm:$0xff]  ;;  %v266_v53 = vsel %vm2166_vm4, %v261_v40, %v265_v34  ;;  %v707_v58 = vshrl.u32 %v1650_v46, 16  ;;  %v1993_v11 = vld [vmem:[%s2462_s1 + $0x1a0] sm:$0xff]  ;;  %v695_v14 = vrot.slane %v693_v56, 4  ;;  %v698_v15 = vrot.slane %v696_v57, 5  ;;  %v1974_v19 = vld [vmem:[%s2462_s1 + $0x118] sm:$0xff] }
  0x24   : > { %360 = vmatpush.bf16.msra.mxu0 %v1946_v54  ;;  %v280_v54 = vsel %vm2166_vm4, %v275_v42, %v279_v35  ;;  %v300_v4 = vunpack.c.l.b16 %v266_v53  ;;  %v2296_v13 = vld [vmem:[%s2126_s20 + $0x14] sm:$0x1]  ;;  %v2001_v18 = vld [vmem:[%s2462_s1 + $0x1e0] sm:$0xff]  ;;  %v1084_v20 = vrot.slane %v1082_v2, 4  ;;  %v1087_v21 = vrot.slane %v1085_v3, 5  ;;  %v1982_v25 = vld [vmem:[%s2462_s1 + $0x158] sm:$0xff] }
  0x25   : > { %439 = vmatpush.bf16.msra.mxu1 %v1938_v55  ;;  %v482_v55 = vsel %vm2178_vm5, %v1539_v43, %v481_v44  ;;  %v709_v16 = vrot.slane %v707_v58, 4  ;;  %v1962_v24 = vld [vmem:[%s2126_s20 + $0x1c] sm:$0xf0]  ;;  %v2309_v26 = vld [vmem:[%s2126_s20 + $0x14] sm:$0x1]  ;;  %v699_v34 = vor.u32 %v698_v15, %v695_v14  ;;  %v1992_v43 = vld [vmem:[%s2462_s1 + $0x198] sm:$0xff] }
  0x26   : > { %562 = vmatpush.bf16.msra.mxu2 %v1954_v59  ;;  %v710_v59 = vshll.u32 %v1650_v46, 16  ;;  %v503_v9 = vunpack.c.l.b16 %v482_v55  ;;  %v2314_v29 = vld [vmem:[%s2126_s20 + $0x1c] sm:$0x1]  ;;  %v1704_v36 = vld [vmem:[%s2126_s20 + $0x8] sm:$0xe]  ;;  %v1088_v40 = vor.u32 %v1087_v21, %v1084_v20  ;;  %v1091_v42 = vshll.u32 %v2309_v26, 16 }
  0x27   : > { %667 = vmatpush.bf16.msra.mxu3 %v1964_v60  ;;  %v1994_v60 = vld [vmem:[%s2462_s1 + $0x1a8] sm:$0xff]  ;;  %v2000_v44 = vld [vmem:[%s2462_s1 + $0x1d8] sm:$0xff]  ;;  %v1105_v46 = vshll.u32 %v2314_v29, 16  ;;  %v858_v53 = vrot.slane %v2289_v10, 5  ;;  %v1999_v55 = vld [vmem:[%s2462_s1 + $0x1d0] sm:$0xff]  ;;  %v700_v56 = vrot.slane %v699_v34, 4 }
  0x28   : > { %361 = vmatpush.bf16.msra.mxu0 %v1945_v5  ;;  %v301_v5 = vunpack.c.l.b16 %v280_v54  ;;  %v712_v17 = vrot.slane %v710_v59, 5  ;;  %v505_v37 = vpack.c.b16 %v503_v9, %v502_v8  ;;  %v1991_v54 = vld [vmem:[%s2462_s1 + $0x190] sm:$0xff]  ;;  %v862_v59 = vrot.slane %v2296_v13, 5  ;;  %v1654_v2 = vld [vmem:[%s2126_s20 + $0x20] sm:$0xf]  ;;  %v1980_v3 = vld [vmem:[%s2462_s1 + $0x148] sm:$0xff] }
  0x29   : > { %440 = vmatpush.bf16.msra.mxu1 %v1937_v6  ;;  %v1502_v6 = vld [vmem:[%s2126_s20 + $0x10] sm:$0xf]  ;;  %v1093_v62 = vrot.slane %v1091_v42, 5  ;;  %v738_v14 = vshll.u32 %v1654_v2, 16  ;;  %v1990_v15 = vld [vmem:[%s2462_s1 + $0x188] sm:$0xff]  ;;  %v1971_v21 = vld [vmem:[%s2462_s1 + $0x100] sm:$0xff] }
  0x2a   : > { %563 = vmatpush.bf16.msra.mxu2 %v1953_v7  ;;  %v1936_v7 = vld [vmem:[%s2126_s20 + $0x14] sm:$0xf0]  ;;  %v713_v35 = vor.u32 %v712_v17, %v709_v16  ;;  %v1998_v16 = vld [vmem:[%s2462_s1 + $0x1c8] sm:$0xff]  ;;  %v1653_v34 = vld [vmem:[%s2126_s20 + $0x1c] sm:$0x1] }
  0x2b   : > { %668 = vmatpush.bf16.msra.mxu3 %v1963_v12  ;;  %362 = vmatmul.bf16.vlgmr.msra.gmra.mxu0 %v302_v27  ;;  %v1614_v12 = vld [vmem:[%s2126_s20 + $0x18] sm:$0xf]  ;;  %v702_v27 = vshll.u32 %v2289_v10, 16  ;;  %v740_v42 = vrot.slane %v738_v14, 5 }
  0x2c   : > { %821 = vmatpush.bf16.msrb.mxu0 %v1978_v22  ;;  %441 = vmatmul.bf16.vlgmr.msra.gmra.mxu1 %v1499_v28  ;;  %v1096_v22 = vshrl.u32 %v1822_v1, 16  ;;  %v716_v28 = vshll.u32 %v2296_v13, 16  ;;  %v714_v57 = vrot.slane %v713_v35, 4  ;;  %v735_v13 = vshrl.u32 %v1654_v2, 16 }
  0x2d   : > { %945 = vmatpush.bf16.msrb.mxu1 %v1986_v23  ;;  %564 = vmatmul.bf16.vlgmr.msra.gmra.mxu2 %v504_v30  ;;  %v1099_v23 = vshll.u32 %v1822_v1, 16  ;;  %v704_v50 = vrot.slane %v702_v27, 5  ;;  %v1107_v1 = vrot.slane %v1105_v46, 5  ;;  %v1989_v27 = vld [vmem:[%s2462_s1 + $0x180] sm:$0xff] }
  0x2e   : > { %669 = vmatmul.bf16.vlgmr.msra.gmra.mxu3 %v1611_v31  ;;  %1050 = vmatpush.bf16.msrb.mxu2 %v1996_v32  ;;  %v1098_v30 = vrot.slane %v1096_v22, 4  ;;  %v303_v32 = vpack.c.b16 %v301_v5, %v300_v4  ;;  %v1824_v5 = vld [vmem:[%s2126_s20 + $0x20] sm:$0xf] }
  0x2f   : > { %1210 = vmatpush.bf16.msrb.mxu3 %v2004_v33  ;;  %v1101_v31 = vrot.slane %v1099_v23, 5  ;;  %v1503_v33 = vor.u32 %v1936_v7, %v1502_v6  ;;  %v1826_v6 = vld [vmem:[%s2126_s20 + $0x28] sm:$0xf]  ;;  %v705_v7 = vsel %vm2166_vm4, %v700_v56, %v704_v50  ;;  %v1979_v22 = vld [vmem:[%s2462_s1 + $0x140] sm:$0xff]  ;;  %v2391_v50 = vld [vmem:[%s2126_s20 + $0x2c] sm:$0x1] }
  0x30   : > { %822 = vmatpush.bf16.msrb.mxu0 %v1977_v38  ;;  %v1615_v38 = vor.u32 %v1962_v24, %v1614_v12  ;;  %v1124_v20 = vshrl.u32 %v1826_v6, 16 }
  0x31   : > { %946 = vmatpush.bf16.msrb.mxu1 %v1985_v39  ;;  %v1705_v39 = vld [vmem:[%s2126_s20 + $0x10] sm:$0xe]  ;;  %v1102_v45 = vor.u32 %v1101_v31, %v1098_v30 }
  0x32   : > { %1051 = vmatpush.bf16.msrb.mxu2 %v1995_v47  ;;  %v1973_v47 = vld [vmem:[%s2462_s1 + $0x110] sm:$0xff]  ;;  %v1709_v58 = vrot.slane %v1705_v39, 9  ;;  %v1126_v46 = vrot.slane %v1124_v20, 4 }
  0x33   : > { %1211 = vmatpush.bf16.msrb.mxu3 %v2003_v48  ;;  %v1981_v48 = vld [vmem:[%s2462_s1 + $0x150] sm:$0xff] }
  0x34   : > { %823 = vmatpush.bf16.msrb.mxu0 %v1976_v51  ;;  %v718_v51 = vrot.slane %v716_v28, 5  ;;  %v863_v9 = vsel %vm2178_vm5, %v1709_v58, %v862_v59  ;;  %v765_v28 = vunpack.c.l.b16 %v705_v7  ;;  %v1782_v31 = vld [vmem:[%s2126_s20 + $0x10] sm:$0xf]  ;;  %v1706_v59 = vld [vmem:[%s2126_s20 + $0x18] sm:$0xe] }
  0x35   : > { %947 = vmatpush.bf16.msrb.mxu1 %v1984_v52  ;;  %v1708_v52 = vrot.slane %v1704_v36, 9  ;;  %v890_v24 = vunpack.c.l.b16 %v863_v9  ;;  %v1997_v36 = vld [vmem:[%s2462_s1 + $0x1c0] sm:$0xff] }
  0x36   : > { %1052 = vmatpush.bf16.msrb.mxu2 %v1994_v60  ;;  %v1972_v60 = vld [vmem:[%s2462_s1 + $0x108] sm:$0xff]  ;;  %v719_v8 = vsel %vm2166_vm4, %v714_v57, %v718_v51 }
  0x37   : > { %1212 = vmatpush.bf16.msrb.mxu3 %v2002_v61  ;;  %v1089_v61 = vrot.slane %v1088_v40, 4  ;;  %v859_v4 = vsel %vm2178_vm5, %v1708_v52, %v858_v53  ;;  %v766_v30 = vunpack.c.l.b16 %v719_v8  ;;  %v737_v40 = vrot.slane %v735_v13, 4 }
  0x38   : > { %824 = vmatpush.bf16.msrb.mxu0 %v1975_v63  ;;  %v1652_v63 = vld [vmem:[%s2126_s20 + $0x18] sm:$0xf]  ;;  %v889_v23 = vunpack.c.l.b16 %v859_v4  ;;  %v730_v53 = vshll.u32 %v1653_v34, 16  ;;  %v1710_v4 = vrot.slane %v1706_v59, 9 }
  0x39   : > { %948 = vmatpush.bf16.msrb.mxu1 %v1983_v0  ;;  %v1103_v0 = vrot.slane %v1102_v45, 4  ;;  %v721_v10 = vshrl.u32 %v1652_v63, 16  ;;  %v724_v12 = vshll.u32 %v1652_v63, 16  ;;  %v769_v51 = vpack.c.b16 %v766_v30, %v765_v28  ;;  %v1786_v30 = vld [vmem:[%s2126_s20 + $0x20] sm:$0xf] }
  0x3a   : > { %1053 = vmatpush.bf16.msrb.mxu2 %v1993_v11  ;;  %v1094_v11 = vsel %vm2166_vm4, %v1089_v61, %v1093_v62  ;;  %v893_v52 = vpack.c.b16 %v890_v24, %v889_v23  ;;  %v741_v58 = vor.u32 %v740_v42, %v737_v40  ;;  %v1707_v61 = vld [vmem:[%s2126_s20 + $0x20] sm:$0xe]  ;;  %v732_v2 = vrot.slane %v730_v53, 5  ;;  %v1879_v40 = vld [vmem:[%s2126_s20 + $0x28] sm:$0xe] }
  0x3b   : > { %1213 = vmatpush.bf16.msrb.mxu3 %v2001_v18  ;;  %367 = vmatmul.bf16.gmra.mxu0 %v303_v32  ;;  %v1108_v17 = vsel %vm2166_vm4, %v1103_v0, %v1107_v1  ;;  %v1110_v18 = vshrl.u32 %v1824_v5, 16  ;;  %v1154_v32 = vunpack.c.l.b16 %v1094_v11  ;;  %v723_v35 = vrot.slane %v721_v10, 4  ;;  %v2010_v10 = vld [vmem:[%s2462_s1 + $0x228] sm:$0xff] }
  0x3c   : > { %825 = vmatpush.bf16.msrb.mxu0 %v1974_v19  ;;  %446 = vmatmul.bf16.gmra.mxu1 %v1503_v33  ;;  %v1113_v19 = vshll.u32 %v1824_v5, 16  ;;  %v2012_v33 = vld [vmem:[%s2462_s1 + $0x238] sm:$0xff]  ;;  %v726_v39 = vrot.slane %v724_v12, 5  ;;  %v1133_v1 = vshll.u32 %v2391_v50, 16  ;;  %v866_v5 = vrot.slane %v1653_v34, 5 }
  0x3d   : > { %949 = vmatpush.bf16.msrb.mxu1 %v1982_v25  ;;  %569 = vmatmul.bf16.gmra.mxu2 %v505_v37  ;;  %v1127_v25 = vshll.u32 %v1826_v6, 16  ;;  %v1155_v37 = vunpack.c.l.b16 %v1108_v17  ;;  %v742_v7 = vrot.slane %v741_v58, 4  ;;  %v1711_v8 = vrot.slane %v1707_v61, 9 }
  0x3e   : > { %674 = vmatmul.bf16.gmra.mxu3 %v1615_v38  ;;  %1054 = vmatpush.bf16.msrb.mxu2 %v1992_v43  ;;  %v1655_v38 = vld [vmem:[%s2126_s20 + $0x24] sm:$0x1]  ;;  %v1987_v43 = vld [vmem:[%s2126_s20 + $0x14] sm:$0xf0]  ;;  %v1115_v45 = vrot.slane %v1113_v19, 5  ;;  %v727_v57 = vor.u32 %v726_v39, %v723_v35  ;;  %v1135_v14 = vrot.slane %v1133_v1, 5  ;;  %v867_v17 = vsel %vm2178_vm5, %v1710_v4, %v866_v5 }
  0x3f   : > { %1214 = vmatpush.bf16.msrb.mxu3 %v2000_v44  ;;  %v1112_v44 = vrot.slane %v1110_v18, 4  ;;  %v1158_v56 = vpack.c.b16 %v1155_v37, %v1154_v32  ;;  %v870_v9 = vrot.slane %v1655_v38, 5  ;;  %v2009_v19 = vld [vmem:[%s2462_s1 + $0x220] sm:$0xff]  ;;  %v891_v24 = vunpack.c.l.b16 %v867_v17  ;;  %v2008_v32 = vld [vmem:[%s2462_s1 + $0x218] sm:$0xff]  ;;  %v1876_v37 = vld [vmem:[%s2126_s20 + $0x10] sm:$0xe] }
  0x40   : > { %826 = vmatpush.bf16.msrb.mxu0 %v1973_v47  ;;  %v1129_v47 = vrot.slane %v1127_v25, 5  ;;  %v728_v6 = vrot.slane %v727_v57, 4  ;;  %v1878_v39 = vld [vmem:[%s2126_s20 + $0x20] sm:$0xe]  ;;  %v1247_v42 = vrot.slane %v2309_v26, 5  ;;  %v2006_v26 = vld [vmem:[%s2462_s1 + $0x208] sm:$0xff] }
  0x41   : > { %950 = vmatpush.bf16.msrb.mxu1 %v1981_v48  ;;  %v2388_v48 = vld [vmem:[%s2126_s20 + $0x24] sm:$0x1]  ;;  %v1116_v62 = vor.u32 %v1115_v45, %v1112_v44  ;;  %v871_v18 = vsel %vm2178_vm5, %v1711_v8, %v870_v9  ;;  %v1259_v45 = vrot.slane %v2391_v50, 5 }
  0x42   : > { %1055 = vmatpush.bf16.msrb.mxu2 %v1991_v54  ;;  %v744_v54 = vshll.u32 %v1655_v38, 16  ;;  %v1119_v63 = vshll.u32 %v2388_v48, 16  ;;  %v1130_v0 = vor.u32 %v1129_v47, %v1126_v46  ;;  %v892_v25 = vunpack.c.l.b16 %v871_v18  ;;  %v1877_v38 = vld [vmem:[%s2126_s20 + $0x18] sm:$0xe] }
  0x43   : > { %1215 = vmatpush.bf16.msrb.mxu3 %v1999_v55  ;;  %v1783_v55 = vor.u32 %v1987_v43, %v1782_v31  ;;  %v1117_v11 = vrot.slane %v1116_v62, 4  ;;  %v1988_v31 = vld [vmem:[%s2126_s20 + $0x24] sm:$0xf0]  ;;  %v1251_v43 = vrot.slane %v2314_v29, 5  ;;  %v1255_v44 = vrot.slane %v2388_v48, 5 }
  0x44   : > { %827 = vmatpush.bf16.msrb.mxu0 %v1972_v60  ;;  %v2011_v60 = vld [vmem:[%s2462_s1 + $0x230] sm:$0xff]  ;;  %v1121_v12 = vrot.slane %v1119_v63, 5  ;;  %v1131_v13 = vrot.slane %v1130_v0, 4  ;;  %v1787_v34 = vor.u32 %v1988_v31, %v1786_v30  ;;  %v1880_v46 = vrot.slane %v1876_v37, 9 }
  0x45   : > { %951 = vmatpush.bf16.msrb.mxu1 %v1980_v3  ;;  %v746_v3 = vrot.slane %v744_v54, 5  ;;  %v1881_v47 = vrot.slane %v1877_v38, 9  ;;  %v2005_v54 = vld [vmem:[%s2462_s1 + $0x200] sm:$0xff] }
  0x46   : > { %1056 = vmatpush.bf16.msrb.mxu2 %v1990_v15  ;;  %v733_v15 = vsel %vm2166_vm4, %v728_v6, %v732_v2  ;;  %v1122_v20 = vsel %vm2166_vm4, %v1117_v11, %v1121_v12  ;;  %v1248_v29 = vsel %vm2178_vm5, %v1880_v46, %v1247_v42 }
  0x47   : > { %1216 = vmatpush.bf16.msrb.mxu3 %v1998_v16  ;;  %v747_v16 = vsel %vm2166_vm4, %v742_v7, %v746_v3  ;;  %v1252_v48 = vsel %vm2178_vm5, %v1881_v47, %v1251_v43 }
  0x48   : > { %828 = vmatpush.bf16.msrb.mxu0 %v1971_v21  ;;  %v1136_v21 = vsel %vm2166_vm4, %v1131_v13, %v1135_v14  ;;  %v768_v23 = vunpack.c.l.b16 %v747_v16 }
  0x49   : > { %952 = vmatpush.bf16.msrb.mxu1 %v1979_v22  ;;  %v767_v22 = vunpack.c.l.b16 %v733_v15  ;;  %v1157_v28 = vunpack.c.l.b16 %v1136_v21 }
  0x4a   : > { %1057 = vmatpush.bf16.msrb.mxu2 %v1989_v27  ;;  %v1156_v27 = vunpack.c.l.b16 %v1122_v20 }
  0x4b   : > { %1217 = vmatpush.bf16.msrb.mxu3 %v1997_v36  ;;  %829 = vmatmul.bf16.vlgmr.msrb.gmra.mxu0 %v769_v51  ;;  %v770_v41 = vpack.c.b16 %v768_v23, %v767_v22  ;;  %v2007_v36 = vld [vmem:[%s2462_s1 + $0x210] sm:$0xff]  ;;  %v1882_v51 = vrot.slane %v1878_v39, 9 }
  0x4c   : > { %1334 = vmatpush.bf16.msra.mxu0 %v2012_v33  ;;  %953 = vmatmul.bf16.vlgmr.msrb.gmra.mxu1 %v893_v52  ;;  %v1159_v35 = vpack.c.b16 %v1157_v28, %v1156_v27  ;;  %v1883_v52 = vrot.slane %v1879_v40, 9 }
  0x4d   : > { %2024 = vmatpush.bf16.msra.mxu1 %v2012_v33  ;;  %1058 = vmatmul.bf16.vlgmr.msrb.gmra.mxu2 %v1783_v55  ;;  %v894_v33 = vpack.c.b16 %v892_v25, %v891_v24  ;;  %v1256_v50 = vsel %vm2178_vm5, %v1882_v51, %v1255_v44  ;;  %v1278_v55 = vunpack.c.l.b16 %v1248_v29 }
  0x4e   : > { %1218 = vmatmul.bf16.vlgmr.msrb.gmra.mxu3 %v1158_v56  ;;  %v1260_v53 = vsel %vm2178_vm5, %v1883_v52, %v1259_v45  ;;  %v1279_v56 = vunpack.c.l.b16 %v1252_v48  ;;  %v1280_v57 = vunpack.c.l.b16 %v1256_v50 }
  0x4f   : > { %v1281_v58 = vunpack.c.l.b16 %v1260_v53 }
  0x50   : > { %1335 = vmatpush.bf16.msra.mxu0 %v2011_v60  ;;  %v1282_v59 = vpack.c.b16 %v1279_v56, %v1278_v55 }
  0x51   : > { %2025 = vmatpush.bf16.msra.mxu1 %v2011_v60  ;;  %v1283_v60 = vpack.c.b16 %v1281_v58, %v1280_v57  ;;  %v2041_v57 = vld [vmem:[%s2463_s2] ss:$0 sm:$0xff] }
  0x54   : > { %1336 = vmatpush.bf16.msra.mxu0 %v2010_v10 }
  0x55   : > { %2026 = vmatpush.bf16.msra.mxu1 %v2010_v10 }
  0x58   : > { %1337 = vmatpush.bf16.msra.mxu0 %v2009_v19 }
  0x59   : > { %2027 = vmatpush.bf16.msra.mxu1 %v2009_v19 }
  0x5b   : > { %834 = vmatmul.bf16.gmra.mxu0 %v770_v41 }
  0x5c   : > { %1338 = vmatpush.bf16.msra.mxu0 %v2008_v32  ;;  %958 = vmatmul.bf16.gmra.mxu1 %v894_v33 }
  0x5d   : > { %2028 = vmatpush.bf16.msra.mxu1 %v2008_v32  ;;  %1063 = vmatmul.bf16.gmra.mxu2 %v1787_v34 }
  0x5e   : > { %1223 = vmatmul.bf16.gmra.mxu3 %v1159_v35 }
  0x60   : > { %1339 = vmatpush.bf16.msra.mxu0 %v2007_v36 }
  0x61   : > { %2029 = vmatpush.bf16.msra.mxu1 %v2007_v36 }
  0x64   : > { %1340 = vmatpush.bf16.msra.mxu0 %v2006_v26 }
  0x65   : > { %2030 = vmatpush.bf16.msra.mxu1 %v2006_v26 }
  0x68   : > { %1341 = vmatpush.bf16.msra.mxu0 %v2005_v54 }
  0x69   : > { %2031 = vmatpush.bf16.msra.mxu1 %v2005_v54 }
  0x6b   : > { %1342 = vmatmul.bf16.vlgmr.msra.gmra.mxu0 %v1282_v59 }
  0x6c   : > { %1347 = vmatmul.bf16.vlgmr.msra.gmra.mxu1 %v1283_v60 }
  0xa8   : > { %v363_v61 = vpop.f32.mrf.mxu0 }
  0xa9   : > { %v442_v62 = vpop.f32.mrf.mxu1 }
  0xaa   : > { %v443_v18 = vadd.f32 %v442_v62, %v363_v61 }
  0xb0   : > { %v565_v49 = vpop.f32.mrf.mxu2  ;;  %v365_v0 = vpop.f32.mrf.mxu0 }
  0xb1   : > { %v670_v63 = vpop.f32.mrf.mxu3  ;;  %v444_v1 = vpop.f32.mrf.mxu1  ;;  %v575_v23 = vadd.f32 %v565_v49, %v443_v18  ;;  %v2042_v49 = vld [vmem:[%s2464_s3] ss:$0 sm:$0xff] }
  0xb2   : > { %v445_v28 = vadd.f32 %v444_v1, %v365_v0 }
  0xb3   : > { %v680_v27 = vadd.f32 %v670_v63, %v575_v23 }
  0xb8   : > { %v567_v2 = vpop.f32.mrf.mxu2  ;;  %v368_v4 = vpop.f32.mrf.mxu0 }
  0xb9   : > { %v672_v3 = vpop.f32.mrf.mxu3  ;;  %v447_v5 = vpop.f32.mrf.mxu1  ;;  %v576_v32 = vadd.f32 %v567_v2, %v445_v28 }
  0xba   : > { %v448_v19 = vadd.f32 %v447_v5, %v368_v4 }
  0xbb   : > { %v681_v38 = vadd.f32 %v672_v3, %v576_v32 }
  0xc0   : > { %v570_v6 = vpop.f32.mrf.mxu2  ;;  %v370_v8 = vpop.f32.mrf.mxu0 }
  0xc1   : > { %v675_v7 = vpop.f32.mrf.mxu3  ;;  %v449_v9 = vpop.f32.mrf.mxu1  ;;  %v577_v24 = vadd.f32 %v570_v6, %v448_v19 }
  0xc2   : > { %v450_v31 = vadd.f32 %v449_v9, %v370_v8 }
  0xc3   : > { %v682_v30 = vadd.f32 %v675_v7, %v577_v24 }
  0xc8   : > { %v572_v10 = vpop.f32.mrf.mxu2  ;;  %v830_v12 = vpop.f32.mrf.mxu0 }
  0xc9   : > { %v677_v11 = vpop.f32.mrf.mxu3  ;;  %v954_v13 = vpop.f32.mrf.mxu1  ;;  %v578_v41 = vadd.f32 %v572_v10, %v450_v31  ;;  %v840_v33 = vadd.f32 %v830_v12, %v680_v27 }
  0xcb   : > { %v683_v39 = vadd.f32 %v677_v11, %v578_v41  ;;  %v964_v40 = vadd.f32 %v954_v13, %v840_v33 }
  0xd0   : > { %v1059_v14 = vpop.f32.mrf.mxu2  ;;  %v832_v16 = vpop.f32.mrf.mxu0 }
  0xd1   : > { %v1219_v15 = vpop.f32.mrf.mxu3  ;;  %v956_v17 = vpop.f32.mrf.mxu1  ;;  %v1069_v44 = vadd.f32 %v1059_v14, %v964_v40  ;;  %v841_v45 = vadd.f32 %v832_v16, %v681_v38 }
  0xd3   : > { %v1229_v29 = vadd.f32 %v1219_v15, %v1069_v44  ;;  %v965_v48 = vadd.f32 %v956_v17, %v841_v45 }
  0xd8   : > { %v1061_v20 = vpop.f32.mrf.mxu2  ;;  %v835_v21 = vpop.f32.mrf.mxu0 }
  0xd9   : > { %v959_v22 = vpop.f32.mrf.mxu1  ;;  %v1221_v25 = vpop.f32.mrf.mxu3  ;;  %v842_v34 = vadd.f32 %v835_v21, %v682_v30  ;;  %v1070_v54 = vadd.f32 %v1061_v20, %v965_v48 }
  0xdb   : > { %v966_v42 = vadd.f32 %v959_v22, %v842_v34  ;;  %v1230_v60 = vadd.f32 %v1221_v25, %v1070_v54 }
  0xe0   : > { %v1064_v35 = vpop.f32.mrf.mxu2  ;;  %v837_v36 = vpop.f32.mrf.mxu0 }
  0xe1   : > { %v961_v37 = vpop.f32.mrf.mxu1  ;;  %v1224_v43 = vpop.f32.mrf.mxu3  ;;  %v1071_v46 = vadd.f32 %v1064_v35, %v966_v42  ;;  %v843_v47 = vadd.f32 %v837_v36, %v683_v39 }
  0xe3   : > { %v1231_v50 = vadd.f32 %v1224_v43, %v1071_v46  ;;  %v967_v53 = vadd.f32 %v961_v37, %v843_v47 }
  0xe8   : > { %v1066_v51 = vpop.f32.mrf.mxu2  ;;  %v1343_v52 = vpop.f32.mrf.mxu0 }
  0xe9   : > { %v1348_v26 = vpop.f32.mrf.mxu1  ;;  %v1072_v55 = vadd.f32 %v1066_v51, %v967_v53  ;;  %v1353_v56 = vadd.f32 %v1343_v52, %v1229_v29  ;;  %v1226_v59 = vpop.f32.mrf.mxu3 }
  0xea   : > { %v1355_v58 = vadd.f32 %v1348_v26, %v1231_v50 }
  0xeb   : > { %v1232_v61 = vadd.f32 %v1226_v59, %v1072_v55  ;;  %v1361_v62 = vmul.f32 %v2041_v57, %v1353_v56 }
  0xec   : > { %v1363_v63 = vmul.f32 %v2041_v57, %v1355_v58 }
  0xed   : > { %v1369_v4 = vadd.f32 %v2042_v49, %v1361_v62 }
  0xee   : > { %v1371_v5 = vadd.f32 %v2042_v49, %v1363_v63 }
  0xef   : > { %v1373_v10 = vmax.f32 %v1369_v4, 0.0 }
  0xf0   : > { %v1345_v0 = vpop.f32.mrf.mxu0  ;;  %v1375_v11 = vmax.f32 %v1371_v5, 0.0 }
  0xf1   : > { %v1350_v1 = vpop.f32.mrf.mxu1  ;;  %v1354_v2 = vadd.f32 %v1345_v0, %v1230_v60 }
  0xf2   : > { %v1356_v3 = vadd.f32 %v1350_v1, %v1232_v61 }
  0xf3   : > { %v1362_v6 = vmul.f32 %v2041_v57, %v1354_v2 }
  0xf4   : > { %v1364_v7 = vmul.f32 %v2041_v57, %v1356_v3 }
  0xf5   : > { %v1370_v8 = vadd.f32 %v2042_v49, %v1362_v6 }
  0xf6   : > { %v1372_v9 = vadd.f32 %v2042_v49, %v1364_v7 }
  0xf7   : > { %v1374_v12 = vmax.f32 %v1370_v8, 0.0 }
  0xf8   : > { %v1376_v13 = vmax.f32 %v1372_v9, 0.0 }
  0xf9   : > { %v2016_v14 = vpack.c.bf16 %v1374_v12, %v1373_v10 }
  0xfa   : > { %v2021_v15 = vpack.c.bf16 %v1376_v13, %v1375_v11 }
  0xfb   : > { %2017 = vst [vmem:[%s197_s6] sm:$0xff] %v2016_v14  }
  0xfc   : > { %2023 = vst [vmem:[%s197_s6 + $0x8] sm:$0xff] %v2021_v15  }
  0xfd PF: > { %s14_s15 = sadd.s32 1, %s2049_s15  }
  0xfe   : > { %p11_p4 = scmp.ge.s32.totalorder %s14_s15, 4  }
 0x100   :  { %13 = sbr.rel (!%p11_p4) target bundleno = 1 (0x1), region = 76 }

// kernel: conv_blocks_forward.15
= control target key start
LH: loop header
LB: loop body
LE: loop exit
PB: predicated region body
PF: predicated region fallthrough
CT: control target
= control target key end

     0   :  { %s2223_s24 = smov 0   ;;  %s2682_s0 = inlined_call_operand.vmem [shape: bf16[2,6,10,128], index: 0, kind: input, shape index: {}]   ;;  %s2683_s1 = inlined_call_operand.vmem [shape: bf16[9,128,128], index: 1, kind: input, shape index: {}]   ;;  %s2684_s2 = inlined_call_operand.vmem [shape: f32[1,128], index: 2, kind: input, shape index: {}]   ;;  %s2685_s3 = inlined_call_operand.vmem [shape: f32[1,128], index: 3, kind: input, shape index: {}]   ;;  %s2686_s4 = inlined_call_operand.vmem [shape: f32[32,1], index: 4, kind: input, shape index: {}]   ;;  %s2687_s5 = inlined_call_operand.vmem [shape: f32[128,128], index: 5, kind: input, shape index: {}]   ;;  %s2688_s6 = inlined_call_operand.vmem [shape: f32[1,128], index: 6, kind: input, shape index: {}]   ;;  %s2689_s7 = inlined_call_operand.vmem [shape: f32[2,8,128], index: 7, kind: output, shape index: {}]  }
   0x1 LB: > { %s1581_s25 = sadd.s32 4294967295, %s2180_s24   ;;  %p1585_p0 = scmp.ge.s32.totalorder %s2180_s24, 1  ;;  %s2180_s24 = sphi %s2223_s24, %s17_s24  }
   0x2   : > { %p237_p1 = scmp.lt.s32.totalorder %s2180_s24, 3 }
   0x4   : > { %p238_p2 = pnand %p1585_p0, %p237_p1 }
   0x5   : > { %p268_p3 = scmp.lt.s32.totalorder (!%p238_p2), %s1581_s25, 1 }
   0x6   : > { %241 = sbr.rel (%p238_p2) target bundleno = 402 (0x192), region = 48 }
   0xb   : > { %v2091_v0 = vld [vmem:[%s2683_s1 + $0x78] sm:$0xff]  ;;  %v2090_v4 = vld [vmem:[%s2683_s1 + $0x70] sm:$0xff]  ;;  %s2695_s25 = smov (!%p268_p3, %s1581_s25), 1  ;;  %v2089_v8 = vld [vmem:[%s2683_s1 + $0x68] sm:$0xff]  ;;  %vm543_vm0 = vcmask 1042432   ;;  %vm544_vm1 = vcmask 1046532  }
   0xc   : > { %v2083_v1 = vld [vmem:[%s2683_s1 + $0x38] sm:$0xff]  ;;  %433 = vmatpush.bf16.msra.mxu0 %v2091_v0  ;;  %v2082_v5 = vld [vmem:[%s2683_s1 + $0x30] sm:$0xff]  ;;  %s2160_s19 = smul.u32 48, %s2695_s25  ;;  %v2081_v9 = vld [vmem:[%s2683_s1 + $0x28] sm:$0xff]  ;;  %vm301_vm2 = vsmask.f32 3328 }
   0xd   : > { %v2099_v2 = vld [vmem:[%s2683_s1 + $0xb8] sm:$0xff]  ;;  %512 = vmatpush.bf16.msra.mxu1 %v2083_v1  ;;  %v2098_v6 = vld [vmem:[%s2683_s1 + $0xb0] sm:$0xff]  ;;  %v2097_v10 = vld [vmem:[%s2683_s1 + $0xa8] sm:$0xff]  ;;  %vm302_vm3 = vsmask.f32 7440  ;;  %s1587_s14 = sshll.u32 %s2695_s25, 3 }
   0xe   : > { %v2109_v3 = vld [vmem:[%s2683_s1 + $0xf8] sm:$0xff]  ;;  %635 = vmatpush.bf16.msra.mxu2 %v2099_v2  ;;  %v2108_v7 = vld [vmem:[%s2683_s1 + $0xf0] sm:$0xff]  ;;  %v2107_v11 = vld [vmem:[%s2683_s1 + $0xe8] sm:$0xff]  ;;  %s2273_s9 = scalar_lea.vmem %s2682_s0, %s2160_s19  ;;  %s276_s17 = scalar_lea.vmem %s2689_s7, %s1587_s14 }
   0xf   : > { %740 = vmatpush.bf16.msra.mxu3 %v2109_v3  ;;  %v2088_v12 = vld [vmem:[%s2683_s1 + $0x60] sm:$0xff]  ;;  %v278_v17 = vld [vmem:[%s2273_s9 + $0x8] sm:$0xf]  ;;  %v298_v19 = vld [vmem:[%s2273_s9 + $0xc] sm:$0x1] }
  0x10   : > { %434 = vmatpush.bf16.msra.mxu0 %v2090_v4  ;;  %v2080_v13 = vld [vmem:[%s2683_s1 + $0x20] sm:$0xff]  ;;  %v319_v22 = vshrl.u32 %v278_v17, 16  ;;  %v2087_v23 = vld [vmem:[%s2683_s1 + $0x58] sm:$0xff]  ;;  %v322_v26 = vshll.u32 %v278_v17, 16  ;;  %v328_v31 = vshll.u32 %v298_v19, 16  ;;  %v552_v41 = vrot.slane %v298_v19, 5  ;;  %vm2313_vm4 = vmor %vm543_vm0, %vm544_vm1 }
  0x11   : > { %513 = vmatpush.bf16.msra.mxu1 %v2082_v5  ;;  %v2096_v14 = vld [vmem:[%s2683_s1 + $0xa0] sm:$0xff]  ;;  %v2079_v24 = vld [vmem:[%s2683_s1 + $0x18] sm:$0xff]  ;;  %v532_v32 = vld [vmem:[%s2273_s9 + $0x8] sm:$0xe] }
  0x12   : > { %636 = vmatpush.bf16.msra.mxu2 %v2098_v6  ;;  %v2106_v15 = vld [vmem:[%s2683_s1 + $0xe0] sm:$0xff]  ;;  %v321_v30 = vrot.slane %v319_v22, 4  ;;  %v2095_v33 = vld [vmem:[%s2683_s1 + $0x98] sm:$0xff]  ;;  %v324_v35 = vrot.slane %v322_v26, 5  ;;  %v1677_v40 = vrot.slane %v532_v32, 9  ;;  %v2086_v42 = vld [vmem:[%s2683_s1 + $0x50] sm:$0xff] }
  0x13   : > { %741 = vmatpush.bf16.msra.mxu3 %v2108_v7  ;;  %v277_v16 = vld [vmem:[%s2273_s9] sm:$0xf]  ;;  %v297_v18 = vld [vmem:[%s2273_s9 + $0x4] sm:$0x1]  ;;  %v2105_v34 = vld [vmem:[%s2683_s1 + $0xd8] sm:$0xff]  ;;  %v330_v46 = vrot.slane %v328_v31, 5 }
  0x14   : > { %435 = vmatpush.bf16.msra.mxu0 %v2089_v8  ;;  %v305_v20 = vshrl.u32 %v277_v16, 16  ;;  %v308_v21 = vshll.u32 %v277_v16, 16  ;;  %v314_v25 = vshll.u32 %v297_v18, 16  ;;  %v531_v27 = vld [vmem:[%s2273_s9] sm:$0xe]  ;;  %v325_v38 = vor.u32 %v324_v35, %v321_v30  ;;  %v2078_v43 = vld [vmem:[%s2683_s1 + $0x10] sm:$0xff]  ;;  %vm2325_vm5 = vmor %vm301_vm2, %vm302_vm3 }
  0x15   : > { %514 = vmatpush.bf16.msra.mxu1 %v2081_v9  ;;  %v1676_v37 = vrot.slane %v531_v27, 9  ;;  %v548_v39 = vrot.slane %v297_v18, 5  ;;  %v2094_v48 = vld [vmem:[%s2683_s1 + $0x90] sm:$0xff]  ;;  %v553_v53 = vsel %vm2313_vm4, %v1677_v40, %v552_v41  ;;  %v280_v55 = vld [vmem:[%s2273_s9 + $0x18] sm:$0xf]  ;;  %v2085_v56 = vld [vmem:[%s2683_s1 + $0x48] sm:$0xff] }
  0x16   : > { %637 = vmatpush.bf16.msra.mxu2 %v2097_v10  ;;  %v307_v28 = vrot.slane %v305_v20, 4  ;;  %v310_v29 = vrot.slane %v308_v21, 5  ;;  %v316_v45 = vrot.slane %v314_v25, 5  ;;  %v2104_v49 = vld [vmem:[%s2683_s1 + $0xd0] sm:$0xff]  ;;  %v326_v51 = vrot.slane %v325_v38, 4  ;;  %v2077_v57 = vld [vmem:[%s2683_s1 + $0x8] sm:$0xff] }
  0x17   : > { %742 = vmatpush.bf16.msra.mxu3 %v2107_v11  ;;  %v549_v52 = vsel %vm2313_vm4, %v1676_v37, %v548_v39  ;;  %v279_v54 = vld [vmem:[%s2273_s9 + $0x10] sm:$0xf]  ;;  %v2093_v62 = vld [vmem:[%s2683_s1 + $0x88] sm:$0xff]  ;;  %v347_v0 = vshrl.u32 %v280_v55, 16  ;;  %v350_v1 = vshll.u32 %v280_v55, 16  ;;  %v2084_v2 = vld [vmem:[%s2683_s1 + $0x40] sm:$0xff]  ;;  %v580_v10 = vunpack.c.l.b16 %v553_v53 }
  0x18   : > { %436 = vmatpush.bf16.msra.mxu0 %v2088_v12  ;;  %v311_v36 = vor.u32 %v310_v29, %v307_v28  ;;  %v331_v59 = vsel %vm2325_vm5, %v326_v51, %v330_v46  ;;  %v333_v60 = vshrl.u32 %v279_v54, 16  ;;  %v336_v61 = vshll.u32 %v279_v54, 16  ;;  %v2103_v63 = vld [vmem:[%s2683_s1 + $0xc8] sm:$0xff]  ;;  %v2076_v3 = vld [vmem:[%s2683_s1] sm:$0xff]  ;;  %v2100_v12 = vld [vmem:[%s2273_s9 + $0xc] sm:$0xf0] }
  0x19   : > { %515 = vmatpush.bf16.msra.mxu1 %v2080_v13  ;;  %v2092_v4 = vld [vmem:[%s2683_s1 + $0x80] sm:$0xff]  ;;  %v378_v6 = vunpack.c.l.b16 %v331_v59  ;;  %v2074_v8 = vld [vmem:[%s2273_s9 + $0x4] sm:$0xf0]  ;;  %v579_v9 = vunpack.c.l.b16 %v549_v52  ;;  %v352_v16 = vrot.slane %v350_v1, 5  ;;  %v299_v18 = vld [vmem:[%s2273_s9 + $0x14] sm:$0x1] }
  0x1a   : > { %638 = vmatpush.bf16.msra.mxu2 %v2096_v14  ;;  %v312_v44 = vrot.slane %v311_v36, 4  ;;  %v1638_v7 = vld [vmem:[%s2273_s9] sm:$0xf]  ;;  %v1750_v11 = vld [vmem:[%s2273_s9 + $0x8] sm:$0xf]  ;;  %v335_v13 = vrot.slane %v333_v60, 4 }
  0x1b   : > { %743 = vmatpush.bf16.msra.mxu3 %v2106_v15  ;;  %v338_v14 = vrot.slane %v336_v61, 5  ;;  %v349_v15 = vrot.slane %v347_v0, 4  ;;  %v2102_v17 = vld [vmem:[%s2683_s1 + $0xc0] sm:$0xff]  ;;  %v300_v19 = vld [vmem:[%s2273_s9 + $0x1c] sm:$0x1]  ;;  %v1751_v25 = vor.u32 %v2100_v12, %v1750_v11  ;;  %v342_v27 = vshll.u32 %v299_v18, 16 }
  0x1c   : > { %437 = vmatpush.bf16.msra.mxu0 %v2087_v23  ;;  %v317_v58 = vsel %vm2325_vm5, %v312_v44, %v316_v45  ;;  %v2135_v20 = vld [vmem:[%s2683_s1 + $0x1b8] sm:$0xff]  ;;  %v1639_v23 = vor.u32 %v2074_v8, %v1638_v7  ;;  %v356_v29 = vshll.u32 %v300_v19, 16  ;;  %v533_v30 = vld [vmem:[%s2273_s9 + $0x10] sm:$0xe]  ;;  %v556_v37 = vrot.slane %v299_v18, 5  ;;  %v2115_v51 = vld [vmem:[%s2683_s1 + $0x128] sm:$0xff] }
  0x1d   : > { %516 = vmatpush.bf16.msra.mxu1 %v2079_v24  ;;  %v377_v5 = vunpack.c.l.b16 %v317_v58  ;;  %v2117_v21 = vld [vmem:[%s2683_s1 + $0x138] sm:$0xff]  ;;  %v583_v24 = vpack.c.b16 %v580_v10, %v579_v9  ;;  %v339_v26 = vor.u32 %v338_v14, %v335_v13  ;;  %v353_v28 = vor.u32 %v352_v16, %v349_v15  ;;  %v2116_v35 = vld [vmem:[%s2683_s1 + $0x130] sm:$0xff]  ;;  %v1788_v44 = vld [vmem:[%s2273_s9 + $0x8] sm:$0xf] }
  0x1e   : > { %639 = vmatpush.bf16.msra.mxu2 %v2095_v33  ;;  %v534_v31 = vld [vmem:[%s2273_s9 + $0x18] sm:$0xe]  ;;  %v1678_v36 = vrot.slane %v533_v30, 9  ;;  %v560_v39 = vrot.slane %v300_v19, 5  ;;  %v344_v41 = vrot.slane %v342_v27, 5  ;;  %v2124_v45 = vld [vmem:[%s2683_s1 + $0x170] sm:$0xff] }
  0x1f   : > { %744 = vmatpush.bf16.msra.mxu3 %v2105_v34  ;;  %v381_v22 = vpack.c.b16 %v378_v6, %v377_v5  ;;  %v2125_v32 = vld [vmem:[%s2683_s1 + $0x178] sm:$0xff]  ;;  %v2134_v34 = vld [vmem:[%s2683_s1 + $0x1b0] sm:$0xff]  ;;  %v1679_v38 = vrot.slane %v534_v31, 9  ;;  %v340_v40 = vrot.slane %v339_v26, 4  ;;  %v772_v54 = vshrl.u32 %v1788_v44, 16  ;;  %v2123_v61 = vld [vmem:[%s2683_s1 + $0x168] sm:$0xff] }
  0x20   : > { %438 = vmatpush.bf16.msra.mxu0 %v2086_v42  ;;  %v2143_v33 = vld [vmem:[%s2683_s1 + $0x1f8] sm:$0xff]  ;;  %v354_v42 = vrot.slane %v353_v28, 4  ;;  %v2142_v46 = vld [vmem:[%s2683_s1 + $0x1f0] sm:$0xff]  ;;  %v557_v52 = vsel %vm2313_vm4, %v1678_v36, %v556_v37  ;;  %v775_v55 = vshll.u32 %v1788_v44, 16  ;;  %v2122_v7 = vld [vmem:[%s2683_s1 + $0x160] sm:$0xff] }
  0x21   : > { %517 = vmatpush.bf16.msra.mxu1 %v2078_v43  ;;  %v358_v43 = vrot.slane %v356_v29, 5  ;;  %v561_v53 = vsel %vm2313_vm4, %v1679_v38, %v560_v39  ;;  %v581_v5 = vunpack.c.l.b16 %v557_v52  ;;  %v2140_v8 = vld [vmem:[%s2683_s1 + $0x1e0] sm:$0xff]  ;;  %v2075_v11 = vld [vmem:[%s2273_s9 + $0x14] sm:$0xf0]  ;;  %v774_v13 = vrot.slane %v772_v54, 4  ;;  %v2130_v44 = vld [vmem:[%s2683_s1 + $0x190] sm:$0xff] }
  0x22   : > { %640 = vmatpush.bf16.msra.mxu2 %v2094_v48  ;;  %v1790_v48 = vld [vmem:[%s2273_s9 + $0x10] sm:$0xf]  ;;  %v582_v6 = vunpack.c.l.b16 %v561_v53  ;;  %v1754_v12 = vld [vmem:[%s2273_s9 + $0x18] sm:$0xf]  ;;  %v777_v14 = vrot.slane %v775_v55, 5 }
  0x23   : > { %745 = vmatpush.bf16.msra.mxu3 %v2104_v49  ;;  %v2133_v49 = vld [vmem:[%s2683_s1 + $0x1a8] sm:$0xff]  ;;  %v359_v58 = vsel %vm2325_vm5, %v354_v42, %v358_v43  ;;  %v786_v59 = vshrl.u32 %v1790_v48, 16  ;;  %v789_v60 = vshll.u32 %v1790_v48, 16  ;;  %v2448_v26 = vld [vmem:[%s2273_s9 + $0x14] sm:$0x1] }
  0x24   : > { %439 = vmatpush.bf16.msra.mxu0 %v2085_v56  ;;  %v1960_v56 = vld [vmem:[%s2273_s9 + $0x10] sm:$0xf]  ;;  %v380_v10 = vunpack.c.l.b16 %v359_v58  ;;  %v2435_v15 = vld [vmem:[%s2273_s9 + $0xc] sm:$0x1]  ;;  %v778_v31 = vor.u32 %v777_v14, %v774_v13  ;;  %v1170_v43 = vshll.u32 %v2448_v26, 16 }
  0x25   : > { %518 = vmatpush.bf16.msra.mxu1 %v2077_v57  ;;  %v345_v57 = vsel %vm2325_vm5, %v340_v40, %v344_v41  ;;  %v1161_v0 = vshrl.u32 %v1960_v56, 16  ;;  %v1164_v1 = vshll.u32 %v1960_v56, 16  ;;  %v788_v16 = vrot.slane %v786_v59, 4  ;;  %v1845_v39 = vld [vmem:[%s2273_s9 + $0x10] sm:$0xe]  ;;  %v2121_v40 = vld [vmem:[%s2683_s1 + $0x158] sm:$0xff] }
  0x26   : > { %641 = vmatpush.bf16.msra.mxu2 %v2093_v62  ;;  %v2141_v62 = vld [vmem:[%s2683_s1 + $0x1e8] sm:$0xff]  ;;  %v379_v9 = vunpack.c.l.b16 %v345_v57  ;;  %v2139_v41 = vld [vmem:[%s2683_s1 + $0x1d8] sm:$0xff]  ;;  %v937_v48 = vrot.slane %v2435_v15, 5  ;;  %v2120_v52 = vld [vmem:[%s2683_s1 + $0x150] sm:$0xff]  ;;  %v779_v54 = vrot.slane %v778_v31, 4  ;;  %v1849_v56 = vrot.slane %v1845_v39, 9 }
  0x27   : > { %746 = vmatpush.bf16.msra.mxu3 %v2103_v63  ;;  %v1962_v63 = vld [vmem:[%s2273_s9 + $0x18] sm:$0xf]  ;;  %v2138_v53 = vld [vmem:[%s2683_s1 + $0x1d0] sm:$0xff]  ;;  %v2129_v58 = vld [vmem:[%s2683_s1 + $0x188] sm:$0xff] }
  0x28   : > { %440 = vmatpush.bf16.msra.mxu0 %v2084_v2  ;;  %v2132_v2 = vld [vmem:[%s2683_s1 + $0x1a0] sm:$0xff]  ;;  %v1175_v18 = vshrl.u32 %v1962_v63, 16  ;;  %v1178_v19 = vshll.u32 %v1962_v63, 16  ;;  %v382_v29 = vpack.c.b16 %v380_v10, %v379_v9  ;;  %v2111_v59 = vld [vmem:[%s2683_s1 + $0x108] sm:$0xff]  ;;  %v2487_v63 = vld [vmem:[%s2273_s9 + $0x10] sm:$0xf] }
  0x29   : > { %519 = vmatpush.bf16.msra.mxu1 %v2076_v3  ;;  %v2114_v3 = vld [vmem:[%s2683_s1 + $0x120] sm:$0xff] }
  0x2a   : > { %642 = vmatpush.bf16.msra.mxu2 %v2092_v4  ;;  %v1642_v4 = vld [vmem:[%s2273_s9 + $0x10] sm:$0xf]  ;;  %v1177_v27 = vrot.slane %v1175_v18, 4  ;;  %v1180_v28 = vrot.slane %v1178_v19, 5  ;;  %v2128_v18 = vld [vmem:[%s2683_s1 + $0x180] sm:$0xff] }
  0x2b   : > { %747 = vmatpush.bf16.msra.mxu3 %v2102_v17  ;;  %441 = vmatmul.bf16.vlgmr.msra.gmra.mxu0 %v381_v22  ;;  %v791_v17 = vrot.slane %v789_v60, 5  ;;  %v1163_v22 = vrot.slane %v1161_v0, 4  ;;  %v1643_v30 = vor.u32 %v2075_v11, %v1642_v4  ;;  %v1966_v11 = vld [vmem:[%s2273_s9 + $0x28] sm:$0xf] }
  0x2c   : > { %900 = vmatpush.bf16.msrb.mxu0 %v2117_v21  ;;  %520 = vmatmul.bf16.vlgmr.msra.gmra.mxu1 %v1639_v23  ;;  %v2439_v21 = vld [vmem:[%s2273_s9 + $0x14] sm:$0x1]  ;;  %v1166_v23 = vrot.slane %v1164_v1, 5  ;;  %v1172_v1 = vrot.slane %v1170_v43, 5  ;;  %v2118_v43 = vld [vmem:[%s2683_s1 + $0x140] sm:$0xff] }
  0x2d   : > { %643 = vmatmul.bf16.vlgmr.msra.gmra.mxu2 %v583_v24  ;;  %1024 = vmatpush.bf16.msrb.mxu1 %v2125_v32  ;;  %v2131_v24 = vld [vmem:[%s2683_s1 + $0x198] sm:$0xff]  ;;  %v781_v32 = vshll.u32 %v2435_v15, 16  ;;  %v792_v37 = vor.u32 %v791_v17, %v788_v16  ;;  %v795_v38 = vshll.u32 %v2439_v21, 16  ;;  %v941_v57 = vrot.slane %v2439_v21, 5  ;;  %v2119_v16 = vld [vmem:[%s2683_s1 + $0x148] sm:$0xff] }
  0x2e   : > { %1129 = vmatpush.bf16.msrb.mxu2 %v2135_v20  ;;  %748 = vmatmul.bf16.vlgmr.msra.gmra.mxu3 %v1751_v25  ;;  %v2101_v20 = vld [vmem:[%s2273_s9 + $0x1c] sm:$0xf0]  ;;  %v2113_v25 = vld [vmem:[%s2683_s1 + $0x118] sm:$0xff]  ;;  %v1167_v42 = vor.u32 %v1166_v23, %v1163_v22  ;;  %v2137_v17 = vld [vmem:[%s2683_s1 + $0x1c8] sm:$0xff] }
  0x2f   : > { %1289 = vmatpush.bf16.msrb.mxu3 %v2143_v33  ;;  %v1844_v33 = vld [vmem:[%s2273_s9 + $0x8] sm:$0xe]  ;;  %v1755_v36 = vor.u32 %v2101_v20, %v1754_v12  ;;  %v783_v55 = vrot.slane %v781_v32, 5  ;;  %v793_v60 = vrot.slane %v792_v37, 4  ;;  %v942_v9 = vsel %vm2313_vm4, %v1849_v56, %v941_v57  ;;  %v2110_v23 = vld [vmem:[%s2683_s1 + $0x100] sm:$0xff]  ;;  %v2151_v32 = vld [vmem:[%s2683_s1 + $0x238] sm:$0xff] }
  0x30   : > { %901 = vmatpush.bf16.msrb.mxu0 %v2116_v35  ;;  %v584_v35 = vpack.c.b16 %v582_v6, %v581_v5  ;;  %v1168_v0 = vrot.slane %v1167_v42, 4  ;;  %v2534_v37 = vld [vmem:[%s2273_s9 + $0x24] sm:$0x1] }
  0x31   : > { %1025 = vmatpush.bf16.msrb.mxu1 %v2124_v45  ;;  %v2112_v45 = vld [vmem:[%s2683_s1 + $0x110] sm:$0xff]  ;;  %v1334_v42 = vrot.slane %v2534_v37, 5 }
  0x32   : > { %1130 = vmatpush.bf16.msrb.mxu2 %v2134_v34  ;;  %v2453_v34 = vld [vmem:[%s2273_s9 + $0x1c] sm:$0x1]  ;;  %v1173_v21 = vsel %vm2325_vm5, %v1168_v0, %v1172_v1 }
  0x33   : > { %1290 = vmatpush.bf16.msrb.mxu3 %v2142_v46  ;;  %v1848_v46 = vrot.slane %v1844_v33, 9  ;;  %v969_v33 = vunpack.c.l.b16 %v942_v9  ;;  %v1847_v9 = vld [vmem:[%s2273_s9 + $0x20] sm:$0xe] }
  0x34   : > { %902 = vmatpush.bf16.msrb.mxu0 %v2115_v51  ;;  %v1184_v51 = vshll.u32 %v2453_v34, 16 }
  0x35   : > { %1026 = vmatpush.bf16.msrb.mxu1 %v2123_v61  ;;  %v797_v61 = vrot.slane %v795_v38, 5  ;;  %v2495_v4 = vsel %vm2313_vm4, %v1848_v46, %v937_v48 }
  0x36   : > { %1131 = vmatpush.bf16.msrb.mxu2 %v2133_v49  ;;  %v1181_v49 = vor.u32 %v1180_v28, %v1177_v27  ;;  %v1186_v6 = vrot.slane %v1184_v51, 5  ;;  %v968_v20 = vunpack.c.l.b16 %v2495_v4  ;;  %v1203_v28 = vshrl.u32 %v1966_v11, 16  ;;  %v2018_v51 = vld [vmem:[%s2273_s9 + $0x20] sm:$0xe] }
  0x37   : > { %1291 = vmatpush.bf16.msrb.mxu3 %v2141_v62  ;;  %v1792_v62 = vld [vmem:[%s2273_s9 + $0x18] sm:$0xf]  ;;  %v798_v12 = vsel %vm2325_vm5, %v793_v60, %v797_v61  ;;  %v2022_v56 = vrot.slane %v2018_v51, 9  ;;  %v2146_v51 = vld [vmem:[%s2683_s1 + $0x210] sm:$0xff] }
  0x38   : > { %903 = vmatpush.bf16.msrb.mxu0 %v2114_v3  ;;  %v2491_v3 = vld [vmem:[%s2273_s9 + $0x14] sm:$0xf0]  ;;  %v1182_v5 = vrot.slane %v1181_v49, 4  ;;  %v800_v10 = vshrl.u32 %v1792_v62, 16  ;;  %v803_v13 = vshll.u32 %v1792_v62, 16  ;;  %v845_v31 = vunpack.c.l.b16 %v798_v12 }
  0x39   : > { %1027 = vmatpush.bf16.msrb.mxu1 %v2122_v7  ;;  %v1964_v7 = vld [vmem:[%s2273_s9 + $0x20] sm:$0xf]  ;;  %v1923_v19 = vor.u32 %v2491_v3, %v2487_v63  ;;  %v972_v62 = vpack.c.b16 %v969_v33, %v968_v20  ;;  %v1454_v63 = vld [vmem:[%s2686_s4 + $0x10] sm:$0xff] }
  0x3a   : > { %1132 = vmatpush.bf16.msrb.mxu2 %v2132_v2  ;;  %v1794_v2 = vld [vmem:[%s2273_s9 + $0x20] sm:$0xf]  ;;  %v1189_v22 = vshrl.u32 %v1964_v7, 16  ;;  %v1192_v27 = vshll.u32 %v1964_v7, 16  ;;  %v805_v38 = vrot.slane %v803_v13, 5 }
  0x3b   : > { %1292 = vmatpush.bf16.msrb.mxu3 %v2140_v8  ;;  %446 = vmatmul.bf16.gmra.mxu0 %v382_v29  ;;  %v784_v8 = vsel %vm2325_vm5, %v779_v54, %v783_v55  ;;  %v814_v14 = vshrl.u32 %v1794_v2, 16  ;;  %v817_v15 = vshll.u32 %v1794_v2, 16  ;;  %v1206_v29 = vshll.u32 %v1966_v11, 16  ;;  %v2019_v55 = vld [vmem:[%s2273_s9 + $0x28] sm:$0xe] }
  0x3c   : > { %904 = vmatpush.bf16.msrb.mxu0 %v2113_v25  ;;  %525 = vmatmul.bf16.gmra.mxu1 %v1643_v30  ;;  %v2525_v25 = vld [vmem:[%s2273_s9 + $0x1c] sm:$0x1]  ;;  %v844_v30 = vunpack.c.l.b16 %v784_v8  ;;  %v1191_v48 = vrot.slane %v1189_v22, 4  ;;  %v2023_v61 = vrot.slane %v2019_v55, 9  ;;  %v1335_v2 = vsel %vm2313_vm4, %v2022_v56, %v1334_v42  ;;  %v1846_v8 = vld [vmem:[%s2273_s9 + $0x18] sm:$0xe] }
  0x3d   : > { %648 = vmatmul.bf16.gmra.mxu2 %v584_v35  ;;  %1028 = vmatpush.bf16.msrb.mxu1 %v2121_v40  ;;  %v2531_v35 = vld [vmem:[%s2273_s9 + $0x24] sm:$0x1]  ;;  %v816_v39 = vrot.slane %v814_v14, 4  ;;  %v819_v40 = vrot.slane %v817_v15, 5  ;;  %v1208_v54 = vrot.slane %v1206_v29, 5  ;;  %v1359_v7 = vunpack.c.l.b16 %v1335_v2  ;;  %v2149_v14 = vld [vmem:[%s2683_s1 + $0x228] sm:$0xff] }
  0x3e   : > { %1133 = vmatpush.bf16.msrb.mxu2 %v2131_v24  ;;  %753 = vmatmul.bf16.gmra.mxu3 %v1755_v36  ;;  %v1187_v24 = vsel %vm2325_vm5, %v1182_v5, %v1186_v6  ;;  %v802_v36 = vrot.slane %v800_v10, 4  ;;  %v848_v57 = vpack.c.b16 %v845_v31, %v844_v30  ;;  %v823_v60 = vshll.u32 %v2531_v35, 16  ;;  %v2148_v31 = vld [vmem:[%s2683_s1 + $0x220] sm:$0xff]  ;;  %v2016_v55 = vld [vmem:[%s2273_s9 + $0x10] sm:$0xe] }
  0x3f   : > { %1293 = vmatpush.bf16.msrb.mxu3 %v2139_v41  ;;  %v1967_v41 = vld [vmem:[%s2273_s9 + $0x2c] sm:$0x1]  ;;  %v1234_v46 = vunpack.c.l.b16 %v1187_v24  ;;  %v820_v1 = vor.u32 %v819_v40, %v816_v39  ;;  %v1198_v5 = vshll.u32 %v2534_v37, 16  ;;  %v1850_v22 = vrot.slane %v1846_v8, 9  ;;  %v2147_v40 = vld [vmem:[%s2683_s1 + $0x218] sm:$0xff] }
  0x40   : > { %905 = vmatpush.bf16.msrb.mxu0 %v2112_v45  ;;  %v1233_v45 = vunpack.c.l.b16 %v1173_v21  ;;  %v1338_v49 = vrot.slane %v1967_v41, 5  ;;  %v806_v0 = vor.u32 %v805_v38, %v802_v36  ;;  %v1212_v12 = vshll.u32 %v1967_v41, 16  ;;  %v1452_v21 = vld [vmem:[%s2686_s4] sm:$0xff]  ;;  %v2017_v56 = vld [vmem:[%s2273_s9 + $0x18] sm:$0xe] }
  0x41   : > { %1029 = vmatpush.bf16.msrb.mxu1 %v2120_v52  ;;  %v1194_v52 = vrot.slane %v1192_v27, 5  ;;  %v1851_v24 = vrot.slane %v1847_v9, 9  ;;  %v949_v27 = vrot.slane %v2531_v35, 5  ;;  %v2182_v30 = vmov 0  }
  0x42   : > { %1134 = vmatpush.bf16.msrb.mxu2 %v2130_v44  ;;  %v2136_v44 = vld [vmem:[%s2683_s1 + $0x1c0] sm:$0xff]  ;;  %v1237_v4 = vpack.c.b16 %v1234_v46, %v1233_v45  ;;  %v1339_v6 = vsel %vm2313_vm4, %v2023_v61, %v1338_v49  ;;  %v1214_v29 = vrot.slane %v1212_v12, 5  ;;  %2170 = vset.pattern.permute.xlu0 %v2182_v30  ;;  %v2127_v45 = vld [vmem:[%s2273_s9 + $0x24] sm:$0xf0]  ;;  %v2021_v61 = vrot.slane %v2017_v56, 9 }
  0x43   : > { %1294 = vmatpush.bf16.msrb.mxu3 %v2138_v53  ;;  %v1205_v53 = vrot.slane %v1203_v28, 4  ;;  %v1195_v10 = vor.u32 %v1194_v52, %v1191_v48  ;;  %v1360_v13 = vunpack.c.l.b16 %v1339_v6  ;;  %2171 = vset.pattern.permute.xlu1 %v2182_v30  ;;  %v950_v35 = vsel %vm2313_vm4, %v1851_v24, %v949_v27  ;;  %v1455_v48 = vld [vmem:[%s2686_s4 + $0x18] sm:$0xff]  ;;  %v1503_v27 = vld [vmem:[%s2687_s5 + $0x70] sm:$0xff]  ;;  %v1493_v56 = vld [vmem:[%s2687_s5 + $0x20] sm:$0xff] }
  0x44   : > { %906 = vmatpush.bf16.msrb.mxu0 %v2111_v59  ;;  %v809_v59 = vshll.u32 %v2525_v25, 16  ;;  %1458 = vperm.xlu0 %2170, %v1452_v21   ;;  %v971_v42 = vunpack.c.l.b16 %v950_v35  ;;  %v1498_v35 = vld [vmem:[%s2687_s5 + $0x48] sm:$0xff] }
  0x45   : > { %1030 = vmatpush.bf16.msrb.mxu1 %v2119_v16  ;;  %v1209_v11 = vor.u32 %v1208_v54, %v1205_v53  ;;  %v825_v16 = vrot.slane %v823_v60, 5  ;;  %v2564_v20 = vpack.c.b16 %v1360_v13, %v1359_v7  ;;  %v1196_v3 = vrot.slane %v1195_v10, 4  ;;  %1468 = vperm.xlu1 %2171, %v1454_v63   ;;  %v1502_v63 = vld [vmem:[%s2687_s5 + $0x68] sm:$0xff] }
  0x46   : > { %1135 = vmatpush.bf16.msrb.mxu2 %v2129_v58  ;;  %v2150_v58 = vld [vmem:[%s2683_s1 + $0x230] sm:$0xff]  ;;  %v811_v15 = vrot.slane %v809_v59, 5  ;;  %v1330_v59 = vrot.slane %v2453_v34, 5  ;;  %v2020_v60 = vrot.slane %v2016_v55, 9 }
  0x47   : > { %1295 = vmatpush.bf16.msrb.mxu3 %v2137_v17  ;;  %v807_v17 = vrot.slane %v806_v0, 4  ;;  %v1210_v28 = vrot.slane %v1209_v11, 4 }
  0x48   : > { %907 = vmatpush.bf16.msrb.mxu0 %v2110_v23  ;;  %v945_v23 = vrot.slane %v2525_v25, 5 }
  0x49   : > { %1031 = vmatpush.bf16.msrb.mxu1 %v2118_v43  ;;  %v812_v25 = vsel %vm2325_vm5, %v807_v17, %v811_v15  ;;  %v1215_v37 = vsel %vm2325_vm5, %v1210_v28, %v1214_v29  ;;  %v1453_v43 = vld [vmem:[%s2686_s4 + $0x8] sm:$0xff]  ;;  %v1500_v28 = vld [vmem:[%s2687_s5 + $0x58] sm:$0xff] }
  0x4a   : > { %1136 = vmatpush.bf16.msrb.mxu2 %v2128_v18  ;;  %v821_v18 = vrot.slane %v820_v1, 4  ;;  %v946_v33 = vsel %vm2313_vm4, %v1850_v22, %v945_v23  ;;  %v846_v38 = vunpack.c.l.b16 %v812_v25  ;;  %v1236_v46 = vunpack.c.l.b16 %v1215_v37  ;;  %v1499_v25 = vld [vmem:[%s2687_s5 + $0x50] sm:$0xff]  ;;  %v1497_v37 = vld [vmem:[%s2687_s5 + $0x40] sm:$0xff] }
  0x4b   : > { %1296 = vmatpush.bf16.msrb.mxu3 %v2136_v44  ;;  %908 = vmatmul.bf16.vlgmr.msrb.gmra.mxu0 %v848_v57  ;;  %v970_v41 = vunpack.c.l.b16 %v946_v33  ;;  %v1926_v44 = vld [vmem:[%s2273_s9 + $0x20] sm:$0xf]  ;;  %v2145_v57 = vld [vmem:[%s2683_s1 + $0x208] sm:$0xff]  ;;  %v1331_v1 = vsel %vm2313_vm4, %v2021_v61, %v1330_v59  ;;  %v1491_v61 = vld [vmem:[%s2687_s5 + $0x10] sm:$0xff] }
  0x4c   : > { %1413 = vmatpush.bf16.msra.mxu0 %v2151_v32  ;;  %1032 = vmatmul.bf16.vlgmr.msrb.gmra.mxu1 %v972_v62  ;;  %v1927_v52 = vor.u32 %v2127_v45, %v1926_v44  ;;  %v2144_v62 = vld [vmem:[%s2683_s1 + $0x200] sm:$0xff]  ;;  %v1358_v34 = vunpack.c.l.b16 %v1331_v1 }
  0x4d   : > { %1137 = vmatmul.bf16.vlgmr.msrb.gmra.mxu2 %v1923_v19  ;;  %v1200_v19 = vrot.slane %v1198_v5, 5  ;;  %1463 = vperm.xlu0 %2170, %v1453_v43   ;;  %v973_v53 = vpack.c.b16 %v971_v42, %v970_v41  ;;  %v1496_v41 = vld [vmem:[%s2687_s5 + $0x38] sm:$0xff] }
  0x4e   : > { %2152 = vmatpush.bf16.msra.mxu2 %v2151_v32  ;;  %1297 = vmatmul.bf16.vlgmr.msrb.gmra.mxu3 %v1237_v4  ;;  %v826_v32 = vsel %vm2325_vm5, %v821_v18, %v825_v16 }
  0x4f   : > { %v1201_v36 = vsel %vm2325_vm5, %v1196_v3, %v1200_v19  ;;  %v847_v39 = vunpack.c.l.b16 %v826_v32  ;;  %1473 = vperm.xlu1 %2171, %v1455_v48   ;;  %v1501_v3 = vld [vmem:[%s2687_s5 + $0x60] sm:$0xff] }
  0x50   : > { %1414 = vmatpush.bf16.msra.mxu0 %v2150_v58  ;;  %v1235_v50 = vunpack.c.l.b16 %v1201_v36 }
  0x51   : > { %v849_v49 = vpack.c.b16 %v847_v39, %v846_v38 }
  0x52   : > { %2153 = vmatpush.bf16.msra.mxu2 %v2150_v58  ;;  %v1238_v54 = vpack.c.b16 %v1236_v46, %v1235_v50  ;;  %v1326_v58 = vrot.slane %v2448_v26, 5  ;;  %v1495_v46 = vld [vmem:[%s2687_s5 + $0x30] sm:$0xff] }
  0x54   : > { %1415 = vmatpush.bf16.msra.mxu0 %v2149_v14  ;;  %v1327_v0 = vsel %vm2313_vm4, %v2020_v60, %v1326_v58 }
  0x55   : > { %v1357_v26 = vunpack.c.l.b16 %v1327_v0 }
  0x56   : > { %2154 = vmatpush.bf16.msra.mxu2 %v2149_v14 }
  0x57   : > { %v1361_v2 = vpack.c.b16 %v1358_v34, %v1357_v26  ;;  %v1490_v26 = vld [vmem:[%s2687_s5 + $0x8] sm:$0xff] }
  0x58   : > { %1416 = vmatpush.bf16.msra.mxu0 %v2148_v31 }
  0x5a   : > { %2155 = vmatpush.bf16.msra.mxu2 %v2148_v31 }
  0x5b   : > { %913 = vmatmul.bf16.gmra.mxu0 %v849_v49  ;;  %v1494_v49 = vld [vmem:[%s2687_s5 + $0x28] sm:$0xff] }
  0x5c   : > { %1417 = vmatpush.bf16.msra.mxu0 %v2147_v40  ;;  %1037 = vmatmul.bf16.gmra.mxu1 %v973_v53 }
  0x5d   : > { %1142 = vmatmul.bf16.gmra.mxu2 %v1927_v52 }
  0x5e   : > { %2156 = vmatpush.bf16.msra.mxu2 %v2147_v40  ;;  %1302 = vmatmul.bf16.gmra.mxu3 %v1238_v54 }
  0x60   : > { %1418 = vmatpush.bf16.msra.mxu0 %v2146_v51 }
  0x62   : > { %2157 = vmatpush.bf16.msra.mxu2 %v2146_v51 }
  0x64   : > { %1419 = vmatpush.bf16.msra.mxu0 %v2145_v57 }
  0x66   : > { %2158 = vmatpush.bf16.msra.mxu2 %v2145_v57  ;;  %v1492_v57 = vld [vmem:[%s2687_s5 + $0x18] sm:$0xff] }
  0x68   : > { %1420 = vmatpush.bf16.msra.mxu0 %v2144_v62 }
  0x6a   : > { %2159 = vmatpush.bf16.msra.mxu2 %v2144_v62 }
  0x6b   : > { %1421 = vmatmul.bf16.vlgmr.msra.gmra.mxu0 %v1361_v2 }
  0x6d   : > { %1426 = vmatmul.bf16.vlgmr.msra.gmra.mxu2 %v2564_v20  ;;  %v1504_v20 = vld [vmem:[%s2687_s5 + $0x78] sm:$0xff] }
  0x6e   : > { %1506 = vmatpush.msra.mxu1 %v1504_v20 }
  0x70   : > { %1507 = vmatpush.msra.mxu1 %v1503_v27 }
  0x72   : > { %1508 = vmatpush.msra.mxu1 %v1502_v63 }
  0x74   : > { %1509 = vmatpush.msra.mxu1 %v1501_v3 }
  0x76   : > { %1510 = vmatpush.msra.mxu1 %v1500_v28 }
  0x78   : > { %1511 = vmatpush.msra.mxu1 %v1499_v25 }
  0x7a   : > { %1512 = vmatpush.msra.mxu1 %v1498_v35 }
  0x7c   : > { %1513 = vmatpush.msra.mxu1 %v1497_v37 }
  0x7e   : > { %1514 = vmatpush.msra.mxu1 %v1496_v41 }
  0x80   : > { %1515 = vmatpush.msra.mxu1 %v1495_v46 }
  0x82   : > { %1516 = vmatpush.msra.mxu1 %v1494_v49 }
  0x84   : > { %1517 = vmatpush.msra.mxu1 %v1493_v56 }
  0x86   : > { %1518 = vmatpush.msra.mxu1 %v1492_v57 }
  0x88   : > { %1519 = vmatpush.msra.mxu1 %v1491_v61 }
  0x8a   : > { %1520 = vmatpush.msra.mxu1 %v1490_v26 }
  0xa8   : > { %v442_v4 = vpop.f32.mrf.mxu0 }
  0xa9   : > { %v521_v5 = vpop.f32.mrf.mxu1 }
  0xaa   : > { %v522_v30 = vadd.f32 %v521_v5, %v442_v4 }
  0xb0   : > { %v644_v6 = vpop.f32.mrf.mxu2  ;;  %v444_v8 = vpop.f32.mrf.mxu0 }
  0xb1   : > { %v749_v7 = vpop.f32.mrf.mxu3  ;;  %v523_v9 = vpop.f32.mrf.mxu1  ;;  %v654_v33 = vadd.f32 %v644_v6, %v522_v30 }
  0xb2   : > { %v524_v38 = vadd.f32 %v523_v9, %v444_v8 }
  0xb3   : > { %v759_v39 = vadd.f32 %v749_v7, %v654_v33  ;;  %v1489_v7 = vld [vmem:[%s2687_s5] sm:$0xff] }
  0xb4   : > { %1521 = vmatpush.msra.mxu1 %v1489_v7 }
  0xb7   : > { %v1469_v27 = vpop.permute.xlu1 %1468 }
  0xb8   : > { %v646_v10 = vpop.f32.mrf.mxu2  ;;  %v447_v12 = vpop.f32.mrf.mxu0 }
  0xb9   : > { %v751_v11 = vpop.f32.mrf.mxu3  ;;  %v526_v47 = vpop.f32.mrf.mxu1  ;;  %v655_v42 = vadd.f32 %v646_v10, %v524_v38 }
  0xba   : > { %v527_v36 = vadd.f32 %v526_v47, %v447_v12  ;;  %v1459_v10 = vpop.permute.xlu0 %1458  ;;  %v2172_v12 = vld [vmem:[%s2684_s2] ss:$0 sm:$0xff] }
  0xbb   : > { %v760_v51 = vadd.f32 %v751_v11, %v655_v42 }
  0xc0   : > { %v649_v13 = vpop.f32.mrf.mxu2  ;;  %v449_v14 = vpop.f32.mrf.mxu0 }
  0xc1   : > { %v754_v15 = vpop.f32.mrf.mxu3  ;;  %v528_v16 = vpop.f32.mrf.mxu1  ;;  %v656_v40 = vadd.f32 %v649_v13, %v527_v36 }
  0xc2   : > { %v529_v53 = vadd.f32 %v528_v16, %v449_v14  ;;  %v1464_v30 = vpop.permute.xlu0 %1463 }
  0xc3   : > { %v761_v48 = vadd.f32 %v754_v15, %v656_v40  ;;  %v1474_v40 = vpop.permute.xlu1 %1473 }
  0xc8   : > { %v651_v17 = vpop.f32.mrf.mxu2  ;;  %v909_v18 = vpop.f32.mrf.mxu0 }
  0xc9   : > { %v756_v21 = vpop.f32.mrf.mxu3  ;;  %v1033_v22 = vpop.f32.mrf.mxu1  ;;  %v919_v45 = vadd.f32 %v909_v18, %v759_v39  ;;  %v657_v59 = vadd.f32 %v651_v17, %v529_v53  ;;  %v2173_v18 = vld [vmem:[%s2685_s3] ss:$0 sm:$0xff] }
  0xcb   : > { %v1043_v54 = vadd.f32 %v1033_v22, %v919_v45  ;;  %v762_v4 = vadd.f32 %v756_v21, %v657_v59 }
  0xd0   : > { %v1138_v23 = vpop.f32.mrf.mxu2  ;;  %v911_v24 = vpop.f32.mrf.mxu0 }
  0xd1   : > { %v1298_v19 = vpop.f32.mrf.mxu3  ;;  %v1035_v32 = vpop.f32.mrf.mxu1  ;;  %v920_v58 = vadd.f32 %v911_v24, %v760_v51  ;;  %v1148_v60 = vadd.f32 %v1138_v23, %v1043_v54  ;;  %v1505_v51 = vld [vmem:[%s2688_s6] sm:$0x1] }
  0xd3   : > { %v1044_v34 = vadd.f32 %v1035_v32, %v920_v58  ;;  %v1308_v5 = vadd.f32 %v1298_v19, %v1148_v60 }
  0xd8   : > { %v1140_v29 = vpop.f32.mrf.mxu2  ;;  %v914_v31 = vpop.f32.mrf.mxu0 }
  0xd9   : > { %v1300_v43 = vpop.f32.mrf.mxu3  ;;  %v1038_v52 = vpop.f32.mrf.mxu1  ;;  %v921_v55 = vadd.f32 %v914_v31, %v761_v48  ;;  %v1149_v8 = vadd.f32 %v1140_v29, %v1044_v34 }
  0xdb   : > { %v1045_v0 = vadd.f32 %v1038_v52, %v921_v55  ;;  %v1309_v14 = vadd.f32 %v1300_v43, %v1149_v8 }
  0xe0   : > { %v1143_v44 = vpop.f32.mrf.mxu2  ;;  %v916_v50 = vpop.f32.mrf.mxu0 }
  0xe1   : > { %v1303_v2 = vpop.f32.mrf.mxu3  ;;  %v1150_v6 = vadd.f32 %v1143_v44, %v1045_v0  ;;  %v922_v9 = vadd.f32 %v916_v50, %v762_v4  ;;  %v1040_v47 = vpop.f32.mrf.mxu1 }
  0xe3   : > { %v1310_v13 = vadd.f32 %v1303_v2, %v1150_v6  ;;  %v1046_v16 = vadd.f32 %v1040_v47, %v922_v9 }
  0xe8   : > { %v1145_v62 = vpop.f32.mrf.mxu2  ;;  %v1422_v1 = vpop.f32.mrf.mxu0 }
  0xe9   : > { %v1432_v11 = vadd.f32 %v1422_v1, %v1308_v5  ;;  %v1151_v23 = vadd.f32 %v1145_v62, %v1046_v16  ;;  %v1305_v24 = vpop.f32.mrf.mxu3 }
  0xeb   : > { %v1440_v17 = vmul.f32 %v2172_v12, %v1432_v11  ;;  %v1311_v29 = vadd.f32 %v1305_v24, %v1151_v23 }
  0xed   : > { %v1448_v3 = vadd.f32 %v2173_v18, %v1440_v17 }
  0xef   : > { %v1476_v32 = vmul.f32 %v1459_v10, %v1448_v3 }
  0xf0   : > { %v1427_v15 = vpop.f32.mrf.mxu2  ;;  %v1424_v20 = vpop.f32.mrf.mxu0 }
  0xf1   : > { %v1434_v21 = vadd.f32 %v1427_v15, %v1310_v13  ;;  %v1433_v22 = vadd.f32 %v1424_v20, %v1309_v14 }
  0xf3   : > { %v1441_v63 = vmul.f32 %v2172_v12, %v1433_v22  ;;  %v1442_v19 = vmul.f32 %v2172_v12, %v1434_v21 }
  0xf5   : > { %v1449_v28 = vadd.f32 %v2173_v18, %v1441_v63  ;;  %v1450_v33 = vadd.f32 %v2173_v18, %v1442_v19 }
  0xf7   : > { %v1477_v31 = vmul.f32 %v1464_v30, %v1449_v28  ;;  %v1478_v38 = vmul.f32 %v1469_v27, %v1450_v33 }
  0xf8   : > { %v1429_v25 = vpop.f32.mrf.mxu2 }
  0xf9   : > { %v1435_v35 = vadd.f32 %v1429_v25, %v1311_v29  ;;  %v1480_v36 = vadd.f32 %v1477_v31, %v1476_v32 }
  0xfb   : > { %v1443_v37 = vmul.f32 %v2172_v12, %v1435_v35  ;;  %v1481_v42 = vadd.f32 %v1480_v36, %v1478_v38 }
  0xfd   : > { %v1451_v39 = vadd.f32 %v2173_v18, %v1443_v37 }
  0xff   : > { %v1479_v41 = vmul.f32 %v1474_v40, %v1451_v39 }
 0x101   : > { %v1482_v43 = vadd.f32 %v1481_v42, %v1479_v41 }
 0x103   : > { %v1483_v44 = vrot.slane %v1482_v43, 4 }
 0x105   : > { %v1484_v45 = vadd.f32 %v1483_v44, %v1482_v43 }
 0x107   : > { %v1485_v50 = vrot.slane %v1484_v45, 2 }
 0x109   : > { %v1486_v46 = vadd.f32 %v1485_v50, %v1484_v45 }
 0x10b   : > { %v1487_v48 = vrot.slane %v1486_v46, 1 }
 0x10d   : > { %v1488_v49 = vadd.f32 %v1487_v48, %v1486_v46 }
 0x10f   : > { %1522 = vmatmul.f32.vlgmr.msra.gmra.mxu1 %v1488_v49 }
 0x18c   : > { %v1523_v52 = vpop.f32.mrf.mxu1 }
 0x18d   : > { %v1524_v53 = vadd.f32 %v1523_v52, %v1505_v51 }
 0x18f   : > { %v1526_v54 = vperm.slane %v1524_v53, 0 }
 0x191   : > { %1527 = vst [vmem:[%s276_s17] sm:$0xff] %v1526_v54 }
 0x192 PF: > { %s17_s24 = sadd.s32 1, %s2180_s24  }
 0x193   : > { %p14_p4 = scmp.ge.s32.totalorder %s17_s24, 4  }
 0x195   :  { %16 = sbr.rel (!%p14_p4) target bundleno = 1 (0x1), region = 88 }

</bundles_post_ra>
